<compile_context>
chip_gen: v7x
topology: tpu7x:2x2x1
jax: 0.10.0
libtpu: 0.0.40
codegen_flags: <defaults>
</compile_context>

<pallas_src>
import functools
import math

import jax
import jax.numpy as jnp
from jax.experimental import pallas as pl
from jax.experimental.pallas import tpu as pltpu

_EPS = 1e-12                     # BatchNorm eps from the module
_INV_SQRT2 = 0.7071067811865476

# MXU operand dtype.  jnp.bfloat16 is the recommended setting on v6e/v7x (native
# MXU input, halves VMEM held by inputs/weights); accumulation / BN / GELU stay
# f32 either way.  Default f32 keeps the forward bit-close to the f32 module and
# inside the 2e-3 self-check tolerance (bf16 operands deviate ~1e-2 after BN).
MXU_DTYPE = jnp.float32


def _erf(x):
    # Abramowitz & Stegun 7.1.26 (max abs err ~1.5e-7): only mul/add/exp (VPU+EUP).
    a1, a2, a3, a4, a5 = (0.254829592, -0.284496736, 1.421413741,
                          -1.453152027, 1.061405429)
    p = 0.3275911
    ax = jnp.abs(x)
    t = 1.0 / (1.0 + p * ax)
    poly = ((((a5 * t + a4) * t + a3) * t + a2) * t + a1) * t
    y = 1.0 - poly * jnp.exp(-ax * ax)
    return jnp.where(x >= 0.0, y, -y)


def _gelu(x):
    # exact (erf-based) GELU, like torch.nn.GELU()
    return 0.5 * x * (1.0 + _erf(x * _INV_SQRT2))


def _bn(t, g_ref, b_ref):
    # training-mode BatchNorm2d on an (M, C) slab: per-channel batch mean and
    # biased variance over all N*H*W rows.  rsqrt -> EUP.
    mean = jnp.mean(t, axis=0, keepdims=True)
    var = jnp.mean(jnp.square(t - mean), axis=0, keepdims=True)
    return (t - mean) * jax.lax.rsqrt(var + _EPS) * g_ref[...] + b_ref[...]


def _zero_map(ndim, i):
    return (0,) * ndim


def _make_convgroup_kernel(depth, n, h, w, cin, cout, mxu_dtype):
    h2, w2 = h // 2, w // 2
    m2 = n * h2 * w2                      # rows after pooling

    def _im2col(col_srcs, h_out, w_out):
        # col_srcs: 3 (array, column_offset) pairs, one per kernel column dw=0,1,2.
        # Builds the (n*h_out*w_out, 9*C) im2col operand as a value (unit-stride
        # slices + one lane-dim concat + one layout-preserving reshape).
        taps = []
        for dh in range(3):
            for src, c0 in col_srcs:
                taps.append(src[:, dh:dh + h_out, c0:c0 + w_out, :])
        pat = jnp.concatenate(taps, axis=-1)              # (n, h_out, w_out, 9*C)
        return pat.reshape(n * h_out * w_out, -1).astype(mxu_dtype)

    def kernel(*refs):
        if depth == 3:
            (xe_ref, xo_ref, w1_ref, w2_ref, w3_ref,
             g1_ref, b1_ref, g2_ref, b2_ref, g3_ref, b3_ref,
             out_ref, pad_ref) = refs
        else:
            (xe_ref, xo_ref, w1_ref, w2_ref,
             g1_ref, b1_ref, g2_ref, b2_ref,
             out_ref, pad_ref) = refs

        xev = xe_ref[...]                 # (n, h+2, w2+1, cin) even padded columns
        xov = xo_ref[...]                 # (n, h+2, w2+1, cin) odd  padded columns
        w1s = w1_ref[...]                 # (9*cin, cout)

        # --- conv1, split by output-column parity: one im2col matmul each ------
        # even output column x=2k reads padded cols {2k, 2k+1, 2k+2} = xe[k], xo[k], xe[k+1]
        # odd  output column x=2k+1 reads            {2k+1,2k+2,2k+3} = xo[k], xe[k+1], xo[k+1]
        ye = jnp.dot(_im2col([(xev, 0), (xov, 0), (xev, 1)], h, w2), w1s,
                     preferred_element_type=jnp.float32)      # (n*h*w2, cout)
        yo = jnp.dot(_im2col([(xov, 0), (xev, 1), (xov, 1)], h, w2), w1s,
                     preferred_element_type=jnp.float32)      # (n*h*w2, cout)

        # --- 2x2 max-pool, stride 2, entirely in registers ----------------------
        mw = jnp.maximum(ye, yo)                              # pooled over width
        mw = mw.reshape(n, h2, 2, w2, cout)                   # split row pairs (layout-preserving)
        pooled = jnp.maximum(mw[:, :, 0], mw[:, :, 1]).reshape(m2, cout)

        # NOTE: cout=8 under-fills the 128-lane vregs for the BN/GELU chain and the
        # output store; this is moot for production cout >= 128 and a relayout here
        # would cost more than it saves at these shapes.
        h1 = _gelu(_bn(pooled, g1_ref, b1_ref))               # (m2, cout)

        # --- conv2 / conv3: zero the 'same'-pad halo once, reuse for both convs --
        pad_ref[...] = jnp.zeros(pad_ref.shape, pad_ref.dtype)

        def conv_same(act2d, wk_ref):
            pad_ref[:, 1:h2 + 1, 1:w2 + 1, :] = act2d.reshape(n, h2, w2, cout)
            padv = pad_ref[...]
            pat = _im2col([(padv, 0), (padv, 1), (padv, 2)], h2, w2)   # (m2, 9*cout)
            return jnp.dot(pat, wk_ref[...], preferred_element_type=jnp.float32)

        a2 = _gelu(_bn(conv_same(h1, w2_ref), g2_ref, b2_ref))
        if depth == 3:
            a3 = _bn(conv_same(a2, w3_ref), g3_ref, b3_ref)
            result = _gelu(a3 + h1)       # residual with the post-pool activation
        else:
            result = a2
        out_ref[...] = result.astype(out_ref.dtype)

    return kernel


def conv_group_forward(x_nchw, params, depth, mxu_dtype=MXU_DTYPE):
    assert depth in (2, 3)
    x = jnp.transpose(x_nchw, (0, 2, 3, 1)).astype(jnp.float32)   # NCHW -> NHWC
    n, h, w, cin = x.shape
    cout = params["w1"].shape[-1]
    assert h % 2 == 0 and w % 2 == 0
    h2, w2 = h // 2, w // 2

    # 'same' pad + even/odd column de-interleave (wrapper glue; fused by XLA).
    # Splitting by output-column parity is what lets the in-kernel 2x2 max-pool be
    # a plain elementwise max with zero strided / masked ops inside the kernel.
    xpad = jnp.pad(x, ((0, 0), (1, 1), (1, 1), (0, 0)))
    xe = xpad[:, :, 0::2, :]          # (n, h+2, w2+1, cin)
    xo = xpad[:, :, 1::2, :]          # (n, h+2, w2+1, cin)

    def slab(wk):                     # HWIO (3,3,ci,co) -> im2col weight slab (9*ci, co)
        return wk.reshape(-1, wk.shape[-1]).astype(mxu_dtype)

    inputs = [xe, xo, slab(params["w1"]), slab(params["w2"])]
    if depth == 3:
        inputs.append(slab(params["w3"]))
    inputs += [params["g1"].reshape(1, -1), params["b1"].reshape(1, -1),
               params["g2"].reshape(1, -1), params["b2"].reshape(1, -1)]
    if depth == 3:
        inputs += [params["g3"].reshape(1, -1), params["b3"].reshape(1, -1)]

    in_specs = [pl.BlockSpec(a.shape, functools.partial(_zero_map, a.ndim))
                for a in inputs]
    out_specs = pl.BlockSpec((n * h2 * w2, cout), functools.partial(_zero_map, 2))

    y = pl.pallas_call(
        _make_convgroup_kernel(depth, n, h, w, cin, cout, mxu_dtype),
        out_shape=jax.ShapeDtypeStruct((n * h2 * w2, cout), jnp.float32),
        grid=(1,),
        in_specs=in_specs,
        out_specs=out_specs,
        scratch_shapes=[
            pltpu.VMEM((n, h2 + 2, w2 + 2, cout), jnp.float32),  # conv2/3 pad buffer
        ],
        compiler_params=pltpu.CompilerParams(
            dimension_semantics=("arbitrary",),
            vmem_limit_bytes=32 * 1024 * 1024),
    )(*inputs)
    # TODO(synk): for non-toy shapes on v7x (64 MiB VMEM, 2 TCs), stream conv1+pool
    # over row-pair blocks and split the first stage over Cout on a parallel grid
    # axis; training-mode BN couples all N,H,W so that needs a stats+apply split.
    y = y.reshape(n, h2, w2, cout)
    return jnp.transpose(y, (0, 3, 1, 2))                          # NHWC -> NCHW


def init_params(key, cin, cout, depth):
    # Conv.reset_parameters: kaiming-uniform, then dirac_ on the first in_channels
    # output filters.  For conv2/conv3 (out == in) that makes them identity convs.
    bound = 1.0 / math.sqrt(cin * 9)
    w1 = jax.random.uniform(key, (3, 3, cin, cout), jnp.float32, -bound, bound)
    w1 = w1.at[:, :, :, :cin].set(0.0).at[1, 1, :, :cin].set(jnp.eye(cin))
    w_id = jnp.zeros((3, 3, cout, cout), jnp.float32).at[1, 1].set(jnp.eye(cout))
    params = dict(
        w1=w1, w2=w_id,
        g1=jnp.ones((cout,), jnp.float32), b1=jnp.zeros((cout,), jnp.float32),
        g2=jnp.ones((cout,), jnp.float32), b2=jnp.zeros((cout,), jnp.float32),
    )
    if depth == 3:
        params.update(w3=w_id,
                      g3=jnp.ones((cout,), jnp.float32),
                      b3=jnp.zeros((cout,), jnp.float32))
    return params


def reference_forward(x_nchw, params, depth):
    # pure-JAX reference (XLA conv / reduce_window / exact GELU), f32
    x = jnp.transpose(x_nchw, (0, 2, 3, 1)).astype(jnp.float32)

    def conv(t, wk):
        return jax.lax.conv_general_dilated(
            t, wk, window_strides=(1, 1), padding="SAME",
            dimension_numbers=("NHWC", "HWIO", "NHWC"))

    def bn(t, g, b):
        m = jnp.mean(t, axis=(0, 1, 2))
        v = jnp.mean((t - m) ** 2, axis=(0, 1, 2))
        return (t - m) / jnp.sqrt(v + _EPS) * g + b

    gelu = lambda t: jax.nn.gelu(t, approximate=False)

    y = conv(x, params["w1"])
    y = jax.lax.reduce_window(y, -jnp.inf, jax.lax.max,
                              (1, 2, 2, 1), (1, 2, 2, 1), "VALID")
    y = gelu(bn(y, params["g1"], params["b1"]))
    x0 = y
    y = gelu(bn(conv(y, params["w2"]), params["g2"], params["b2"]))
    if depth == 3:
        y = bn(conv(y, params["w3"]), params["g3"], params["b3"])
        y = gelu(y + x0)
    return jnp.transpose(y, (0, 3, 1, 2))


if __name__ == "__main__":
    key = jax.random.PRNGKey(0)
    kx, kw = jax.random.split(key)
    N, CIN, COUT, H, W = 2, 4, 8, 16, 16

    x = jax.random.normal(kx, (N, CIN, H, W), jnp.float32)
    tol = 2e-3 if MXU_DTYPE == jnp.float32 else 7.5e-2

    for depth in (3, 2):
        params = init_params(kw, CIN, COUT, depth)
        out = jax.block_until_ready(conv_group_forward(x, params, depth))
        assert out.shape == (N, COUT, H // 2, W // 2), out.shape
        ref = reference_forward(x, params, depth)
        max_err = float(jnp.max(jnp.abs(out - ref)))
        assert max_err < tol, f"depth={depth}: mismatch vs reference: {max_err}"

    print("KERNEL_OK")
</pallas_src>

<mosaic_0001>
module attributes {stable_mosaic.version = 11 : i64} {
  func.func @kernel(%arg0: i32, %arg1: memref<2x18x9x4xf32, #tpu.memory_space<vmem>>, %arg2: memref<2x18x9x4xf32, #tpu.memory_space<vmem>>, %arg3: memref<36x8xf32, #tpu.memory_space<vmem>>, %arg4: memref<72x8xf32, #tpu.memory_space<vmem>>, %arg5: memref<72x8xf32, #tpu.memory_space<vmem>>, %arg6: memref<1x8xf32, #tpu.memory_space<vmem>>, %arg7: memref<1x8xf32, #tpu.memory_space<vmem>>, %arg8: memref<1x8xf32, #tpu.memory_space<vmem>>, %arg9: memref<1x8xf32, #tpu.memory_space<vmem>>, %arg10: memref<1x8xf32, #tpu.memory_space<vmem>>, %arg11: memref<1x8xf32, #tpu.memory_space<vmem>>, %arg12: memref<128x8xf32, #tpu.memory_space<vmem>>, %arg13: memref<2x10x10x8xf32, #tpu.memory_space<vmem>>) attributes {dimension_semantics = [#tpu.dimension_semantics<arbitrary>], iteration_bounds = array<i64: 1>, scalar_prefetch = 0 : i64, scratch_operands = 1 : i64, tpu.core_type = #tpu.core_type<tc>, window_params = [{pipeline_mode = #tpu.pipeline_mode<synchronous>, transform_indices = @transform_0, window_bounds = array<i64: 2, 18, 9, 4>}, {pipeline_mode = #tpu.pipeline_mode<synchronous>, transform_indices = @transform_1, window_bounds = array<i64: 2, 18, 9, 4>}, {pipeline_mode = #tpu.pipeline_mode<synchronous>, transform_indices = @transform_2, window_bounds = array<i64: 36, 8>}, {pipeline_mode = #tpu.pipeline_mode<synchronous>, transform_indices = @transform_3, window_bounds = array<i64: 72, 8>}, {pipeline_mode = #tpu.pipeline_mode<synchronous>, transform_indices = @transform_4, window_bounds = array<i64: 72, 8>}, {pipeline_mode = #tpu.pipeline_mode<synchronous>, transform_indices = @transform_5, window_bounds = array<i64: 1, 8>}, {pipeline_mode = #tpu.pipeline_mode<synchronous>, transform_indices = @transform_6, window_bounds = array<i64: 1, 8>}, {pipeline_mode = #tpu.pipeline_mode<synchronous>, transform_indices = @transform_7, window_bounds = array<i64: 1, 8>}, {pipeline_mode = #tpu.pipeline_mode<synchronous>, transform_indices = @transform_8, window_bounds = array<i64: 1, 8>}, {pipeline_mode = #tpu.pipeline_mode<synchronous>, transform_indices = @transform_9, window_bounds = array<i64: 1, 8>}, {pipeline_mode = #tpu.pipeline_mode<synchronous>, transform_indices = @transform_10, window_bounds = array<i64: 1, 8>}, {pipeline_mode = #tpu.pipeline_mode<synchronous>, transform_indices = @transform_11, window_bounds = array<i64: 128, 8>}]} {
    %c0 = arith.constant 0 : index
    %c0_0 = arith.constant 0 : index
    %c0_1 = arith.constant 0 : index
    %c0_2 = arith.constant 0 : index
    %0 = vector.load %arg1[%c0, %c0_0, %c0_1, %c0_2] : memref<2x18x9x4xf32, #tpu.memory_space<vmem>>, vector<2x18x9x4xf32>
    %c0_3 = arith.constant 0 : index
    %c0_4 = arith.constant 0 : index
    %c0_5 = arith.constant 0 : index
    %c0_6 = arith.constant 0 : index
    %1 = vector.load %arg2[%c0_3, %c0_4, %c0_5, %c0_6] : memref<2x18x9x4xf32, #tpu.memory_space<vmem>>, vector<2x18x9x4xf32>
    %c0_7 = arith.constant 0 : index
    %c0_8 = arith.constant 0 : index
    %2 = vector.load %arg3[%c0_7, %c0_8] : memref<36x8xf32, #tpu.memory_space<vmem>>, vector<36x8xf32>
    %3 = vector.extract_strided_slice %0 {offsets = [0, 0, 0, 0], sizes = [2, 16, 8, 4], strides = [1, 1, 1, 1]} : vector<2x18x9x4xf32> to vector<2x16x8x4xf32>
    %4 = vector.extract_strided_slice %1 {offsets = [0, 0, 0, 0], sizes = [2, 16, 8, 4], strides = [1, 1, 1, 1]} : vector<2x18x9x4xf32> to vector<2x16x8x4xf32>
    %5 = vector.extract_strided_slice %0 {offsets = [0, 0, 1, 0], sizes = [2, 16, 8, 4], strides = [1, 1, 1, 1]} : vector<2x18x9x4xf32> to vector<2x16x8x4xf32>
    %6 = vector.extract_strided_slice %0 {offsets = [0, 1, 0, 0], sizes = [2, 16, 8, 4], strides = [1, 1, 1, 1]} : vector<2x18x9x4xf32> to vector<2x16x8x4xf32>
    %7 = vector.extract_strided_slice %1 {offsets = [0, 1, 0, 0], sizes = [2, 16, 8, 4], strides = [1, 1, 1, 1]} : vector<2x18x9x4xf32> to vector<2x16x8x4xf32>
    %8 = vector.extract_strided_slice %0 {offsets = [0, 1, 1, 0], sizes = [2, 16, 8, 4], strides = [1, 1, 1, 1]} : vector<2x18x9x4xf32> to vector<2x16x8x4xf32>
    %9 = vector.extract_strided_slice %0 {offsets = [0, 2, 0, 0], sizes = [2, 16, 8, 4], strides = [1, 1, 1, 1]} : vector<2x18x9x4xf32> to vector<2x16x8x4xf32>
    %10 = vector.extract_strided_slice %1 {offsets = [0, 2, 0, 0], sizes = [2, 16, 8, 4], strides = [1, 1, 1, 1]} : vector<2x18x9x4xf32> to vector<2x16x8x4xf32>
    %11 = vector.extract_strided_slice %0 {offsets = [0, 2, 1, 0], sizes = [2, 16, 8, 4], strides = [1, 1, 1, 1]} : vector<2x18x9x4xf32> to vector<2x16x8x4xf32>
    %12 = tpu.concatenate %3, %4, %5, %6, %7, %8, %9, %10, %11 in 3 : vector<2x16x8x4xf32>, vector<2x16x8x4xf32>, vector<2x16x8x4xf32>, vector<2x16x8x4xf32>, vector<2x16x8x4xf32>, vector<2x16x8x4xf32>, vector<2x16x8x4xf32>, vector<2x16x8x4xf32>, vector<2x16x8x4xf32> -> vector<2x16x8x36xf32>
    %13 = vector.shape_cast %12 : vector<2x16x8x36xf32> to vector<256x36xf32>
    %cst = arith.constant dense<0.000000e+00> : vector<256x8xf32>
    %14 = tpu.matmul %13, %2, %cst {dimension_numbers = #tpu.dot_dimension_numbers<[1], [0], [0], [1], [0, 0, 1, 1], [], []>} : vector<256x36xf32>, vector<36x8xf32>, vector<256x8xf32> -> vector<256x8xf32>
    %15 = vector.extract_strided_slice %1 {offsets = [0, 0, 0, 0], sizes = [2, 16, 8, 4], strides = [1, 1, 1, 1]} : vector<2x18x9x4xf32> to vector<2x16x8x4xf32>
    %16 = vector.extract_strided_slice %0 {offsets = [0, 0, 1, 0], sizes = [2, 16, 8, 4], strides = [1, 1, 1, 1]} : vector<2x18x9x4xf32> to vector<2x16x8x4xf32>
    %17 = vector.extract_strided_slice %1 {offsets = [0, 0, 1, 0], sizes = [2, 16, 8, 4], strides = [1, 1, 1, 1]} : vector<2x18x9x4xf32> to vector<2x16x8x4xf32>
    %18 = vector.extract_strided_slice %1 {offsets = [0, 1, 0, 0], sizes = [2, 16, 8, 4], strides = [1, 1, 1, 1]} : vector<2x18x9x4xf32> to vector<2x16x8x4xf32>
    %19 = vector.extract_strided_slice %0 {offsets = [0, 1, 1, 0], sizes = [2, 16, 8, 4], strides = [1, 1, 1, 1]} : vector<2x18x9x4xf32> to vector<2x16x8x4xf32>
    %20 = vector.extract_strided_slice %1 {offsets = [0, 1, 1, 0], sizes = [2, 16, 8, 4], strides = [1, 1, 1, 1]} : vector<2x18x9x4xf32> to vector<2x16x8x4xf32>
    %21 = vector.extract_strided_slice %1 {offsets = [0, 2, 0, 0], sizes = [2, 16, 8, 4], strides = [1, 1, 1, 1]} : vector<2x18x9x4xf32> to vector<2x16x8x4xf32>
    %22 = vector.extract_strided_slice %0 {offsets = [0, 2, 1, 0], sizes = [2, 16, 8, 4], strides = [1, 1, 1, 1]} : vector<2x18x9x4xf32> to vector<2x16x8x4xf32>
    %23 = vector.extract_strided_slice %1 {offsets = [0, 2, 1, 0], sizes = [2, 16, 8, 4], strides = [1, 1, 1, 1]} : vector<2x18x9x4xf32> to vector<2x16x8x4xf32>
    %24 = tpu.concatenate %15, %16, %17, %18, %19, %20, %21, %22, %23 in 3 : vector<2x16x8x4xf32>, vector<2x16x8x4xf32>, vector<2x16x8x4xf32>, vector<2x16x8x4xf32>, vector<2x16x8x4xf32>, vector<2x16x8x4xf32>, vector<2x16x8x4xf32>, vector<2x16x8x4xf32>, vector<2x16x8x4xf32> -> vector<2x16x8x36xf32>
    %25 = vector.shape_cast %24 : vector<2x16x8x36xf32> to vector<256x36xf32>
    %cst_9 = arith.constant dense<0.000000e+00> : vector<256x8xf32>
    %26 = tpu.matmul %25, %2, %cst_9 {dimension_numbers = #tpu.dot_dimension_numbers<[1], [0], [0], [1], [0, 0, 1, 1], [], []>} : vector<256x36xf32>, vector<36x8xf32>, vector<256x8xf32> -> vector<256x8xf32>
    %27 = arith.maximumf %14, %26 : vector<256x8xf32>
    %28 = vector.shape_cast %27 : vector<256x8xf32> to vector<2x8x2x8x8xf32>
    %29 = vector.extract_strided_slice %28 {offsets = [0, 0, 0, 0, 0], sizes = [2, 8, 1, 8, 8], strides = [1, 1, 1, 1, 1]} : vector<2x8x2x8x8xf32> to vector<2x8x1x8x8xf32>
    %30 = vector.shape_cast %29 : vector<2x8x1x8x8xf32> to vector<2x8x8x8xf32>
    %31 = vector.extract_strided_slice %28 {offsets = [0, 0, 1, 0, 0], sizes = [2, 8, 1, 8, 8], strides = [1, 1, 1, 1, 1]} : vector<2x8x2x8x8xf32> to vector<2x8x1x8x8xf32>
    %32 = vector.shape_cast %31 : vector<2x8x1x8x8xf32> to vector<2x8x8x8xf32>
    %33 = arith.maximumf %30, %32 : vector<2x8x8x8xf32>
    %34 = vector.shape_cast %33 : vector<2x8x8x8xf32> to vector<128x8xf32>
    %cst_10 = arith.constant dense<0.000000e+00> : vector<8xf32>
    %35 = vector.multi_reduction <add>, %34, %cst_10 [0] : vector<128x8xf32> to vector<8xf32>
    %36 = vector.shape_cast %35 : vector<8xf32> to vector<1x8xf32>
    %cst_11 = arith.constant 1.280000e+02 : f32
    %37 = vector.broadcast %cst_11 : f32 to vector<1x8xf32>
    %38 = arith.divf %36, %37 : vector<1x8xf32>
    %39 = vector.broadcast %38 : vector<1x8xf32> to vector<128x8xf32>
    %40 = arith.subf %34, %39 : vector<128x8xf32>
    %41 = arith.mulf %40, %40 : vector<128x8xf32>
    %cst_12 = arith.constant dense<0.000000e+00> : vector<8xf32>
    %42 = vector.multi_reduction <add>, %41, %cst_12 [0] : vector<128x8xf32> to vector<8xf32>
    %43 = vector.shape_cast %42 : vector<8xf32> to vector<1x8xf32>
    %cst_13 = arith.constant 1.280000e+02 : f32
    %44 = vector.broadcast %cst_13 : f32 to vector<1x8xf32>
    %45 = arith.divf %43, %44 : vector<1x8xf32>
    %46 = vector.broadcast %38 : vector<1x8xf32> to vector<128x8xf32>
    %47 = arith.subf %34, %46 : vector<128x8xf32>
    %cst_14 = arith.constant 9.99999996E-13 : f32
    %48 = vector.broadcast %cst_14 : f32 to vector<1x8xf32>
    %49 = arith.addf %45, %48 : vector<1x8xf32>
    %50 = math.rsqrt %49 : vector<1x8xf32>
    %51 = vector.broadcast %50 : vector<1x8xf32> to vector<128x8xf32>
    %52 = arith.mulf %47, %51 : vector<128x8xf32>
    %c0_15 = arith.constant 0 : index
    %c0_16 = arith.constant 0 : index
    %53 = vector.load %arg6[%c0_15, %c0_16] : memref<1x8xf32, #tpu.memory_space<vmem>>, vector<1x8xf32>
    %54 = vector.broadcast %53 : vector<1x8xf32> to vector<128x8xf32>
    %55 = arith.mulf %52, %54 : vector<128x8xf32>
    %c0_17 = arith.constant 0 : index
    %c0_18 = arith.constant 0 : index
    %56 = vector.load %arg7[%c0_17, %c0_18] : memref<1x8xf32, #tpu.memory_space<vmem>>, vector<1x8xf32>
    %57 = vector.broadcast %56 : vector<1x8xf32> to vector<128x8xf32>
    %58 = arith.addf %55, %57 : vector<128x8xf32>
    %cst_19 = arith.constant 5.000000e-01 : f32
    %59 = vector.broadcast %cst_19 : f32 to vector<128x8xf32>
    %60 = arith.mulf %59, %58 : vector<128x8xf32>
    %cst_20 = arith.constant 0.707106769 : f32
    %61 = vector.broadcast %cst_20 : f32 to vector<128x8xf32>
    %62 = arith.mulf %58, %61 : vector<128x8xf32>
    %63 = math.absf %62 : vector<128x8xf32>
    %cst_21 = arith.constant 0.327591091 : f32
    %64 = vector.broadcast %cst_21 : f32 to vector<128x8xf32>
    %65 = arith.mulf %64, %63 : vector<128x8xf32>
    %cst_22 = arith.constant 1.000000e+00 : f32
    %66 = vector.broadcast %cst_22 : f32 to vector<128x8xf32>
    %67 = arith.addf %66, %65 : vector<128x8xf32>
    %cst_23 = arith.constant 1.000000e+00 : f32
    %68 = vector.broadcast %cst_23 : f32 to vector<128x8xf32>
    %69 = arith.divf %68, %67 : vector<128x8xf32>
    %cst_24 = arith.constant 1.06140542 : f32
    %70 = vector.broadcast %cst_24 : f32 to vector<128x8xf32>
    %71 = arith.mulf %70, %69 : vector<128x8xf32>
    %cst_25 = arith.constant -1.45315206 : f32
    %72 = vector.broadcast %cst_25 : f32 to vector<128x8xf32>
    %73 = arith.addf %71, %72 : vector<128x8xf32>
    %74 = arith.mulf %73, %69 : vector<128x8xf32>
    %cst_26 = arith.constant 1.42141378 : f32
    %75 = vector.broadcast %cst_26 : f32 to vector<128x8xf32>
    %76 = arith.addf %74, %75 : vector<128x8xf32>
    %77 = arith.mulf %76, %69 : vector<128x8xf32>
    %cst_27 = arith.constant -0.284496725 : f32
    %78 = vector.broadcast %cst_27 : f32 to vector<128x8xf32>
    %79 = arith.addf %77, %78 : vector<128x8xf32>
    %80 = arith.mulf %79, %69 : vector<128x8xf32>
    %cst_28 = arith.constant 0.254829586 : f32
    %81 = vector.broadcast %cst_28 : f32 to vector<128x8xf32>
    %82 = arith.addf %80, %81 : vector<128x8xf32>
    %83 = arith.mulf %82, %69 : vector<128x8xf32>
    %cst_29 = arith.constant 0.000000e+00 : f32
    %84 = vector.broadcast %cst_29 : f32 to vector<128x8xf32>
    %85 = arith.subf %84, %63 : vector<128x8xf32>
    %86 = arith.mulf %85, %63 : vector<128x8xf32>
    %87 = math.exp %86 : vector<128x8xf32>
    %88 = arith.mulf %83, %87 : vector<128x8xf32>
    %cst_30 = arith.constant 1.000000e+00 : f32
    %89 = vector.broadcast %cst_30 : f32 to vector<128x8xf32>
    %90 = arith.subf %89, %88 : vector<128x8xf32>
    %cst_31 = arith.constant 0.000000e+00 : f32
    %91 = vector.broadcast %cst_31 : f32 to vector<128x8xf32>
    %92 = arith.cmpf oge, %62, %91 : vector<128x8xf32>
    %cst_32 = arith.constant 0.000000e+00 : f32
    %93 = vector.broadcast %cst_32 : f32 to vector<128x8xf32>
    %94 = arith.subf %93, %90 : vector<128x8xf32>
    %95 = arith.select %92, %90, %94 : vector<128x8xi1>, vector<128x8xf32>
    %cst_33 = arith.constant 1.000000e+00 : f32
    %96 = vector.broadcast %cst_33 : f32 to vector<128x8xf32>
    %97 = arith.addf %96, %95 : vector<128x8xf32>
    %98 = arith.mulf %60, %97 : vector<128x8xf32>
    %cst_34 = arith.constant 0.000000e+00 : f32
    %99 = vector.broadcast %cst_34 : f32 to vector<2x10x10x8xf32>
    %c0_35 = arith.constant 0 : index
    %c0_36 = arith.constant 0 : index
    %c0_37 = arith.constant 0 : index
    %c0_38 = arith.constant 0 : index
    %100 = vector.load %arg13[%c0_35, %c0_36, %c0_37, %c0_38] : memref<2x10x10x8xf32, #tpu.memory_space<vmem>>, vector<2x10x10x8xf32>
    tpu.vector_store %arg13[%c0_35, %c0_36, %c0_37, %c0_38], %99 {strides = array<i32>} : memref<2x10x10x8xf32, #tpu.memory_space<vmem>>, vector<2x10x10x8xf32>,
    %101 = vector.shape_cast %98 : vector<128x8xf32> to vector<2x8x8x8xf32>
    %c0_39 = arith.constant 0 : index
    %c1 = arith.constant 1 : index
    %c1_40 = arith.constant 1 : index
    %c0_41 = arith.constant 0 : index
    %102 = vector.load %arg13[%c0_39, %c1, %c1_40, %c0_41] : memref<2x10x10x8xf32, #tpu.memory_space<vmem>>, vector<2x8x8x8xf32>
    tpu.vector_store %arg13[%c0_39, %c1, %c1_40, %c0_41], %101 {strides = array<i32>} : memref<2x10x10x8xf32, #tpu.memory_space<vmem>>, vector<2x8x8x8xf32>,
    %c0_42 = arith.constant 0 : index
    %c0_43 = arith.constant 0 : index
    %c0_44 = arith.constant 0 : index
    %c0_45 = arith.constant 0 : index
    %103 = vector.load %arg13[%c0_42, %c0_43, %c0_44, %c0_45] : memref<2x10x10x8xf32, #tpu.memory_space<vmem>>, vector<2x10x10x8xf32>
    %104 = vector.extract_strided_slice %103 {offsets = [0, 0, 0, 0], sizes = [2, 8, 8, 8], strides = [1, 1, 1, 1]} : vector<2x10x10x8xf32> to vector<2x8x8x8xf32>
    %105 = vector.extract_strided_slice %103 {offsets = [0, 0, 1, 0], sizes = [2, 8, 8, 8], strides = [1, 1, 1, 1]} : vector<2x10x10x8xf32> to vector<2x8x8x8xf32>
    %106 = vector.extract_strided_slice %103 {offsets = [0, 0, 2, 0], sizes = [2, 8, 8, 8], strides = [1, 1, 1, 1]} : vector<2x10x10x8xf32> to vector<2x8x8x8xf32>
    %107 = vector.extract_strided_slice %103 {offsets = [0, 1, 0, 0], sizes = [2, 8, 8, 8], strides = [1, 1, 1, 1]} : vector<2x10x10x8xf32> to vector<2x8x8x8xf32>
    %108 = vector.extract_strided_slice %103 {offsets = [0, 1, 1, 0], sizes = [2, 8, 8, 8], strides = [1, 1, 1, 1]} : vector<2x10x10x8xf32> to vector<2x8x8x8xf32>
    %109 = vector.extract_strided_slice %103 {offsets = [0, 1, 2, 0], sizes = [2, 8, 8, 8], strides = [1, 1, 1, 1]} : vector<2x10x10x8xf32> to vector<2x8x8x8xf32>
    %110 = vector.extract_strided_slice %103 {offsets = [0, 2, 0, 0], sizes = [2, 8, 8, 8], strides = [1, 1, 1, 1]} : vector<2x10x10x8xf32> to vector<2x8x8x8xf32>
    %111 = vector.extract_strided_slice %103 {offsets = [0, 2, 1, 0], sizes = [2, 8, 8, 8], strides = [1, 1, 1, 1]} : vector<2x10x10x8xf32> to vector<2x8x8x8xf32>
    %112 = vector.extract_strided_slice %103 {offsets = [0, 2, 2, 0], sizes = [2, 8, 8, 8], strides = [1, 1, 1, 1]} : vector<2x10x10x8xf32> to vector<2x8x8x8xf32>
    %113 = tpu.concatenate %104, %105, %106, %107, %108, %109, %110, %111, %112 in 3 : vector<2x8x8x8xf32>, vector<2x8x8x8xf32>, vector<2x8x8x8xf32>, vector<2x8x8x8xf32>, vector<2x8x8x8xf32>, vector<2x8x8x8xf32>, vector<2x8x8x8xf32>, vector<2x8x8x8xf32>, vector<2x8x8x8xf32> -> vector<2x8x8x72xf32>
    %114 = vector.shape_cast %113 : vector<2x8x8x72xf32> to vector<128x72xf32>
    %c0_46 = arith.constant 0 : index
    %c0_47 = arith.constant 0 : index
    %115 = vector.load %arg4[%c0_46, %c0_47] : memref<72x8xf32, #tpu.memory_space<vmem>>, vector<72x8xf32>
    %cst_48 = arith.constant dense<0.000000e+00> : vector<128x8xf32>
    %116 = tpu.matmul %114, %115, %cst_48 {dimension_numbers = #tpu.dot_dimension_numbers<[1], [0], [0], [1], [0, 0, 1, 1], [], []>} : vector<128x72xf32>, vector<72x8xf32>, vector<128x8xf32> -> vector<128x8xf32>
    %cst_49 = arith.constant dense<0.000000e+00> : vector<8xf32>
    %117 = vector.multi_reduction <add>, %116, %cst_49 [0] : vector<128x8xf32> to vector<8xf32>
    %118 = vector.shape_cast %117 : vector<8xf32> to vector<1x8xf32>
    %cst_50 = arith.constant 1.280000e+02 : f32
    %119 = vector.broadcast %cst_50 : f32 to vector<1x8xf32>
    %120 = arith.divf %118, %119 : vector<1x8xf32>
    %121 = vector.broadcast %120 : vector<1x8xf32> to vector<128x8xf32>
    %122 = arith.subf %116, %121 : vector<128x8xf32>
    %123 = arith.mulf %122, %122 : vector<128x8xf32>
    %cst_51 = arith.constant dense<0.000000e+00> : vector<8xf32>
    %124 = vector.multi_reduction <add>, %123, %cst_51 [0] : vector<128x8xf32> to vector<8xf32>
    %125 = vector.shape_cast %124 : vector<8xf32> to vector<1x8xf32>
    %cst_52 = arith.constant 1.280000e+02 : f32
    %126 = vector.broadcast %cst_52 : f32 to vector<1x8xf32>
    %127 = arith.divf %125, %126 : vector<1x8xf32>
    %128 = vector.broadcast %120 : vector<1x8xf32> to vector<128x8xf32>
    %129 = arith.subf %116, %128 : vector<128x8xf32>
    %cst_53 = arith.constant 9.99999996E-13 : f32
    %130 = vector.broadcast %cst_53 : f32 to vector<1x8xf32>
    %131 = arith.addf %127, %130 : vector<1x8xf32>
    %132 = math.rsqrt %131 : vector<1x8xf32>
    %133 = vector.broadcast %132 : vector<1x8xf32> to vector<128x8xf32>
    %134 = arith.mulf %129, %133 : vector<128x8xf32>
    %c0_54 = arith.constant 0 : index
    %c0_55 = arith.constant 0 : index
    %135 = vector.load %arg8[%c0_54, %c0_55] : memref<1x8xf32, #tpu.memory_space<vmem>>, vector<1x8xf32>
    %136 = vector.broadcast %135 : vector<1x8xf32> to vector<128x8xf32>
    %137 = arith.mulf %134, %136 : vector<128x8xf32>
    %c0_56 = arith.constant 0 : index
    %c0_57 = arith.constant 0 : index
    %138 = vector.load %arg9[%c0_56, %c0_57] : memref<1x8xf32, #tpu.memory_space<vmem>>, vector<1x8xf32>
    %139 = vector.broadcast %138 : vector<1x8xf32> to vector<128x8xf32>
    %140 = arith.addf %137, %139 : vector<128x8xf32>
    %cst_58 = arith.constant 5.000000e-01 : f32
    %141 = vector.broadcast %cst_58 : f32 to vector<128x8xf32>
    %142 = arith.mulf %141, %140 : vector<128x8xf32>
    %cst_59 = arith.constant 0.707106769 : f32
    %143 = vector.broadcast %cst_59 : f32 to vector<128x8xf32>
    %144 = arith.mulf %140, %143 : vector<128x8xf32>
    %145 = math.absf %144 : vector<128x8xf32>
    %cst_60 = arith.constant 0.327591091 : f32
    %146 = vector.broadcast %cst_60 : f32 to vector<128x8xf32>
    %147 = arith.mulf %146, %145 : vector<128x8xf32>
    %cst_61 = arith.constant 1.000000e+00 : f32
    %148 = vector.broadcast %cst_61 : f32 to vector<128x8xf32>
    %149 = arith.addf %148, %147 : vector<128x8xf32>
    %cst_62 = arith.constant 1.000000e+00 : f32
    %150 = vector.broadcast %cst_62 : f32 to vector<128x8xf32>
    %151 = arith.divf %150, %149 : vector<128x8xf32>
    %cst_63 = arith.constant 1.06140542 : f32
    %152 = vector.broadcast %cst_63 : f32 to vector<128x8xf32>
    %153 = arith.mulf %152, %151 : vector<128x8xf32>
    %cst_64 = arith.constant -1.45315206 : f32
    %154 = vector.broadcast %cst_64 : f32 to vector<128x8xf32>
    %155 = arith.addf %153, %154 : vector<128x8xf32>
    %156 = arith.mulf %155, %151 : vector<128x8xf32>
    %cst_65 = arith.constant 1.42141378 : f32
    %157 = vector.broadcast %cst_65 : f32 to vector<128x8xf32>
    %158 = arith.addf %156, %157 : vector<128x8xf32>
    %159 = arith.mulf %158, %151 : vector<128x8xf32>
    %cst_66 = arith.constant -0.284496725 : f32
    %160 = vector.broadcast %cst_66 : f32 to vector<128x8xf32>
    %161 = arith.addf %159, %160 : vector<128x8xf32>
    %162 = arith.mulf %161, %151 : vector<128x8xf32>
    %cst_67 = arith.constant 0.254829586 : f32
    %163 = vector.broadcast %cst_67 : f32 to vector<128x8xf32>
    %164 = arith.addf %162, %163 : vector<128x8xf32>
    %165 = arith.mulf %164, %151 : vector<128x8xf32>
    %cst_68 = arith.constant 0.000000e+00 : f32
    %166 = vector.broadcast %cst_68 : f32 to vector<128x8xf32>
    %167 = arith.subf %166, %145 : vector<128x8xf32>
    %168 = arith.mulf %167, %145 : vector<128x8xf32>
    %169 = math.exp %168 : vector<128x8xf32>
    %170 = arith.mulf %165, %169 : vector<128x8xf32>
    %cst_69 = arith.constant 1.000000e+00 : f32
    %171 = vector.broadcast %cst_69 : f32 to vector<128x8xf32>
    %172 = arith.subf %171, %170 : vector<128x8xf32>
    %cst_70 = arith.constant 0.000000e+00 : f32
    %173 = vector.broadcast %cst_70 : f32 to vector<128x8xf32>
    %174 = arith.cmpf oge, %144, %173 : vector<128x8xf32>
    %cst_71 = arith.constant 0.000000e+00 : f32
    %175 = vector.broadcast %cst_71 : f32 to vector<128x8xf32>
    %176 = arith.subf %175, %172 : vector<128x8xf32>
    %177 = arith.select %174, %172, %176 : vector<128x8xi1>, vector<128x8xf32>
    %cst_72 = arith.constant 1.000000e+00 : f32
    %178 = vector.broadcast %cst_72 : f32 to vector<128x8xf32>
    %179 = arith.addf %178, %177 : vector<128x8xf32>
    %180 = arith.mulf %142, %179 : vector<128x8xf32>
    %181 = vector.shape_cast %180 : vector<128x8xf32> to vector<2x8x8x8xf32>
    %c0_73 = arith.constant 0 : index
    %c1_74 = arith.constant 1 : index
    %c1_75 = arith.constant 1 : index
    %c0_76 = arith.constant 0 : index
    %182 = vector.load %arg13[%c0_73, %c1_74, %c1_75, %c0_76] : memref<2x10x10x8xf32, #tpu.memory_space<vmem>>, vector<2x8x8x8xf32>
    tpu.vector_store %arg13[%c0_73, %c1_74, %c1_75, %c0_76], %181 {strides = array<i32>} : memref<2x10x10x8xf32, #tpu.memory_space<vmem>>, vector<2x8x8x8xf32>,
    %c0_77 = arith.constant 0 : index
    %c0_78 = arith.constant 0 : index
    %c0_79 = arith.constant 0 : index
    %c0_80 = arith.constant 0 : index
    %183 = vector.load %arg13[%c0_77, %c0_78, %c0_79, %c0_80] : memref<2x10x10x8xf32, #tpu.memory_space<vmem>>, vector<2x10x10x8xf32>
    %184 = vector.extract_strided_slice %183 {offsets = [0, 0, 0, 0], sizes = [2, 8, 8, 8], strides = [1, 1, 1, 1]} : vector<2x10x10x8xf32> to vector<2x8x8x8xf32>
    %185 = vector.extract_strided_slice %183 {offsets = [0, 0, 1, 0], sizes = [2, 8, 8, 8], strides = [1, 1, 1, 1]} : vector<2x10x10x8xf32> to vector<2x8x8x8xf32>
    %186 = vector.extract_strided_slice %183 {offsets = [0, 0, 2, 0], sizes = [2, 8, 8, 8], strides = [1, 1, 1, 1]} : vector<2x10x10x8xf32> to vector<2x8x8x8xf32>
    %187 = vector.extract_strided_slice %183 {offsets = [0, 1, 0, 0], sizes = [2, 8, 8, 8], strides = [1, 1, 1, 1]} : vector<2x10x10x8xf32> to vector<2x8x8x8xf32>
    %188 = vector.extract_strided_slice %183 {offsets = [0, 1, 1, 0], sizes = [2, 8, 8, 8], strides = [1, 1, 1, 1]} : vector<2x10x10x8xf32> to vector<2x8x8x8xf32>
    %189 = vector.extract_strided_slice %183 {offsets = [0, 1, 2, 0], sizes = [2, 8, 8, 8], strides = [1, 1, 1, 1]} : vector<2x10x10x8xf32> to vector<2x8x8x8xf32>
    %190 = vector.extract_strided_slice %183 {offsets = [0, 2, 0, 0], sizes = [2, 8, 8, 8], strides = [1, 1, 1, 1]} : vector<2x10x10x8xf32> to vector<2x8x8x8xf32>
    %191 = vector.extract_strided_slice %183 {offsets = [0, 2, 1, 0], sizes = [2, 8, 8, 8], strides = [1, 1, 1, 1]} : vector<2x10x10x8xf32> to vector<2x8x8x8xf32>
    %192 = vector.extract_strided_slice %183 {offsets = [0, 2, 2, 0], sizes = [2, 8, 8, 8], strides = [1, 1, 1, 1]} : vector<2x10x10x8xf32> to vector<2x8x8x8xf32>
    %193 = tpu.concatenate %184, %185, %186, %187, %188, %189, %190, %191, %192 in 3 : vector<2x8x8x8xf32>, vector<2x8x8x8xf32>, vector<2x8x8x8xf32>, vector<2x8x8x8xf32>, vector<2x8x8x8xf32>, vector<2x8x8x8xf32>, vector<2x8x8x8xf32>, vector<2x8x8x8xf32>, vector<2x8x8x8xf32> -> vector<2x8x8x72xf32>
    %194 = vector.shape_cast %193 : vector<2x8x8x72xf32> to vector<128x72xf32>
    %c0_81 = arith.constant 0 : index
    %c0_82 = arith.constant 0 : index
    %195 = vector.load %arg5[%c0_81, %c0_82] : memref<72x8xf32, #tpu.memory_space<vmem>>, vector<72x8xf32>
    %cst_83 = arith.constant dense<0.000000e+00> : vector<128x8xf32>
    %196 = tpu.matmul %194, %195, %cst_83 {dimension_numbers = #tpu.dot_dimension_numbers<[1], [0], [0], [1], [0, 0, 1, 1], [], []>} : vector<128x72xf32>, vector<72x8xf32>, vector<128x8xf32> -> vector<128x8xf32>
    %cst_84 = arith.constant dense<0.000000e+00> : vector<8xf32>
    %197 = vector.multi_reduction <add>, %196, %cst_84 [0] : vector<128x8xf32> to vector<8xf32>
    %198 = vector.shape_cast %197 : vector<8xf32> to vector<1x8xf32>
    %cst_85 = arith.constant 1.280000e+02 : f32
    %199 = vector.broadcast %cst_85 : f32 to vector<1x8xf32>
    %200 = arith.divf %198, %199 : vector<1x8xf32>
    %201 = vector.broadcast %200 : vector<1x8xf32> to vector<128x8xf32>
    %202 = arith.subf %196, %201 : vector<128x8xf32>
    %203 = arith.mulf %202, %202 : vector<128x8xf32>
    %cst_86 = arith.constant dense<0.000000e+00> : vector<8xf32>
    %204 = vector.multi_reduction <add>, %203, %cst_86 [0] : vector<128x8xf32> to vector<8xf32>
    %205 = vector.shape_cast %204 : vector<8xf32> to vector<1x8xf32>
    %cst_87 = arith.constant 1.280000e+02 : f32
    %206 = vector.broadcast %cst_87 : f32 to vector<1x8xf32>
    %207 = arith.divf %205, %206 : vector<1x8xf32>
    %208 = vector.broadcast %200 : vector<1x8xf32> to vector<128x8xf32>
    %209 = arith.subf %196, %208 : vector<128x8xf32>
    %cst_88 = arith.constant 9.99999996E-13 : f32
    %210 = vector.broadcast %cst_88 : f32 to vector<1x8xf32>
    %211 = arith.addf %207, %210 : vector<1x8xf32>
    %212 = math.rsqrt %211 : vector<1x8xf32>
    %213 = vector.broadcast %212 : vector<1x8xf32> to vector<128x8xf32>
    %214 = arith.mulf %209, %213 : vector<128x8xf32>
    %c0_89 = arith.constant 0 : index
    %c0_90 = arith.constant 0 : index
    %215 = vector.load %arg10[%c0_89, %c0_90] : memref<1x8xf32, #tpu.memory_space<vmem>>, vector<1x8xf32>
    %216 = vector.broadcast %215 : vector<1x8xf32> to vector<128x8xf32>
    %217 = arith.mulf %214, %216 : vector<128x8xf32>
    %c0_91 = arith.constant 0 : index
    %c0_92 = arith.constant 0 : index
    %218 = vector.load %arg11[%c0_91, %c0_92] : memref<1x8xf32, #tpu.memory_space<vmem>>, vector<1x8xf32>
    %219 = vector.broadcast %218 : vector<1x8xf32> to vector<128x8xf32>
    %220 = arith.addf %217, %219 : vector<128x8xf32>
    %221 = arith.addf %220, %98 : vector<128x8xf32>
    %cst_93 = arith.constant 5.000000e-01 : f32
    %222 = vector.broadcast %cst_93 : f32 to vector<128x8xf32>
    %223 = arith.mulf %222, %221 : vector<128x8xf32>
    %cst_94 = arith.constant 0.707106769 : f32
    %224 = vector.broadcast %cst_94 : f32 to vector<128x8xf32>
    %225 = arith.mulf %221, %224 : vector<128x8xf32>
    %226 = math.absf %225 : vector<128x8xf32>
    %cst_95 = arith.constant 0.327591091 : f32
    %227 = vector.broadcast %cst_95 : f32 to vector<128x8xf32>
    %228 = arith.mulf %227, %226 : vector<128x8xf32>
    %cst_96 = arith.constant 1.000000e+00 : f32
    %229 = vector.broadcast %cst_96 : f32 to vector<128x8xf32>
    %230 = arith.addf %229, %228 : vector<128x8xf32>
    %cst_97 = arith.constant 1.000000e+00 : f32
    %231 = vector.broadcast %cst_97 : f32 to vector<128x8xf32>
    %232 = arith.divf %231, %230 : vector<128x8xf32>
    %cst_98 = arith.constant 1.06140542 : f32
    %233 = vector.broadcast %cst_98 : f32 to vector<128x8xf32>
    %234 = arith.mulf %233, %232 : vector<128x8xf32>
    %cst_99 = arith.constant -1.45315206 : f32
    %235 = vector.broadcast %cst_99 : f32 to vector<128x8xf32>
    %236 = arith.addf %234, %235 : vector<128x8xf32>
    %237 = arith.mulf %236, %232 : vector<128x8xf32>
    %cst_100 = arith.constant 1.42141378 : f32
    %238 = vector.broadcast %cst_100 : f32 to vector<128x8xf32>
    %239 = arith.addf %237, %238 : vector<128x8xf32>
    %240 = arith.mulf %239, %232 : vector<128x8xf32>
    %cst_101 = arith.constant -0.284496725 : f32
    %241 = vector.broadcast %cst_101 : f32 to vector<128x8xf32>
    %242 = arith.addf %240, %241 : vector<128x8xf32>
    %243 = arith.mulf %242, %232 : vector<128x8xf32>
    %cst_102 = arith.constant 0.254829586 : f32
    %244 = vector.broadcast %cst_102 : f32 to vector<128x8xf32>
    %245 = arith.addf %243, %244 : vector<128x8xf32>
    %246 = arith.mulf %245, %232 : vector<128x8xf32>
    %cst_103 = arith.constant 0.000000e+00 : f32
    %247 = vector.broadcast %cst_103 : f32 to vector<128x8xf32>
    %248 = arith.subf %247, %226 : vector<128x8xf32>
    %249 = arith.mulf %248, %226 : vector<128x8xf32>
    %250 = math.exp %249 : vector<128x8xf32>
    %251 = arith.mulf %246, %250 : vector<128x8xf32>
    %cst_104 = arith.constant 1.000000e+00 : f32
    %252 = vector.broadcast %cst_104 : f32 to vector<128x8xf32>
    %253 = arith.subf %252, %251 : vector<128x8xf32>
    %cst_105 = arith.constant 0.000000e+00 : f32
    %254 = vector.broadcast %cst_105 : f32 to vector<128x8xf32>
    %255 = arith.cmpf oge, %225, %254 : vector<128x8xf32>
    %cst_106 = arith.constant 0.000000e+00 : f32
    %256 = vector.broadcast %cst_106 : f32 to vector<128x8xf32>
    %257 = arith.subf %256, %253 : vector<128x8xf32>
    %258 = arith.select %255, %253, %257 : vector<128x8xi1>, vector<128x8xf32>
    %cst_107 = arith.constant 1.000000e+00 : f32
    %259 = vector.broadcast %cst_107 : f32 to vector<128x8xf32>
    %260 = arith.addf %259, %258 : vector<128x8xf32>
    %261 = arith.mulf %223, %260 : vector<128x8xf32>
    %c0_108 = arith.constant 0 : index
    %c0_109 = arith.constant 0 : index
    %262 = vector.load %arg12[%c0_108, %c0_109] : memref<128x8xf32, #tpu.memory_space<vmem>>, vector<128x8xf32>
    tpu.vector_store %arg12[%c0_108, %c0_109], %261 {strides = array<i32>} : memref<128x8xf32, #tpu.memory_space<vmem>>, vector<128x8xf32>,
    return
  }
  func.func @transform_0(%arg0: i32) -> (i32, i32, i32, i32) {
    %c0_i32 = arith.constant 0 : i32
    %c0_i32_0 = arith.constant 0 : i32
    %c0_i32_1 = arith.constant 0 : i32
    %c0_i32_2 = arith.constant 0 : i32
    %c0_i32_3 = arith.constant 0 : i32
    return %c0_i32, %c0_i32_0, %c0_i32_1, %c0_i32_2 : i32, i32, i32, i32
  }
  func.func @transform_1(%arg0: i32) -> (i32, i32, i32, i32) {
    %c0_i32 = arith.constant 0 : i32
    %c0_i32_0 = arith.constant 0 : i32
    %c0_i32_1 = arith.constant 0 : i32
    %c0_i32_2 = arith.constant 0 : i32
    %c0_i32_3 = arith.constant 0 : i32
    return %c0_i32, %c0_i32_0, %c0_i32_1, %c0_i32_2 : i32, i32, i32, i32
  }
  func.func @transform_2(%arg0: i32) -> (i32, i32) {
    %c0_i32 = arith.constant 0 : i32
    %c0_i32_0 = arith.constant 0 : i32
    %c0_i32_1 = arith.constant 0 : i32
    return %c0_i32, %c0_i32_0 : i32, i32
  }
  func.func @transform_3(%arg0: i32) -> (i32, i32) {
    %c0_i32 = arith.constant 0 : i32
    %c0_i32_0 = arith.constant 0 : i32
    %c0_i32_1 = arith.constant 0 : i32
    return %c0_i32, %c0_i32_0 : i32, i32
  }
  func.func @transform_4(%arg0: i32) -> (i32, i32) {
    %c0_i32 = arith.constant 0 : i32
    %c0_i32_0 = arith.constant 0 : i32
    %c0_i32_1 = arith.constant 0 : i32
    return %c0_i32, %c0_i32_0 : i32, i32
  }
  func.func @transform_5(%arg0: i32) -> (i32, i32) {
    %c0_i32 = arith.constant 0 : i32
    %c0_i32_0 = arith.constant 0 : i32
    %c0_i32_1 = arith.constant 0 : i32
    return %c0_i32, %c0_i32_0 : i32, i32
  }
  func.func @transform_6(%arg0: i32) -> (i32, i32) {
    %c0_i32 = arith.constant 0 : i32
    %c0_i32_0 = arith.constant 0 : i32
    %c0_i32_1 = arith.constant 0 : i32
    return %c0_i32, %c0_i32_0 : i32, i32
  }
  func.func @transform_7(%arg0: i32) -> (i32, i32) {
    %c0_i32 = arith.constant 0 : i32
    %c0_i32_0 = arith.constant 0 : i32
    %c0_i32_1 = arith.constant 0 : i32
    return %c0_i32, %c0_i32_0 : i32, i32
  }
  func.func @transform_8(%arg0: i32) -> (i32, i32) {
    %c0_i32 = arith.constant 0 : i32
    %c0_i32_0 = arith.constant 0 : i32
    %c0_i32_1 = arith.constant 0 : i32
    return %c0_i32, %c0_i32_0 : i32, i32
  }
  func.func @transform_9(%arg0: i32) -> (i32, i32) {
    %c0_i32 = arith.constant 0 : i32
    %c0_i32_0 = arith.constant 0 : i32
    %c0_i32_1 = arith.constant 0 : i32
    return %c0_i32, %c0_i32_0 : i32, i32
  }
  func.func @transform_10(%arg0: i32) -> (i32, i32) {
    %c0_i32 = arith.constant 0 : i32
    %c0_i32_0 = arith.constant 0 : i32
    %c0_i32_1 = arith.constant 0 : i32
    return %c0_i32, %c0_i32_0 : i32, i32
  }
  func.func @transform_11(%arg0: i32) -> (i32, i32) {
    %c0_i32 = arith.constant 0 : i32
    %c0_i32_0 = arith.constant 0 : i32
    %c0_i32_1 = arith.constant 0 : i32
    return %c0_i32, %c0_i32_0 : i32, i32
  }
}

</mosaic_0001>

<bundles_post_ra>
// kernel: tpu_custom_call.1
= control target key start
LH: loop header
LB: loop body
LE: loop exit
PB: predicated region body
PF: predicated region fallthrough
CT: control target
= control target key end

     0   :  { %s7807_s21 = smov 4   ;;  %vm379_vm0 = vcmask 1046528   ;;  %s7808_s15 = smov 8   ;;  %vm1533_vm1 = vcmask 1043456   ;;  %vm1172_vm2 = vcmask 31744   ;;  %vm1205_vm3 = vcmask 64512   ;;  %s14491_s1 = inlined_call_operand.vmem [shape: f32[2,18,9,4], index: 1, kind: input, shape index: {}]   ;;  %s14492_s0 = inlined_call_operand.vmem [shape: f32[2,18,9,4], index: 0, kind: input, shape index: {}]   ;;  %s14493_s2 = inlined_call_operand.vmem [shape: f32[36,8], index: 2, kind: input, shape index: {}]   ;;  %s14494_s5 = inlined_call_operand.vmem [shape: f32[1,8], index: 5, kind: input, shape index: {}]   ;;  %s14495_s6 = inlined_call_operand.vmem [shape: f32[1,8], index: 6, kind: input, shape index: {}]   ;;  %s14496_s3 = inlined_call_operand.vmem [shape: f32[72,8], index: 3, kind: input, shape index: {}]   ;;  %s14497_s7 = inlined_call_operand.vmem [shape: f32[1,8], index: 7, kind: input, shape index: {}]   ;;  %s14498_s8 = inlined_call_operand.vmem [shape: f32[1,8], index: 8, kind: input, shape index: {}]   ;;  %s14499_s4 = inlined_call_operand.vmem [shape: f32[72,8], index: 4, kind: input, shape index: {}]   ;;  %s14500_s9 = inlined_call_operand.vmem [shape: f32[1,8], index: 9, kind: input, shape index: {}]   ;;  %s14501_s10 = inlined_call_operand.vmem [shape: f32[1,8], index: 10, kind: input, shape index: {}]   ;;  %s14502_s11 = inlined_call_operand.vmem [shape: f32[128,8], index: 11, kind: output, shape index: {}]  }
   0x1   :  { %v7883_v0 = vld [vmem:[%s14491_s1 + $0x20] sm:$0xff]  ;;  %v7897_v2 = vld [vmem:[%s14491_s1 + $0x30] sm:$0xff]  ;;  %v41_v31 = vld [vmem:[%s14492_s0 + $0x18] sm:$0x1]  ;;  %s7809_s18 = smov 12   ;;  %s7810_s24 = smov 16  }
   0x2   :  { %v7888_v1 = vld [vmem:[%s14491_s1] sm:$0xff]  ;;  %223 = vrot.lane.b32.xlu1 %v7883_v0, %s7807_s21  ;;  %v7902_v3 = vld [vmem:[%s14491_s1 + $0x10] sm:$0xff]  ;;  %v39_v33 = vld [vmem:[%s14492_s0 + $0x8] sm:$0x1]  ;;  %v384_v37 = vrot.slane %v41_v31, 1  ;;  %s7811_s25 = smov 20  }
   0x3   :  { %219 = vrot.lane.b32.xlu0 %v7888_v1, %s7807_s21  ;;  %v7911_v4 = vld [vmem:[%s14491_s1 + $0x50] sm:$0xff]  ;;  %v7916_v5 = vld [vmem:[%s14491_s1 + $0x40] sm:$0xff]  ;;  %v381_v39 = vrot.slane %v39_v33, 1  ;;  %v45_v41 = vld [vmem:[%s14492_s0 + $0x38] sm:$0x1]  ;;  %s7812_s28 = smov 24  }
   0x4   :  { %v7925_v6 = vld [vmem:[%s14491_s1 + $0x70] sm:$0xff]  ;;  %v7930_v7 = vld [vmem:[%s14491_s1 + $0x60] sm:$0xff]  ;;  %v43_v43 = vld [vmem:[%s14492_s0 + $0x28] sm:$0x1]  ;;  %v390_v45 = vrot.slane %v45_v41, 1  ;;  %s7813_s12 = smov 28  }
   0x5   :  { %v128_v8 = vld [vmem:[%s14491_s1 + $0x90] sm:$0xff]  ;;  %v7942_v9 = vld [vmem:[%s14491_s1 + $0x80] sm:$0xff]  ;;  %v387_v49 = vrot.slane %v43_v43, 1  ;;  %v49_v51 = vld [vmem:[%s14492_s0 + $0x58] sm:$0x1]  ;;  %s7814_s26 = smov 32  }
   0x6   :  { %225 = vrot.lane.b32.xlu1 %v7897_v2, %s7807_s21  ;;  %v132_v10 = vld [vmem:[%s14491_s1 + $0xb0] sm:$0xff]  ;;  %v130_v11 = vld [vmem:[%s14491_s1 + $0xa0] sm:$0xff]  ;;  %v47_v53 = vld [vmem:[%s14492_s0 + $0x48] sm:$0x1]  ;;  %v396_v55 = vrot.slane %v49_v51, 1  ;;  %vm1238_vm4 = vcmask 97280  }
   0x7   :  { %221 = vrot.lane.b32.xlu0 %v7902_v3, %s7807_s21  ;;  %v136_v12 = vld [vmem:[%s14491_s1 + $0xd0] sm:$0xff]  ;;  %v134_v13 = vld [vmem:[%s14491_s1 + $0xc0] sm:$0xff]  ;;  %v393_v59 = vrot.slane %v47_v53, 1  ;;  %v53_v61 = vld [vmem:[%s14492_s0 + $0x78] sm:$0x1]  ;;  %vm1271_vm5 = vcmask 130048  }
   0x8   :  { %v140_v14 = vld [vmem:[%s14491_s1 + $0xf0] sm:$0xff]  ;;  %v138_v15 = vld [vmem:[%s14491_s1 + $0xe0] sm:$0xff]  ;;  %v51_v63 = vld [vmem:[%s14492_s0 + $0x68] sm:$0x1]  ;;  %vm1304_vm6 = vcmask 162816   ;;  %vm14612_vm7 = vcmask 195584  }
   0x9   :  { %v148_v16 = vld [vmem:[%s14491_s1 + $0x130] sm:$0xff]  ;;  %v146_v17 = vld [vmem:[%s14491_s1 + $0x120] sm:$0xff]  ;;  %v63_v41 = vld [vmem:[%s14492_s0 + $0xc8] sm:$0x1]  ;;  %vm1370_vm8 = vcmask 228352   ;;  %vm14611_vm9 = vcmask 261120  }
   0xa   :  { %229 = vrot.lane.b32.xlu1 %v7911_v4, %s7807_s21  ;;  %v152_v18 = vld [vmem:[%s14491_s1 + $0x150] sm:$0xff]  ;;  %v150_v19 = vld [vmem:[%s14491_s1 + $0x140] sm:$0xff]  ;;  %v417_v51 = vrot.slane %v63_v41, 1  ;;  %vm1436_vm10 = vcmask 293888   ;;  %vm3905_vm11 = vcmask 58368   ;;  %vm4130_vm12 = vcmask 1045504  }
   0xb   :  { %227 = vrot.lane.b32.xlu0 %v7916_v5, %s7807_s21  ;;  %v156_v20 = vld [vmem:[%s14491_s1 + $0x170] sm:$0xff]  ;;  %v154_v21 = vld [vmem:[%s14491_s1 + $0x160] sm:$0xff]  ;;  %s7817_s22 = smov 48   ;;  %s7818_s13 = smov 56  }
   0xc   :  { %v160_v22 = vld [vmem:[%s14491_s1 + $0x190] sm:$0xff]  ;;  %v158_v23 = vld [vmem:[%s14491_s1 + $0x180] sm:$0xff]  ;;  %s7819_s17 = smov 64  }
   0xd   :  { %v164_v24 = vld [vmem:[%s14491_s1 + $0x1b0] sm:$0xff]  ;;  %v162_v25 = vld [vmem:[%s14491_s1 + $0x1a0] sm:$0xff] }
   0xe   :  { %233 = vrot.lane.b32.xlu1 %v7925_v6, %s7807_s21  ;;  %v168_v26 = vld [vmem:[%s14491_s1 + $0x1d0] sm:$0xff]  ;;  %v166_v27 = vld [vmem:[%s14491_s1 + $0x1c0] sm:$0xff] }
   0xf   :  { %231 = vrot.lane.b32.xlu0 %v7930_v7, %s7807_s21  ;;  %v172_v28 = vld [vmem:[%s14491_s1 + $0x1f0] sm:$0xff]  ;;  %v170_v29 = vld [vmem:[%s14491_s1 + $0x1e0] sm:$0xff] }
  0x10   :  { %v8028_v30 = vld [vmem:[%s14492_s0 + $0x10] sm:$0xff]  ;;  %v8036_v32 = vld [vmem:[%s14492_s0] sm:$0xff] }
  0x11   :  { %v176_v34 = vld [vmem:[%s14491_s1 + $0x210] sm:$0xff]  ;;  %v174_v35 = vld [vmem:[%s14491_s1 + $0x200] sm:$0xff]  ;;  %v383_v36 = vrot.slane %v8028_v30, 1  ;;  %v380_v38 = vrot.slane %v8036_v32, 1 }
  0x12   :  { %237 = vrot.lane.b32.xlu1 %v128_v8, %s7807_s21  ;;  %v8054_v40 = vld [vmem:[%s14492_s0 + $0x30] sm:$0xff]  ;;  %v8062_v42 = vld [vmem:[%s14492_s0 + $0x20] sm:$0xff] }
  0x13   :  { %235 = vrot.lane.b32.xlu0 %v7942_v9, %s7807_s21  ;;  %v389_v44 = vrot.slane %v8054_v40, 1  ;;  %v8071_v46 = vsel %vm379_vm0, %v383_v36, %v384_v37  ;;  %v8074_v47 = vsel %vm379_vm0, %v380_v38, %v381_v39  ;;  %v386_v48 = vrot.slane %v8062_v42, 1  ;;  %v8080_v50 = vld [vmem:[%s14492_s0 + $0x50] sm:$0xff]  ;;  %v8088_v52 = vld [vmem:[%s14492_s0 + $0x40] sm:$0xff]  ;;  %v65_v38 = vld [vmem:[%s14492_s0 + $0xd8] sm:$0x1] }
  0x14   :  { %v395_v54 = vrot.slane %v8080_v50, 1  ;;  %v392_v58 = vrot.slane %v8088_v52, 1  ;;  %v8108_v60 = vld [vmem:[%s14492_s0 + $0x70] sm:$0xff]  ;;  %v8116_v62 = vld [vmem:[%s14492_s0 + $0x60] sm:$0xff] }
  0x15   :  { %v8099_v56 = vsel %vm379_vm0, %v389_v44, %v390_v45  ;;  %v8102_v57 = vsel %vm379_vm0, %v386_v48, %v387_v49  ;;  %v64_v37 = vld [vmem:[%s14492_s0 + $0xd0] sm:$0xff]  ;;  %v8198_v39 = vld [vmem:[%s14492_s0 + $0xc0] sm:$0xff]  ;;  %v420_v48 = vrot.slane %v65_v38, 1 }
  0x16   :  { %241 = vrot.lane.b32.xlu1 %v132_v10, %s7807_s21  ;;  %v8126_v8 = vsel %vm379_vm0, %v395_v54, %v396_v55  ;;  %v401_v10 = vrot.slane %v8108_v60, 1  ;;  %v419_v44 = vrot.slane %v64_v37, 1  ;;  %v416_v49 = vrot.slane %v8198_v39, 1  ;;  %v68_v53 = vld [vmem:[%s14492_s0 + $0xf0] sm:$0xff]  ;;  %v69_v54 = vld [vmem:[%s14492_s0 + $0xf8] sm:$0x1] }
  0x17   :  { %239 = vrot.lane.b32.xlu0 %v130_v11, %s7807_s21  ;;  %v8130_v11 = vsel %vm379_vm0, %v392_v58, %v393_v59  ;;  %v66_v55 = vld [vmem:[%s14492_s0 + $0xe0] sm:$0xff]  ;;  %v67_v58 = vld [vmem:[%s14492_s0 + $0xe8] sm:$0x1]  ;;  %v425_v59 = vrot.slane %v68_v53, 1  ;;  %v84_v53 = vld [vmem:[%s14492_s0 + $0x170] sm:$0xff] }
  0x18   :  { %v79_v37 = vld [vmem:[%s14492_s0 + $0x148] sm:$0x1] }
  0x1a   :  { %245 = vrot.lane.b32.xlu1 %v136_v12, %s7807_s21  ;;  %v402_v12 = vrot.slane %v53_v61, 1  ;;  %v426_v61 = vrot.slane %v69_v54, 1  ;;  %v85_v54 = vld [vmem:[%s14492_s0 + $0x178] sm:$0x1] }
  0x1b   :  { %243 = vrot.lane.b32.xlu0 %v134_v13, %s7807_s21  ;;  %v398_v13 = vrot.slane %v8116_v62, 1 }
  0x1e   :  { %249 = vrot.lane.b32.xlu1 %v140_v14, %s7807_s21  ;;  %v399_v14 = vrot.slane %v51_v63, 1  ;;  %v8231_v63 = vsel %vm379_vm0, %v419_v44, %v420_v48 }
  0x1f   :  { %247 = vrot.lane.b32.xlu0 %v138_v15, %s7807_s21  ;;  %v8136_v15 = vld [vmem:[%s14492_s0 + $0x90] sm:$0xff] }
  0x22   :  { %253 = vrot.lane.b32.xlu1 %v148_v16, %s7807_s21  ;;  %v57_v16 = vld [vmem:[%s14492_s0 + $0x98] sm:$0x1] }
  0x23   :  { %251 = vrot.lane.b32.xlu0 %v146_v17, %s7807_s21  ;;  %v8144_v17 = vld [vmem:[%s14492_s0 + $0x80] sm:$0xff] }
  0x26   :  { %257 = vrot.lane.b32.xlu1 %v152_v18, %s7807_s21  ;;  %v55_v18 = vld [vmem:[%s14492_s0 + $0x88] sm:$0x1] }
  0x27   :  { %255 = vrot.lane.b32.xlu0 %v150_v19, %s7807_s21  ;;  %v407_v19 = vrot.slane %v8136_v15, 1 }
  0x2a   :  { %261 = vrot.lane.b32.xlu1 %v156_v20, %s7807_s21  ;;  %v408_v20 = vrot.slane %v57_v16, 1  ;;  %v77_v16 = vld [vmem:[%s14492_s0 + $0x138] sm:$0x1] }
  0x2b   :  { %259 = vrot.lane.b32.xlu0 %v154_v21, %s7807_s21  ;;  %v8155_v21 = vsel %vm379_vm0, %v401_v10, %v402_v12  ;;  %v8234_v10 = vsel %vm379_vm0, %v416_v49, %v417_v51  ;;  %v422_v12 = vrot.slane %v66_v55, 1  ;;  %v435_v51 = vrot.slane %v79_v37, 1  ;;  %v82_v55 = vld [vmem:[%s14492_s0 + $0x160] sm:$0xff] }
  0x2c   :  { %v8183_v33 = vsel %vm379_vm0, %v407_v19, %v408_v20  ;;  %v75_v19 = vld [vmem:[%s14492_s0 + $0x128] sm:$0x1] }
  0x2e   :  { %265 = vrot.lane.b32.xlu1 %v160_v22, %s7807_s21  ;;  %v8158_v22 = vsel %vm379_vm0, %v398_v13, %v399_v14  ;;  %v423_v13 = vrot.slane %v67_v58, 1  ;;  %v76_v14 = vld [vmem:[%s14492_s0 + $0x130] sm:$0xff]  ;;  %v83_v58 = vld [vmem:[%s14492_s0 + $0x168] sm:$0x1] }
  0x2f   :  { %263 = vrot.lane.b32.xlu0 %v158_v23, %s7807_s21  ;;  %v404_v23 = vrot.slane %v8144_v17, 1  ;;  %v431_v20 = vrot.slane %v76_v14, 1  ;;  %v440_v14 = vrot.slane %v82_v55, 1 }
  0x32   :  { %269 = vrot.lane.b32.xlu1 %v164_v24, %s7807_s21  ;;  %v405_v24 = vrot.slane %v55_v18, 1  ;;  %v74_v18 = vld [vmem:[%s14492_s0 + $0x120] sm:$0xff] }
  0x33   :  { %267 = vrot.lane.b32.xlu0 %v162_v25, %s7807_s21  ;;  %v8164_v25 = vld [vmem:[%s14492_s0 + $0xb0] sm:$0xff] }
  0x36   :  { %273 = vrot.lane.b32.xlu1 %v168_v26, %s7807_s21  ;;  %v61_v26 = vld [vmem:[%s14492_s0 + $0xb8] sm:$0x1] }
  0x37   :  { %271 = vrot.lane.b32.xlu0 %v166_v27, %s7807_s21  ;;  %v8172_v27 = vld [vmem:[%s14492_s0 + $0xa0] sm:$0xff]  ;;  %v414_v31 = vrot.slane %v61_v26, 1  ;;  %v8256_v26 = vsel %vm379_vm0, %v422_v12, %v423_v13 }
  0x38   :  { %14646 = vst [vmem:[#allocation4_spill] sm:$0xff] %v8256_v26 }
  0x3a   :  { %277 = vrot.lane.b32.xlu1 %v172_v28, %s7807_s21  ;;  %v59_v28 = vld [vmem:[%s14492_s0 + $0xa8] sm:$0x1] }
  0x3b   :  { %275 = vrot.lane.b32.xlu0 %v170_v29, %s7807_s21  ;;  %v413_v29 = vrot.slane %v8164_v25, 1  ;;  %v411_v36 = vrot.slane %v59_v28, 1  ;;  %v428_v28 = vrot.slane %v74_v18, 1  ;;  %v88_v18 = vld [vmem:[%s14492_s0 + $0x190] sm:$0xff] }
  0x3d   :  { %v8208_v43 = vsel %vm379_vm0, %v413_v29, %v414_v31  ;;  %v429_v29 = vrot.slane %v75_v19, 1  ;;  %v80_v31 = vld [vmem:[%s14492_s0 + $0x150] sm:$0xff]  ;;  %v89_v19 = vld [vmem:[%s14492_s0 + $0x198] sm:$0x1] }
  0x3e   :  { %281 = vrot.lane.b32.xlu1 %v176_v34, %s7807_s21  ;;  %v8186_v34 = vsel %vm379_vm0, %v404_v23, %v405_v24  ;;  %v432_v23 = vrot.slane %v77_v16, 1  ;;  %v8253_v24 = vsel %vm379_vm0, %v425_v59, %v426_v61  ;;  %v437_v41 = vrot.slane %v80_v31, 1 }
  0x3f   :  { %279 = vrot.lane.b32.xlu0 %v174_v35, %s7807_s21  ;;  %v410_v35 = vrot.slane %v8172_v27, 1  ;;  %14645 = vst [vmem:[#allocation3_spill] sm:$0xff] %v8253_v24  ;;  %v8278_v44 = vsel %vm379_vm0, %v428_v28, %v429_v29  ;;  %v443_v59 = vrot.slane %v84_v53, 1  ;;  %v444_v61 = vrot.slane %v85_v54, 1 }
  0x40   :  { %v8275_v38 = vsel %vm379_vm0, %v431_v20, %v432_v23  ;;  %14648 = vst [vmem:[#allocation6_spill] sm:$0xff] %v8278_v44  ;;  %v441_v16 = vrot.slane %v83_v58, 1  ;;  %v86_v20 = vld [vmem:[%s14492_s0 + $0x180] sm:$0xff]  ;;  %v87_v23 = vld [vmem:[%s14492_s0 + $0x188] sm:$0x1]  ;;  %v449_v28 = vrot.slane %v88_v18, 1 }
  0x41   :  { %v8211_v45 = vsel %vm379_vm0, %v410_v35, %v411_v36  ;;  %v81_v35 = vld [vmem:[%s14492_s0 + $0x158] sm:$0x1]  ;;  %v78_v36 = vld [vmem:[%s14492_s0 + $0x140] sm:$0xff]  ;;  %14647 = vst [vmem:[#allocation5_spill] sm:$0xff] %v8275_v38  ;;  %v450_v29 = vrot.slane %v89_v19, 1  ;;  %v8319_v31 = vsel %vm379_vm0, %v443_v59, %v444_v61  ;;  %v447_v37 = vrot.slane %v87_v23, 1 }
  0x42   :  { %478 = vrot.lane.b32.xlu1 %v8071_v46, %s7808_s15  ;;  %v438_v48 = vrot.slane %v81_v35, 1  ;;  %v434_v49 = vrot.slane %v78_v36, 1  ;;  %14651 = vst [vmem:[#allocation9_spill] sm:$0xff] %v8319_v31  ;;  %v8322_v35 = vsel %vm379_vm0, %v440_v14, %v441_v16  ;;  %v446_v36 = vrot.slane %v86_v20, 1  ;;  %v96_v14 = vld [vmem:[%s14492_s0 + $0x1d0] sm:$0xff]  ;;  %v94_v18 = vld [vmem:[%s14492_s0 + $0x1c0] sm:$0xff] }
  0x43   :  { %476 = vrot.lane.b32.xlu0 %v8074_v47, %s7808_s15  ;;  %14652 = vst [vmem:[#allocation10_spill] sm:$0xff] %v8322_v35  ;;  %v8341_v53 = vsel %vm379_vm0, %v449_v28, %v450_v29  ;;  %v97_v16 = vld [vmem:[%s14492_s0 + $0x1d8] sm:$0x1]  ;;  %v95_v19 = vld [vmem:[%s14492_s0 + $0x1c8] sm:$0x1]  ;;  %v461_v20 = vrot.slane %v96_v14, 1 }
  0x44   :  { %v8297_v12 = vsel %vm379_vm0, %v437_v41, %v438_v48  ;;  %v8300_v13 = vsel %vm379_vm0, %v434_v49, %v435_v51  ;;  %v92_v41 = vld [vmem:[%s14492_s0 + $0x1b0] sm:$0xff]  ;;  %v93_v48 = vld [vmem:[%s14492_s0 + $0x1b8] sm:$0x1]  ;;  %v90_v49 = vld [vmem:[%s14492_s0 + $0x1a0] sm:$0xff]  ;;  %14653 = vst [vmem:[#allocation11_spill] sm:$0xff] %v8341_v53  ;;  %v8344_v55 = vsel %vm379_vm0, %v446_v36, %v447_v37  ;;  %v462_v23 = vrot.slane %v97_v16, 1 }
  0x45   :  { %14649 = vst [vmem:[#allocation7_spill] sm:$0xff] %v8297_v12  ;;  %14650 = vst [vmem:[#allocation8_spill] sm:$0xff] %v8300_v13  ;;  %v91_v51 = vld [vmem:[%s14492_s0 + $0x1a8] sm:$0x1]  ;;  %v455_v54 = vrot.slane %v92_v41, 1  ;;  %v456_v58 = vrot.slane %v93_v48, 1 }
  0x46   :  { %482 = vrot.lane.b32.xlu1 %v8099_v56, %s7808_s15  ;;  %14654 = vst [vmem:[#allocation12_spill] sm:$0xff] %v8344_v55  ;;  %v452_v59 = vrot.slane %v90_v49, 1  ;;  %v453_v61 = vrot.slane %v91_v51, 1  ;;  %v458_v36 = vrot.slane %v94_v18, 1  ;;  %v459_v37 = vrot.slane %v95_v19, 1  ;;  %v100_v41 = vld [vmem:[%s14492_s0 + $0x1f0] sm:$0xff] }
  0x47   :  { %480 = vrot.lane.b32.xlu0 %v8102_v57, %s7808_s15  ;;  %v8363_v28 = vsel %vm379_vm0, %v455_v54, %v456_v58  ;;  %v101_v48 = vld [vmem:[%s14492_s0 + $0x1f8] sm:$0x1]  ;;  %v98_v49 = vld [vmem:[%s14492_s0 + $0x1e0] sm:$0xff]  ;;  %v99_v51 = vld [vmem:[%s14492_s0 + $0x1e8] sm:$0x1]  ;;  %v467_v54 = vrot.slane %v100_v41, 1 }
  0x48   :  { %14655 = vst [vmem:[#allocation13_spill] sm:$0xff] %v8363_v28  ;;  %v8366_v29 = vsel %vm379_vm0, %v452_v59, %v453_v61  ;;  %v468_v58 = vrot.slane %v101_v48, 1  ;;  %v8385_v59 = vsel %vm379_vm0, %v461_v20, %v462_v23  ;;  %v8388_v61 = vsel %vm379_vm0, %v458_v36, %v459_v37  ;;  %v104_v18 = vld [vmem:[%s14492_s0 + $0x210] sm:$0xff]  ;;  %v105_v41 = vld [vmem:[%s14492_s0 + $0x218] sm:$0x1]  ;;  %v102_v20 = vld [vmem:[%s14492_s0 + $0x200] sm:$0xff] }
  0x49   :  { %14656 = vst [vmem:[#allocation14_spill] sm:$0xff] %v8366_v29  ;;  %14657 = vst [vmem:[#allocation15_spill] sm:$0xff] %v8385_v59  ;;  %v464_v14 = vrot.slane %v98_v49, 1  ;;  %v465_v16 = vrot.slane %v99_v51, 1  ;;  %v103_v23 = vld [vmem:[%s14492_s0 + $0x208] sm:$0x1] }
  0x4a   :  { %486 = vrot.lane.b32.xlu1 %v8126_v8, %s7808_s15  ;;  %14658 = vst [vmem:[#allocation16_spill] sm:$0xff] %v8388_v61  ;;  %v8411_v36 = vsel %vm379_vm0, %v467_v54, %v468_v58  ;;  %v473_v37 = vrot.slane %v104_v18, 1  ;;  %v474_v49 = vrot.slane %v105_v41, 1  ;;  %v470_v51 = vrot.slane %v102_v20, 1 }
  0x4b   :  { %484 = vrot.lane.b32.xlu0 %v8130_v11, %s7808_s15  ;;  %14659 = vst [vmem:[#allocation17_spill] sm:$0xff] %v8411_v36  ;;  %v8414_v48 = vsel %vm379_vm0, %v464_v14, %v465_v16 }
  0x4c   :  { %14660 = vst [vmem:[#allocation18_spill] sm:$0xff] %v8414_v48  ;;  %v8425_v54 = vsel %vm379_vm0, %v473_v37, %v474_v49 }
  0x4d   :  { %14661 = vst [vmem:[#allocation19_spill] sm:$0xff] %v8425_v54 }
  0x4e   :  { %490 = vrot.lane.b32.xlu1 %v8155_v21, %s7808_s15 }
  0x4f   :  { %488 = vrot.lane.b32.xlu0 %v8158_v22, %s7808_s15 }
  0x52   :  { %494 = vrot.lane.b32.xlu1 %v8183_v33, %s7808_s15 }
  0x53   :  { %492 = vrot.lane.b32.xlu0 %v8186_v34, %s7808_s15 }
  0x56   :  { %498 = vrot.lane.b32.xlu1 %v8208_v43, %s7808_s15 }
  0x57   :  { %496 = vrot.lane.b32.xlu0 %v8211_v45, %s7808_s15 }
  0x5a   :  { %502 = vrot.lane.b32.xlu1 %v8231_v63, %s7808_s15 }
  0x5b   :  { %500 = vrot.lane.b32.xlu0 %v8234_v10, %s7808_s15 }
  0x5e   :  { %506 = vrot.lane.b32.xlu1 %v8253_v24, %s7808_s15 }
  0x5f   :  { %504 = vrot.lane.b32.xlu0 %v8256_v26, %s7808_s15 }
  0x62   :  { %510 = vrot.lane.b32.xlu1 %v8275_v38, %s7808_s15 }
  0x63   :  { %508 = vrot.lane.b32.xlu0 %v8278_v44, %s7808_s15 }
  0x66   :  { %514 = vrot.lane.b32.xlu1 %v8297_v12, %s7808_s15  ;;  %v186_v12 = vld [vmem:[%s14493_s2 + $0x20] sm:$0xf] }
  0x67   :  { %512 = vrot.lane.b32.xlu0 %v8300_v13, %s7808_s15 }
  0x6a   :  { %518 = vrot.lane.b32.xlu1 %v8319_v31, %s7808_s15 }
  0x6b   :  { %516 = vrot.lane.b32.xlu0 %v8322_v35, %s7808_s15 }
  0x6e   :  { %522 = vrot.lane.b32.xlu1 %v8341_v53, %s7808_s15 }
  0x6f   :  { %520 = vrot.lane.b32.xlu0 %v8344_v55, %s7808_s15 }
  0x72   :  { %526 = vrot.lane.b32.xlu1 %v8363_v28, %s7808_s15 }
  0x73   :  { %524 = vrot.lane.b32.xlu0 %v8366_v29, %s7808_s15  ;;  %v471_v29 = vrot.slane %v103_v23, 1 }
  0x74   :  { %v8393_v19 = vpop.permute.xlu1 %223 }
  0x75   :  { %v8395_v28 = vpop.permute.xlu0 %219  ;;  %v8428_v58 = vsel %vm379_vm0, %v470_v51, %v471_v29 }
  0x76   :  { %530 = vrot.lane.b32.xlu1 %v8385_v59, %s7808_s15  ;;  %14662 = vst [vmem:[#allocation20_spill] sm:$0xff] %v8428_v58  ;;  %v113_v59 = vld [vmem:[%s14491_s1 + $0x18] sm:$0x1] }
  0x77   :  { %528 = vrot.lane.b32.xlu0 %v8388_v61, %s7808_s15  ;;  %v111_v61 = vld [vmem:[%s14491_s1 + $0x8] sm:$0x1] }
  0x78   :  { %v8416_v53 = vpop.permute.xlu1 %225 }
  0x79   :  { %v8418_v55 = vpop.permute.xlu0 %221 }
  0x7a   :  { %534 = vrot.lane.b32.xlu1 %v8411_v36, %s7808_s15 }
  0x7b   :  { %532 = vrot.lane.b32.xlu0 %v8414_v48, %s7808_s15 }
  0x7c   :  { %v8430_v14 = vpop.permute.xlu1 %229 }
  0x7d   :  { %v8432_v16 = vpop.permute.xlu0 %227 }
  0x7e   :  { %538 = vrot.lane.b32.xlu1 %v8425_v54, %s7808_s15 }
  0x7f   :  { %536 = vrot.lane.b32.xlu0 %v8428_v58, %s7808_s15 }
  0x80   :  { %v8438_v18 = vpop.permute.xlu1 %233 }
  0x81   :  { %14663 = vst [vmem:[#allocation21_spill] sm:$0xff] %v8438_v18  ;;  %v8440_v41 = vpop.permute.xlu0 %231 }
  0x82   :  { %576 = vrot.lane.b32.xlu1 %v8062_v42, %s7809_s18 }
  0x83   :  { %574 = vrot.lane.b32.xlu0 %v8028_v30, %s7809_s18 }
  0x84   :  { %v8446_v29 = vpop.permute.xlu1 %237 }
  0x85   :  { %14664 = vst [vmem:[#allocation22_spill] sm:$0xff] %v8446_v29  ;;  %v8448_v20 = vpop.permute.xlu0 %235 }
  0x86   :  { %14665 = vst [vmem:[#allocation23_spill] sm:$0xff] %v8448_v20  ;;  %580 = vrot.lane.b32.xlu1 %v8088_v52, %s7809_s18 }
  0x87   :  { %578 = vrot.lane.b32.xlu0 %v8054_v40, %s7809_s18 }
  0x88   :  { %v8454_v23 = vpop.permute.xlu1 %241 }
  0x89   :  { %14666 = vst [vmem:[#allocation24_spill] sm:$0xff] %v8454_v23  ;;  %v8456_v37 = vpop.permute.xlu0 %239 }
  0x8a   :  { %14667 = vst [vmem:[#allocation25_spill] sm:$0xff] %v8456_v37  ;;  %584 = vrot.lane.b32.xlu1 %v8116_v62, %s7809_s18 }
  0x8b   :  { %582 = vrot.lane.b32.xlu0 %v8080_v50, %s7809_s18 }
  0x8c   :  { %v8462_v49 = vpop.permute.xlu1 %245 }
  0x8d   :  { %14668 = vst [vmem:[#allocation26_spill] sm:$0xff] %v8462_v49  ;;  %v8464_v51 = vpop.permute.xlu0 %243 }
  0x8e   :  { %14669 = vst [vmem:[#allocation27_spill] sm:$0xff] %v8464_v51  ;;  %588 = vrot.lane.b32.xlu1 %v8144_v17, %s7809_s18 }
  0x8f   :  { %586 = vrot.lane.b32.xlu0 %v8108_v60, %s7809_s18 }
  0x90   :  { %v8470_v54 = vpop.permute.xlu1 %249 }
  0x91   :  { %14670 = vst [vmem:[#allocation28_spill] sm:$0xff] %v8470_v54  ;;  %v8472_v58 = vpop.permute.xlu0 %247  ;;  %v1894_v54 = vrot.slane %v113_v59, 1 }
  0x92   :  { %14671 = vst [vmem:[#allocation29_spill] sm:$0xff] %v8472_v58  ;;  %592 = vrot.lane.b32.xlu1 %v8172_v27, %s7809_s18  ;;  %v1890_v27 = vrot.slane %v7888_v1, 1 }
  0x93   :  { %590 = vrot.lane.b32.xlu0 %v8136_v15, %s7809_s18 }
  0x94   :  { %v8478_v36 = vpop.permute.xlu1 %253 }
  0x95   :  { %14672 = vst [vmem:[#allocation30_spill] sm:$0xff] %v8478_v36  ;;  %v8480_v48 = vpop.permute.xlu0 %251  ;;  %v1893_v36 = vrot.slane %v7902_v3, 1 }
  0x96   :  { %14673 = vst [vmem:[#allocation31_spill] sm:$0xff] %v8480_v48  ;;  %596 = vrot.lane.b32.xlu1 %v8198_v39, %s7809_s18  ;;  %v1891_v48 = vrot.slane %v111_v61, 1 }
  0x97   :  { %594 = vrot.lane.b32.xlu0 %v8164_v25, %s7809_s18  ;;  %v1895_v39 = vsel %vm379_vm0, %v1893_v36, %v1894_v54 }
  0x98   :  { %v8494_v58 = vpop.permute.xlu1 %257  ;;  %v1892_v25 = vsel %vm379_vm0, %v1890_v27, %v1891_v48 }
  0x99   :  { %14674 = vst [vmem:[#allocation32_spill] sm:$0xff] %v8494_v58  ;;  %v8496_v31 = vpop.permute.xlu0 %255 }
  0x9a   :  { %14675 = vst [vmem:[#allocation33_spill] sm:$0xff] %v8496_v31  ;;  %1764 = vrot.lane.b32.xlu1 %v8071_v46, %s7807_s21  ;;  %v184_v31 = vld [vmem:[%s14493_s2 + $0x10] sm:$0xff] }
  0x9b   :  { %1762 = vrot.lane.b32.xlu0 %v8074_v47, %s7807_s21 }
  0x9c   :  { %v8504_v35 = vpop.permute.xlu1 %261 }
  0x9d   :  { %14676 = vst [vmem:[#allocation34_spill] sm:$0xff] %v8504_v35  ;;  %v8506_v1 = vpop.permute.xlu0 %259 }
  0x9e   :  { %14677 = vst [vmem:[#allocation35_spill] sm:$0xff] %v8506_v1  ;;  %1988 = vrot.lane.b32.xlu1 %v1895_v39, %s7808_s15 }
  0x9f   :  { %1986 = vrot.lane.b32.xlu0 %v1892_v25, %s7808_s15 }
  0xa0   :  { %v8510_v59 = vpop.permute.xlu1 %265 }
  0xa1   :  { %14678 = vst [vmem:[#allocation36_spill] sm:$0xff] %v8510_v59  ;;  %v8512_v61 = vpop.permute.xlu0 %263 }
  0xa2   :  { %14679 = vst [vmem:[#allocation37_spill] sm:$0xff] %v8512_v61  ;;  %672 = vrot.lane.b32.xlu1 %v7902_v3, %s7810_s24 }
  0xa3   :  { %2082 = vrot.lane.b32.xlu0 %v7902_v3, %s7809_s18 }
  0xa4   :  { %v8518_v47 = vpop.permute.xlu1 %269 }
  0xa5   :  { %14680 = vst [vmem:[#allocation38_spill] sm:$0xff] %v8518_v47  ;;  %v8520_v36 = vpop.permute.xlu0 %267 }
  0xa6   :  { %14681 = vst [vmem:[#allocation39_spill] sm:$0xff] %v8520_v36  ;;  %2178 = vrot.lane.b32.xlu1 %v8071_v46, %s7810_s24 }
  0xa7   :  { %2084 = vrot.lane.b32.xlu0 %v7883_v0, %s7809_s18 }
  0xa8   :  { %v8526_v48 = vpop.permute.xlu1 %273 }
  0xa9   :  { %14682 = vst [vmem:[#allocation40_spill] sm:$0xff] %v8526_v48  ;;  %v8528_v54 = vpop.permute.xlu0 %271 }
  0xaa   :  { %14683 = vst [vmem:[#allocation41_spill] sm:$0xff] %v8528_v54  ;;  %776 = vrot.lane.b32.xlu1 %v8071_v46, %s7811_s25  ;;  %v115_v46 = vld [vmem:[%s14491_s1 + $0x28] sm:$0x1] }
  0xab   :  { %674 = vrot.lane.b32.xlu0 %v7883_v0, %s7810_s24 }
  0xac   :  { %v8534_v3 = vpop.permute.xlu1 %277 }
  0xad   :  { %14684 = vst [vmem:[#allocation42_spill] sm:$0xff] %v8534_v3  ;;  %v8536_v27 = vpop.permute.xlu0 %275  ;;  %v1896_v3 = vrot.slane %v7883_v0, 1 }
  0xae   :  { %14685 = vst [vmem:[#allocation43_spill] sm:$0xff] %v8536_v27  ;;  %2180 = vrot.lane.b32.xlu1 %v8102_v57, %s7810_s24  ;;  %v1897_v27 = vrot.slane %v115_v46, 1  ;;  %v1899_v46 = vrot.slane %v7897_v2, 1 }
  0xaf   :  { %1766 = vrot.lane.b32.xlu0 %v8102_v57, %s7807_s21 }
  0xb0   :  { %v8542_v25 = vpop.permute.xlu1 %281 }
  0xb1   :  { %14686 = vst [vmem:[#allocation44_spill] sm:$0xff] %v8542_v25  ;;  %v8544_v48 = vpop.permute.xlu0 %279  ;;  %v1898_v25 = vsel %vm379_vm0, %v1896_v3, %v1897_v27 }
  0xb2   :  { %14687 = vst [vmem:[#allocation45_spill] sm:$0xff] %v8544_v48  ;;  %778 = vrot.lane.b32.xlu1 %v8102_v57, %s7811_s25 }
  0xb3   :  { %2282 = vrot.lane.b32.xlu0 %v1895_v39, %s7811_s25  ;;  %v117_v39 = vld [vmem:[%s14491_s1 + $0x38] sm:$0x1] }
  0xb4   :  { %v8553_v54 = vpop.permute.xlu1 %478  ;;  %v1900_v59 = vrot.slane %v117_v39, 1 }
  0xb5   :  { %v8555_v47 = vpop.permute.xlu0 %476 }
  0xb6   :  { %1768 = vrot.lane.b32.xlu1 %v8099_v56, %s7807_s21  ;;  %v8581_v3 = vsel %vm379_vm0, %v1899_v46, %v1900_v59  ;;  %v182_v59 = vld [vmem:[%s14493_s2] sm:$0xff]  ;;  %v183_v46 = vld [vmem:[%s14493_s2 + $0x8] sm:$0xff] }
  0xb7   :  { %874 = vrot.lane.b32.xlu0 %v8062_v42, %s7812_s28  ;;  %v7484_v1 = vpack.c.bf16 %v183_v46, %v182_v59  ;;  %v185_v59 = vld [vmem:[%s14493_s2 + $0x18] sm:$0xff] }
  0xb8   :  { %v8562_v48 = vpop.permute.xlu1 %482  ;;  %v7488_v46 = vpack.c.bf16 %v185_v59, %v184_v31 }
  0xb9   :  { %v8564_v36 = vpop.permute.xlu0 %480  ;;  %7485 = vmatprep.subr.bf16.mxu0 %v7484_v1  ;;  %7493 = vmatprep.subr.bf16.mxu1 %v7484_v1 }
  0xba   :  { %2284 = vrot.lane.b32.xlu1 %v1898_v25, %s7811_s25  ;;  %7487 = vmatpush3.bf16.msra.mxu0 %v7484_v1 }
  0xbb   :  { %1990 = vrot.lane.b32.xlu0 %v1898_v25, %s7808_s15  ;;  %7495 = vmatpush3.bf16.msra.mxu1 %v7484_v1 }
  0xbc   :  { %v8572_v61 = vpop.permute.xlu1 %486  ;;  %7489 = vmatprep.subr.bf16.mxu0 %v7488_v46  ;;  %7497 = vmatprep.subr.bf16.mxu1 %v7488_v46 }
  0xbd   :  { %v8574_v42 = vpop.permute.xlu0 %484 }
  0xbe   :  { %876 = vrot.lane.b32.xlu1 %v8054_v40, %s7812_s28  ;;  %7491 = vmatpush3.bf16.msra.mxu0 %v7488_v46 }
  0xbf   :  { %2378 = vrot.lane.b32.xlu0 %v7883_v0, %s7812_s28  ;;  %7499 = vmatpush3.bf16.msra.mxu1 %v7488_v46 }
  0xc0   :  { %v8583_v27 = vpop.permute.xlu1 %490  ;;  %7292 = vmatprep.subr.msk.mxu0 %vm1533_vm1, %v186_v12  ;;  %7350 = vmatprep.subr.msk.mxu1 %vm1533_vm1, %v186_v12 }
  0xc1   :  { %14688 = vst [vmem:[#allocation46_spill] sm:$0xff] %v8583_v27  ;;  %v8585_v35 = vpop.permute.xlu0 %488  ;;  %v1173_v27 = vsel %vm1172_vm2, %v8036_v32, %v8395_v28 }
  0xc2   :  { %1992 = vrot.lane.b32.xlu1 %v8581_v3, %s7808_s15  ;;  %7293 = vmatpush3.msk.msra.mxu0 %vm1533_vm1, %v186_v12 }
  0xc3   :  { %972 = vrot.lane.b32.xlu0 %v7883_v0, %s7813_s12  ;;  %7351 = vmatpush3.msk.msra.mxu1 %vm1533_vm1, %v186_v12 }
  0xc4   :  { %v8591_v39 = vpop.permute.xlu1 %494 }
  0xc5   :  { %14689 = vst [vmem:[#allocation47_spill] sm:$0xff] %v8591_v39  ;;  %v8593_v40 = vpop.permute.xlu0 %492 }
  0xc6   :  { %14690 = vst [vmem:[#allocation48_spill] sm:$0xff] %v8593_v40  ;;  %2380 = vrot.lane.b32.xlu1 %v7897_v2, %s7812_s28 }
  0xc7   :  { %2086 = vrot.lane.b32.xlu0 %v7897_v2, %s7809_s18 }
  0xc8   :  { %v8605_v0 = vpop.permute.xlu1 %498 }
  0xc9   :  { %14691 = vst [vmem:[#allocation49_spill] sm:$0xff] %v8605_v0  ;;  %v8607_v58 = vpop.permute.xlu0 %496 }
  0xca   :  { %14692 = vst [vmem:[#allocation50_spill] sm:$0xff] %v8607_v58  ;;  %676 = vrot.lane.b32.xlu1 %v7897_v2, %s7810_s24 }
  0xcb   :  { %2474 = vrot.lane.b32.xlu0 %v8102_v57, %s7813_s12 }
  0xcc   :  { %v8619_v49 = vpop.permute.xlu1 %502 }
  0xcd   :  { %14693 = vst [vmem:[#allocation51_spill] sm:$0xff] %v8619_v49  ;;  %v8621_v51 = vpop.permute.xlu0 %500 }
  0xce   :  { %14694 = vst [vmem:[#allocation52_spill] sm:$0xff] %v8621_v51  ;;  %1076 = vrot.lane.b32.xlu1 %v8102_v57, %s7814_s26 }
  0xcf   :  { %974 = vrot.lane.b32.xlu0 %v7897_v2, %s7813_s12 }
  0xd0   :  { %v8630_v31 = vpop.permute.xlu1 %506 }
  0xd1   :  { %14695 = vst [vmem:[#allocation53_spill] sm:$0xff] %v8630_v31  ;;  %v8632_v1 = vpop.permute.xlu0 %504 }
  0xd2   :  { %14696 = vst [vmem:[#allocation54_spill] sm:$0xff] %v8632_v1  ;;  %2182 = vrot.lane.b32.xlu1 %v8099_v56, %s7810_s24 }
  0xd3   :  { %2088 = vrot.lane.b32.xlu0 %v7916_v5, %s7809_s18 }
  0xd4   :  { %v8638_v2 = vpop.permute.xlu1 %510 }
  0xd5   :  { %14697 = vst [vmem:[#allocation55_spill] sm:$0xff] %v8638_v2  ;;  %v8640_v57 = vpop.permute.xlu0 %508 }
  0xd6   :  { %14698 = vst [vmem:[#allocation56_spill] sm:$0xff] %v8640_v57  ;;  %2578 = vrot.lane.b32.xlu1 %v1898_v25, %s7814_s26 }
  0xd7   :  { %2476 = vrot.lane.b32.xlu0 %v8099_v56, %s7813_s12 }
  0xd8   :  { %v8645_v59 = vpop.permute.xlu1 %514 }
  0xd9   :  { %14699 = vst [vmem:[#allocation57_spill] sm:$0xff] %v8645_v59  ;;  %v8647_v46 = vpop.permute.xlu0 %512 }
  0xda   :  { %14700 = vst [vmem:[#allocation58_spill] sm:$0xff] %v8647_v46  ;;  %780 = vrot.lane.b32.xlu1 %v8099_v56, %s7811_s25 }
  0xdb   :  { %678 = vrot.lane.b32.xlu0 %v7916_v5, %s7810_s24 }
  0xdc   :  { %v8653_v12 = vpop.permute.xlu1 %518 }
  0xdd   :  { %14701 = vst [vmem:[#allocation59_spill] sm:$0xff] %v8653_v12  ;;  %v8655_v2 = vpop.permute.xlu0 %516 }
  0xde   :  { %14702 = vst [vmem:[#allocation60_spill] sm:$0xff] %v8655_v2  ;;  %1770 = vrot.lane.b32.xlu1 %v8130_v11, %s7807_s21  ;;  %v119_v2 = vld [vmem:[%s14491_s1 + $0x48] sm:$0x1] }
  0xdf   :  { %1078 = vrot.lane.b32.xlu0 %v8099_v56, %s7814_s26  ;;  %v1902_v56 = vrot.slane %v7916_v5, 1 }
  0xe0   :  { %v8661_v25 = vpop.permute.xlu1 %522 }
  0xe1   :  { %14703 = vst [vmem:[#allocation61_spill] sm:$0xff] %v8661_v25  ;;  %v8663_v59 = vpop.permute.xlu0 %520  ;;  %v1903_v25 = vrot.slane %v119_v2, 1  ;;  %v1905_v2 = vrot.slane %v7911_v4, 1 }
  0xe2   :  { %14704 = vst [vmem:[#allocation62_spill] sm:$0xff] %v8663_v59  ;;  %2286 = vrot.lane.b32.xlu1 %v8581_v3, %s7811_s25 }
  0xe3   :  { %2184 = vrot.lane.b32.xlu0 %v8130_v11, %s7810_s24 }
  0xe4   :  { %v8669_v46 = vpop.permute.xlu1 %526 }
  0xe5   :  { %14705 = vst [vmem:[#allocation63_spill] sm:$0xff] %v8669_v46  ;;  %v8671_v12 = vpop.permute.xlu0 %524  ;;  %v1904_v46 = vsel %vm379_vm0, %v1902_v56, %v1903_v25 }
  0xe6   :  { %14706 = vst [vmem:[#allocation64_spill] sm:$0xff] %v8671_v12  ;;  %782 = vrot.lane.b32.xlu1 %v8130_v11, %s7811_s25 }
  0xe7   :  { %2580 = vrot.lane.b32.xlu0 %v8581_v3, %s7814_s26  ;;  %v121_v3 = vld [vmem:[%s14491_s1 + $0x58] sm:$0x1] }
  0xe8   :  { %v8681_v59 = vpop.permute.xlu1 %530 }
  0xe9   :  { %14707 = vst [vmem:[#allocation65_spill] sm:$0xff] %v8681_v59  ;;  %v8683_v57 = vpop.permute.xlu0 %528  ;;  %v1906_v59 = vrot.slane %v121_v3, 1 }
  0xea   :  { %14708 = vst [vmem:[#allocation66_spill] sm:$0xff] %v8683_v57  ;;  %1772 = vrot.lane.b32.xlu1 %v8126_v8, %s7807_s21 }
  0xeb   :  { %878 = vrot.lane.b32.xlu0 %v8088_v52, %s7812_s28  ;;  %v1907_v25 = vsel %vm379_vm0, %v1905_v2, %v1906_v59 }
  0xec   :  { %v8690_v12 = vpop.permute.xlu1 %534 }
  0xed   :  { %14709 = vst [vmem:[#allocation67_spill] sm:$0xff] %v8690_v12  ;;  %v8692_v31 = vpop.permute.xlu0 %532 }
  0xee   :  { %14710 = vst [vmem:[#allocation68_spill] sm:$0xff] %v8692_v31  ;;  %2288 = vrot.lane.b32.xlu1 %v1904_v46, %s7811_s25 }
  0xef   :  { %1994 = vrot.lane.b32.xlu0 %v1904_v46, %s7808_s15 }
  0xf0   :  { %v8700_v57 = vpop.permute.xlu1 %538 }
  0xf1   :  { %14711 = vst [vmem:[#allocation69_spill] sm:$0xff] %v8700_v57  ;;  %v8702_v52 = vpop.permute.xlu0 %536 }
  0xf2   :  { %14712 = vst [vmem:[#allocation70_spill] sm:$0xff] %v8702_v52  ;;  %880 = vrot.lane.b32.xlu1 %v8080_v50, %s7812_s28 }
  0xf3   :  { %2382 = vrot.lane.b32.xlu0 %v7916_v5, %s7812_s28 }
  0xf4   :  { %v8709_v56 = vpop.permute.xlu1 %576 }
  0xf5   :  { %v8711_v12 = vpop.permute.xlu0 %574 }
  0xf6   :  { %1996 = vrot.lane.b32.xlu1 %v1907_v25, %s7808_s15 }
  0xf7   :  { %976 = vrot.lane.b32.xlu0 %v7916_v5, %s7813_s12 }
  0xf8   :  { %v8716_v3 = vpop.permute.xlu1 %580 }
  0xf9   :  { %v8718_v57 = vpop.permute.xlu0 %578 }
  0xfa   :  { %2384 = vrot.lane.b32.xlu1 %v7911_v4, %s7812_s28 }
  0xfb   :  { %2090 = vrot.lane.b32.xlu0 %v7911_v4, %s7809_s18 }
  0xfc   :  { %v8724_v50 = vpop.permute.xlu1 %584 }
  0xfd   :  { %v8726_v59 = vpop.permute.xlu0 %582 }
  0xfe   :  { %680 = vrot.lane.b32.xlu1 %v7911_v4, %s7810_s24 }
  0xff   :  { %2478 = vrot.lane.b32.xlu0 %v8130_v11, %s7813_s12 }
 0x100   :  { %v8732_v5 = vpop.permute.xlu1 %588 }
 0x101   :  { %14713 = vst [vmem:[#allocation71_spill] sm:$0xff] %v8732_v5  ;;  %v8734_v2 = vpop.permute.xlu0 %586 }
 0x102   :  { %1080 = vrot.lane.b32.xlu1 %v8130_v11, %s7814_s26 }
 0x103   :  { %978 = vrot.lane.b32.xlu0 %v7911_v4, %s7813_s12 }
 0x104   :  { %v8740_v52 = vpop.permute.xlu1 %592 }
 0x105   :  { %14714 = vst [vmem:[#allocation72_spill] sm:$0xff] %v8740_v52  ;;  %v8742_v31 = vpop.permute.xlu0 %590 }
 0x106   :  { %14715 = vst [vmem:[#allocation73_spill] sm:$0xff] %v8742_v31  ;;  %2186 = vrot.lane.b32.xlu1 %v8126_v8, %s7810_s24 }
 0x107   :  { %2092 = vrot.lane.b32.xlu0 %v7930_v7, %s7809_s18 }
 0x108   :  { %v8748_v1 = vpop.permute.xlu1 %596 }
 0x109   :  { %14716 = vst [vmem:[#allocation74_spill] sm:$0xff] %v8748_v1  ;;  %v8750_v49 = vpop.permute.xlu0 %594 }
 0x10a   :  { %14717 = vst [vmem:[#allocation75_spill] sm:$0xff] %v8750_v49  ;;  %2582 = vrot.lane.b32.xlu1 %v1904_v46, %s7814_s26  ;;  %v123_v49 = vld [vmem:[%s14491_s1 + $0x68] sm:$0x1] }
 0x10b   :  { %2480 = vrot.lane.b32.xlu0 %v8126_v8, %s7813_s12  ;;  %v1909_v58 = vrot.slane %v123_v49, 1  ;;  %v1911_v49 = vrot.slane %v7925_v6, 1 }
 0x10c   :  { %v8755_v4 = vpop.permute.xlu1 %1764 }
 0x10d   :  { %v8757_v11 = vpop.permute.xlu0 %1762 }
 0x10e   :  { %784 = vrot.lane.b32.xlu1 %v8126_v8, %s7811_s25 }
 0x10f   :  { %682 = vrot.lane.b32.xlu0 %v7930_v7, %s7810_s24 }
 0x110   :  { %v8763_v51 = vpop.permute.xlu1 %1988 }
 0x111   :  { %v8765_v13 = vpop.permute.xlu0 %1986 }
 0x112   :  { %1774 = vrot.lane.b32.xlu1 %v8158_v22, %s7807_s21 }
 0x113   :  { %1082 = vrot.lane.b32.xlu0 %v8126_v8, %s7814_s26  ;;  %v1908_v8 = vrot.slane %v7930_v7, 1 }
 0x114   :  { %v673_v46 = vpop.permute.xlu1 %672 }
 0x115   :  { %v8771_v1 = vpop.permute.xlu0 %2082  ;;  %v1910_v44 = vsel %vm379_vm0, %v1908_v8, %v1909_v58 }
 0x116   :  { %2290 = vrot.lane.b32.xlu1 %v1907_v25, %s7811_s25 }
 0x117   :  { %2188 = vrot.lane.b32.xlu0 %v8158_v22, %s7810_s24 }
 0x118   :  { %v8776_v0 = vpop.permute.xlu1 %2178 }
 0x119   :  { %v8778_v23 = vpop.permute.xlu0 %2084 }
 0x11a   :  { %786 = vrot.lane.b32.xlu1 %v8158_v22, %s7811_s25 }
 0x11b   :  { %2584 = vrot.lane.b32.xlu0 %v1907_v25, %s7814_s26  ;;  %v125_v25 = vld [vmem:[%s14491_s1 + $0x78] sm:$0x1] }
 0x11c   :  { %v777_v37 = vpop.permute.xlu1 %776  ;;  %v1912_v29 = vrot.slane %v125_v25, 1 }
 0x11d   :  { %v8787_v38 = vpop.permute.xlu0 %674 }
 0x11e   :  { %1776 = vrot.lane.b32.xlu1 %v8155_v21, %s7807_s21  ;;  %v8811_v58 = vsel %vm379_vm0, %v1911_v49, %v1912_v29 }
 0x11f   :  { %882 = vrot.lane.b32.xlu0 %v8116_v62, %s7812_s28 }
 0x120   :  { %v8794_v52 = vpop.permute.xlu1 %2180 }
 0x121   :  { %v8796_v39 = vpop.permute.xlu0 %1766 }
 0x122   :  { %2292 = vrot.lane.b32.xlu1 %v1910_v44, %s7811_s25 }
 0x123   :  { %1998 = vrot.lane.b32.xlu0 %v1910_v44, %s7808_s15 }
 0x124   :  { %v8804_v31 = vpop.permute.xlu1 %778 }
 0x125   :  { %v2283_v62 = vpop.permute.xlu0 %2282 }
 0x126   :  { %884 = vrot.lane.b32.xlu1 %v8108_v60, %s7812_s28 }
 0x127   :  { %2386 = vrot.lane.b32.xlu0 %v7930_v7, %s7812_s28 }
 0x128   :  { %v8813_v8 = vpop.permute.xlu1 %1768 }
 0x129   :  { %v875_v40 = vpop.permute.xlu0 %874 }
 0x12a   :  { %2000 = vrot.lane.b32.xlu1 %v8811_v58, %s7808_s15 }
 0x12b   :  { %980 = vrot.lane.b32.xlu0 %v7930_v7, %s7813_s12 }
 0x12c   :  { %v8819_v25 = vpop.permute.xlu1 %2284 }
 0x12d   :  { %v8821_v20 = vpop.permute.xlu0 %1990 }
 0x12e   :  { %2388 = vrot.lane.b32.xlu1 %v7925_v6, %s7812_s28 }
 0x12f   :  { %2094 = vrot.lane.b32.xlu0 %v7925_v6, %s7809_s18 }
 0x130   :  { %v8827_v60 = vpop.permute.xlu1 %876 }
 0x131   :  { %v2379_v29 = vpop.permute.xlu0 %2378 }
 0x132   :  { %684 = vrot.lane.b32.xlu1 %v7925_v6, %s7810_s24 }
 0x133   :  { %2482 = vrot.lane.b32.xlu0 %v8158_v22, %s7813_s12 }
 0x134   :  { %v8833_v7 = vpop.permute.xlu1 %1992 }
 0x135   :  { %v973_v49 = vpop.permute.xlu0 %972 }
 0x136   :  { %1084 = vrot.lane.b32.xlu1 %v8158_v22, %s7814_s26 }
 0x137   :  { %982 = vrot.lane.b32.xlu0 %v7925_v6, %s7813_s12  ;;  %v1206_v6 = vsel %vm1205_vm3, %v1173_v27, %v8555_v47 }
 0x138   :  { %v8839_v24 = vpop.permute.xlu1 %2380  ;;  %v1239_v22 = vsel %vm1238_vm4, %v1206_v6, %v8711_v12 }
 0x139   :  { %v8841_v5 = vpop.permute.xlu0 %2086  ;;  %v1272_v32 = vsel %vm1271_vm5, %v1239_v22, %v673_v46  ;;  %v7743_v46 = vld [vmem:[%s14491_s1] sm:$0xff] }
 0x13a   :  { %2190 = vrot.lane.b32.xlu1 %v8155_v21, %s7810_s24  ;;  %v1305_v28 = vsel %vm1304_vm6, %v1272_v32, %v777_v37  ;;  %v8874_v37 = vld [vmem:[%s14491_s1 + $0x80] sm:$0xff] }
 0x13b   :  { %2096 = vrot.lane.b32.xlu0 %v7942_v9, %s7809_s18  ;;  %v1338_v9 = vsel %vm14612_vm7, %v1305_v28, %v875_v40 }
 0x13c   :  { %v8854_v26 = vpop.permute.xlu1 %676  ;;  %v1371_v47 = vsel %vm1370_vm8, %v1338_v9, %v973_v49 }
 0x13d   :  { %v2475_v18 = vpop.permute.xlu0 %2474 }
 0x13e   :  { %2586 = vrot.lane.b32.xlu1 %v1910_v44, %s7814_s26  ;;  %v2674_v44 = vsel %vm1172_vm2, %v7743_v46, %v8757_v11 }
 0x13f   :  { %2484 = vrot.lane.b32.xlu0 %v8155_v21, %s7813_s12  ;;  %v2706_v40 = vsel %vm1205_vm3, %v2674_v44, %v8765_v13 }
 0x140   :  { %v1077_v27 = vpop.permute.xlu1 %1076  ;;  %v2738_v49 = vsel %vm1238_vm4, %v2706_v40, %v8771_v1 }
 0x141   :  { %v975_v12 = vpop.permute.xlu0 %974  ;;  %v1404_v6 = vsel %vm14611_vm9, %v1371_v47, %v1077_v27  ;;  %v2770_v32 = vsel %vm1271_vm5, %v2738_v49, %v8776_v0  ;;  %v1174_v0 = vsel %vm1172_vm2, %v8028_v30, %v8418_v55  ;;  %v127_v30 = vld [vmem:[%s14491_s1 + $0x88] sm:$0x1] }
 0x142   :  { %788 = vrot.lane.b32.xlu1 %v8155_v21, %s7811_s25  ;;  %7294 = vmatprep.mubr.msk.f32.mxu0 %vm1436_vm10, %v1404_v6  ;;  %v2802_v28 = vsel %vm1304_vm6, %v2770_v32, %v2283_v62  ;;  %v1915_v46 = vrot.slane %v127_v30, 1 }
 0x143   :  { %686 = vrot.lane.b32.xlu0 %v8874_v37, %s7810_s24  ;;  %v2834_v13 = vsel %vm14612_vm7, %v2802_v28, %v2379_v29 }
 0x144   :  { %v8883_v11 = vpop.permute.xlu1 %2182  ;;  %v2866_v9 = vsel %vm1370_vm8, %v2834_v13, %v2475_v18 }
 0x145   :  { %v8885_v22 = vpop.permute.xlu0 %2088 }
 0x146   :  { %1778 = vrot.lane.b32.xlu1 %v8186_v34, %s7807_s21 }
 0x147   :  { %1086 = vrot.lane.b32.xlu0 %v8155_v21, %s7814_s26  ;;  %v1207_v21 = vsel %vm1205_vm3, %v1174_v0, %v8553_v54 }
 0x148   :  { %v2579_v1 = vpop.permute.xlu1 %2578  ;;  %v1240_v18 = vsel %vm1238_vm4, %v1207_v21, %v8709_v56  ;;  %v1914_v56 = vrot.slane %v8874_v37, 1 }
 0x149   :  { %v2477_v47 = vpop.permute.xlu0 %2476  ;;  %v2898_v27 = vsel %vm14611_vm9, %v2866_v9, %v2579_v1  ;;  %v1273_v55 = vsel %vm1271_vm5, %v1240_v18, %v8787_v38  ;;  %v8964_v9 = vld [vmem:[%s14491_s1 + $0x90] sm:$0xff] }
 0x14a   :  { %2294 = vrot.lane.b32.xlu1 %v8811_v58, %s7811_s25  ;;  %7352 = vmatprep.mubr.msk.f32.mxu1 %vm1436_vm10, %v2898_v27  ;;  %v1306_v6 = vsel %vm1304_vm6, %v1273_v55, %v8804_v31  ;;  %v7745_v31 = vld [vmem:[%s14491_s1 + $0x10] sm:$0xff]  ;;  %v1917_v1 = vrot.slane %v8964_v9, 1 }
 0x14b   :  { %2192 = vrot.lane.b32.xlu0 %v8186_v34, %s7810_s24  ;;  %v1339_v54 = vsel %vm14612_vm7, %v1306_v6, %v8827_v60 }
 0x14c   :  { %v8909_v62 = vpop.permute.xlu1 %780  ;;  %v1372_v44 = vsel %vm1370_vm8, %v1339_v54, %v975_v12  ;;  %v1916_v12 = vsel %vm379_vm0, %v1914_v56, %v1915_v46 }
 0x14d   :  { %v8911_v29 = vpop.permute.xlu0 %678 }
 0x14e   :  { %790 = vrot.lane.b32.xlu1 %v8186_v34, %s7811_s25 }
 0x14f   :  { %2588 = vrot.lane.b32.xlu0 %v8811_v58, %s7814_s26  ;;  %v2675_v58 = vsel %vm1172_vm2, %v7745_v31, %v8755_v4  ;;  %v129_v4 = vld [vmem:[%s14491_s1 + $0x98] sm:$0x1] }
 0x150   :  { %v8928_v40 = vpop.permute.xlu1 %1770  ;;  %v2707_v60 = vsel %vm1205_vm3, %v2675_v58, %v8763_v51  ;;  %v1918_v27 = vrot.slane %v129_v4, 1 }
 0x151   :  { %v1079_v38 = vpop.permute.xlu0 %1078  ;;  %v2739_v32 = vsel %vm1238_vm4, %v2707_v60, %v8778_v23 }
 0x152   :  { %v1405_v49 = vsel %vm14611_vm9, %v1372_v44, %v1079_v38  ;;  %1780 = vrot.lane.b32.xlu1 %v8183_v33, %s7807_s21  ;;  %v7747_v38 = vld [vmem:[%s14492_s0 + $0x20] sm:$0xff] }
 0x153   :  { %886 = vrot.lane.b32.xlu0 %v8144_v17, %s7812_s28  ;;  %7295 = vmatmul.mubr.msk.f32.vlgmr.msra.gmra.mrb[0].mxu0 %vm1436_vm10, %v1405_v49  ;;  %v2771_v17 = vsel %vm1271_vm5, %v2739_v32, %v8794_v52  ;;  %v1175_v49 = vsel %vm1172_vm2, %v7747_v38, %v8393_v19 }
 0x154   :  { %v8946_v28 = vpop.permute.xlu1 %2286  ;;  %v2803_v51 = vsel %vm1304_vm6, %v2771_v17, %v8819_v25  ;;  %v1208_v31 = vsel %vm1205_vm3, %v1175_v49, %v8564_v36 }
 0x155   :  { %v8948_v13 = vpop.permute.xlu0 %2184  ;;  %v2835_v23 = vsel %vm14612_vm7, %v2803_v51, %v8839_v24  ;;  %v8977_v24 = vsel %vm379_vm0, %v1917_v1, %v1918_v27  ;;  %v1241_v58 = vsel %vm1238_vm4, %v1208_v31, %v8718_v57 }
 0x156   :  { %2296 = vrot.lane.b32.xlu1 %v1916_v12, %s7811_s25  ;;  %v2867_v52 = vsel %vm1370_vm8, %v2835_v23, %v2477_v47  ;;  %v1274_v32 = vsel %vm1271_vm5, %v1241_v58, %v8854_v26  ;;  %v7749_v26 = vld [vmem:[%s14491_s1 + $0x20] sm:$0xff] }
 0x157   :  { %2002 = vrot.lane.b32.xlu0 %v1916_v12, %s7808_s15  ;;  %v1307_v4 = vsel %vm1304_vm6, %v1274_v32, %v8909_v62  ;;  %v2676_v62 = vsel %vm1172_vm2, %v7749_v26, %v8796_v39  ;;  %v133_v26 = vld [vmem:[%s14491_s1 + $0xb8] sm:$0x1] }
 0x158   :  { %v8968_v0 = vpop.permute.xlu1 %782 }
 0x159   :  { %v2581_v25 = vpop.permute.xlu0 %2580 }
 0x15a   :  { %v2899_v21 = vsel %vm14611_vm9, %v2867_v52, %v2581_v25  ;;  %888 = vrot.lane.b32.xlu1 %v8136_v15, %s7812_s28 }
 0x15b   :  { %2390 = vrot.lane.b32.xlu0 %v8874_v37, %s7812_s28  ;;  %7353 = vmatmul.mubr.msk.f32.vlgmr.msra.gmra.mrb[0].mxu1 %vm1436_vm10, %v2899_v21 }
 0x15c   :  { %v8979_v18 = vpop.permute.xlu1 %1772 }
 0x15d   :  { %v879_v30 = vpop.permute.xlu0 %878 }
 0x15e   :  { %2004 = vrot.lane.b32.xlu1 %v8977_v24, %s7808_s15  ;;  %v1340_v17 = vsel %vm14612_vm7, %v1307_v4, %v879_v30 }
 0x15f   :  { %984 = vrot.lane.b32.xlu0 %v8874_v37, %s7813_s12 }
 0x160   :  { %v8985_v47 = vpop.permute.xlu1 %2288 }
 0x161   :  { %v8987_v15 = vpop.permute.xlu0 %1994 }
 0x162   :  { %2392 = vrot.lane.b32.xlu1 %v8964_v9, %s7812_s28 }
 0x163   :  { %2098 = vrot.lane.b32.xlu0 %v8964_v9, %s7809_s18 }
 0x164   :  { %v881_v55 = vpop.permute.xlu1 %880 }
 0x165   :  { %v2383_v6 = vpop.permute.xlu0 %2382 }
 0x166   :  { %688 = vrot.lane.b32.xlu1 %v8964_v9, %s7810_s24 }
 0x167   :  { %2486 = vrot.lane.b32.xlu0 %v8186_v34, %s7813_s12 }
 0x168   :  { %v8997_v54 = vpop.permute.xlu1 %1996 }
 0x169   :  { %v977_v56 = vpop.permute.xlu0 %976 }
 0x16a   :  { %1088 = vrot.lane.b32.xlu1 %v8186_v34, %s7814_s26  ;;  %v9017_v34 = vld [vmem:[%s14491_s1 + $0xa0] sm:$0xff]  ;;  %v1373_v36 = vsel %vm1370_vm8, %v1340_v17, %v977_v56 }
 0x16b   :  { %986 = vrot.lane.b32.xlu0 %v8964_v9, %s7813_s12 }
 0x16c   :  { %v9003_v46 = vpop.permute.xlu1 %2384 }
 0x16d   :  { %v9005_v44 = vpop.permute.xlu0 %2090 }
 0x16e   :  { %2194 = vrot.lane.b32.xlu1 %v8183_v33, %s7810_s24 }
 0x16f   :  { %2100 = vrot.lane.b32.xlu0 %v9017_v34, %s7809_s18 }
 0x170   :  { %v9025_v60 = vpop.permute.xlu1 %680 }
 0x171   :  { %v2479_v19 = vpop.permute.xlu0 %2478 }
 0x172   :  { %2590 = vrot.lane.b32.xlu1 %v1916_v12, %s7814_s26  ;;  %v2708_v12 = vsel %vm1205_vm3, %v2676_v62, %v8821_v20 }
 0x173   :  { %2488 = vrot.lane.b32.xlu0 %v8183_v33, %s7813_s12  ;;  %v2740_v1 = vsel %vm1238_vm4, %v2708_v12, %v8841_v5  ;;  %v9139_v12 = vld [vmem:[%s14491_s1 + $0xb0] sm:$0xff] }
 0x174   :  { %v1081_v51 = vpop.permute.xlu1 %1080  ;;  %v2772_v39 = vsel %vm1271_vm5, %v2740_v1, %v8883_v11  ;;  %v7750_v11 = vld [vmem:[%s14492_s0 + $0x30] sm:$0xff]  ;;  %v1923_v1 = vrot.slane %v9139_v12, 1 }
 0x175   :  { %v979_v57 = vpop.permute.xlu0 %978  ;;  %v1406_v23 = vsel %vm14611_vm9, %v1373_v36, %v1081_v51  ;;  %v2804_v25 = vsel %vm1304_vm6, %v2772_v39, %v8946_v28  ;;  %v1176_v28 = vsel %vm1172_vm2, %v7750_v11, %v8416_v53  ;;  %v131_v53 = vld [vmem:[%s14491_s1 + $0xa8] sm:$0x1]  ;;  %v1924_v39 = vrot.slane %v133_v26, 1 }
 0x176   :  { %792 = vrot.lane.b32.xlu1 %v8183_v33, %s7811_s25  ;;  %7297 = vmatprep.mubr.msk.f32.mxu0 %vm1436_vm10, %v1406_v23  ;;  %v2836_v20 = vsel %vm14612_vm7, %v2804_v25, %v2383_v6 }
 0x177   :  { %690 = vrot.lane.b32.xlu0 %v9017_v34, %s7810_s24  ;;  %v2868_v5 = vsel %vm1370_vm8, %v2836_v20, %v2479_v19  ;;  %v1921_v19 = vrot.slane %v131_v53, 1 }
 0x178   :  { %v9051_v27 = vpop.permute.xlu1 %2186 }
 0x179   :  { %v9053_v52 = vpop.permute.xlu0 %2092 }
 0x17a   :  { %1782 = vrot.lane.b32.xlu1 %v8211_v45, %s7807_s21 }
 0x17b   :  { %1090 = vrot.lane.b32.xlu0 %v8183_v33, %s7814_s26  ;;  %v1209_v33 = vsel %vm1205_vm3, %v1176_v28, %v8562_v48 }
 0x17c   :  { %v2583_v21 = vpop.permute.xlu1 %2582  ;;  %v1242_v6 = vsel %vm1238_vm4, %v1209_v33, %v8716_v3  ;;  %v1920_v3 = vrot.slane %v9017_v34, 1 }
 0x17d   :  { %v2481_v30 = vpop.permute.xlu0 %2480  ;;  %v2900_v56 = vsel %vm14611_vm9, %v2868_v5, %v2583_v21  ;;  %v1275_v31 = vsel %vm1271_vm5, %v1242_v6, %v8911_v29  ;;  %v9149_v5 = vld [vmem:[%s14492_s0 + $0xb0] sm:$0xff] }
 0x17e   :  { %2298 = vrot.lane.b32.xlu1 %v8977_v24, %s7811_s25  ;;  %7355 = vmatprep.mubr.msk.f32.mxu1 %vm1436_vm10, %v2900_v56  ;;  %v1308_v58 = vsel %vm1304_vm6, %v1275_v31, %v8968_v0  ;;  %v7751_v0 = vld [vmem:[%s14491_s1 + $0x30] sm:$0xff]  ;;  %v1922_v51 = vsel %vm379_vm0, %v1920_v3, %v1921_v19 }
 0x17f   :  { %2196 = vrot.lane.b32.xlu0 %v8211_v45, %s7810_s24  ;;  %v1341_v48 = vsel %vm14612_vm7, %v1308_v58, %v881_v55  ;;  %v2677_v36 = vsel %vm1172_vm2, %v7751_v0, %v8813_v8 }
 0x180   :  { %v9080_v38 = vpop.permute.xlu1 %784  ;;  %v1374_v32 = vsel %vm1370_vm8, %v1341_v48, %v979_v57  ;;  %v2709_v55 = vsel %vm1205_vm3, %v2677_v36, %v8833_v7  ;;  %v7755_v48 = vld [vmem:[%s14492_s0 + $0x40] sm:$0xff] }
 0x181   :  { %v9082_v49 = vpop.permute.xlu0 %682  ;;  %v2741_v8 = vsel %vm1238_vm4, %v2709_v55, %v8885_v22  ;;  %v1177_v3 = vsel %vm1172_vm2, %v7755_v48, %v8432_v16 }
 0x182   :  { %794 = vrot.lane.b32.xlu1 %v8211_v45, %s7811_s25  ;;  %v2773_v62 = vsel %vm1271_vm5, %v2741_v8, %v8948_v13  ;;  %v1210_v19 = vsel %vm1205_vm3, %v1177_v3, %v8574_v42 }
 0x183   :  { %2592 = vrot.lane.b32.xlu0 %v8977_v24, %s7814_s26  ;;  %v9111_v24 = vld [vmem:[%s14492_s0 + $0xa0] sm:$0xff]  ;;  %v2805_v7 = vsel %vm1304_vm6, %v2773_v62, %v8985_v47 }
 0x184   :  { %v9098_v4 = vpop.permute.xlu1 %1774  ;;  %v2837_v22 = vsel %vm14612_vm7, %v2805_v7, %v9003_v46  ;;  %v9157_v46 = vsel %vm379_vm0, %v1923_v1, %v1924_v39 }
 0x185   :  { %v1083_v17 = vpop.permute.xlu0 %1082  ;;  %v2869_v13 = vsel %vm1370_vm8, %v2837_v22, %v2481_v30 }
 0x186   :  { %v1407_v29 = vsel %vm14611_vm9, %v1374_v32, %v1083_v17  ;;  %1784 = vrot.lane.b32.xlu1 %v8208_v43, %s7807_s21  ;;  %v1243_v32 = vsel %vm1238_vm4, %v1210_v19, %v8726_v59 }
 0x187   :  { %890 = vrot.lane.b32.xlu0 %v9111_v24, %s7812_s28  ;;  %7298 = vmatmul.mubr.msk.f32.gmra.mrb[2].mxu0 %vm1436_vm10, %v1407_v29  ;;  %v1276_v29 = vsel %vm1271_vm5, %v1243_v32, %v9025_v60  ;;  %v7757_v60 = vld [vmem:[%s14491_s1 + $0x40] sm:$0xff] }
 0x188   :  { %v9121_v57 = vpop.permute.xlu1 %2290  ;;  %v1309_v0 = vsel %vm1304_vm6, %v1276_v29, %v9080_v38  ;;  %v2678_v38 = vsel %vm1172_vm2, %v7757_v60, %v8928_v40  ;;  %v137_v60 = vld [vmem:[%s14491_s1 + $0xd8] sm:$0x1] }
 0x189   :  { %v9123_v23 = vpop.permute.xlu0 %2188 }
 0x18a   :  { %2300 = vrot.lane.b32.xlu1 %v1922_v51, %s7811_s25 }
 0x18b   :  { %2006 = vrot.lane.b32.xlu0 %v1922_v51, %s7808_s15 }
 0x18c   :  { %v9143_v25 = vpop.permute.xlu1 %786 }
 0x18d   :  { %v2585_v47 = vpop.permute.xlu0 %2584 }
 0x18e   :  { %v2901_v20 = vsel %vm14611_vm9, %v2869_v13, %v2585_v47  ;;  %892 = vrot.lane.b32.xlu1 %v9149_v5, %s7812_s28 }
 0x18f   :  { %2394 = vrot.lane.b32.xlu0 %v9017_v34, %s7812_s28  ;;  %7356 = vmatmul.mubr.msk.f32.gmra.mrb[2].mxu1 %vm1436_vm10, %v2901_v20 }
 0x190   :  { %v9159_v21 = vpop.permute.xlu1 %1776 }
 0x191   :  { %v883_v30 = vpop.permute.xlu0 %882 }
 0x192   :  { %2008 = vrot.lane.b32.xlu1 %v9157_v46, %s7808_s15  ;;  %v1342_v36 = vsel %vm14612_vm7, %v1309_v0, %v883_v30 }
 0x193   :  { %988 = vrot.lane.b32.xlu0 %v9017_v34, %s7813_s12 }
 0x194   :  { %v9165_v56 = vpop.permute.xlu1 %2292 }
 0x195   :  { %v9167_v11 = vpop.permute.xlu0 %1998 }
 0x196   :  { %2396 = vrot.lane.b32.xlu1 %v9139_v12, %s7812_s28 }
 0x197   :  { %2102 = vrot.lane.b32.xlu0 %v9139_v12, %s7809_s18 }
 0x198   :  { %v885_v28 = vpop.permute.xlu1 %884 }
 0x199   :  { %v2387_v33 = vpop.permute.xlu0 %2386 }
 0x19a   :  { %692 = vrot.lane.b32.xlu1 %v9139_v12, %s7810_s24 }
 0x19b   :  { %2490 = vrot.lane.b32.xlu0 %v8211_v45, %s7813_s12 }
 0x19c   :  { %v9177_v6 = vpop.permute.xlu1 %2000 }
 0x19d   :  { %v981_v53 = vpop.permute.xlu0 %980 }
 0x19e   :  { %1092 = vrot.lane.b32.xlu1 %v8211_v45, %s7814_s26  ;;  %v9197_v45 = vld [vmem:[%s14491_s1 + $0xc0] sm:$0xff]  ;;  %v1375_v42 = vsel %vm1370_vm8, %v1342_v36, %v981_v53 }
 0x19f   :  { %990 = vrot.lane.b32.xlu0 %v9139_v12, %s7813_s12 }
 0x1a0   :  { %v9183_v31 = vpop.permute.xlu1 %2388 }
 0x1a1   :  { %v9185_v58 = vpop.permute.xlu0 %2094 }
 0x1a2   :  { %2198 = vrot.lane.b32.xlu1 %v8208_v43, %s7810_s24 }
 0x1a3   :  { %2104 = vrot.lane.b32.xlu0 %v9197_v45, %s7809_s18 }
 0x1a4   :  { %v9205_v17 = vpop.permute.xlu1 %684 }
 0x1a5   :  { %v2483_v16 = vpop.permute.xlu0 %2482 }
 0x1a6   :  { %2594 = vrot.lane.b32.xlu1 %v1922_v51, %s7814_s26  ;;  %v2710_v51 = vsel %vm1205_vm3, %v2678_v38, %v8987_v15 }
 0x1a7   :  { %2492 = vrot.lane.b32.xlu0 %v8208_v43, %s7813_s12  ;;  %v2742_v26 = vsel %vm1238_vm4, %v2710_v51, %v9005_v44  ;;  %v1930_v51 = vrot.slane %v137_v60, 1  ;;  %v14719_v60 = vld [vmem:[#allocation4_spill] sm:$0xff] }
 0x1a8   :  { %v1085_v55 = vpop.permute.xlu1 %1084  ;;  %v2774_v40 = vsel %vm1271_vm5, %v2742_v26, %v9051_v27  ;;  %v7758_v27 = vld [vmem:[%s14492_s0 + $0x50] sm:$0xff] }
 0x1a9   :  { %v983_v59 = vpop.permute.xlu0 %982  ;;  %v1408_v8 = vsel %vm14611_vm9, %v1375_v42, %v1085_v55  ;;  %v2806_v22 = vsel %vm1304_vm6, %v2774_v40, %v9121_v57  ;;  %v1178_v57 = vsel %vm1172_vm2, %v7758_v27, %v8430_v14  ;;  %v135_v14 = vld [vmem:[%s14491_s1 + $0xc8] sm:$0x1] }
 0x1aa   :  { %796 = vrot.lane.b32.xlu1 %v8208_v43, %s7811_s25  ;;  %7300 = vmatprep.mubr.msk.f32.mxu0 %vm1436_vm10, %v1408_v8  ;;  %v2838_v15 = vsel %vm14612_vm7, %v2806_v22, %v2387_v33  ;;  %v1927_v48 = vrot.slane %v135_v14, 1  ;;  %v7764_v14 = vld [vmem:[%s14492_s0 + $0x60] sm:$0xff] }
 0x1ab   :  { %694 = vrot.lane.b32.xlu0 %v9197_v45, %s7810_s24  ;;  %v2870_v44 = vsel %vm1370_vm8, %v2838_v15, %v2483_v16 }
 0x1ac   :  { %v9231_v62 = vpop.permute.xlu1 %2190 }
 0x1ad   :  { %v9233_v7 = vpop.permute.xlu0 %2096 }
 0x1ae   :  { %1786 = vrot.lane.b32.xlu1 %v8234_v10, %s7807_s21 }
 0x1af   :  { %1094 = vrot.lane.b32.xlu0 %v8208_v43, %s7814_s26  ;;  %v1211_v43 = vsel %vm1205_vm3, %v1178_v57, %v8572_v61  ;;  %v9364_v57 = vld [vmem:[%s14492_s0 + $0xe0] sm:$0xff] }
 0x1b0   :  { %v2587_v1 = vpop.permute.xlu1 %2586  ;;  %v1244_v47 = vsel %vm1238_vm4, %v1211_v43, %v8724_v50  ;;  %v1926_v50 = vrot.slane %v9197_v45, 1 }
 0x1b1   :  { %v2485_v39 = vpop.permute.xlu0 %2484  ;;  %v2902_v13 = vsel %vm14611_vm9, %v2870_v44, %v2587_v1  ;;  %v1277_v33 = vsel %vm1271_vm5, %v1244_v47, %v9082_v49 }
 0x1b2   :  { %2302 = vrot.lane.b32.xlu1 %v9157_v46, %s7811_s25  ;;  %7358 = vmatprep.mubr.msk.f32.mxu1 %vm1436_vm10, %v2902_v13  ;;  %v1310_v53 = vsel %vm1304_vm6, %v1277_v33, %v9143_v25  ;;  %v7759_v25 = vld [vmem:[%s14491_s1 + $0x50] sm:$0xff]  ;;  %v1928_v29 = vsel %vm379_vm0, %v1926_v50, %v1927_v48  ;;  %v1179_v33 = vsel %vm1172_vm2, %v7764_v14, %v8440_v41 }
 0x1b3   :  { %2200 = vrot.lane.b32.xlu0 %v8234_v10, %s7810_s24  ;;  %v1343_v61 = vsel %vm14612_vm7, %v1310_v53, %v885_v28  ;;  %v2679_v16 = vsel %vm1172_vm2, %v7759_v25, %v8979_v18  ;;  %v1212_v53 = vsel %vm1205_vm3, %v1179_v33, %v8585_v35 }
 0x1b4   :  { %v9260_v20 = vpop.permute.xlu1 %788  ;;  %v1376_v3 = vsel %vm1370_vm8, %v1343_v61, %v983_v59  ;;  %v2711_v28 = vsel %vm1205_vm3, %v2679_v16, %v8997_v54  ;;  %v1245_v61 = vsel %vm1238_vm4, %v1212_v53, %v8734_v2 }
 0x1b5   :  { %v9262_v30 = vpop.permute.xlu0 %686  ;;  %v2743_v18 = vsel %vm1238_vm4, %v2711_v28, %v9053_v52 }
 0x1b6   :  { %798 = vrot.lane.b32.xlu1 %v8234_v10, %s7811_s25  ;;  %v2775_v42 = vsel %vm1271_vm5, %v2743_v18, %v9123_v23 }
 0x1b7   :  { %2596 = vrot.lane.b32.xlu0 %v9157_v46, %s7814_s26  ;;  %v9291_v46 = vld [vmem:[%s14492_s0 + $0xc0] sm:$0xff]  ;;  %v2807_v55 = vsel %vm1304_vm6, %v2775_v42, %v9165_v56  ;;  %v9323_v56 = vld [vmem:[%s14492_s0 + $0xd0] sm:$0xff] }
 0x1b8   :  { %v9278_v19 = vpop.permute.xlu1 %1778  ;;  %v2839_v54 = vsel %vm14612_vm7, %v2807_v55, %v9183_v31  ;;  %v9333_v31 = vld [vmem:[%s14491_s1 + $0xd0] sm:$0xff] }
 0x1b9   :  { %v1087_v32 = vpop.permute.xlu0 %1086  ;;  %v2871_v59 = vsel %vm1370_vm8, %v2839_v54, %v2485_v39  ;;  %v1929_v38 = vrot.slane %v9333_v31, 1 }
 0x1ba   :  { %v1409_v49 = vsel %vm14611_vm9, %v1376_v3, %v1087_v32  ;;  %1788 = vrot.lane.b32.xlu1 %v8231_v63, %s7807_s21  ;;  %v1278_v3 = vsel %vm1271_vm5, %v1245_v61, %v9205_v17 }
 0x1bb   :  { %894 = vrot.lane.b32.xlu0 %v9291_v46, %s7812_s28  ;;  %7301 = vmatmul.mubr.msk.f32.gmra.mrb[4].mxu0 %vm1436_vm10, %v1409_v49  ;;  %v9343_v22 = vsel %vm379_vm0, %v1929_v38, %v1930_v51  ;;  %v1311_v41 = vsel %vm1304_vm6, %v1278_v3, %v9260_v20  ;;  %v7766_v20 = vld [vmem:[%s14491_s1 + $0x60] sm:$0xff] }
 0x1bc   :  { %v9301_v0 = vpop.permute.xlu1 %2294  ;;  %v2680_v25 = vsel %vm1172_vm2, %v7766_v20, %v9098_v4  ;;  %v14721_v51 = vld [vmem:[#allocation71_spill] sm:$0xff] }
 0x1bd   :  { %v9303_v36 = vpop.permute.xlu0 %2192  ;;  %v2712_v16 = vsel %vm1205_vm3, %v2680_v25, %v9167_v11 }
 0x1be   :  { %2304 = vrot.lane.b32.xlu1 %v1928_v29, %s7811_s25  ;;  %v2744_v28 = vsel %vm1238_vm4, %v2712_v16, %v9185_v58 }
 0x1bf   :  { %2010 = vrot.lane.b32.xlu0 %v1928_v29, %s7808_s15  ;;  %v2776_v4 = vsel %vm1271_vm5, %v2744_v28, %v9231_v62  ;;  %v7767_v62 = vld [vmem:[%s14492_s0 + $0x70] sm:$0xff] }
 0x1c0   :  { %v9314_v52 = vpop.permute.xlu1 %790 }
 0x1c1   :  { %v2589_v8 = vpop.permute.xlu0 %2588 }
 0x1c2   :  { %v2903_v23 = vsel %vm14611_vm9, %v2871_v59, %v2589_v8  ;;  %598 = vrot.lane.b32.xlu1 %v9323_v56, %s7809_s18  ;;  %v14718_v8 = vld [vmem:[#allocation21_spill] sm:$0xff] }
 0x1c3   :  { %2398 = vrot.lane.b32.xlu0 %v9197_v45, %s7812_s28  ;;  %7359 = vmatmul.mubr.msk.f32.gmra.mrb[4].mxu1 %vm1436_vm10, %v2903_v23  ;;  %v14720_v23 = vld [vmem:[#allocation46_spill] sm:$0xff] }
 0x1c4   :  { %v9336_v26 = vpop.permute.xlu1 %1780 }
 0x1c5   :  { %v887_v40 = vpop.permute.xlu0 %886 }
 0x1c6   :  { %992 = vrot.lane.b32.xlu1 %v9197_v45, %s7813_s12  ;;  %v1344_v35 = vsel %vm14612_vm7, %v1311_v41, %v887_v40 }
 0x1c7   :  { %896 = vrot.lane.b32.xlu0 %v9323_v56, %s7812_s28 }
 0x1c8   :  { %v9345_v15 = vpop.permute.xlu1 %2296 }
 0x1c9   :  { %v9347_v44 = vpop.permute.xlu0 %2002 }
 0x1ca   :  { %2106 = vrot.lane.b32.xlu1 %v9333_v31, %s7809_s18 }
 0x1cb   :  { %2012 = vrot.lane.b32.xlu0 %v9343_v22, %s7808_s15 }
 0x1cc   :  { %v889_v1 = vpop.permute.xlu1 %888 }
 0x1cd   :  { %v2391_v39 = vpop.permute.xlu0 %2390 }
 0x1ce   :  { %2494 = vrot.lane.b32.xlu1 %v8234_v10, %s7813_s12 }
 0x1cf   :  { %2400 = vrot.lane.b32.xlu0 %v9333_v31, %s7812_s28 }
 0x1d0   :  { %v9357_v13 = vpop.permute.xlu1 %2004 }
 0x1d1   :  { %v985_v27 = vpop.permute.xlu0 %984 }
 0x1d2   :  { %696 = vrot.lane.b32.xlu1 %v9333_v31, %s7810_s24  ;;  %v1377_v2 = vsel %vm1370_vm8, %v1344_v35, %v985_v27 }
 0x1d3   :  { %600 = vrot.lane.b32.xlu0 %v9364_v57, %s7809_s18 }
 0x1d4   :  { %v9368_v43 = vpop.permute.xlu1 %2392 }
 0x1d5   :  { %v9370_v47 = vpop.permute.xlu0 %2098 }
 0x1d6   :  { %1096 = vrot.lane.b32.xlu1 %v8234_v10, %s7814_s26  ;;  %v9396_v10 = vld [vmem:[%s14491_s1 + $0xe0] sm:$0xff] }
 0x1d7   :  { %994 = vrot.lane.b32.xlu0 %v9333_v31, %s7813_s12  ;;  %v1932_v35 = vrot.slane %v9396_v10, 1 }
 0x1d8   :  { %v9385_v50 = vpop.permute.xlu1 %688 }
 0x1d9   :  { %v2487_v48 = vpop.permute.xlu0 %2486 }
 0x1da   :  { %2202 = vrot.lane.b32.xlu1 %v8231_v63, %s7810_s24 }
 0x1db   :  { %2108 = vrot.lane.b32.xlu0 %v9396_v10, %s7809_s18 }
 0x1dc   :  { %v1089_v32 = vpop.permute.xlu1 %1088 }
 0x1dd   :  { %v987_v17 = vpop.permute.xlu0 %986  ;;  %v1410_v49 = vsel %vm14611_vm9, %v1377_v2, %v1089_v32 }
 0x1de   :  { %2598 = vrot.lane.b32.xlu1 %v1928_v29, %s7814_s26  ;;  %7303 = vmatprep.mubr.msk.f32.mxu0 %vm1436_vm10, %v1410_v49  ;;  %v2808_v29 = vsel %vm1304_vm6, %v2776_v4, %v9301_v0  ;;  %v1180_v0 = vsel %vm1172_vm2, %v7767_v62, %v14718_v8 }
 0x1df   :  { %2496 = vrot.lane.b32.xlu0 %v8231_v63, %s7813_s12  ;;  %v2840_v11 = vsel %vm14612_vm7, %v2808_v29, %v2391_v39  ;;  %v1213_v38 = vsel %vm1205_vm3, %v1180_v0, %v14720_v23  ;;  %v9510_v29 = vld [vmem:[%s14492_s0 + $0xf0] sm:$0xff] }
 0x1e0   :  { %v9416_v18 = vpop.permute.xlu1 %2194  ;;  %v2872_v58 = vsel %vm1370_vm8, %v2840_v11, %v2487_v48  ;;  %v1246_v40 = vsel %vm1238_vm4, %v1213_v38, %v14721_v51  ;;  %v9519_v11 = vld [vmem:[%s14491_s1 + $0xf0] sm:$0xff]  ;;  %v9548_v51 = vld [vmem:[%s14492_s0 + $0x100] sm:$0xff] }
 0x1e1   :  { %v9418_v42 = vpop.permute.xlu0 %2100  ;;  %v1279_v14 = vsel %vm1271_vm5, %v1246_v40, %v9262_v30  ;;  %v139_v30 = vld [vmem:[%s14491_s1 + $0xe8] sm:$0x1] }
 0x1e2   :  { %800 = vrot.lane.b32.xlu1 %v8231_v63, %s7811_s25  ;;  %v1312_v33 = vsel %vm1304_vm6, %v1279_v14, %v9314_v52  ;;  %v7768_v52 = vld [vmem:[%s14491_s1 + $0x70] sm:$0xff]  ;;  %v1933_v2 = vrot.slane %v139_v30, 1 }
 0x1e3   :  { %698 = vrot.lane.b32.xlu0 %v9396_v10, %s7810_s24  ;;  %v2681_v41 = vsel %vm1172_vm2, %v7768_v52, %v9159_v21 }
 0x1e4   :  { %v2591_v55 = vpop.permute.xlu1 %2590 }
 0x1e5   :  { %v2489_v54 = vpop.permute.xlu0 %2488  ;;  %v2904_v59 = vsel %vm14611_vm9, %v2872_v58, %v2591_v55  ;;  %v1935_v58 = vrot.slane %v9519_v11, 1 }
 0x1e6   :  { %1790 = vrot.lane.b32.xlu1 %v14719_v60, %s7807_s21  ;;  %7361 = vmatprep.mubr.msk.f32.mxu1 %vm1436_vm10, %v2904_v59 }
 0x1e7   :  { %1098 = vrot.lane.b32.xlu0 %v8231_v63, %s7814_s26  ;;  %v1345_v63 = vsel %vm14612_vm7, %v1312_v33, %v889_v1  ;;  %v2713_v1 = vsel %vm1205_vm3, %v2681_v41, %v9177_v6  ;;  %v14722_v6 = vld [vmem:[#allocation3_spill] sm:$0xff] }
 0x1e8   :  { %v9445_v39 = vpop.permute.xlu1 %792  ;;  %v1378_v53 = vsel %vm1370_vm8, %v1345_v63, %v987_v17  ;;  %v2745_v32 = vsel %vm1238_vm4, %v2713_v1, %v9233_v7  ;;  %v1934_v7 = vsel %vm379_vm0, %v1932_v35, %v1933_v2  ;;  %v7771_v33 = vld [vmem:[%s14492_s0 + $0x80] sm:$0xff] }
 0x1e9   :  { %v9447_v27 = vpop.permute.xlu0 %690  ;;  %v2777_v49 = vsel %vm1271_vm5, %v2745_v32, %v9303_v36  ;;  %v14723_v63 = vld [vmem:[#allocation23_spill] sm:$0xff] }
 0x1ea   :  { %2306 = vrot.lane.b32.xlu1 %v9343_v22, %s7811_s25 }
 0x1eb   :  { %2204 = vrot.lane.b32.xlu0 %v14719_v60, %s7810_s24 }
 0x1ec   :  { %v9459_v61 = vpop.permute.xlu1 %1782 }
 0x1ed   :  { %v1091_v48 = vpop.permute.xlu0 %1090 }
 0x1ee   :  { %v1411_v3 = vsel %vm14611_vm9, %v1378_v53, %v1091_v48  ;;  %802 = vrot.lane.b32.xlu1 %v14719_v60, %s7811_s25  ;;  %v1181_v53 = vsel %vm1172_vm2, %v7771_v33, %v14723_v63  ;;  %v14724_v48 = vld [vmem:[#allocation48_spill] sm:$0xff]  ;;  %v770_v63 = vrot.slane %v9548_v51, 1 }
 0x1ef   :  { %2600 = vrot.lane.b32.xlu0 %v9343_v22, %s7814_s26  ;;  %7304 = vmatmul.mubr.msk.f32.gmra.mrb[6].mxu0 %vm1436_vm10, %v1411_v3  ;;  %v2809_v22 = vsel %vm1304_vm6, %v2777_v49, %v9345_v15  ;;  %v1214_v30 = vsel %vm1205_vm3, %v1181_v53, %v14724_v48  ;;  %v14725_v3 = vld [vmem:[#allocation73_spill] sm:$0xff]  ;;  %v9581_v49 = vld [vmem:[%s14491_s1 + $0x100] sm:$0xff]  ;;  %v14728_v48 = vld [vmem:[#allocation72_spill] sm:$0xff] }
 0x1f0   :  { %v9480_v17 = vpop.permute.xlu1 %2298  ;;  %v2841_v20 = vsel %vm14612_vm7, %v2809_v22, %v9368_v43  ;;  %v141_v43 = vld [vmem:[%s14491_s1 + $0xf8] sm:$0x1]  ;;  %v1247_v52 = vsel %vm1238_vm4, %v1214_v30, %v14725_v3 }
 0x1f1   :  { %v9482_v21 = vpop.permute.xlu0 %2196  ;;  %v2873_v25 = vsel %vm1370_vm8, %v2841_v20, %v2489_v54  ;;  %v1936_v55 = vrot.slane %v141_v43, 1  ;;  %v1280_v35 = vsel %vm1271_vm5, %v1247_v52, %v9385_v50 }
 0x1f2   :  { %1792 = vrot.lane.b32.xlu1 %v14722_v6, %s7807_s21  ;;  %v1313_v2 = vsel %vm1304_vm6, %v1280_v35, %v9445_v39 }
 0x1f3   :  { %898 = vrot.lane.b32.xlu0 %v9364_v57, %s7812_s28  ;;  %v9531_v62 = vsel %vm379_vm0, %v1935_v58, %v1936_v55  ;;  %v71_v55 = vld [vmem:[%s14492_s0 + $0x108] sm:$0x1] }
 0x1f4   :  { %v9496_v16 = vpop.permute.xlu1 %794  ;;  %v771_v53 = vrot.slane %v71_v55, 1 }
 0x1f5   :  { %v2593_v28 = vpop.permute.xlu0 %2592 }
 0x1f6   :  { %v2905_v36 = vsel %vm14611_vm9, %v2873_v25, %v2593_v28  ;;  %2308 = vrot.lane.b32.xlu1 %v1934_v7, %s7811_s25 }
 0x1f7   :  { %2014 = vrot.lane.b32.xlu0 %v1934_v7, %s7808_s15  ;;  %7362 = vmatmul.mubr.msk.f32.gmra.mrb[6].mxu1 %vm1436_vm10, %v2905_v36 }
 0x1f8   :  { %v9502_v15 = vpop.permute.xlu1 %1784 }
 0x1f9   :  { %v891_v4 = vpop.permute.xlu0 %890 }
 0x1fa   :  { %602 = vrot.lane.b32.xlu1 %v9510_v29, %s7809_s18  ;;  %v1346_v32 = vsel %vm14612_vm7, %v1313_v2, %v891_v4  ;;  %v14729_v2 = vld [vmem:[#allocation6_spill] sm:$0xff] }
 0x1fb   :  { %2402 = vrot.lane.b32.xlu0 %v9396_v10, %s7812_s28 }
 0x1fc   :  { %v9522_v54 = vpop.permute.xlu1 %2300 }
 0x1fd   :  { %v9524_v59 = vpop.permute.xlu0 %2006 }
 0x1fe   :  { %996 = vrot.lane.b32.xlu1 %v9396_v10, %s7813_s12 }
 0x1ff   :  { %900 = vrot.lane.b32.xlu0 %v9510_v29, %s7812_s28 }
 0x200   :  { %v9533_v8 = vpop.permute.xlu1 %892 }
 0x201   :  { %v2395_v0 = vpop.permute.xlu0 %2394 }
 0x202   :  { %2110 = vrot.lane.b32.xlu1 %v9519_v11, %s7809_s18 }
 0x203   :  { %2016 = vrot.lane.b32.xlu0 %v9531_v62, %s7808_s15 }
 0x204   :  { %v9539_v23 = vpop.permute.xlu1 %2008 }
 0x205   :  { %v989_v38 = vpop.permute.xlu0 %988 }
 0x206   :  { %2498 = vrot.lane.b32.xlu1 %v14719_v60, %s7813_s12  ;;  %v1379_v22 = vsel %vm1370_vm8, %v1346_v32, %v989_v38 }
 0x207   :  { %2404 = vrot.lane.b32.xlu0 %v9519_v11, %s7812_s28 }
 0x208   :  { %v9550_v40 = vpop.permute.xlu1 %2396 }
 0x209   :  { %v9552_v14 = vpop.permute.xlu0 %2102 }
 0x20a   :  { %700 = vrot.lane.b32.xlu1 %v9519_v11, %s7810_s24 }
 0x20b   :  { %604 = vrot.lane.b32.xlu0 %v9548_v51, %s7809_s18 }
 0x20c   :  { %v9567_v41 = vpop.permute.xlu1 %692 }
 0x20d   :  { %v2491_v1 = vpop.permute.xlu0 %2490 }
 0x20e   :  { %1100 = vrot.lane.b32.xlu1 %v14719_v60, %s7814_s26  ;;  %v2682_v60 = vsel %vm1172_vm2, %v8874_v37, %v9278_v19 }
 0x20f   :  { %998 = vrot.lane.b32.xlu0 %v9519_v11, %s7813_s12  ;;  %v2714_v39 = vsel %vm1205_vm3, %v2682_v60, %v9347_v44 }
 0x210   :  { %v1093_v20 = vpop.permute.xlu1 %1092  ;;  %v2746_v28 = vsel %vm1238_vm4, %v2714_v39, %v9370_v47 }
 0x211   :  { %v991_v50 = vpop.permute.xlu0 %990  ;;  %v1412_v25 = vsel %vm14611_vm9, %v1379_v22, %v1093_v20  ;;  %v2778_v37 = vsel %vm1271_vm5, %v2746_v28, %v9416_v18  ;;  %v9644_v22 = vsel %vm379_vm0, %v770_v63, %v771_v53  ;;  %v9677_v28 = vld [vmem:[%s14491_s1 + $0x120] sm:$0xff] }
 0x212   :  { %2206 = vrot.lane.b32.xlu1 %v14722_v6, %s7810_s24  ;;  %7306 = vmatprep.mubr.msk.f32.mxu0 %vm1436_vm10, %v1412_v25  ;;  %v2810_v19 = vsel %vm1304_vm6, %v2778_v37, %v9480_v17  ;;  %v7772_v17 = vld [vmem:[%s14492_s0 + $0x90] sm:$0xff] }
 0x213   :  { %2112 = vrot.lane.b32.xlu0 %v9581_v49, %s7809_s18  ;;  %v2842_v44 = vsel %vm14612_vm7, %v2810_v19, %v2395_v0  ;;  %v14727_v0 = vld [vmem:[#allocation47_spill] sm:$0xff] }
 0x214   :  { %v9597_v36 = vpop.permute.xlu1 %2198  ;;  %v2874_v43 = vsel %vm1370_vm8, %v2842_v44, %v2491_v1 }
 0x215   :  { %v9599_v4 = vpop.permute.xlu0 %2104 }
 0x216   :  { %2602 = vrot.lane.b32.xlu1 %v1934_v7, %s7814_s26  ;;  %v14726_v7 = vld [vmem:[#allocation22_spill] sm:$0xff] }
 0x217   :  { %2500 = vrot.lane.b32.xlu0 %v14722_v6, %s7813_s12  ;;  %v1182_v38 = vsel %vm1172_vm2, %v7772_v17, %v14726_v7 }
 0x218   :  { %v2595_v47 = vpop.permute.xlu1 %2594  ;;  %v1215_v33 = vsel %vm1205_vm3, %v1182_v38, %v14727_v0  ;;  %v14730_v38 = vld [vmem:[#allocation5_spill] sm:$0xff] }
 0x219   :  { %v2493_v58 = vpop.permute.xlu0 %2492  ;;  %v2906_v18 = vsel %vm14611_vm9, %v2874_v43, %v2595_v47  ;;  %v1248_v30 = vsel %vm1238_vm4, %v1215_v33, %v14728_v48  ;;  %v2276_v43 = vrot.slane %v9581_v49, 1 }
 0x21a   :  { %804 = vrot.lane.b32.xlu1 %v14722_v6, %s7811_s25  ;;  %7364 = vmatprep.mubr.msk.f32.mxu1 %vm1436_vm10, %v2906_v18  ;;  %v1281_v1 = vsel %vm1271_vm5, %v1248_v30, %v9447_v27 }
 0x21b   :  { %702 = vrot.lane.b32.xlu0 %v9581_v49, %s7810_s24  ;;  %v1314_v35 = vsel %vm1304_vm6, %v1281_v1, %v9496_v16  ;;  %v2683_v16 = vsel %vm1172_vm2, %v8964_v9, %v9336_v26  ;;  %v143_v9 = vld [vmem:[%s14491_s1 + $0x108] sm:$0x1]  ;;  %v149_v1 = vld [vmem:[%s14491_s1 + $0x138] sm:$0x1] }
 0x21c   :  { %v9629_v3 = vpop.permute.xlu1 %796  ;;  %v1347_v32 = vsel %vm14612_vm7, %v1314_v35, %v9533_v8  ;;  %v147_v26 = vld [vmem:[%s14491_s1 + $0x128] sm:$0x1]  ;;  %v2277_v47 = vrot.slane %v143_v9, 1 }
 0x21d   :  { %v9631_v52 = vpop.permute.xlu0 %694  ;;  %v1380_v20 = vsel %vm1370_vm8, %v1347_v32, %v991_v50  ;;  %v1939_v55 = vrot.slane %v147_v26, 1  ;;  %v72_v32 = vld [vmem:[%s14492_s0 + $0x110] sm:$0xff] }
 0x21e   :  { %1794 = vrot.lane.b32.xlu1 %v14729_v2, %s7807_s21  ;;  %v9719_v2 = vld [vmem:[%s14492_s0 + $0x130] sm:$0xff] }
 0x21f   :  { %1102 = vrot.lane.b32.xlu0 %v14722_v6, %s7814_s26  ;;  %v2715_v6 = vsel %vm1205_vm3, %v2683_v16, %v9357_v13 }
 0x220   :  { %v9647_v25 = vpop.permute.xlu1 %1786  ;;  %v2747_v8 = vsel %vm1238_vm4, %v2715_v6, %v9418_v42  ;;  %v1938_v42 = vrot.slane %v9677_v28, 1 }
 0x221   :  { %v1095_v27 = vpop.permute.xlu0 %1094  ;;  %v2779_v13 = vsel %vm1271_vm5, %v2747_v8, %v9482_v21 }
 0x222   :  { %v1413_v60 = vsel %vm14611_vm9, %v1380_v20, %v1095_v27  ;;  %2310 = vrot.lane.b32.xlu1 %v9531_v62, %s7811_s25  ;;  %v2811_v37 = vsel %vm1304_vm6, %v2779_v13, %v9522_v54  ;;  %v9731_v20 = vld [vmem:[%s14491_s1 + $0x130] sm:$0xff] }
 0x223   :  { %2208 = vrot.lane.b32.xlu0 %v9644_v22, %s7810_s24  ;;  %7307 = vmatmul.mubr.msk.f32.gmra.mrb[8].mxu0 %vm1436_vm10, %v1413_v60  ;;  %v2843_v21 = vsel %vm14612_vm7, %v2811_v37, %v9550_v40  ;;  %v1940_v40 = vsel %vm379_vm0, %v1938_v42, %v1939_v55  ;;  %v1941_v27 = vrot.slane %v9731_v20, 1  ;;  %v1942_v60 = vrot.slane %v149_v1, 1  ;;  %v9751_v13 = vld [vmem:[%s14491_s1 + $0x110] sm:$0xff] }
 0x224   :  { %v9662_v50 = vpop.permute.xlu1 %2302  ;;  %v2875_v18 = vsel %vm1370_vm8, %v2843_v21, %v2493_v58  ;;  %v14731_v21 = vld [vmem:[#allocation25_spill] sm:$0xff] }
 0x225   :  { %v9664_v39 = vpop.permute.xlu0 %2200  ;;  %v9740_v8 = vsel %vm379_vm0, %v1941_v27, %v1942_v60 }
 0x226   :  { %v7296_v19 = vpop.f32.mrb[0].mxu0  ;;  %806 = vrot.lane.b32.xlu1 %v9644_v22, %s7811_s25 }
 0x227   :  { %2604 = vrot.lane.b32.xlu0 %v9531_v62, %s7814_s26  ;;  %v1603_v44 = vpop.f32.mrb[1].mxu0  ;;  %v9699_v62 = vsel %vm379_vm0, %v2276_v43, %v2277_v47  ;;  %v9771_v43 = vld [vmem:[%s14492_s0 + $0x140] sm:$0xff]  ;;  %v14732_v47 = vld [vmem:[#allocation50_spill] sm:$0xff] }
 0x228   :  { %v9690_v17 = vpop.permute.xlu1 %798 }
 0x229   :  { %v2597_v54 = vpop.permute.xlu0 %2596 }
 0x22a   :  { %v2907_v7 = vsel %vm14611_vm9, %v2875_v18, %v2597_v54  ;;  %1796 = vrot.lane.b32.xlu1 %v14730_v38, %s7807_s21  ;;  %v14733_v18 = vld [vmem:[#allocation75_spill] sm:$0xff] }
 0x22b   :  { %902 = vrot.lane.b32.xlu0 %v9548_v51, %s7812_s28  ;;  %7365 = vmatmul.mubr.msk.f32.gmra.mrb[8].mxu1 %vm1436_vm10, %v2907_v7 }
 0x22c   :  { %v9702_v0 = vpop.permute.xlu1 %1788 }
 0x22d   :  { %v895_v58 = vpop.permute.xlu0 %894 }
 0x22e   :  { %v7354_v33 = vpop.f32.mrb[0].mxu1  ;;  %2312 = vrot.lane.b32.xlu1 %v9699_v62, %s7811_s25 }
 0x22f   :  { %2018 = vrot.lane.b32.xlu0 %v1940_v40, %s7808_s15  ;;  %v3252_v63 = vmax.f32 %v7296_v19, %v7354_v33  ;;  %v3092_v53 = vpop.f32.mrb[1].mxu1  ;;  %v73_v40 = vld [vmem:[%s14492_s0 + $0x118] sm:$0x1] }
 0x230   :  { %v3251_v48 = vmax.f32 %v1603_v44, %v3092_v53  ;;  %v9707_v51 = vpop.permute.xlu1 %2304  ;;  %v1183_v44 = vsel %vm1172_vm2, %v9111_v24, %v14731_v21  ;;  %v1071_v1 = vrot.slane %v73_v40, 1  ;;  %v14734_v40 = vld [vmem:[#allocation24_spill] sm:$0xff] }
 0x231   :  { %v9709_v30 = vpop.permute.xlu0 %2010  ;;  %v1216_v55 = vsel %vm1205_vm3, %v1183_v44, %v14732_v47 }
 0x232   :  { %v9714_v35 = vmax.f32 %v3251_v48, %v3252_v63  ;;  %606 = vrot.lane.b32.xlu1 %v9719_v2, %s7809_s18  ;;  %v1249_v54 = vsel %vm1238_vm4, %v1216_v55, %v14733_v18  ;;  %v1070_v48 = vrot.slane %v72_v32, 1 }
 0x233   :  { %2406 = vrot.lane.b32.xlu0 %v9581_v49, %s7812_s28  ;;  %v1282_v33 = vsel %vm1271_vm5, %v1249_v54, %v9567_v41  ;;  %v2684_v41 = vsel %vm1172_vm2, %v9017_v34, %v9459_v61 }
 0x234   :  { %v9734_v16 = vpop.permute.xlu1 %598  ;;  %v1315_v63 = vsel %vm1304_vm6, %v1282_v33, %v9629_v3  ;;  %v9805_v3 = vld [vmem:[%s14491_s1 + $0x140] sm:$0xff] }
 0x235   :  { %v2399_v6 = vpop.permute.xlu0 %2398  ;;  %v1348_v53 = vsel %vm14612_vm7, %v1315_v63, %v895_v58  ;;  %v1072_v58 = vsel %vm379_vm0, %v1070_v48, %v1071_v1  ;;  %v14737_v48 = vld [vmem:[#allocation8_spill] sm:$0xff] }
 0x236   :  { %1000 = vrot.lane.b32.xlu1 %v9581_v49, %s7813_s12 }
 0x237   :  { %904 = vrot.lane.b32.xlu0 %v72_v32, %s7812_s28 }
 0x238   :  { %v993_v9 = vpop.permute.xlu1 %992 }
 0x239   :  { %v9742_v26 = vpop.permute.xlu0 %896  ;;  %v1381_v27 = vsel %vm1370_vm8, %v1348_v53, %v993_v9 }
 0x23a   :  { %2114 = vrot.lane.b32.xlu1 %v9731_v20, %s7809_s18 }
 0x23b   :  { %2020 = vrot.lane.b32.xlu0 %v9740_v8, %s7808_s15 }
 0x23c   :  { %v9753_v49 = vpop.permute.xlu1 %2106 }
 0x23d   :  { %v9755_v42 = vpop.permute.xlu0 %2012 }
 0x23e   :  { %2502 = vrot.lane.b32.xlu1 %v9644_v22, %s7813_s12 }
 0x23f   :  { %2408 = vrot.lane.b32.xlu0 %v9751_v13, %s7812_s28 }
 0x240   :  { %v2495_v37 = vpop.permute.xlu1 %2494 }
 0x241   :  { %v9761_v19 = vpop.permute.xlu0 %2400 }
 0x242   :  { %704 = vrot.lane.b32.xlu1 %v9731_v20, %s7810_s24 }
 0x243   :  { %608 = vrot.lane.b32.xlu0 %v9771_v43, %s7809_s18 }
 0x244   :  { %v9779_v7 = vpop.permute.xlu1 %696 }
 0x245   :  { %v9781_v24 = vpop.permute.xlu0 %600 }
 0x246   :  { %1104 = vrot.lane.b32.xlu1 %v9644_v22, %s7814_s26  ;;  %v2716_v22 = vsel %vm1205_vm3, %v2684_v41, %v9524_v59 }
 0x247   :  { %1002 = vrot.lane.b32.xlu0 %v9751_v13, %s7813_s12  ;;  %v2748_v34 = vsel %vm1238_vm4, %v2716_v22, %v9552_v14 }
 0x248   :  { %v1097_v60 = vpop.permute.xlu1 %1096  ;;  %v2780_v9 = vsel %vm1271_vm5, %v2748_v34, %v9597_v36  ;;  %v1184_v36 = vsel %vm1172_vm2, %v9149_v5, %v14734_v40  ;;  %v145_v5 = vld [vmem:[%s14491_s1 + $0x118] sm:$0x1] }
 0x249   :  { %v995_v21 = vpop.permute.xlu0 %994  ;;  %v1414_v44 = vsel %vm14611_vm9, %v1381_v27, %v1097_v60  ;;  %v2812_v47 = vsel %vm1304_vm6, %v2780_v9, %v9662_v50  ;;  %v14735_v50 = vld [vmem:[#allocation49_spill] sm:$0xff]  ;;  %v2572_v27 = vrot.slane %v9751_v13, 1  ;;  %v2573_v60 = vrot.slane %v145_v5, 1 }
 0x24a   :  { %2210 = vrot.lane.b32.xlu1 %v14730_v38, %s7810_s24  ;;  %7309 = vmatprep.mubr.msk.f32.mxu0 %vm1436_vm10, %v1414_v44  ;;  %v2844_v59 = vsel %vm14612_vm7, %v2812_v47, %v2399_v6  ;;  %v14736_v6 = vld [vmem:[#allocation74_spill] sm:$0xff]  ;;  %v1944_v47 = vrot.slane %v9805_v3, 1  ;;  %v3299_v5 = vsel %vm1205_vm3, %v9714_v35, 0.0 }
 0x24b   :  { %2116 = vrot.lane.b32.xlu0 %v9805_v3, %s7809_s18  ;;  %v2876_v55 = vsel %vm1370_vm8, %v2844_v59, %v2495_v37 }
 0x24c   :  { %v9815_v61 = vpop.permute.xlu1 %2202 }
 0x24d   :  { %v9817_v32 = vpop.permute.xlu0 %2108 }
 0x24e   :  { %2606 = vrot.lane.b32.xlu1 %v9699_v62, %s7814_s26  ;;  %v1217_v62 = vsel %vm1205_vm3, %v1184_v36, %v14735_v50 }
 0x24f   :  { %2504 = vrot.lane.b32.xlu0 %v1072_v58, %s7813_s12  ;;  %v1250_v37 = vsel %vm1238_vm4, %v1217_v62, %v14736_v6 }
 0x250   :  { %v2599_v14 = vpop.permute.xlu1 %2598 }
 0x251   :  { %v2497_v18 = vpop.permute.xlu0 %2496  ;;  %v2908_v54 = vsel %vm14611_vm9, %v2876_v55, %v2599_v14 }
 0x252   :  { %808 = vrot.lane.b32.xlu1 %v14730_v38, %s7811_s25  ;;  %7367 = vmatprep.mubr.msk.f32.mxu1 %vm1436_vm10, %v2908_v54  ;;  %v1283_v38 = vsel %vm1271_vm5, %v1250_v37, %v9631_v52 }
 0x253   :  { %706 = vrot.lane.b32.xlu0 %v9805_v3, %s7810_s24  ;;  %v1316_v53 = vsel %vm1304_vm6, %v1283_v38, %v9690_v17  ;;  %v2685_v17 = vsel %vm1172_vm2, %v9139_v12, %v9502_v15  ;;  %v151_v15 = vld [vmem:[%s14491_s1 + $0x148] sm:$0x1] }
 0x254   :  { %v9841_v33 = vpop.permute.xlu1 %800  ;;  %v1349_v1 = vsel %vm14612_vm7, %v1316_v53, %v9742_v26  ;;  %v2717_v26 = vsel %vm1205_vm3, %v2685_v17, %v9539_v23  ;;  %v1945_v59 = vrot.slane %v151_v15, 1 }
 0x255   :  { %v9843_v63 = vpop.permute.xlu0 %698  ;;  %v1382_v44 = vsel %vm1370_vm8, %v1349_v1, %v995_v21  ;;  %v2574_v21 = vsel %vm379_vm0, %v2572_v27, %v2573_v60  ;;  %v153_v27 = vld [vmem:[%s14491_s1 + $0x158] sm:$0x1] }
 0x256   :  { %1798 = vrot.lane.b32.xlu1 %v14737_v48, %s7807_s21  ;;  %v1948_v17 = vrot.slane %v153_v27, 1 }
 0x257   :  { %1106 = vrot.lane.b32.xlu0 %v1072_v58, %s7814_s26  ;;  %v2749_v58 = vsel %vm1238_vm4, %v2717_v26, %v9599_v4 }
 0x258   :  { %v9859_v41 = vpop.permute.xlu1 %1790 }
 0x259   :  { %v1099_v22 = vpop.permute.xlu0 %1098 }
 0x25a   :  { %v1415_v52 = vsel %vm14611_vm9, %v1382_v44, %v1099_v22  ;;  %v7299_v34 = vpop.f32.mrb[2].mxu0  ;;  %2314 = vrot.lane.b32.xlu1 %v9740_v8, %s7811_s25  ;;  %v2781_v8 = vsel %vm1271_vm5, %v2749_v58, %v9664_v39  ;;  %v9928_v44 = vld [vmem:[%s14492_s0 + $0x150] sm:$0xff] }
 0x25b   :  { %2212 = vrot.lane.b32.xlu0 %v14737_v48, %s7810_s24  ;;  %v1613_v13 = vpop.f32.mrb[3].mxu0  ;;  %7310 = vmatmul.mubr.msk.f32.gmra.mrb[10].mxu0 %vm1436_vm10, %v1415_v52  ;;  %v2813_v23 = vsel %vm1304_vm6, %v2781_v8, %v9707_v51  ;;  %v14738_v51 = vld [vmem:[#allocation7_spill] sm:$0xff]  ;;  %v9937_v22 = vld [vmem:[%s14491_s1 + $0x150] sm:$0xff] }
 0x25c   :  { %v9875_v9 = vpop.permute.xlu1 %2306  ;;  %v2845_v4 = vsel %vm14612_vm7, %v2813_v23, %v9761_v19  ;;  %v9902_v19 = vsel %vm379_vm0, %v1944_v47, %v1945_v59  ;;  %v1947_v52 = vrot.slane %v9937_v22, 1  ;;  %v14739_v47 = vld [vmem:[#allocation27_spill] sm:$0xff] }
 0x25d   :  { %v9877_v12 = vpop.permute.xlu0 %2204  ;;  %v2877_v55 = vsel %vm1370_vm8, %v2845_v4, %v2497_v18  ;;  %v1185_v59 = vsel %vm1172_vm2, %v9291_v46, %v14739_v47 }
 0x25e   :  { %810 = vrot.lane.b32.xlu1 %v14737_v48, %s7811_s25 }
 0x25f   :  { %2608 = vrot.lane.b32.xlu0 %v2574_v21, %s7814_s26 }
 0x260   :  { %v9893_v14 = vpop.permute.xlu1 %802 }
 0x261   :  { %v2601_v54 = vpop.permute.xlu0 %2600 }
 0x262   :  { %v2909_v39 = vsel %vm14611_vm9, %v2877_v55, %v2601_v54  ;;  %v7357_v40 = vpop.f32.mrb[2].mxu1  ;;  %1800 = vrot.lane.b32.xlu1 %v14738_v51, %s7807_s21  ;;  %v9971_v55 = vld [vmem:[%s14492_s0 + $0x160] sm:$0xff]  ;;  %v14740_v54 = vld [vmem:[#allocation52_spill] sm:$0xff] }
 0x263   :  { %906 = vrot.lane.b32.xlu0 %v9771_v43, %s7812_s28  ;;  %v3254_v36 = vmax.f32 %v7299_v34, %v7357_v40  ;;  %v3102_v50 = vpop.f32.mrb[3].mxu1  ;;  %7368 = vmatmul.mubr.msk.f32.gmra.mrb[10].mxu1 %vm1436_vm10, %v2909_v39  ;;  %v1218_v39 = vsel %vm1205_vm3, %v1185_v59, %v14740_v54 }
 0x264   :  { %v3253_v18 = vmax.f32 %v1613_v13, %v3102_v50  ;;  %v9904_v62 = vpop.permute.xlu1 %1792  ;;  %v9947_v13 = vsel %vm379_vm0, %v1947_v52, %v1948_v17  ;;  %v1251_v40 = vsel %vm1238_vm4, %v1218_v39, %v9734_v16  ;;  %v14741_v39 = vld [vmem:[#allocation26_spill] sm:$0xff] }
 0x265   :  { %v899_v6 = vpop.permute.xlu0 %898  ;;  %v1284_v50 = vsel %vm1271_vm5, %v1251_v40, %v9779_v7  ;;  %v2686_v7 = vsel %vm1172_vm2, %v9197_v45, %v9647_v25 }
 0x266   :  { %v9906_v37 = vmax.f32 %v3253_v18, %v3254_v36  ;;  %2316 = vrot.lane.b32.xlu1 %v9902_v19, %s7811_s25  ;;  %v1317_v18 = vsel %vm1304_vm6, %v1284_v50, %v9841_v33  ;;  %v10002_v33 = vld [vmem:[%s14491_s1 + $0x160] sm:$0xff] }
 0x267   :  { %2022 = vrot.lane.b32.xlu0 %v9902_v19, %s7808_s15 }
 0x268   :  { %v3300_v38 = vsel %vm1205_vm3, %v9906_v37, 0.0  ;;  %v9916_v53 = vpop.permute.xlu1 %2308 }
 0x269   :  { %v9918_v1 = vpop.permute.xlu0 %2014  ;;  %v9923_v60 = vadd.f32 %v3300_v38, %v3299_v5  ;;  %v1350_v5 = vsel %vm14612_vm7, %v1317_v18, %v899_v6 }
 0x26a   :  { %610 = vrot.lane.b32.xlu1 %v9928_v44, %s7809_s18 }
 0x26b   :  { %2410 = vrot.lane.b32.xlu0 %v9805_v3, %s7812_s28 }
 0x26c   :  { %v9940_v34 = vpop.permute.xlu1 %602 }
 0x26d   :  { %v2403_v26 = vpop.permute.xlu0 %2402 }
 0x26e   :  { %1004 = vrot.lane.b32.xlu1 %v9805_v3, %s7813_s12 }
 0x26f   :  { %908 = vrot.lane.b32.xlu0 %v9928_v44, %s7812_s28 }
 0x270   :  { %v997_v21 = vpop.permute.xlu1 %996 }
 0x271   :  { %v901_v58 = vpop.permute.xlu0 %900  ;;  %v1383_v16 = vsel %vm1370_vm8, %v1350_v5, %v997_v21  ;;  %v14743_v5 = vld [vmem:[#allocation10_spill] sm:$0xff] }
 0x272   :  { %2118 = vrot.lane.b32.xlu1 %v9937_v22, %s7809_s18 }
 0x273   :  { %2024 = vrot.lane.b32.xlu0 %v9947_v13, %s7808_s15 }
 0x274   :  { %v9953_v15 = vpop.permute.xlu1 %2110 }
 0x275   :  { %v9955_v8 = vpop.permute.xlu0 %2016 }
 0x276   :  { %2506 = vrot.lane.b32.xlu1 %v14737_v48, %s7813_s12 }
 0x277   :  { %2412 = vrot.lane.b32.xlu0 %v9937_v22, %s7812_s28 }
 0x278   :  { %v2499_v23 = vpop.permute.xlu1 %2498 }
 0x279   :  { %v9961_v4 = vpop.permute.xlu0 %2404 }
 0x27a   :  { %708 = vrot.lane.b32.xlu1 %v9937_v22, %s7810_s24 }
 0x27b   :  { %612 = vrot.lane.b32.xlu0 %v9971_v55, %s7809_s18 }
 0x27c   :  { %v9979_v36 = vpop.permute.xlu1 %700 }
 0x27d   :  { %v9981_v46 = vpop.permute.xlu0 %604 }
 0x27e   :  { %1108 = vrot.lane.b32.xlu1 %v14737_v48, %s7814_s26  ;;  %v2718_v48 = vsel %vm1205_vm3, %v2686_v7, %v9709_v30 }
 0x27f   :  { %1006 = vrot.lane.b32.xlu0 %v9937_v22, %s7813_s12  ;;  %v2750_v6 = vsel %vm1238_vm4, %v2718_v48, %v9753_v49 }
 0x280   :  { %v1101_v38 = vpop.permute.xlu1 %1100  ;;  %v2782_v17 = vsel %vm1271_vm5, %v2750_v6, %v9815_v61  ;;  %v1186_v61 = vsel %vm1172_vm2, %v9323_v56, %v14741_v39 }
 0x281   :  { %v999_v27 = vpop.permute.xlu0 %998  ;;  %v1416_v52 = vsel %vm14611_vm9, %v1383_v16, %v1101_v38  ;;  %v2814_v21 = vsel %vm1304_vm6, %v2782_v17, %v9875_v9  ;;  %v14742_v9 = vld [vmem:[#allocation51_spill] sm:$0xff] }
 0x282   :  { %2214 = vrot.lane.b32.xlu1 %v14738_v51, %s7810_s24  ;;  %7312 = vmatprep.mubr.msk.f32.mxu0 %vm1436_vm10, %v1416_v52  ;;  %v2846_v30 = vsel %vm14612_vm7, %v2814_v21, %v2403_v26 }
 0x283   :  { %2120 = vrot.lane.b32.xlu0 %v10002_v33, %s7809_s18  ;;  %v2878_v49 = vsel %vm1370_vm8, %v2846_v30, %v2499_v23  ;;  %v1950_v30 = vrot.slane %v10002_v33, 1 }
 0x284   :  { %v10011_v45 = vpop.permute.xlu1 %2206 }
 0x285   :  { %v10013_v25 = vpop.permute.xlu0 %2112 }
 0x286   :  { %2610 = vrot.lane.b32.xlu1 %v9902_v19, %s7814_s26  ;;  %v1219_v19 = vsel %vm1205_vm3, %v1186_v61, %v14742_v9 }
 0x287   :  { %2508 = vrot.lane.b32.xlu0 %v14738_v51, %s7813_s12  ;;  %v1252_v26 = vsel %vm1238_vm4, %v1219_v19, %v9781_v24 }
 0x288   :  { %v2603_v47 = vpop.permute.xlu1 %2602  ;;  %v1285_v56 = vsel %vm1271_vm5, %v1252_v26, %v9843_v63 }
 0x289   :  { %v2501_v59 = vpop.permute.xlu0 %2500  ;;  %v2910_v54 = vsel %vm14611_vm9, %v2878_v49, %v2603_v47  ;;  %v1318_v50 = vsel %vm1304_vm6, %v1285_v56, %v9893_v14  ;;  %v2687_v14 = vsel %vm1172_vm2, %v9333_v31, %v9702_v0  ;;  %v155_v31 = vld [vmem:[%s14491_s1 + $0x168] sm:$0x1] }
 0x28a   :  { %812 = vrot.lane.b32.xlu1 %v14738_v51, %s7811_s25  ;;  %7370 = vmatprep.mubr.msk.f32.mxu1 %vm1436_vm10, %v2910_v54  ;;  %v1351_v16 = vsel %vm14612_vm7, %v1318_v50, %v901_v58  ;;  %v1951_v49 = vrot.slane %v155_v31, 1 }
 0x28b   :  { %710 = vrot.lane.b32.xlu0 %v10002_v33, %s7810_s24  ;;  %v1384_v38 = vsel %vm1370_vm8, %v1351_v16, %v999_v27  ;;  %v10116_v16 = vld [vmem:[%s14492_s0 + $0x170] sm:$0xff] }
 0x28c   :  { %v10038_v23 = vpop.permute.xlu1 %804 }
 0x28d   :  { %v10040_v40 = vpop.permute.xlu0 %702 }
 0x28e   :  { %v7302_v18 = vpop.f32.mrb[4].mxu0  ;;  %1802 = vrot.lane.b32.xlu1 %v14743_v5, %s7807_s21 }
 0x28f   :  { %1110 = vrot.lane.b32.xlu0 %v14738_v51, %s7814_s26  ;;  %v1623_v24 = vpop.f32.mrb[5].mxu0  ;;  %v2719_v51 = vsel %vm1205_vm3, %v2687_v14, %v9755_v42 }
 0x290   :  { %v10052_v52 = vpop.permute.xlu1 %1794  ;;  %v2751_v58 = vsel %vm1238_vm4, %v2719_v51, %v9817_v32 }
 0x291   :  { %v1103_v7 = vpop.permute.xlu0 %1102  ;;  %v2783_v0 = vsel %vm1271_vm5, %v2751_v58, %v9877_v12 }
 0x292   :  { %v1417_v63 = vsel %vm14611_vm9, %v1384_v38, %v1103_v7  ;;  %2318 = vrot.lane.b32.xlu1 %v9947_v13, %s7811_s25  ;;  %v2815_v6 = vsel %vm1304_vm6, %v2783_v0, %v9916_v53 }
 0x293   :  { %2216 = vrot.lane.b32.xlu0 %v14743_v5, %s7810_s24  ;;  %7313 = vmatmul.mubr.msk.f32.gmra.mrb[12].mxu0 %vm1436_vm10, %v1417_v63  ;;  %v2847_v32 = vsel %vm14612_vm7, %v2815_v6, %v9961_v4  ;;  %v1952_v4 = vsel %vm379_vm0, %v1950_v30, %v1951_v49  ;;  %v14746_v30 = vld [vmem:[#allocation54_spill] sm:$0xff] }
 0x294   :  { %v10067_v27 = vpop.permute.xlu1 %2310  ;;  %v2879_v12 = vsel %vm1370_vm8, %v2847_v32, %v2501_v59  ;;  %v14745_v32 = vld [vmem:[#allocation29_spill] sm:$0xff] }
 0x295   :  { %v10069_v48 = vpop.permute.xlu0 %2208 }
 0x296   :  { %v7360_v42 = vpop.f32.mrb[4].mxu1  ;;  %814 = vrot.lane.b32.xlu1 %v14743_v5, %s7811_s25 }
 0x297   :  { %2612 = vrot.lane.b32.xlu0 %v9947_v13, %s7814_s26  ;;  %v3256_v17 = vmax.f32 %v7302_v18, %v7360_v42  ;;  %v3112_v21 = vpop.f32.mrb[5].mxu1  ;;  %v14744_v13 = vld [vmem:[#allocation9_spill] sm:$0xff]  ;;  %v157_v18 = vld [vmem:[%s14491_s1 + $0x178] sm:$0x1] }
 0x298   :  { %v3255_v47 = vmax.f32 %v1623_v24, %v3112_v21  ;;  %v10086_v54 = vpop.permute.xlu1 %806  ;;  %v1954_v38 = vrot.slane %v157_v18, 1  ;;  %v10159_v21 = vld [vmem:[%s14492_s0 + $0x180] sm:$0xff] }
 0x299   :  { %v2605_v53 = vpop.permute.xlu0 %2604 }
 0x29a   :  { %v2911_v39 = vsel %vm14611_vm9, %v2879_v12, %v2605_v53  ;;  %v10089_v61 = vmax.f32 %v3255_v47, %v3256_v17  ;;  %1804 = vrot.lane.b32.xlu1 %v14744_v13, %s7807_s21  ;;  %v1187_v17 = vsel %vm1172_vm2, %v9364_v57, %v14745_v32 }
 0x29b   :  { %910 = vrot.lane.b32.xlu0 %v9971_v55, %s7812_s28  ;;  %7371 = vmatmul.mubr.msk.f32.gmra.mrb[12].mxu1 %vm1436_vm10, %v2911_v39  ;;  %v1220_v49 = vsel %vm1205_vm3, %v1187_v17, %v14746_v30 }
 0x29c   :  { %v3302_v59 = vsel %vm1205_vm3, %v10089_v61, 0.0  ;;  %v10099_v9 = vpop.permute.xlu1 %1796  ;;  %v1253_v12 = vsel %vm1238_vm4, %v1220_v49, %v9940_v34 }
 0x29d   :  { %v903_v19 = vpop.permute.xlu0 %902  ;;  %v10102_v26 = vadd.f32 %v3302_v59, %v9923_v60  ;;  %v10125_v60 = vld [vmem:[%s14491_s1 + $0x170] sm:$0xff]  ;;  %v1286_v53 = vsel %vm1271_vm5, %v1253_v12, %v9979_v36  ;;  %v2688_v36 = vsel %vm1172_vm2, %v9396_v10, %v9859_v41  ;;  %v14747_v12 = vld [vmem:[#allocation28_spill] sm:$0xff] }
 0x29e   :  { %2320 = vrot.lane.b32.xlu1 %v1952_v4, %s7811_s25  ;;  %v1953_v24 = vrot.slane %v10125_v60, 1  ;;  %v1319_v39 = vsel %vm1304_vm6, %v1286_v53, %v10038_v23  ;;  %v10190_v23 = vld [vmem:[%s14491_s1 + $0x180] sm:$0xff] }
 0x29f   :  { %2026 = vrot.lane.b32.xlu0 %v1952_v4, %s7808_s15  ;;  %v1352_v59 = vsel %vm14612_vm7, %v1319_v39, %v903_v19 }
 0x2a0   :  { %v10106_v56 = vpop.permute.xlu1 %2312  ;;  %v10135_v14 = vsel %vm379_vm0, %v1953_v24, %v1954_v38 }
 0x2a1   :  { %v10108_v50 = vpop.permute.xlu0 %2018 }
 0x2a2   :  { %614 = vrot.lane.b32.xlu1 %v10116_v16, %s7809_s18 }
 0x2a3   :  { %2414 = vrot.lane.b32.xlu0 %v10002_v33, %s7812_s28 }
 0x2a4   :  { %v10128_v7 = vpop.permute.xlu1 %606 }
 0x2a5   :  { %v2407_v63 = vpop.permute.xlu0 %2406 }
 0x2a6   :  { %1008 = vrot.lane.b32.xlu1 %v10002_v33, %s7813_s12 }
 0x2a7   :  { %912 = vrot.lane.b32.xlu0 %v10116_v16, %s7812_s28 }
 0x2a8   :  { %v1001_v51 = vpop.permute.xlu1 %1000 }
 0x2a9   :  { %v905_v58 = vpop.permute.xlu0 %904  ;;  %v1385_v34 = vsel %vm1370_vm8, %v1352_v59, %v1001_v51 }
 0x2aa   :  { %2122 = vrot.lane.b32.xlu1 %v10125_v60, %s7809_s18 }
 0x2ab   :  { %2028 = vrot.lane.b32.xlu0 %v10135_v14, %s7808_s15 }
 0x2ac   :  { %v10141_v31 = vpop.permute.xlu1 %2114 }
 0x2ad   :  { %v10143_v0 = vpop.permute.xlu0 %2020 }
 0x2ae   :  { %2510 = vrot.lane.b32.xlu1 %v14743_v5, %s7813_s12 }
 0x2af   :  { %2416 = vrot.lane.b32.xlu0 %v10125_v60, %s7812_s28 }
 0x2b0   :  { %v2503_v6 = vpop.permute.xlu1 %2502 }
 0x2b1   :  { %v10149_v42 = vpop.permute.xlu0 %2408 }
 0x2b2   :  { %712 = vrot.lane.b32.xlu1 %v10125_v60, %s7810_s24 }
 0x2b3   :  { %616 = vrot.lane.b32.xlu0 %v10159_v21, %s7809_s18 }
 0x2b4   :  { %v10167_v47 = vpop.permute.xlu1 %704 }
 0x2b5   :  { %v10169_v57 = vpop.permute.xlu0 %608 }
 0x2b6   :  { %1112 = vrot.lane.b32.xlu1 %v14743_v5, %s7814_s26  ;;  %v2720_v5 = vsel %vm1205_vm3, %v2688_v36, %v9918_v1 }
 0x2b7   :  { %1010 = vrot.lane.b32.xlu0 %v10125_v60, %s7813_s12  ;;  %v2752_v19 = vsel %vm1238_vm4, %v2720_v5, %v9953_v15 }
 0x2b8   :  { %v1105_v18 = vpop.permute.xlu1 %1104  ;;  %v2784_v51 = vsel %vm1271_vm5, %v2752_v19, %v10011_v45  ;;  %v1188_v45 = vsel %vm1172_vm2, %v9510_v29, %v14747_v12 }
 0x2b9   :  { %v1003_v24 = vpop.permute.xlu0 %1002  ;;  %v1418_v38 = vsel %vm14611_vm9, %v1385_v34, %v1105_v18  ;;  %v2816_v32 = vsel %vm1304_vm6, %v2784_v51, %v10067_v27  ;;  %v14748_v27 = vld [vmem:[#allocation53_spill] sm:$0xff]  ;;  %v14749_v18 = vld [vmem:[#allocation12_spill] sm:$0xff] }
 0x2ba   :  { %2218 = vrot.lane.b32.xlu1 %v14744_v13, %s7810_s24  ;;  %7315 = vmatprep.mubr.msk.f32.mxu0 %vm1436_vm10, %v1418_v38  ;;  %v2848_v1 = vsel %vm14612_vm7, %v2816_v32, %v2407_v63 }
 0x2bb   :  { %2124 = vrot.lane.b32.xlu0 %v10190_v23, %s7809_s18  ;;  %v2880_v17 = vsel %vm1370_vm8, %v2848_v1, %v2503_v6 }
 0x2bc   :  { %v10199_v10 = vpop.permute.xlu1 %2210 }
 0x2bd   :  { %v10201_v41 = vpop.permute.xlu0 %2116 }
 0x2be   :  { %2614 = vrot.lane.b32.xlu1 %v1952_v4, %s7814_s26  ;;  %v1221_v4 = vsel %vm1205_vm3, %v1188_v45, %v14748_v27 }
 0x2bf   :  { %2512 = vrot.lane.b32.xlu0 %v14744_v13, %s7813_s12  ;;  %v1254_v6 = vsel %vm1238_vm4, %v1221_v4, %v9981_v46 }
 0x2c0   :  { %v2607_v15 = vpop.permute.xlu1 %2606  ;;  %v1287_v29 = vsel %vm1271_vm5, %v1254_v6, %v10040_v40  ;;  %v2689_v40 = vsel %vm1172_vm2, %v9519_v11, %v9904_v62  ;;  %v159_v62 = vld [vmem:[%s14491_s1 + $0x188] sm:$0x1] }
 0x2c1   :  { %v2505_v30 = vpop.permute.xlu0 %2504  ;;  %v2912_v49 = vsel %vm14611_vm9, %v2880_v17, %v2607_v15  ;;  %v1320_v34 = vsel %vm1304_vm6, %v1287_v29, %v10086_v54  ;;  %v1957_v12 = vrot.slane %v159_v62, 1  ;;  %v161_v29 = vld [vmem:[%s14491_s1 + $0x198] sm:$0x1] }
 0x2c2   :  { %v7305_v53 = vpop.f32.mrb[6].mxu0  ;;  %816 = vrot.lane.b32.xlu1 %v14744_v13, %s7811_s25  ;;  %7373 = vmatprep.mubr.msk.f32.mxu1 %vm1436_vm10, %v2912_v49  ;;  %v1353_v38 = vsel %vm14612_vm7, %v1320_v34, %v905_v58  ;;  %v1956_v49 = vrot.slane %v10190_v23, 1  ;;  %v10303_v34 = vld [vmem:[%s14492_s0 + $0x190] sm:$0xff] }
 0x2c3   :  { %714 = vrot.lane.b32.xlu0 %v10190_v23, %s7810_s24  ;;  %v1633_v63 = vpop.f32.mrb[7].mxu0  ;;  %v1386_v46 = vsel %vm1370_vm8, %v1353_v38, %v1003_v24  ;;  %v10312_v38 = vld [vmem:[%s14491_s1 + $0x190] sm:$0xff] }
 0x2c4   :  { %v10225_v39 = vpop.permute.xlu1 %808 }
 0x2c5   :  { %v10227_v59 = vpop.permute.xlu0 %706 }
 0x2c6   :  { %1806 = vrot.lane.b32.xlu1 %v14749_v18, %s7807_s21 }
 0x2c7   :  { %1114 = vrot.lane.b32.xlu0 %v14744_v13, %s7814_s26  ;;  %v2721_v13 = vsel %vm1205_vm3, %v2689_v40, %v9955_v8 }
 0x2c8   :  { %v10239_v36 = vpop.permute.xlu1 %1798  ;;  %v2753_v51 = vsel %vm1238_vm4, %v2721_v13, %v10013_v25 }
 0x2c9   :  { %v1107_v5 = vpop.permute.xlu0 %1106  ;;  %v2785_v17 = vsel %vm1271_vm5, %v2753_v51, %v10069_v48 }
 0x2ca   :  { %v1419_v19 = vsel %vm14611_vm9, %v1386_v46, %v1107_v5  ;;  %v7363_v54 = vpop.f32.mrb[6].mxu1  ;;  %2322 = vrot.lane.b32.xlu1 %v10135_v14, %s7811_s25  ;;  %v2817_v8 = vsel %vm1304_vm6, %v2785_v17, %v10106_v56  ;;  %v1959_v46 = vrot.slane %v10312_v38, 1  ;;  %v1960_v5 = vrot.slane %v161_v29, 1  ;;  %v7788_v17 = vld [vmem:[%s14492_s0 + $0x120] sm:$0xff] }
 0x2cb   :  { %2220 = vrot.lane.b32.xlu0 %v14749_v18, %s7810_s24  ;;  %v3258_v58 = vmax.f32 %v7305_v53, %v7363_v54  ;;  %v3122_v24 = vpop.f32.mrb[7].mxu1  ;;  %7316 = vmatmul.mubr.msk.f32.gmra.mrb[14].mxu0 %vm1436_vm10, %v1419_v19  ;;  %v2849_v25 = vsel %vm14612_vm7, %v2817_v8, %v10149_v42  ;;  %v1958_v42 = vsel %vm379_vm0, %v1956_v49, %v1957_v12  ;;  %v14751_v8 = vld [vmem:[#allocation31_spill] sm:$0xff]  ;;  %v14752_v12 = vld [vmem:[#allocation56_spill] sm:$0xff] }
 0x2cc   :  { %v3257_v32 = vmax.f32 %v1633_v63, %v3122_v24  ;;  %v10254_v1 = vpop.permute.xlu1 %2314  ;;  %v2881_v45 = vsel %vm1370_vm8, %v2849_v25, %v2505_v30  ;;  %v10322_v54 = vsel %vm379_vm0, %v1959_v46, %v1960_v5  ;;  %v1189_v25 = vsel %vm1172_vm2, %v7788_v17, %v14751_v8  ;;  %v10348_v49 = vld [vmem:[%s14492_s0 + $0x1a0] sm:$0xff] }
 0x2cd   :  { %v10256_v11 = vpop.permute.xlu0 %2212 }
 0x2ce   :  { %v10265_v15 = vmax.f32 %v3257_v32, %v3258_v58  ;;  %818 = vrot.lane.b32.xlu1 %v14749_v18, %s7811_s25 }
 0x2cf   :  { %2616 = vrot.lane.b32.xlu0 %v10135_v14, %s7814_s26  ;;  %v14750_v14 = vld [vmem:[#allocation11_spill] sm:$0xff] }
 0x2d0   :  { %v3304_v48 = vsel %vm1205_vm3, %v10265_v15, 0.0  ;;  %v10277_v56 = vpop.permute.xlu1 %810 }
 0x2d1   :  { %v2609_v53 = vpop.permute.xlu0 %2608  ;;  %v10280_v27 = vadd.f32 %v3304_v48, %v10102_v26 }
 0x2d2   :  { %v2913_v4 = vsel %vm14611_vm9, %v2881_v45, %v2609_v53  ;;  %1808 = vrot.lane.b32.xlu1 %v14750_v14, %s7807_s21  ;;  %v1222_v45 = vsel %vm1205_vm3, %v1189_v25, %v14752_v12 }
 0x2d3   :  { %914 = vrot.lane.b32.xlu0 %v10159_v21, %s7812_s28  ;;  %7374 = vmatmul.mubr.msk.f32.gmra.mrb[14].mxu1 %vm1436_vm10, %v2913_v4  ;;  %v1255_v48 = vsel %vm1238_vm4, %v1222_v45, %v10128_v7 }
 0x2d4   :  { %v10289_v30 = vpop.permute.xlu1 %1800  ;;  %v1288_v29 = vsel %vm1271_vm5, %v1255_v48, %v10167_v47  ;;  %v2690_v47 = vsel %vm1172_vm2, %v9677_v28, %v10052_v52 }
 0x2d5   :  { %v907_v63 = vpop.permute.xlu0 %906  ;;  %v1321_v46 = vsel %vm1304_vm6, %v1288_v29, %v10225_v39  ;;  %v10379_v39 = vld [vmem:[%s14491_s1 + $0x1a0] sm:$0xff] }
 0x2d6   :  { %2324 = vrot.lane.b32.xlu1 %v1958_v42, %s7811_s25  ;;  %v1354_v5 = vsel %vm14612_vm7, %v1321_v46, %v907_v63 }
 0x2d7   :  { %2030 = vrot.lane.b32.xlu0 %v1958_v42, %s7808_s15 }
 0x2d8   :  { %v10293_v26 = vpop.permute.xlu1 %2316 }
 0x2d9   :  { %v10295_v6 = vpop.permute.xlu0 %2022 }
 0x2da   :  { %618 = vrot.lane.b32.xlu1 %v10303_v34, %s7809_s18 }
 0x2db   :  { %2418 = vrot.lane.b32.xlu0 %v10190_v23, %s7812_s28 }
 0x2dc   :  { %v10315_v19 = vpop.permute.xlu1 %610 }
 0x2dd   :  { %v2411_v40 = vpop.permute.xlu0 %2410 }
 0x2de   :  { %1012 = vrot.lane.b32.xlu1 %v10190_v23, %s7813_s12 }
 0x2df   :  { %916 = vrot.lane.b32.xlu0 %v10303_v34, %s7812_s28 }
 0x2e0   :  { %v1005_v13 = vpop.permute.xlu1 %1004 }
 0x2e1   :  { %v909_v58 = vpop.permute.xlu0 %908  ;;  %v1387_v7 = vsel %vm1370_vm8, %v1354_v5, %v1005_v13 }
 0x2e2   :  { %2126 = vrot.lane.b32.xlu1 %v10312_v38, %s7809_s18 }
 0x2e3   :  { %2032 = vrot.lane.b32.xlu0 %v10322_v54, %s7808_s15 }
 0x2e4   :  { %v10328_v24 = vpop.permute.xlu1 %2118 }
 0x2e5   :  { %v10330_v51 = vpop.permute.xlu0 %2024 }
 0x2e6   :  { %2514 = vrot.lane.b32.xlu1 %v14749_v18, %s7813_s12 }
 0x2e7   :  { %2420 = vrot.lane.b32.xlu0 %v10312_v38, %s7812_s28 }
 0x2e8   :  { %v2507_v32 = vpop.permute.xlu1 %2506 }
 0x2e9   :  { %v10336_v62 = vpop.permute.xlu0 %2412 }
 0x2ea   :  { %716 = vrot.lane.b32.xlu1 %v10312_v38, %s7810_s24 }
 0x2eb   :  { %620 = vrot.lane.b32.xlu0 %v10348_v49, %s7809_s18 }
 0x2ec   :  { %v10356_v53 = vpop.permute.xlu1 %708 }
 0x2ed   :  { %v10358_v4 = vpop.permute.xlu0 %612 }
 0x2ee   :  { %1116 = vrot.lane.b32.xlu1 %v14749_v18, %s7814_s26  ;;  %v2722_v18 = vsel %vm1205_vm3, %v2690_v47, %v10108_v50 }
 0x2ef   :  { %1014 = vrot.lane.b32.xlu0 %v10312_v38, %s7813_s12  ;;  %v2754_v63 = vsel %vm1238_vm4, %v2722_v18, %v10141_v31  ;;  %v14755_v18 = vld [vmem:[#allocation14_spill] sm:$0xff] }
 0x2f0   :  { %v1109_v17 = vpop.permute.xlu1 %1108  ;;  %v2786_v13 = vsel %vm1271_vm5, %v2754_v63, %v10199_v10 }
 0x2f1   :  { %v1007_v8 = vpop.permute.xlu0 %1006  ;;  %v1420_v25 = vsel %vm14611_vm9, %v1387_v7, %v1109_v17  ;;  %v2818_v12 = vsel %vm1304_vm6, %v2786_v13, %v10254_v1  ;;  %v14753_v7 = vld [vmem:[#allocation30_spill] sm:$0xff]  ;;  %v14754_v1 = vld [vmem:[#allocation55_spill] sm:$0xff] }
 0x2f2   :  { %2222 = vrot.lane.b32.xlu1 %v14750_v14, %s7810_s24  ;;  %7318 = vmatprep.mubr.msk.f32.mxu0 %vm1436_vm10, %v1420_v25  ;;  %v2850_v50 = vsel %vm14612_vm7, %v2818_v12, %v2411_v40  ;;  %v1190_v10 = vsel %vm1172_vm2, %v9719_v2, %v14753_v7 }
 0x2f3   :  { %2128 = vrot.lane.b32.xlu0 %v10379_v39, %s7809_s18  ;;  %v2882_v31 = vsel %vm1370_vm8, %v2850_v50, %v2507_v32 }
 0x2f4   :  { %v10388_v28 = vpop.permute.xlu1 %2214 }
 0x2f5   :  { %v10390_v52 = vpop.permute.xlu0 %2120 }
 0x2f6   :  { %v7308_v45 = vpop.f32.mrb[8].mxu0  ;;  %2618 = vrot.lane.b32.xlu1 %v1958_v42, %s7814_s26  ;;  %v1223_v42 = vsel %vm1205_vm3, %v1190_v10, %v14754_v1  ;;  %v1962_v10 = vrot.slane %v10379_v39, 1 }
 0x2f7   :  { %2516 = vrot.lane.b32.xlu0 %v14750_v14, %s7813_s12  ;;  %v1643_v48 = vpop.f32.mrb[9].mxu0  ;;  %v1256_v40 = vsel %vm1238_vm4, %v1223_v42, %v10169_v57 }
 0x2f8   :  { %v2611_v29 = vpop.permute.xlu1 %2610  ;;  %v1289_v2 = vsel %vm1271_vm5, %v1256_v40, %v10227_v59 }
 0x2f9   :  { %v2509_v46 = vpop.permute.xlu0 %2508  ;;  %v2914_v5 = vsel %vm14611_vm9, %v2882_v31, %v2611_v29  ;;  %v1322_v25 = vsel %vm1304_vm6, %v1289_v2, %v10277_v56  ;;  %v2691_v56 = vsel %vm1172_vm2, %v9731_v20, %v10099_v9 }
 0x2fa   :  { %820 = vrot.lane.b32.xlu1 %v14750_v14, %s7811_s25  ;;  %7376 = vmatprep.mubr.msk.f32.mxu1 %vm1436_vm10, %v2914_v5  ;;  %v1355_v63 = vsel %vm14612_vm7, %v1322_v25, %v909_v58 }
 0x2fb   :  { %718 = vrot.lane.b32.xlu0 %v10379_v39, %s7810_s24  ;;  %v1388_v12 = vsel %vm1370_vm8, %v1355_v63, %v1007_v8  ;;  %v10492_v63 = vld [vmem:[%s14492_s0 + $0x1b0] sm:$0xff] }
 0x2fc   :  { %v10414_v32 = vpop.permute.xlu1 %812 }
 0x2fd   :  { %v10416_v17 = vpop.permute.xlu0 %710 }
 0x2fe   :  { %v7366_v47 = vpop.f32.mrb[8].mxu1  ;;  %1810 = vrot.lane.b32.xlu1 %v14755_v18, %s7807_s21 }
 0x2ff   :  { %1118 = vrot.lane.b32.xlu0 %v14750_v14, %s7814_s26  ;;  %v3260_v57 = vmax.f32 %v7308_v45, %v7366_v47  ;;  %v3132_v13 = vpop.f32.mrb[9].mxu1  ;;  %v2723_v14 = vsel %vm1205_vm3, %v2691_v56, %v10143_v0  ;;  %v163_v45 = vld [vmem:[%s14491_s1 + $0x1a8] sm:$0x1]  ;;  %v165_v47 = vld [vmem:[%s14491_s1 + $0x1b8] sm:$0x1] }
 0x300   :  { %v3259_v50 = vmax.f32 %v1643_v48, %v3132_v13  ;;  %v10428_v31 = vpop.permute.xlu1 %1802  ;;  %v2755_v58 = vsel %vm1238_vm4, %v2723_v14, %v10201_v41  ;;  %v1963_v1 = vrot.slane %v163_v45, 1 }
 0x301   :  { %v1111_v59 = vpop.permute.xlu0 %1110  ;;  %v2787_v48 = vsel %vm1271_vm5, %v2755_v58, %v10256_v11 }
 0x302   :  { %v1421_v29 = vsel %vm14611_vm9, %v1388_v12, %v1111_v59  ;;  %v10434_v5 = vmax.f32 %v3259_v50, %v3260_v57  ;;  %2326 = vrot.lane.b32.xlu1 %v10322_v54, %s7811_s25  ;;  %v2819_v41 = vsel %vm1304_vm6, %v2787_v48, %v10293_v26  ;;  %v14756_v26 = vld [vmem:[#allocation13_spill] sm:$0xff]  ;;  %v1966_v12 = vrot.slane %v165_v47, 1 }
 0x303   :  { %2224 = vrot.lane.b32.xlu0 %v14755_v18, %s7810_s24  ;;  %7319 = vmatmul.mubr.msk.f32.gmra.mrb[16].mxu0 %vm1436_vm10, %v1421_v29  ;;  %v2851_v7 = vsel %vm14612_vm7, %v2819_v41, %v10336_v62  ;;  %v10501_v57 = vld [vmem:[%s14491_s1 + $0x1b0] sm:$0xff] }
 0x304   :  { %v3306_v8 = vsel %vm1205_vm3, %v10434_v5, 0.0  ;;  %v10447_v20 = vpop.permute.xlu1 %2318  ;;  %v2883_v11 = vsel %vm1370_vm8, %v2851_v7, %v2509_v46  ;;  %v1965_v13 = vrot.slane %v10501_v57, 1  ;;  %v14757_v41 = vld [vmem:[#allocation33_spill] sm:$0xff] }
 0x305   :  { %v10449_v9 = vpop.permute.xlu0 %2216  ;;  %v10457_v0 = vadd.f32 %v3306_v8, %v10280_v27  ;;  %v1191_v7 = vsel %vm1172_vm2, %v9771_v43, %v14757_v41 }
 0x306   :  { %822 = vrot.lane.b32.xlu1 %v14755_v18, %s7811_s25  ;;  %v10511_v29 = vsel %vm379_vm0, %v1965_v13, %v1966_v12 }
 0x307   :  { %2620 = vrot.lane.b32.xlu0 %v10322_v54, %s7814_s26  ;;  %v1964_v54 = vsel %vm379_vm0, %v1962_v10, %v1963_v1  ;;  %v10535_v10 = vld [vmem:[%s14492_s0 + $0x1c0] sm:$0xff]  ;;  %v14758_v1 = vld [vmem:[#allocation58_spill] sm:$0xff] }
 0x308   :  { %v10469_v42 = vpop.permute.xlu1 %814 }
 0x309   :  { %v2613_v27 = vpop.permute.xlu0 %2612 }
 0x30a   :  { %v2915_v40 = vsel %vm14611_vm9, %v2883_v11, %v2613_v27  ;;  %1812 = vrot.lane.b32.xlu1 %v14756_v26, %s7807_s21  ;;  %v1224_v11 = vsel %vm1205_vm3, %v1191_v7, %v14758_v1 }
 0x30b   :  { %918 = vrot.lane.b32.xlu0 %v10348_v49, %s7812_s28  ;;  %7377 = vmatmul.mubr.msk.f32.gmra.mrb[16].mxu1 %vm1436_vm10, %v2915_v40  ;;  %v1257_v27 = vsel %vm1238_vm4, %v1224_v11, %v10315_v19 }
 0x30c   :  { %v10478_v62 = vpop.permute.xlu1 %1804  ;;  %v1290_v47 = vsel %vm1271_vm5, %v1257_v27, %v10356_v53  ;;  %v2692_v53 = vsel %vm1172_vm2, %v9805_v3, %v10239_v36 }
 0x30d   :  { %v911_v2 = vpop.permute.xlu0 %910  ;;  %v1323_v13 = vsel %vm1304_vm6, %v1290_v47, %v10414_v32  ;;  %v10566_v32 = vld [vmem:[%s14491_s1 + $0x1c0] sm:$0xff] }
 0x30e   :  { %2328 = vrot.lane.b32.xlu1 %v1964_v54, %s7811_s25  ;;  %v1356_v12 = vsel %vm14612_vm7, %v1323_v13, %v911_v2 }
 0x30f   :  { %2034 = vrot.lane.b32.xlu0 %v1964_v54, %s7808_s15 }
 0x310   :  { %v10482_v46 = vpop.permute.xlu1 %2320 }
 0x311   :  { %v10484_v25 = vpop.permute.xlu0 %2026 }
 0x312   :  { %622 = vrot.lane.b32.xlu1 %v10492_v63, %s7809_s18 }
 0x313   :  { %2422 = vrot.lane.b32.xlu0 %v10379_v39, %s7812_s28 }
 0x314   :  { %v10504_v50 = vpop.permute.xlu1 %614 }
 0x315   :  { %v2415_v59 = vpop.permute.xlu0 %2414 }
 0x316   :  { %1016 = vrot.lane.b32.xlu1 %v10379_v39, %s7813_s12 }
 0x317   :  { %920 = vrot.lane.b32.xlu0 %v10492_v63, %s7812_s28 }
 0x318   :  { %v1009_v56 = vpop.permute.xlu1 %1008 }
 0x319   :  { %v913_v14 = vpop.permute.xlu0 %912  ;;  %v1389_v19 = vsel %vm1370_vm8, %v1356_v12, %v1009_v56 }
 0x31a   :  { %2130 = vrot.lane.b32.xlu1 %v10501_v57, %s7809_s18 }
 0x31b   :  { %2036 = vrot.lane.b32.xlu0 %v10511_v29, %s7808_s15 }
 0x31c   :  { %v10517_v58 = vpop.permute.xlu1 %2122 }
 0x31d   :  { %v10519_v8 = vpop.permute.xlu0 %2028 }
 0x31e   :  { %2518 = vrot.lane.b32.xlu1 %v14755_v18, %s7813_s12 }
 0x31f   :  { %2424 = vrot.lane.b32.xlu0 %v10501_v57, %s7812_s28 }
 0x320   :  { %v2511_v45 = vpop.permute.xlu1 %2510 }
 0x321   :  { %v10525_v48 = vpop.permute.xlu0 %2416 }
 0x322   :  { %720 = vrot.lane.b32.xlu1 %v10501_v57, %s7810_s24 }
 0x323   :  { %624 = vrot.lane.b32.xlu0 %v10535_v10, %s7809_s18 }
 0x324   :  { %v10543_v40 = vpop.permute.xlu1 %712 }
 0x325   :  { %v10545_v43 = vpop.permute.xlu0 %616 }
 0x326   :  { %1120 = vrot.lane.b32.xlu1 %v14755_v18, %s7814_s26  ;;  %v2724_v18 = vsel %vm1205_vm3, %v2692_v53, %v10295_v6 }
 0x327   :  { %1018 = vrot.lane.b32.xlu0 %v10501_v57, %s7813_s12  ;;  %v2756_v2 = vsel %vm1238_vm4, %v2724_v18, %v10328_v24 }
 0x328   :  { %v1113_v41 = vpop.permute.xlu1 %1112  ;;  %v2788_v56 = vsel %vm1271_vm5, %v2756_v2, %v10388_v28  ;;  %v14761_v2 = vld [vmem:[#allocation16_spill] sm:$0xff] }
 0x329   :  { %v1011_v7 = vpop.permute.xlu0 %1010  ;;  %v1422_v1 = vsel %vm14611_vm9, %v1389_v19, %v1113_v41  ;;  %v2820_v11 = vsel %vm1304_vm6, %v2788_v56, %v10447_v20  ;;  %v14759_v41 = vld [vmem:[#allocation32_spill] sm:$0xff]  ;;  %v14760_v20 = vld [vmem:[#allocation57_spill] sm:$0xff] }
 0x32a   :  { %2226 = vrot.lane.b32.xlu1 %v14756_v26, %s7810_s24  ;;  %7321 = vmatprep.mubr.msk.f32.mxu0 %vm1436_vm10, %v1422_v1  ;;  %v2852_v6 = vsel %vm14612_vm7, %v2820_v11, %v2415_v59  ;;  %v1192_v28 = vsel %vm1172_vm2, %v9928_v44, %v14759_v41 }
 0x32b   :  { %2132 = vrot.lane.b32.xlu0 %v10566_v32, %s7809_s18  ;;  %v2884_v24 = vsel %vm1370_vm8, %v2852_v6, %v2511_v45 }
 0x32c   :  { %v10575_v3 = vpop.permute.xlu1 %2218 }
 0x32d   :  { %v10577_v36 = vpop.permute.xlu0 %2124 }
 0x32e   :  { %v7311_v27 = vpop.f32.mrb[10].mxu0  ;;  %2622 = vrot.lane.b32.xlu1 %v1964_v54, %s7814_s26  ;;  %v1225_v54 = vsel %vm1205_vm3, %v1192_v28, %v14760_v20  ;;  %v1968_v20 = vrot.slane %v10566_v32, 1 }
 0x32f   :  { %2520 = vrot.lane.b32.xlu0 %v14756_v26, %s7813_s12  ;;  %v1653_v47 = vpop.f32.mrb[11].mxu0  ;;  %v1258_v59 = vsel %vm1238_vm4, %v1225_v54, %v10358_v4 }
 0x330   :  { %v2615_v13 = vpop.permute.xlu1 %2614  ;;  %v1291_v44 = vsel %vm1271_vm5, %v1258_v59, %v10416_v17 }
 0x331   :  { %v2513_v12 = vpop.permute.xlu0 %2512  ;;  %v2916_v19 = vsel %vm14611_vm9, %v2884_v24, %v2615_v13  ;;  %v1324_v53 = vsel %vm1304_vm6, %v1291_v44, %v10469_v42  ;;  %v2693_v42 = vsel %vm1172_vm2, %v9937_v22, %v10289_v30 }
 0x332   :  { %824 = vrot.lane.b32.xlu1 %v14756_v26, %s7811_s25  ;;  %7379 = vmatprep.mubr.msk.f32.mxu1 %vm1436_vm10, %v2916_v19  ;;  %v1357_v56 = vsel %vm14612_vm7, %v1324_v53, %v913_v14 }
 0x333   :  { %722 = vrot.lane.b32.xlu0 %v10566_v32, %s7810_s24  ;;  %v1390_v6 = vsel %vm1370_vm8, %v1357_v56, %v1011_v7  ;;  %v169_v56 = vld [vmem:[%s14491_s1 + $0x1d8] sm:$0x1] }
 0x334   :  { %v10601_v45 = vpop.permute.xlu1 %816 }
 0x335   :  { %v10603_v1 = vpop.permute.xlu0 %714 }
 0x336   :  { %v7369_v18 = vpop.f32.mrb[10].mxu1  ;;  %1814 = vrot.lane.b32.xlu1 %v14761_v2, %s7807_s21 }
 0x337   :  { %1122 = vrot.lane.b32.xlu0 %v14756_v26, %s7814_s26  ;;  %v3262_v4 = vmax.f32 %v7311_v27, %v7369_v18  ;;  %v3142_v11 = vpop.f32.mrb[11].mxu1  ;;  %v2725_v26 = vsel %vm1205_vm3, %v2693_v42, %v10330_v51  ;;  %v167_v27 = vld [vmem:[%s14491_s1 + $0x1c8] sm:$0x1] }
 0x338   :  { %v3261_v24 = vmax.f32 %v1653_v47, %v3142_v11  ;;  %v10615_v13 = vpop.permute.xlu1 %1806  ;;  %v2757_v14 = vsel %vm1238_vm4, %v2725_v26, %v10390_v52  ;;  %v1969_v54 = vrot.slane %v167_v27, 1  ;;  %v10688_v11 = vld [vmem:[%s14491_s1 + $0x1d0] sm:$0xff] }
 0x339   :  { %v1115_v17 = vpop.permute.xlu0 %1114  ;;  %v2789_v47 = vsel %vm1271_vm5, %v2757_v14, %v10449_v9 }
 0x33a   :  { %v1423_v19 = vsel %vm14611_vm9, %v1390_v6, %v1115_v17  ;;  %v10621_v41 = vmax.f32 %v3261_v24, %v3262_v4  ;;  %2330 = vrot.lane.b32.xlu1 %v10511_v29, %s7811_s25  ;;  %v2821_v52 = vsel %vm1304_vm6, %v2789_v47, %v10482_v46  ;;  %v14762_v46 = vld [vmem:[#allocation15_spill] sm:$0xff]  ;;  %v10679_v4 = vld [vmem:[%s14492_s0 + $0x1d0] sm:$0xff]  ;;  %v1971_v6 = vrot.slane %v10688_v11, 1 }
 0x33b   :  { %2228 = vrot.lane.b32.xlu0 %v14761_v2, %s7810_s24  ;;  %7322 = vmatmul.mubr.msk.f32.gmra.mrb[18].mxu0 %vm1436_vm10, %v1423_v19  ;;  %v2853_v28 = vsel %vm14612_vm7, %v2821_v52, %v10525_v48  ;;  %v1972_v24 = vrot.slane %v169_v56, 1 }
 0x33c   :  { %v3308_v7 = vsel %vm1205_vm3, %v10621_v41, 0.0  ;;  %v10634_v22 = vpop.permute.xlu1 %2322  ;;  %v2885_v9 = vsel %vm1370_vm8, %v2853_v28, %v2513_v12  ;;  %v14763_v28 = vld [vmem:[#allocation35_spill] sm:$0xff] }
 0x33d   :  { %v10636_v30 = vpop.permute.xlu0 %2220  ;;  %v10644_v51 = vadd.f32 %v3308_v7, %v10457_v0  ;;  %v10698_v42 = vsel %vm379_vm0, %v1971_v6, %v1972_v24 }
 0x33e   :  { %826 = vrot.lane.b32.xlu1 %v14761_v2, %s7811_s25 }
 0x33f   :  { %2624 = vrot.lane.b32.xlu0 %v10511_v29, %s7814_s26  ;;  %v1970_v29 = vsel %vm379_vm0, %v1968_v20, %v1969_v54  ;;  %v1193_v20 = vsel %vm1172_vm2, %v9971_v55, %v14763_v28  ;;  %v10722_v54 = vld [vmem:[%s14492_s0 + $0x1e0] sm:$0xff] }
 0x340   :  { %v10656_v59 = vpop.permute.xlu1 %818 }
 0x341   :  { %v2617_v0 = vpop.permute.xlu0 %2616 }
 0x342   :  { %v2917_v44 = vsel %vm14611_vm9, %v2885_v9, %v2617_v0  ;;  %1816 = vrot.lane.b32.xlu1 %v14762_v46, %s7807_s21  ;;  %v14764_v9 = vld [vmem:[#allocation60_spill] sm:$0xff] }
 0x343   :  { %922 = vrot.lane.b32.xlu0 %v10535_v10, %s7812_s28  ;;  %7380 = vmatmul.mubr.msk.f32.gmra.mrb[18].mxu1 %vm1436_vm10, %v2917_v44  ;;  %v1226_v0 = vsel %vm1205_vm3, %v1193_v20, %v14764_v9 }
 0x344   :  { %v10665_v48 = vpop.permute.xlu1 %1808  ;;  %v1259_v44 = vsel %vm1238_vm4, %v1226_v0, %v10504_v50 }
 0x345   :  { %v915_v53 = vpop.permute.xlu0 %914  ;;  %v1292_v6 = vsel %vm1271_vm5, %v1259_v44, %v10543_v40  ;;  %v2694_v40 = vsel %vm1172_vm2, %v10002_v33, %v10428_v31 }
 0x346   :  { %2332 = vrot.lane.b32.xlu1 %v1970_v29, %s7811_s25  ;;  %v1325_v24 = vsel %vm1304_vm6, %v1292_v6, %v10601_v45  ;;  %v10753_v45 = vld [vmem:[%s14491_s1 + $0x1e0] sm:$0xff] }
 0x347   :  { %2038 = vrot.lane.b32.xlu0 %v1970_v29, %s7808_s15  ;;  %v1358_v28 = vsel %vm14612_vm7, %v1325_v24, %v915_v53 }
 0x348   :  { %v10669_v12 = vpop.permute.xlu1 %2324 }
 0x349   :  { %v10671_v18 = vpop.permute.xlu0 %2030 }
 0x34a   :  { %626 = vrot.lane.b32.xlu1 %v10679_v4, %s7809_s18 }
 0x34b   :  { %2426 = vrot.lane.b32.xlu0 %v10566_v32, %s7812_s28 }
 0x34c   :  { %v10691_v17 = vpop.permute.xlu1 %618 }
 0x34d   :  { %v2419_v19 = vpop.permute.xlu0 %2418 }
 0x34e   :  { %1020 = vrot.lane.b32.xlu1 %v10566_v32, %s7813_s12 }
 0x34f   :  { %924 = vrot.lane.b32.xlu0 %v10679_v4, %s7812_s28 }
 0x350   :  { %v1013_v26 = vpop.permute.xlu1 %1012 }
 0x351   :  { %v917_v14 = vpop.permute.xlu0 %916  ;;  %v1391_v50 = vsel %vm1370_vm8, %v1358_v28, %v1013_v26 }
 0x352   :  { %2134 = vrot.lane.b32.xlu1 %v10688_v11, %s7809_s18 }
 0x353   :  { %2040 = vrot.lane.b32.xlu0 %v10698_v42, %s7808_s15 }
 0x354   :  { %v10704_v7 = vpop.permute.xlu1 %2126 }
 0x355   :  { %v10706_v27 = vpop.permute.xlu0 %2032 }
 0x356   :  { %2522 = vrot.lane.b32.xlu1 %v14761_v2, %s7813_s12 }
 0x357   :  { %2428 = vrot.lane.b32.xlu0 %v10688_v11, %s7812_s28 }
 0x358   :  { %v2515_v47 = vpop.permute.xlu1 %2514 }
 0x359   :  { %v10712_v52 = vpop.permute.xlu0 %2420 }
 0x35a   :  { %724 = vrot.lane.b32.xlu1 %v10688_v11, %s7810_s24 }
 0x35b   :  { %628 = vrot.lane.b32.xlu0 %v10722_v54, %s7809_s18 }
 0x35c   :  { %v10730_v56 = vpop.permute.xlu1 %716 }
 0x35d   :  { %v10732_v55 = vpop.permute.xlu0 %620 }
 0x35e   :  { %1124 = vrot.lane.b32.xlu1 %v14761_v2, %s7814_s26  ;;  %v2726_v2 = vsel %vm1205_vm3, %v2694_v40, %v10484_v25 }
 0x35f   :  { %1022 = vrot.lane.b32.xlu0 %v10688_v11, %s7813_s12  ;;  %v2758_v53 = vsel %vm1238_vm4, %v2726_v2, %v10517_v58 }
 0x360   :  { %v1117_v20 = vpop.permute.xlu1 %1116  ;;  %v2790_v26 = vsel %vm1271_vm5, %v2758_v53, %v10575_v3 }
 0x361   :  { %v1015_v9 = vpop.permute.xlu0 %1014  ;;  %v1424_v0 = vsel %vm14611_vm9, %v1391_v50, %v1117_v20  ;;  %v2822_v44 = vsel %vm1304_vm6, %v2790_v26, %v10634_v22  ;;  %v14766_v22 = vld [vmem:[#allocation59_spill] sm:$0xff]  ;;  %v14767_v26 = vld [vmem:[#allocation18_spill] sm:$0xff] }
 0x362   :  { %2230 = vrot.lane.b32.xlu1 %v14762_v46, %s7810_s24  ;;  %7324 = vmatprep.mubr.msk.f32.mxu0 %vm1436_vm10, %v1424_v0  ;;  %v2854_v25 = vsel %vm14612_vm7, %v2822_v44, %v2419_v19  ;;  %v14765_v0 = vld [vmem:[#allocation34_spill] sm:$0xff] }
 0x363   :  { %2136 = vrot.lane.b32.xlu0 %v10753_v45, %s7809_s18  ;;  %v2886_v58 = vsel %vm1370_vm8, %v2854_v25, %v2515_v47  ;;  %v1194_v3 = vsel %vm1172_vm2, %v10116_v16, %v14765_v0 }
 0x364   :  { %v10762_v33 = vpop.permute.xlu1 %2222 }
 0x365   :  { %v10764_v31 = vpop.permute.xlu0 %2128 }
 0x366   :  { %v7314_v6 = vpop.f32.mrb[12].mxu0  ;;  %2626 = vrot.lane.b32.xlu1 %v1970_v29, %s7814_s26  ;;  %v1227_v29 = vsel %vm1205_vm3, %v1194_v3, %v14766_v22 }
 0x367   :  { %2524 = vrot.lane.b32.xlu0 %v14762_v46, %s7813_s12  ;;  %v1663_v24 = vpop.f32.mrb[13].mxu0  ;;  %v1260_v19 = vsel %vm1238_vm4, %v1227_v29, %v10545_v43  ;;  %v1974_v29 = vrot.slane %v10753_v45, 1 }
 0x368   :  { %v2619_v28 = vpop.permute.xlu1 %2618  ;;  %v1293_v16 = vsel %vm1271_vm5, %v1260_v19, %v10603_v1 }
 0x369   :  { %v2517_v50 = vpop.permute.xlu0 %2516  ;;  %v2918_v20 = vsel %vm14611_vm9, %v2886_v58, %v2619_v28  ;;  %v1326_v2 = vsel %vm1304_vm6, %v1293_v16, %v10656_v59  ;;  %v2695_v59 = vsel %vm1172_vm2, %v10125_v60, %v10478_v62 }
 0x36a   :  { %828 = vrot.lane.b32.xlu1 %v14762_v46, %s7811_s25  ;;  %7382 = vmatprep.mubr.msk.f32.mxu1 %vm1436_vm10, %v2918_v20  ;;  %v1359_v44 = vsel %vm14612_vm7, %v1326_v2, %v917_v14 }
 0x36b   :  { %726 = vrot.lane.b32.xlu0 %v10753_v45, %s7810_s24  ;;  %v1392_v58 = vsel %vm1370_vm8, %v1359_v44, %v1015_v9 }
 0x36c   :  { %v10788_v47 = vpop.permute.xlu1 %820 }
 0x36d   :  { %v10790_v40 = vpop.permute.xlu0 %718 }
 0x36e   :  { %v7372_v53 = vpop.f32.mrb[12].mxu1  ;;  %1818 = vrot.lane.b32.xlu1 %v14767_v26, %s7807_s21 }
 0x36f   :  { %1126 = vrot.lane.b32.xlu0 %v14762_v46, %s7814_s26  ;;  %v3264_v43 = vmax.f32 %v7314_v6, %v7372_v53  ;;  %v3152_v25 = vpop.f32.mrb[13].mxu1  ;;  %v2727_v46 = vsel %vm1205_vm3, %v2695_v59, %v10519_v8  ;;  %v171_v6 = vld [vmem:[%s14491_s1 + $0x1e8] sm:$0x1] }
 0x370   :  { %v3263_v28 = vmax.f32 %v1663_v24, %v3152_v25  ;;  %v10802_v20 = vpop.permute.xlu1 %1810  ;;  %v2759_v14 = vsel %vm1238_vm4, %v2727_v46, %v10577_v36  ;;  %v1975_v19 = vrot.slane %v171_v6, 1  ;;  %v10866_v25 = vld [vmem:[%s14492_s0 + $0x1f0] sm:$0xff] }
 0x371   :  { %v1119_v1 = vpop.permute.xlu0 %1118  ;;  %v2791_v24 = vsel %vm1271_vm5, %v2759_v14, %v10636_v30 }
 0x372   :  { %v1425_v0 = vsel %vm14611_vm9, %v1392_v58, %v1119_v1  ;;  %v10808_v3 = vmax.f32 %v3263_v28, %v3264_v43  ;;  %2334 = vrot.lane.b32.xlu1 %v10698_v42, %s7811_s25  ;;  %v2823_v36 = vsel %vm1304_vm6, %v2791_v24, %v10669_v12  ;;  %v14769_v12 = vld [vmem:[#allocation17_spill] sm:$0xff]  ;;  %v173_v43 = vld [vmem:[%s14491_s1 + $0x1f8] sm:$0x1] }
 0x373   :  { %2232 = vrot.lane.b32.xlu0 %v14767_v26, %s7810_s24  ;;  %7325 = vmatmul.mubr.msk.f32.gmra.mrb[20].mxu0 %vm1436_vm10, %v1425_v0  ;;  %v2855_v22 = vsel %vm14612_vm7, %v2823_v36, %v10712_v52  ;;  %v10875_v58 = vld [vmem:[%s14491_s1 + $0x1f0] sm:$0xff]  ;;  %v1978_v1 = vrot.slane %v173_v43, 1 }
 0x374   :  { %14768 = vst [vmem:[#allocation21_spill] sm:$0xff] %v10808_v3  ;;  %v3310_v9 = vsel %vm1205_vm3, %v10808_v3, 0.0  ;;  %v10821_v60 = vpop.permute.xlu1 %2326  ;;  %v2887_v30 = vsel %vm1370_vm8, %v2855_v22, %v2517_v50  ;;  %v1977_v28 = vrot.slane %v10875_v58, 1 }
 0x375   :  { %v10823_v62 = vpop.permute.xlu0 %2224  ;;  %v10831_v8 = vadd.f32 %v3310_v9, %v10644_v51 }
 0x376   :  { %830 = vrot.lane.b32.xlu1 %v14767_v26, %s7811_s25  ;;  %v10885_v46 = vsel %vm379_vm0, %v1977_v28, %v1978_v1 }
 0x377   :  { %2628 = vrot.lane.b32.xlu0 %v10698_v42, %s7814_s26  ;;  %v1976_v42 = vsel %vm379_vm0, %v1974_v29, %v1975_v19  ;;  %v14770_v29 = vld [vmem:[#allocation37_spill] sm:$0xff] }
 0x378   :  { %v10843_v16 = vpop.permute.xlu1 %822  ;;  %v1195_v19 = vsel %vm1172_vm2, %v10159_v21, %v14770_v29 }
 0x379   :  { %v2621_v51 = vpop.permute.xlu0 %2620 }
 0x37a   :  { %v2919_v2 = vsel %vm14611_vm9, %v2887_v30, %v2621_v51  ;;  %1820 = vrot.lane.b32.xlu1 %v14769_v12, %s7807_s21  ;;  %v10909_v30 = vld [vmem:[%s14492_s0 + $0x200] sm:$0xff]  ;;  %v14771_v51 = vld [vmem:[#allocation62_spill] sm:$0xff] }
 0x37b   :  { %926 = vrot.lane.b32.xlu0 %v10722_v54, %s7812_s28  ;;  %7383 = vmatmul.mubr.msk.f32.gmra.mrb[20].mxu1 %vm1436_vm10, %v2919_v2  ;;  %v1228_v2 = vsel %vm1205_vm3, %v1195_v19, %v14771_v51 }
 0x37c   :  { %v10852_v52 = vpop.permute.xlu1 %1812  ;;  %v1261_v43 = vsel %vm1238_vm4, %v1228_v2, %v10691_v17 }
 0x37d   :  { %v919_v53 = vpop.permute.xlu0 %918  ;;  %v1294_v1 = vsel %vm1271_vm5, %v1261_v43, %v10730_v56  ;;  %v2696_v56 = vsel %vm1172_vm2, %v10190_v23, %v10615_v13 }
 0x37e   :  { %2336 = vrot.lane.b32.xlu1 %v1976_v42, %s7811_s25  ;;  %v1327_v29 = vsel %vm1304_vm6, %v1294_v1, %v10788_v47  ;;  %v10940_v47 = vld [vmem:[%s14491_s1 + $0x200] sm:$0xff] }
 0x37f   :  { %2042 = vrot.lane.b32.xlu0 %v1976_v42, %s7808_s15  ;;  %v1360_v19 = vsel %vm14612_vm7, %v1327_v29, %v919_v53 }
 0x380   :  { %v10856_v50 = vpop.permute.xlu1 %2328 }
 0x381   :  { %v10858_v44 = vpop.permute.xlu0 %2034 }
 0x382   :  { %630 = vrot.lane.b32.xlu1 %v10866_v25, %s7809_s18 }
 0x383   :  { %2430 = vrot.lane.b32.xlu0 %v10753_v45, %s7812_s28 }
 0x384   :  { %v10878_v0 = vpop.permute.xlu1 %622 }
 0x385   :  { %v2423_v59 = vpop.permute.xlu0 %2422 }
 0x386   :  { %1024 = vrot.lane.b32.xlu1 %v10753_v45, %s7813_s12 }
 0x387   :  { %928 = vrot.lane.b32.xlu0 %v10866_v25, %s7812_s28 }
 0x388   :  { %v1017_v14 = vpop.permute.xlu1 %1016 }
 0x389   :  { %v921_v9 = vpop.permute.xlu0 %920  ;;  %v1393_v17 = vsel %vm1370_vm8, %v1360_v19, %v1017_v14 }
 0x38a   :  { %2138 = vrot.lane.b32.xlu1 %v10875_v58, %s7809_s18 }
 0x38b   :  { %2044 = vrot.lane.b32.xlu0 %v10885_v46, %s7808_s15 }
 0x38c   :  { %v10891_v6 = vpop.permute.xlu1 %2130 }
 0x38d   :  { %v10893_v24 = vpop.permute.xlu0 %2036 }
 0x38e   :  { %2526 = vrot.lane.b32.xlu1 %v14767_v26, %s7813_s12 }
 0x38f   :  { %2432 = vrot.lane.b32.xlu0 %v10875_v58, %s7812_s28 }
 0x390   :  { %v2519_v36 = vpop.permute.xlu1 %2518 }
 0x391   :  { %v10899_v22 = vpop.permute.xlu0 %2424 }
 0x392   :  { %728 = vrot.lane.b32.xlu1 %v10875_v58, %s7810_s24 }
 0x393   :  { %632 = vrot.lane.b32.xlu0 %v10909_v30, %s7809_s18 }
 0x394   :  { %v10917_v28 = vpop.permute.xlu1 %720 }
 0x395   :  { %v10919_v21 = vpop.permute.xlu0 %624 }
 0x396   :  { %1128 = vrot.lane.b32.xlu1 %v14767_v26, %s7814_s26  ;;  %v2728_v26 = vsel %vm1205_vm3, %v2696_v56, %v10671_v18 }
 0x397   :  { %1026 = vrot.lane.b32.xlu0 %v10875_v58, %s7813_s12  ;;  %v2760_v53 = vsel %vm1238_vm4, %v2728_v26, %v10704_v7 }
 0x398   :  { %v1121_v51 = vpop.permute.xlu1 %1120  ;;  %v2792_v14 = vsel %vm1271_vm5, %v2760_v53, %v10762_v33 }
 0x399   :  { %v1019_v2 = vpop.permute.xlu0 %1018  ;;  %v1426_v3 = vsel %vm14611_vm9, %v1393_v17, %v1121_v51  ;;  %v2824_v43 = vsel %vm1304_vm6, %v2792_v14, %v10821_v60  ;;  %v14772_v51 = vld [vmem:[#allocation36_spill] sm:$0xff]  ;;  %v14773_v60 = vld [vmem:[#allocation61_spill] sm:$0xff] }
 0x39a   :  { %2234 = vrot.lane.b32.xlu1 %v14769_v12, %s7810_s24  ;;  %7327 = vmatprep.mubr.msk.f32.mxu0 %vm1436_vm10, %v1426_v3  ;;  %v2856_v18 = vsel %vm14612_vm7, %v2824_v43, %v2423_v59  ;;  %v1196_v33 = vsel %vm1172_vm2, %v10303_v34, %v14772_v51  ;;  %v14774_v14 = vld [vmem:[#allocation20_spill] sm:$0xff] }
 0x39b   :  { %2140 = vrot.lane.b32.xlu0 %v10940_v47, %s7809_s18  ;;  %v2888_v7 = vsel %vm1370_vm8, %v2856_v18, %v2519_v36 }
 0x39c   :  { %v10949_v23 = vpop.permute.xlu1 %2226 }
 0x39d   :  { %v10951_v13 = vpop.permute.xlu0 %2132 }
 0x39e   :  { %v7317_v1 = vpop.f32.mrb[14].mxu0  ;;  %2630 = vrot.lane.b32.xlu1 %v1976_v42, %s7814_s26  ;;  %v1229_v42 = vsel %vm1205_vm3, %v1196_v33, %v14773_v60 }
 0x39f   :  { %2528 = vrot.lane.b32.xlu0 %v14769_v12, %s7813_s12  ;;  %v1673_v3 = vpop.f32.mrb[15].mxu0  ;;  %v1262_v59 = vsel %vm1238_vm4, %v1229_v42, %v10732_v55  ;;  %v1980_v42 = vrot.slane %v10940_v47, 1 }
 0x3a0   :  { %v2623_v29 = vpop.permute.xlu1 %2622  ;;  %v1295_v34 = vsel %vm1271_vm5, %v1262_v59, %v10790_v40 }
 0x3a1   :  { %v2521_v19 = vpop.permute.xlu0 %2520  ;;  %v2920_v17 = vsel %vm14611_vm9, %v2888_v7, %v2623_v29  ;;  %v1328_v26 = vsel %vm1304_vm6, %v1295_v34, %v10843_v16  ;;  %v2697_v16 = vsel %vm1172_vm2, %v10312_v38, %v10665_v48 }
 0x3a2   :  { %832 = vrot.lane.b32.xlu1 %v14769_v12, %s7811_s25  ;;  %7385 = vmatprep.mubr.msk.f32.mxu1 %vm1436_vm10, %v2920_v17  ;;  %v1361_v43 = vsel %vm14612_vm7, %v1328_v26, %v921_v9 }
 0x3a3   :  { %730 = vrot.lane.b32.xlu0 %v10940_v47, %s7810_s24  ;;  %v1394_v7 = vsel %vm1370_vm8, %v1361_v43, %v1019_v2 }
 0x3a4   :  { %v10975_v36 = vpop.permute.xlu1 %824 }
 0x3a5   :  { %v10977_v56 = vpop.permute.xlu0 %722 }
 0x3a6   :  { %v7375_v53 = vpop.f32.mrb[14].mxu1  ;;  %1822 = vrot.lane.b32.xlu1 %v14774_v14, %s7807_s21 }
 0x3a7   :  { %1130 = vrot.lane.b32.xlu0 %v14769_v12, %s7814_s26  ;;  %v3266_v55 = vmax.f32 %v7317_v1, %v7375_v53  ;;  %v3162_v18 = vpop.f32.mrb[15].mxu1  ;;  %v2729_v12 = vsel %vm1205_vm3, %v2697_v16, %v10706_v27  ;;  %v175_v1 = vld [vmem:[%s14491_s1 + $0x208] sm:$0x1] }
 0x3a8   :  { %v3265_v29 = vmax.f32 %v1673_v3, %v3162_v18  ;;  %v10989_v17 = vpop.permute.xlu1 %1814  ;;  %v2761_v9 = vsel %vm1238_vm4, %v2729_v12, %v10764_v31  ;;  %v1981_v59 = vrot.slane %v175_v1, 1  ;;  %v11053_v18 = vld [vmem:[%s14492_s0 + $0x210] sm:$0xff] }
 0x3a9   :  { %v1123_v40 = vpop.permute.xlu0 %1122  ;;  %v2793_v3 = vsel %vm1271_vm5, %v2761_v9, %v10823_v62 }
 0x3aa   :  { %v1427_v51 = vsel %vm14611_vm9, %v1394_v7, %v1123_v40  ;;  %v10995_v33 = vmax.f32 %v3265_v29, %v3266_v55  ;;  %2338 = vrot.lane.b32.xlu1 %v10885_v46, %s7811_s25  ;;  %v2825_v31 = vsel %vm1304_vm6, %v2793_v3, %v10856_v50  ;;  %v14776_v50 = vld [vmem:[#allocation19_spill] sm:$0xff]  ;;  %v177_v55 = vld [vmem:[%s14491_s1 + $0x218] sm:$0x1]  ;;  %v11062_v7 = vld [vmem:[%s14491_s1 + $0x210] sm:$0xff] }
 0x3ab   :  { %2236 = vrot.lane.b32.xlu0 %v14774_v14, %s7810_s24  ;;  %7328 = vmatmul.mubr.msk.f32.gmra.mrb[22].mxu0 %vm1436_vm10, %v1427_v51  ;;  %v2857_v60 = vsel %vm14612_vm7, %v2825_v31, %v10899_v22  ;;  %v1983_v29 = vrot.slane %v11062_v7, 1  ;;  %v1984_v40 = vrot.slane %v177_v55, 1  ;;  %v11091_v31 = vld [vmem:[%s14492_s0 + $0x220] sm:$0xff] }
 0x3ac   :  { %14775 = vst [vmem:[#allocation4_spill] sm:$0xff] %v10995_v33  ;;  %v3312_v2 = vsel %vm1205_vm3, %v10995_v33, 0.0  ;;  %v11008_v38 = vpop.permute.xlu1 %2330  ;;  %v2889_v62 = vsel %vm1370_vm8, %v2857_v60, %v2521_v19 }
 0x3ad   :  { %v11010_v48 = vpop.permute.xlu0 %2228  ;;  %v11018_v27 = vadd.f32 %v3312_v2, %v10831_v8  ;;  %v11072_v12 = vsel %vm379_vm0, %v1983_v29, %v1984_v40 }
 0x3ae   :  { %834 = vrot.lane.b32.xlu1 %v14774_v14, %s7811_s25 }
 0x3af   :  { %2632 = vrot.lane.b32.xlu0 %v10885_v46, %s7814_s26  ;;  %v1982_v46 = vsel %vm379_vm0, %v1980_v42, %v1981_v59  ;;  %v14777_v59 = vld [vmem:[#allocation39_spill] sm:$0xff] }
 0x3b0   :  { %v11030_v34 = vpop.permute.xlu1 %826 }
 0x3b1   :  { %v2625_v8 = vpop.permute.xlu0 %2624 }
 0x3b2   :  { %v2921_v26 = vsel %vm14611_vm9, %v2889_v62, %v2625_v8  ;;  %1824 = vrot.lane.b32.xlu1 %v14776_v50, %s7807_s21  ;;  %v1197_v62 = vsel %vm1172_vm2, %v10348_v49, %v14777_v59  ;;  %v14778_v8 = vld [vmem:[#allocation64_spill] sm:$0xff] }
 0x3b3   :  { %930 = vrot.lane.b32.xlu0 %v10909_v30, %s7812_s28  ;;  %7386 = vmatmul.mubr.msk.f32.gmra.mrb[22].mxu1 %vm1436_vm10, %v2921_v26  ;;  %v1230_v26 = vsel %vm1205_vm3, %v1197_v62, %v14778_v8 }
 0x3b4   :  { %v11039_v22 = vpop.permute.xlu1 %1816  ;;  %v1263_v55 = vsel %vm1238_vm4, %v1230_v26, %v10878_v0  ;;  %v11122_v0 = vld [vmem:[%s14491_s1 + $0x220] sm:$0xff] }
 0x3b5   :  { %v923_v53 = vpop.permute.xlu0 %922  ;;  %v1296_v33 = vsel %vm1271_vm5, %v1263_v55, %v10917_v28 }
 0x3b6   :  { %2340 = vrot.lane.b32.xlu1 %v1982_v46, %s7811_s25  ;;  %v1329_v49 = vsel %vm1304_vm6, %v1296_v33, %v10975_v36  ;;  %v2698_v36 = vsel %vm1172_vm2, %v10379_v39, %v10802_v20  ;;  %v107_v39 = vld [vmem:[%s14492_s0 + $0x228] sm:$0x1] }
 0x3b7   :  { %2046 = vrot.lane.b32.xlu0 %v1982_v46, %s7808_s15  ;;  %v1362_v59 = vsel %vm14612_vm7, %v1329_v49, %v923_v53  ;;  %v773_v49 = vrot.slane %v11091_v31, 1 }
 0x3b8   :  { %v11043_v19 = vpop.permute.xlu1 %2332 }
 0x3b9   :  { %v11045_v43 = vpop.permute.xlu0 %2038 }
 0x3ba   :  { %634 = vrot.lane.b32.xlu1 %v11053_v18, %s7809_s18 }
 0x3bb   :  { %2434 = vrot.lane.b32.xlu0 %v10940_v47, %s7812_s28 }
 0x3bc   :  { %v11065_v51 = vpop.permute.xlu1 %626 }
 0x3bd   :  { %v2427_v16 = vpop.permute.xlu0 %2426 }
 0x3be   :  { %1028 = vrot.lane.b32.xlu1 %v10940_v47, %s7813_s12 }
 0x3bf   :  { %932 = vrot.lane.b32.xlu0 %v11053_v18, %s7812_s28 }
 0x3c0   :  { %v1021_v9 = vpop.permute.xlu1 %1020 }
 0x3c1   :  { %v11074_v2 = vpop.permute.xlu0 %924  ;;  %v1395_v62 = vsel %vm1370_vm8, %v1362_v59, %v1021_v9 }
 0x3c2   :  { %2142 = vrot.lane.b32.xlu1 %v11062_v7, %s7809_s18 }
 0x3c3   :  { %2048 = vrot.lane.b32.xlu0 %v11072_v12, %s7808_s15 }
 0x3c4   :  { %v11080_v1 = vpop.permute.xlu1 %2134 }
 0x3c5   :  { %v11082_v3 = vpop.permute.xlu0 %2040 }
 0x3c6   :  { %2530 = vrot.lane.b32.xlu1 %v14774_v14, %s7813_s12 }
 0x3c7   :  { %2436 = vrot.lane.b32.xlu0 %v11062_v7, %s7812_s28 }
 0x3c8   :  { %v2523_v60 = vpop.permute.xlu1 %2522 }
 0x3c9   :  { %v11093_v42 = vpop.permute.xlu0 %2428 }
 0x3ca   :  { %732 = vrot.lane.b32.xlu1 %v11062_v7, %s7810_s24 }
 0x3cb   :  { %636 = vrot.lane.b32.xlu0 %v11091_v31, %s7809_s18 }
 0x3cc   :  { %v11106_v29 = vpop.permute.xlu1 %724 }
 0x3cd   :  { %v11108_v40 = vpop.permute.xlu0 %628 }
 0x3ce   :  { %1132 = vrot.lane.b32.xlu1 %v14774_v14, %s7814_s26  ;;  %v2730_v14 = vsel %vm1205_vm3, %v2698_v36, %v10858_v44 }
 0x3cf   :  { %1030 = vrot.lane.b32.xlu0 %v11062_v7, %s7813_s12  ;;  %v2762_v33 = vsel %vm1238_vm4, %v2730_v14, %v10891_v6  ;;  %v14779_v14 = vld [vmem:[#allocation38_spill] sm:$0xff] }
 0x3d0   :  { %v1125_v8 = vpop.permute.xlu1 %1124  ;;  %v2794_v20 = vsel %vm1271_vm5, %v2762_v33, %v10949_v23 }
 0x3d1   :  { %v1023_v28 = vpop.permute.xlu0 %1022  ;;  %v1428_v26 = vsel %vm14611_vm9, %v1395_v62, %v1125_v8  ;;  %v2826_v55 = vsel %vm1304_vm6, %v2794_v20, %v11008_v38  ;;  %v774_v62 = vrot.slane %v107_v39, 1  ;;  %v1198_v38 = vsel %vm1172_vm2, %v10492_v63, %v14779_v14 }
 0x3d2   :  { %2238 = vrot.lane.b32.xlu1 %v14776_v50, %s7810_s24  ;;  %7330 = vmatprep.mubr.msk.f32.mxu0 %vm1436_vm10, %v1428_v26  ;;  %v2858_v6 = vsel %vm14612_vm7, %v2826_v55, %v2427_v16 }
 0x3d3   :  { %2144 = vrot.lane.b32.xlu0 %v11122_v0, %s7809_s18  ;;  %v2890_v8 = vsel %vm1370_vm8, %v2858_v6, %v2523_v60  ;;  %v775_v60 = vsel %vm379_vm0, %v773_v49, %v774_v62 }
 0x3d4   :  { %v11138_v53 = vpop.permute.xlu1 %2230 }
 0x3d5   :  { %v11140_v9 = vpop.permute.xlu0 %2136 }
 0x3d6   :  { %v7320_v44 = vpop.f32.mrb[16].mxu0  ;;  %2634 = vrot.lane.b32.xlu1 %v1982_v46, %s7814_s26  ;;  %v14780_v46 = vld [vmem:[#allocation63_spill] sm:$0xff] }
 0x3d7   :  { %2532 = vrot.lane.b32.xlu0 %v14776_v50, %s7813_s12  ;;  %v1683_v59 = vpop.f32.mrb[17].mxu0  ;;  %v1231_v16 = vsel %vm1205_vm3, %v1198_v38, %v14780_v46 }
 0x3d8   :  { %v2627_v26 = vpop.permute.xlu1 %2626  ;;  %v1264_v33 = vsel %vm1238_vm4, %v1231_v16, %v10919_v21 }
 0x3d9   :  { %v2525_v36 = vpop.permute.xlu0 %2524  ;;  %v2922_v23 = vsel %vm14611_vm9, %v2890_v8, %v2627_v26  ;;  %v1297_v63 = vsel %vm1271_vm5, %v1264_v33, %v10977_v56 }
 0x3da   :  { %836 = vrot.lane.b32.xlu1 %v14776_v50, %s7811_s25  ;;  %7388 = vmatprep.mubr.msk.f32.mxu1 %vm1436_vm10, %v2922_v23  ;;  %v1330_v55 = vsel %vm1304_vm6, %v1297_v63, %v11030_v34  ;;  %v179_v34 = vld [vmem:[%s14491_s1 + $0x228] sm:$0x1] }
 0x3db   :  { %734 = vrot.lane.b32.xlu0 %v11122_v0, %s7810_s24  ;;  %v1363_v49 = vsel %vm14612_vm7, %v1330_v55, %v11074_v2 }
 0x3dc   :  { %v11169_v39 = vpop.permute.xlu1 %828  ;;  %v1396_v8 = vsel %vm1370_vm8, %v1363_v49, %v1023_v28  ;;  %v2279_v28 = vrot.slane %v11122_v0, 1 }
 0x3dd   :  { %v11171_v20 = vpop.permute.xlu0 %726 }
 0x3de   :  { %v7378_v6 = vpop.f32.mrb[16].mxu1  ;;  %2240 = vrot.lane.b32.xlu1 %v775_v60, %s7810_s24 }
 0x3df   :  { %1134 = vrot.lane.b32.xlu0 %v14776_v50, %s7814_s26  ;;  %v3268_v21 = vmax.f32 %v7320_v44, %v7378_v6  ;;  %v3172_v62 = vpop.f32.mrb[17].mxu1  ;;  %v2699_v50 = vsel %vm1172_vm2, %v10501_v57, %v10852_v52  ;;  %v2280_v44 = vrot.slane %v179_v34, 1 }
 0x3e0   :  { %v3267_v26 = vmax.f32 %v1683_v59, %v3172_v62  ;;  %v11183_v23 = vpop.permute.xlu1 %1818  ;;  %v2731_v2 = vsel %vm1205_vm3, %v2699_v50, %v10893_v24 }
 0x3e1   :  { %v1127_v56 = vpop.permute.xlu0 %1126  ;;  %v2763_v59 = vsel %vm1238_vm4, %v2731_v2, %v10951_v13  ;;  %v2281_v33 = vsel %vm379_vm0, %v2279_v28, %v2280_v44 }
 0x3e2   :  { %v1429_v14 = vsel %vm14611_vm9, %v1396_v8, %v1127_v56  ;;  %v11192_v38 = vmax.f32 %v3267_v26, %v3268_v21  ;;  %2636 = vrot.lane.b32.xlu1 %v11072_v12, %s7814_s26  ;;  %v109_v21 = vld [vmem:[%s14492_s0 + $0x238] sm:$0x1] }
 0x3e3   :  { %2342 = vrot.lane.b32.xlu0 %v11072_v12, %s7811_s25  ;;  %7331 = vmatmul.mubr.msk.f32.gmra.mrb[24].mxu0 %vm1436_vm10, %v1429_v14  ;;  %v2795_v12 = vsel %vm1271_vm5, %v2763_v59, %v11010_v48  ;;  %v181_v56 = vld [vmem:[%s14491_s1 + $0x238] sm:$0x1] }
 0x3e4   :  { %v3314_v57 = vsel %vm1205_vm3, %v11192_v38, 0.0  ;;  %v11206_v52 = vpop.permute.xlu1 %2334  ;;  %v2827_v16 = vsel %vm1304_vm6, %v2795_v12, %v11043_v19  ;;  %v108_v19 = vld [vmem:[%s14492_s0 + $0x230] sm:$0xff]  ;;  %v2576_v50 = vrot.slane %v181_v56, 1 }
 0x3e5   :  { %v11208_v46 = vpop.permute.xlu0 %2232  ;;  %v11213_v24 = vadd.f32 %v3314_v57, %v11018_v27  ;;  %v2859_v13 = vsel %vm14612_vm7, %v2827_v16, %v11093_v42  ;;  %v1073_v62 = vrot.slane %v108_v19, 1  ;;  %v14781_v16 = vld [vmem:[#allocation41_spill] sm:$0xff] }
 0x3e6   :  { %934 = vrot.lane.b32.xlu1 %v11091_v31, %s7812_s28  ;;  %v2891_v63 = vsel %vm1370_vm8, %v2859_v13, %v2525_v36  ;;  %v180_v36 = vld [vmem:[%s14491_s1 + $0x230] sm:$0xff]  ;;  %v1199_v13 = vsel %vm1172_vm2, %v10535_v10, %v14781_v16 }
 0x3e7   :  { %838 = vrot.lane.b32.xlu0 %v775_v60, %s7811_s25  ;;  %v2575_v34 = vrot.slane %v180_v36, 1 }
 0x3e8   :  { %v11224_v55 = vpop.permute.xlu1 %830 }
 0x3e9   :  { %v2629_v48 = vpop.permute.xlu0 %2628  ;;  %v2577_v44 = vsel %vm379_vm0, %v2575_v34, %v2576_v50 }
 0x3ea   :  { %v2923_v27 = vsel %vm14611_vm9, %v2891_v63, %v2629_v48  ;;  %2438 = vrot.lane.b32.xlu1 %v11122_v0, %s7812_s28  ;;  %v14782_v63 = vld [vmem:[#allocation66_spill] sm:$0xff] }
 0x3eb   :  { %2344 = vrot.lane.b32.xlu0 %v2281_v33, %s7811_s25  ;;  %7389 = vmatmul.mubr.msk.f32.gmra.mrb[24].mxu1 %vm1436_vm10, %v2923_v27 }
 0x3ec   :  { %v11234_v31 = vpop.permute.xlu1 %1820 }
 0x3ed   :  { %v927_v42 = vpop.permute.xlu0 %926 }
 0x3ee   :  { %1032 = vrot.lane.b32.xlu1 %v11122_v0, %s7813_s12  ;;  %v1074_v0 = vrot.slane %v109_v21, 1 }
 0x3ef   :  { %936 = vrot.lane.b32.xlu0 %v108_v19, %s7812_s28 }
 0x3f0   :  { %v11242_v6 = vpop.permute.xlu1 %2336  ;;  %v1075_v14 = vsel %vm379_vm0, %v1073_v62, %v1074_v0 }
 0x3f1   :  { %v11244_v49 = vpop.permute.xlu0 %2042 }
 0x3f2   :  { %2534 = vrot.lane.b32.xlu1 %v775_v60, %s7813_s12 }
 0x3f3   :  { %2440 = vrot.lane.b32.xlu0 %v180_v36, %s7812_s28 }
 0x3f4   :  { %v11251_v8 = vpop.permute.xlu1 %630 }
 0x3f5   :  { %v2431_v26 = vpop.permute.xlu0 %2430 }
 0x3f6   :  { %1136 = vrot.lane.b32.xlu1 %v775_v60, %s7814_s26 }
 0x3f7   :  { %1034 = vrot.lane.b32.xlu0 %v180_v36, %s7813_s12 }
 0x3f8   :  { %v1025_v2 = vpop.permute.xlu1 %1024 }
 0x3f9   :  { %v929_v28 = vpop.permute.xlu0 %928 }
 0x3fa   :  { %2638 = vrot.lane.b32.xlu1 %v2281_v33, %s7814_s26  ;;  %v1232_v33 = vsel %vm1205_vm3, %v1199_v13, %v14782_v63  ;;  %v14783_v63 = vld [vmem:[#allocation40_spill] sm:$0xff] }
 0x3fb   :  { %2536 = vrot.lane.b32.xlu0 %v1075_v14, %s7813_s12  ;;  %v1265_v48 = vsel %vm1238_vm4, %v1232_v33, %v11065_v51  ;;  %v2700_v51 = vsel %vm1172_vm2, %v10566_v32, %v10989_v17  ;;  %v1200_v33 = vsel %vm1172_vm2, %v10679_v4, %v14783_v63 }
 0x3fc   :  { %v11262_v59 = vpop.permute.xlu1 %2138  ;;  %v1298_v36 = vsel %vm1271_vm5, %v1265_v48, %v11106_v29  ;;  %v2732_v29 = vsel %vm1205_vm3, %v2700_v51, %v11045_v43 }
 0x3fd   :  { %v11264_v57 = vpop.permute.xlu0 %2044  ;;  %v1331_v21 = vsel %vm1304_vm6, %v1298_v36, %v11169_v39  ;;  %v2764_v39 = vsel %vm1238_vm4, %v2732_v29, %v11080_v1 }
 0x3fe   :  { %2640 = vrot.lane.b32.xlu1 %v2577_v44, %s7814_s26  ;;  %v1364_v62 = vsel %vm14612_vm7, %v1331_v21, %v927_v42  ;;  %v2796_v50 = vsel %vm1271_vm5, %v2764_v39, %v11138_v53  ;;  %v14784_v53 = vld [vmem:[#allocation65_spill] sm:$0xff] }
 0x3ff   :  { %1138 = vrot.lane.b32.xlu0 %v1075_v14, %s7814_s26  ;;  %v1397_v10 = vsel %vm1370_vm8, %v1364_v62, %v1025_v2  ;;  %v2828_v2 = vsel %vm1304_vm6, %v2796_v50, %v11206_v52  ;;  %v1233_v48 = vsel %vm1205_vm3, %v1200_v33, %v14784_v53 }
 0x400   :  { %v2527_v60 = vpop.permute.xlu1 %2526  ;;  %v2860_v32 = vsel %vm14612_vm7, %v2828_v2, %v2431_v26  ;;  %v1266_v52 = vsel %vm1238_vm4, %v1233_v48, %v11108_v40 }
 0x401   :  { %v2433_v12 = vpop.permute.xlu0 %2432  ;;  %v2892_v16 = vsel %vm1370_vm8, %v2860_v32, %v2527_v60  ;;  %v1299_v60 = vsel %vm1271_vm5, %v1266_v52, %v11171_v20  ;;  %v2701_v20 = vsel %vm1172_vm2, %v10688_v11, %v11039_v22 }
 0x402   :  { %v1332_v21 = vsel %vm1304_vm6, %v1299_v60, %v11224_v55  ;;  %v2733_v55 = vsel %vm1205_vm3, %v2701_v20, %v11082_v3 }
 0x403   :  { %v1365_v4 = vsel %vm14612_vm7, %v1332_v21, %v929_v28  ;;  %v2765_v28 = vsel %vm1238_vm4, %v2733_v55, %v11140_v9  ;;  %v14785_v21 = vld [vmem:[#allocation43_spill] sm:$0xff] }
 0x404   :  { %v11275_v27 = vpop.permute.xlu1 %728  ;;  %v2797_v32 = vsel %vm1271_vm5, %v2765_v28, %v11208_v46 }
 0x405   :  { %v11277_v19 = vpop.permute.xlu0 %632  ;;  %v2829_v22 = vsel %vm1304_vm6, %v2797_v32, %v11242_v6 }
 0x406   :  { %v2861_v3 = vsel %vm14612_vm7, %v2829_v22, %v2433_v12 }
 0x408   :  { %v1129_v0 = vpop.permute.xlu1 %1128 }
 0x409   :  { %v1027_v56 = vpop.permute.xlu0 %1026  ;;  %v1430_v34 = vsel %vm14611_vm9, %v1397_v10, %v1129_v0 }
 0x40a   :  { %7333 = vmatprep.mubr.msk.f32.mxu0 %vm1436_vm10, %v1430_v34  ;;  %v1398_v34 = vsel %vm1370_vm8, %v1365_v4, %v1027_v56  ;;  %v14786_v4 = vld [vmem:[#allocation68_spill] sm:$0xff] }
 0x40c   :  { %v11294_v14 = vpop.permute.xlu1 %2234 }
 0x40d   :  { %v11296_v42 = vpop.permute.xlu0 %2140 }
 0x40e   :  { %v7323_v44 = vpop.f32.mrb[18].mxu0 }
 0x40f   :  { %v1693_v17 = vpop.f32.mrb[19].mxu0 }
 0x410   :  { %v2631_v43 = vpop.permute.xlu1 %2630 }
 0x411   :  { %v2529_v13 = vpop.permute.xlu0 %2528  ;;  %v2924_v1 = vsel %vm14611_vm9, %v2892_v16, %v2631_v43 }
 0x412   :  { %7391 = vmatprep.mubr.msk.f32.mxu1 %vm1436_vm10, %v2924_v1 }
 0x414   :  { %v833_v26 = vpop.permute.xlu1 %832 }
 0x415   :  { %v11313_v36 = vpop.permute.xlu0 %730 }
 0x416   :  { %v7381_v62 = vpop.f32.mrb[18].mxu1 }
 0x417   :  { %v3270_v10 = vmax.f32 %v7323_v44, %v7381_v62  ;;  %v3182_v0 = vpop.f32.mrb[19].mxu1  ;;  %v1201_v62 = vsel %vm1172_vm2, %v10722_v54, %v14785_v21 }
 0x418   :  { %v3269_v51 = vmax.f32 %v1693_v17, %v3182_v0  ;;  %v11321_v29 = vpop.permute.xlu1 %1822  ;;  %v2893_v17 = vsel %vm1370_vm8, %v2861_v3, %v2529_v13 }
 0x419   :  { %v1131_v40 = vpop.permute.xlu0 %1130 }
 0x41a   :  { %v1431_v39 = vsel %vm14611_vm9, %v1398_v34, %v1131_v40  ;;  %v11327_v50 = vmax.f32 %v3269_v51, %v3270_v10  ;;  %v1234_v10 = vsel %vm1205_vm3, %v1201_v62, %v14786_v4  ;;  %v14788_v62 = vld [vmem:[#allocation67_spill] sm:$0xff] }
 0x41b   :  { %7334 = vmatmul.mubr.msk.f32.gmra.mrb[26].mxu0 %vm1436_vm10, %v1431_v39  ;;  %v1267_v0 = vsel %vm1238_vm4, %v1234_v10, %v11251_v8  ;;  %v2702_v8 = vsel %vm1172_vm2, %v10753_v45, %v11183_v23  ;;  %v2703_v10 = vsel %vm1172_vm2, %v10875_v58, %v11234_v31 }
 0x41c   :  { %v3316_v56 = vsel %vm1205_vm3, %v11327_v50, 0.0  ;;  %v2339_v2 = vpop.permute.xlu1 %2338  ;;  %v1300_v40 = vsel %vm1271_vm5, %v1267_v0, %v11275_v27  ;;  %v2734_v32 = vsel %vm1205_vm3, %v2702_v8, %v11244_v49 }
 0x41d   :  { %v11336_v44 = vpop.permute.xlu0 %2236  ;;  %v11341_v11 = vadd.f32 %v3316_v56, %v11213_v24  ;;  %v1333_v39 = vsel %vm1304_vm6, %v1300_v40, %v833_v26  ;;  %v2766_v27 = vsel %vm1238_vm4, %v2734_v32, %v11262_v59  ;;  %v14787_v59 = vld [vmem:[#allocation42_spill] sm:$0xff]  ;;  %v2735_v40 = vsel %vm1205_vm3, %v2703_v10, %v11264_v57 }
 0x41e   :  { %v2798_v3 = vsel %vm1271_vm5, %v2766_v27, %v11294_v14  ;;  %v1202_v21 = vsel %vm1172_vm2, %v10866_v25, %v14787_v59 }
 0x41f   :  { %v1235_v14 = vsel %vm1205_vm3, %v1202_v21, %v14788_v62 }
 0x420   :  { %v835_v9 = vpop.permute.xlu1 %834 }
 0x421   :  { %v2633_v16 = vpop.permute.xlu0 %2632 }
 0x422   :  { %v2925_v43 = vsel %vm14611_vm9, %v2893_v17, %v2633_v16  ;;  %v2830_v17 = vsel %vm1304_vm6, %v2798_v3, %v2339_v2  ;;  %v1268_v2 = vsel %vm1238_vm4, %v1235_v14, %v11277_v19  ;;  %v2767_v19 = vsel %vm1238_vm4, %v2735_v40, %v11296_v42 }
 0x423   :  { %7392 = vmatmul.mubr.msk.f32.gmra.mrb[26].mxu1 %vm1436_vm10, %v2925_v43  ;;  %v2799_v58 = vsel %vm1271_vm5, %v2767_v19, %v11336_v44  ;;  %v2704_v14 = vsel %vm1172_vm2, %v10940_v47, %v11321_v29  ;;  %v14791_v47 = vld [vmem:[#allocation44_spill] sm:$0xff] }
 0x424   :  { %v11349_v1 = vpop.permute.xlu1 %1824  ;;  %v1204_v29 = vsel %vm1172_vm2, %v11053_v18, %v14791_v47 }
 0x425   :  { %v931_v63 = vpop.permute.xlu0 %930 }
 0x426   :  { %v1366_v20 = vsel %vm14612_vm7, %v1333_v39, %v931_v63 }
 0x428   :  { %v2341_v46 = vpop.permute.xlu1 %2340 }
 0x429   :  { %v11351_v33 = vpop.permute.xlu0 %2046 }
 0x42c   :  { %v11353_v24 = vpop.permute.xlu1 %634 }
 0x42d   :  { %v2435_v53 = vpop.permute.xlu0 %2434 }
 0x42e   :  { %v2862_v45 = vsel %vm14612_vm7, %v2830_v17, %v2435_v53 }
 0x430   :  { %v1029_v6 = vpop.permute.xlu1 %1028 }
 0x431   :  { %v933_v48 = vpop.permute.xlu0 %932  ;;  %v1399_v55 = vsel %vm1370_vm8, %v1366_v20, %v1029_v6 }
 0x434   :  { %v11355_v12 = vpop.permute.xlu1 %2142 }
 0x435   :  { %v11357_v13 = vpop.permute.xlu0 %2048 }
 0x438   :  { %v2531_v52 = vpop.permute.xlu1 %2530 }
 0x439   :  { %v2437_v60 = vpop.permute.xlu0 %2436  ;;  %v2894_v43 = vsel %vm1370_vm8, %v2862_v45, %v2531_v52  ;;  %v1301_v52 = vsel %vm1271_vm5, %v1268_v2, %v11313_v36 }
 0x43a   :  { %v1334_v0 = vsel %vm1304_vm6, %v1301_v52, %v835_v9  ;;  %v2831_v9 = vsel %vm1304_vm6, %v2799_v58, %v2341_v46 }
 0x43b   :  { %v1367_v39 = vsel %vm14612_vm7, %v1334_v0, %v933_v48  ;;  %v2863_v48 = vsel %vm14612_vm7, %v2831_v9, %v2437_v60  ;;  %v14789_v60 = vld [vmem:[#allocation45_spill] sm:$0xff] }
 0x43c   :  { %v11366_v34 = vpop.permute.xlu1 %732 }
 0x43d   :  { %v11368_v51 = vpop.permute.xlu0 %636 }
 0x440   :  { %v1133_v54 = vpop.permute.xlu1 %1132 }
 0x441   :  { %v1031_v28 = vpop.permute.xlu0 %1030  ;;  %v1432_v56 = vsel %vm14611_vm9, %v1399_v55, %v1133_v54 }
 0x442   :  { %7336 = vmatprep.mubr.msk.f32.mxu0 %vm1436_vm10, %v1432_v56  ;;  %v1400_v54 = vsel %vm1370_vm8, %v1367_v39, %v1031_v28 }
 0x444   :  { %v11384_v26 = vpop.permute.xlu1 %2238 }
 0x445   :  { %v11386_v22 = vpop.permute.xlu0 %2144 }
 0x446   :  { %v7326_v16 = vpop.f32.mrb[20].mxu0 }
 0x447   :  { %v1703_v23 = vpop.f32.mrb[21].mxu0 }
 0x448   :  { %v2635_v63 = vpop.permute.xlu1 %2634 }
 0x449   :  { %v2533_v49 = vpop.permute.xlu0 %2532  ;;  %v2926_v6 = vsel %vm14611_vm9, %v2894_v43, %v2635_v63  ;;  %v1203_v63 = vsel %vm1172_vm2, %v10909_v30, %v14789_v60  ;;  %v2736_v30 = vsel %vm1205_vm3, %v2704_v14, %v11351_v33  ;;  %v2705_v33 = vsel %vm1172_vm2, %v11062_v7, %v11349_v1 }
 0x44a   :  { %7394 = vmatprep.mubr.msk.f32.mxu1 %vm1436_vm10, %v2926_v6  ;;  %v2895_v42 = vsel %vm1370_vm8, %v2863_v48, %v2533_v49  ;;  %v14790_v49 = vld [vmem:[#allocation70_spill] sm:$0xff]  ;;  %v2768_v10 = vsel %vm1238_vm4, %v2736_v30, %v11355_v12  ;;  %v14792_v12 = vld [vmem:[#allocation69_spill] sm:$0xff] }
 0x44b   :  { %v1236_v6 = vsel %vm1205_vm3, %v1203_v63, %v14790_v49  ;;  %v1237_v39 = vsel %vm1205_vm3, %v1204_v29, %v14792_v12 }
 0x44c   :  { %v837_v53 = vpop.permute.xlu1 %836 }
 0x44d   :  { %v735_v4 = vpop.permute.xlu0 %734 }
 0x44e   :  { %v7384_v25 = vpop.f32.mrb[20].mxu1 }
 0x44f   :  { %v3272_v20 = vmax.f32 %v7326_v16, %v7384_v25  ;;  %v3192_v55 = vpop.f32.mrb[21].mxu1 }
 0x450   :  { %v3271_v36 = vmax.f32 %v1703_v23, %v3192_v55  ;;  %v2241_v56 = vpop.permute.xlu1 %2240  ;;  %v1270_v55 = vsel %vm1238_vm4, %v1237_v39, %v11368_v51 }
 0x451   :  { %v1135_v8 = vpop.permute.xlu0 %1134 }
 0x452   :  { %v1433_v31 = vsel %vm14611_vm9, %v1400_v54, %v1135_v8  ;;  %v11418_v57 = vmax.f32 %v3271_v36, %v3272_v20  ;;  %v1303_v54 = vsel %vm1271_vm5, %v1270_v55, %v735_v4 }
 0x453   :  { %7337 = vmatmul.mubr.msk.f32.gmra.mrb[28].mxu0 %vm1436_vm10, %v1433_v31 }
 0x454   :  { %v3318_v28 = vsel %vm1205_vm3, %v11418_v57, 0.0  ;;  %v2637_v32 = vpop.permute.xlu1 %2636 }
 0x455   :  { %v2343_v27 = vpop.permute.xlu0 %2342  ;;  %v3319_v3 = vadd.f32 %v3318_v28, %v11341_v11  ;;  %v2927_v44 = vsel %vm14611_vm9, %v2895_v42, %v2637_v32  ;;  %v1269_v11 = vsel %vm1238_vm4, %v1236_v6, %v11353_v24 }
 0x456   :  { %7395 = vmatmul.mubr.msk.f32.gmra.mrb[28].mxu1 %vm1436_vm10, %v2927_v44  ;;  %v1302_v62 = vsel %vm1271_vm5, %v1269_v11, %v11366_v34  ;;  %v2800_v34 = vsel %vm1271_vm5, %v2768_v10, %v11384_v26  ;;  %v2737_v26 = vsel %vm1205_vm3, %v2705_v33, %v11357_v13 }
 0x457   :  { %v1335_v2 = vsel %vm1304_vm6, %v1302_v62, %v837_v53  ;;  %v2832_v53 = vsel %vm1304_vm6, %v2800_v34, %v2343_v27  ;;  %v2769_v18 = vsel %vm1238_vm4, %v2737_v26, %v11386_v22 }
 0x458   :  { %v935_v46 = vpop.permute.xlu1 %934  ;;  %v2801_v36 = vsel %vm1271_vm5, %v2769_v18, %v2241_v56 }
 0x459   :  { %v839_v17 = vpop.permute.xlu0 %838  ;;  %v1368_v52 = vsel %vm14612_vm7, %v1335_v2, %v935_v46 }
 0x45a   :  { %v1336_v13 = vsel %vm1304_vm6, %v1303_v54, %v839_v17 }
 0x45c   :  { %v2439_v16 = vpop.permute.xlu1 %2438 }
 0x45d   :  { %v2345_v45 = vpop.permute.xlu0 %2344  ;;  %v2864_v20 = vsel %vm14612_vm7, %v2832_v53, %v2439_v16 }
 0x45e   :  { %v2833_v58 = vsel %vm1304_vm6, %v2801_v36, %v2345_v45 }
 0x460   :  { %v1033_v23 = vpop.permute.xlu1 %1032 }
 0x461   :  { %v937_v43 = vpop.permute.xlu0 %936  ;;  %v1401_v24 = vsel %vm1370_vm8, %v1368_v52, %v1033_v23 }
 0x462   :  { %v1369_v51 = vsel %vm14612_vm7, %v1336_v13, %v937_v43 }
 0x464   :  { %v2535_v59 = vpop.permute.xlu1 %2534 }
 0x465   :  { %v2441_v21 = vpop.permute.xlu0 %2440  ;;  %v2896_v7 = vsel %vm1370_vm8, %v2864_v20, %v2535_v59 }
 0x466   :  { %v2865_v22 = vsel %vm14612_vm7, %v2833_v58, %v2441_v21 }
 0x468   :  { %v1137_v0 = vpop.permute.xlu1 %1136 }
 0x469   :  { %v1035_v25 = vpop.permute.xlu0 %1034  ;;  %v1434_v40 = vsel %vm14611_vm9, %v1401_v24, %v1137_v0 }
 0x46a   :  { %7339 = vmatprep.mubr.msk.f32.mxu0 %vm1436_vm10, %v1434_v40  ;;  %v1402_v31 = vsel %vm1370_vm8, %v1369_v51, %v1035_v25 }
 0x46c   :  { %v2639_v1 = vpop.permute.xlu1 %2638 }
 0x46d   :  { %v2537_v19 = vpop.permute.xlu0 %2536  ;;  %v2928_v8 = vsel %vm14611_vm9, %v2896_v7, %v2639_v1 }
 0x46e   :  { %7397 = vmatprep.mubr.msk.f32.mxu1 %vm1436_vm10, %v2928_v8  ;;  %v2897_v9 = vsel %vm1370_vm8, %v2865_v22, %v2537_v19 }
 0x470   :  { %v2641_v48 = vpop.permute.xlu1 %2640 }
 0x471   :  { %v1139_v4 = vpop.permute.xlu0 %1138  ;;  %v2929_v56 = vsel %vm14611_vm9, %v2897_v9, %v2641_v48 }
 0x472   :  { %v1435_v42 = vsel %vm14611_vm9, %v1402_v31, %v1139_v4  ;;  %7398 = vmatmul.mubr.msk.f32.gmra.mrb[30].mxu1 %vm1436_vm10, %v2929_v56 }
 0x473   :  { %7340 = vmatmul.mubr.msk.f32.gmra.mrb[30].mxu0 %vm1436_vm10, %v1435_v42 }
 0x47e   :  { %v7329_v28 = vpop.f32.mrb[22].mxu0 }
 0x47f   :  { %v1713_v32 = vpop.f32.mrb[23].mxu0 }
 0x486   :  { %v7387_v27 = vpop.f32.mrb[22].mxu1 }
 0x487   :  { %v3274_v44 = vmax.f32 %v7329_v28, %v7387_v27  ;;  %v3202_v46 = vpop.f32.mrb[23].mxu1 }
 0x488   :  { %v3273_v17 = vmax.f32 %v1713_v32, %v3202_v46 }
 0x48a   :  { %v3294_v16 = vmax.f32 %v3273_v17, %v3274_v44  ;;  %v14793_v44 = vld [vmem:[#allocation21_spill] sm:$0xff] }
 0x48c   :  { %v3320_v45 = vsel %vm1205_vm3, %v3294_v16, 0.0 }
 0x48d   :  { %v3321_v23 = vadd.f32 %v3320_v45, %v3319_v3 }
 0x4b6   :  { %v7332_v43 = vpop.f32.mrb[24].mxu0 }
 0x4b7   :  { %v1723_v60 = vpop.f32.mrb[25].mxu0 }
 0x4be   :  { %v7390_v63 = vpop.f32.mrb[24].mxu1 }
 0x4bf   :  { %v3276_v49 = vmax.f32 %v7332_v43, %v7390_v63  ;;  %v3212_v6 = vpop.f32.mrb[25].mxu1 }
 0x4c0   :  { %v3275_v11 = vmax.f32 %v1723_v60, %v3212_v6 }
 0x4c2   :  { %v3295_v59 = vmax.f32 %v3275_v11, %v3276_v49 }
 0x4c4   :  { %v3322_v21 = vsel %vm1205_vm3, %v3295_v59, 0.0 }
 0x4c5   :  { %v3323_v62 = vadd.f32 %v3322_v21, %v3321_v23 }
 0x4ee   :  { %v7335_v14 = vpop.f32.mrb[26].mxu0 }
 0x4ef   :  { %v1733_v2 = vpop.f32.mrb[27].mxu0 }
 0x4f6   :  { %v7393_v30 = vpop.f32.mrb[26].mxu1 }
 0x4f7   :  { %v3278_v52 = vmax.f32 %v7335_v14, %v7393_v30  ;;  %v3222_v10 = vpop.f32.mrb[27].mxu1 }
 0x4f8   :  { %v3277_v24 = vmax.f32 %v1733_v2, %v3222_v10 }
 0x4fa   :  { %v3296_v0 = vmax.f32 %v3277_v24, %v3278_v52 }
 0x4fc   :  { %v3324_v25 = vsel %vm1205_vm3, %v3296_v0, 0.0 }
 0x4fd   :  { %v3325_v3 = vadd.f32 %v3324_v25, %v3323_v62 }
 0x526   :  { %v7338_v34 = vpop.f32.mrb[28].mxu0 }
 0x527   :  { %v1743_v40 = vpop.f32.mrb[29].mxu0 }
 0x529   :  { %v7396_v47 = vpop.f32.mrb[28].mxu1 }
 0x52a   :  { %v3280_v29 = vmax.f32 %v7338_v34, %v7396_v47  ;;  %v3232_v33 = vpop.f32.mrb[29].mxu1 }
 0x52b   :  { %v3279_v53 = vmax.f32 %v1743_v40, %v3232_v33 }
 0x52d   :  { %v3297_v12 = vmax.f32 %v3279_v53, %v3280_v29 }
 0x52f   :  { %v3326_v39 = vsel %vm1205_vm3, %v3297_v12, 0.0 }
 0x530   :  { %v3327_v26 = vadd.f32 %v3326_v39, %v3325_v3 }
 0x545   :  { %v7399_v55 = vpop.f32.mrb[30].mxu1 }
 0x546   :  { %v7341_v20 = vpop.f32.mrb[30].mxu0  ;;  %v3242_v1 = vpop.f32.mrb[31].mxu1 }
 0x547   :  { %v3282_v18 = vmax.f32 %v7341_v20, %v7399_v55  ;;  %v1753_v7 = vpop.f32.mrb[31].mxu0 }
 0x548   :  { %v3281_v19 = vmax.f32 %v1753_v7, %v3242_v1 }
 0x54a   :  { %v3298_v54 = vmax.f32 %v3281_v19, %v3282_v18 }
 0x54c   :  { %v3328_v36 = vsel %vm1205_vm3, %v3298_v54, 0.0 }
 0x54d   :  { %v3329_v8 = vadd.f32 %v3328_v36, %v3327_v26 }
 0x54f   :  { %v3330_v13 = vrot.slane %v3329_v8, 4 }
 0x551   :  { %v3331_v58 = vadd.f32 %v3330_v13, %v3329_v8 }
 0x553   :  { %v3332_v51 = vrot.slane %v3331_v58, 2 }
 0x555   :  { %v3333_v22 = vadd.f32 %v3332_v51, %v3331_v58 }
 0x557   :  { %v3334_v31 = vrot.slane %v3333_v22, 1 }
 0x559   :  { %v3335_v9 = vadd.f32 %v3334_v31, %v3333_v22 }
 0x55b   :  { %v3337_v48 = vmul.f32 0.0078125, %v3335_v9 }
 0x55d   :  { %v11488_v4 = vsub.f32 %v9714_v35, %v3337_v48  ;;  %v11491_v56 = vsub.f32 %v9906_v37, %v3337_v48  ;;  %v11494_v42 = vsub.f32 %v10089_v61, %v3337_v48  ;;  %v11497_v28 = vsub.f32 %v10265_v15, %v3337_v48  ;;  %v14794_v35 = vld [vmem:[#allocation4_spill] sm:$0xff] }
 0x55e   :  { %v11500_v32 = vsub.f32 %v10434_v5, %v3337_v48  ;;  %v11503_v27 = vsub.f32 %v10621_v41, %v3337_v48  ;;  %v11506_v46 = vsub.f32 %v14793_v44, %v3337_v48  ;;  %v11509_v17 = vsub.f32 %v14794_v35, %v3337_v48 }
 0x55f   :  { %v11512_v37 = vsub.f32 %v11192_v38, %v3337_v48  ;;  %v11515_v61 = vsub.f32 %v11327_v50, %v3337_v48  ;;  %v11518_v15 = vsub.f32 %v11418_v57, %v3337_v48  ;;  %v11520_v5 = vsub.f32 %v3294_v16, %v3337_v48 }
 0x560   :  { %v11522_v45 = vsub.f32 %v3295_v59, %v3337_v48  ;;  %v11524_v41 = vsub.f32 %v3296_v0, %v3337_v48  ;;  %v11526_v23 = vsub.f32 %v3297_v12, %v3337_v48  ;;  %v11528_v43 = vsub.f32 %v3298_v54, %v3337_v48 }
 0x561   :  { %v3354_v38 = vmul.f32 %v11488_v4, %v11488_v4  ;;  %v3355_v50 = vmul.f32 %v11491_v56, %v11491_v56  ;;  %v3356_v57 = vmul.f32 %v11494_v42, %v11494_v42  ;;  %v3357_v16 = vmul.f32 %v11497_v28, %v11497_v28 }
 0x562   :  { %v3358_v6 = vmul.f32 %v11500_v32, %v11500_v32  ;;  %v3359_v21 = vmul.f32 %v11503_v27, %v11503_v27  ;;  %v3360_v2 = vmul.f32 %v11506_v46, %v11506_v46  ;;  %v3361_v10 = vmul.f32 %v11509_v17, %v11509_v17 }
 0x563   :  { %v3370_v60 = vsel %vm1205_vm3, %v3354_v38, 0.0  ;;  %v3371_v63 = vsel %vm1205_vm3, %v3355_v50, 0.0  ;;  %v3373_v11 = vsel %vm1205_vm3, %v3356_v57, 0.0  ;;  %v3375_v62 = vsel %vm1205_vm3, %v3357_v16, 0.0 }
 0x564   :  { %v3372_v49 = vadd.f32 %v3371_v63, %v3370_v60  ;;  %v3377_v30 = vsel %vm1205_vm3, %v3358_v6, 0.0  ;;  %v3379_v24 = vsel %vm1205_vm3, %v3359_v21, 0.0  ;;  %v3362_v25 = vmul.f32 %v11512_v37, %v11512_v37 }
 0x565   :  { %v3381_v3 = vsel %vm1205_vm3, %v3360_v2, 0.0  ;;  %v3363_v40 = vmul.f32 %v11515_v61, %v11515_v61  ;;  %v3383_v47 = vsel %vm1205_vm3, %v3361_v10, 0.0  ;;  %v3364_v33 = vmul.f32 %v11518_v15, %v11518_v15 }
 0x566   :  { %v3374_v59 = vadd.f32 %v3373_v11, %v3372_v49  ;;  %v3385_v53 = vsel %vm1205_vm3, %v3362_v25, 0.0  ;;  %v3365_v39 = vmul.f32 %v11520_v5, %v11520_v5  ;;  %v3366_v55 = vmul.f32 %v11522_v45, %v11522_v45 }
 0x567   :  { %v3387_v26 = vsel %vm1205_vm3, %v3363_v40, 0.0  ;;  %v3389_v18 = vsel %vm1205_vm3, %v3364_v33, 0.0  ;;  %v3367_v1 = vmul.f32 %v11524_v41, %v11524_v41  ;;  %v3368_v36 = vmul.f32 %v11526_v23, %v11526_v23 }
 0x568   :  { %v3376_v14 = vadd.f32 %v3375_v62, %v3374_v59  ;;  %v3391_v19 = vsel %vm1205_vm3, %v3365_v39, 0.0  ;;  %v3393_v8 = vsel %vm1205_vm3, %v3366_v55, 0.0  ;;  %v3369_v58 = vmul.f32 %v11528_v43, %v11528_v43 }
 0x569   :  { %v3395_v51 = vsel %vm1205_vm3, %v3367_v1, 0.0  ;;  %v3397_v31 = vsel %vm1205_vm3, %v3368_v36, 0.0  ;;  %v7815_v60 = vmov 0.0  }
 0x56a   :  { %v3378_v52 = vadd.f32 %v3377_v30, %v3376_v14  ;;  %v3399_v48 = vsel %vm1205_vm3, %v3369_v58, 0.0  ;;  %3935 = vst.msk [vmem:[#allocation2 + $0xf0] sm:$0xff] %vm1205_vm3, %v7815_v60  ;;  %3937 = vst.msk [vmem:[#allocation2 + $0x100] sm:$0xff] %vm1205_vm3, %v7815_v60 }
 0x56b   :  { %3936 = vst.msk [vmem:[#allocation2 + $0xf8] sm:$0x3] %vm3905_vm11, %v7815_v60  ;;  %3938 = vst.msk [vmem:[#allocation2 + $0x108] sm:$0x3] %vm3905_vm11, %v7815_v60 }
 0x56c   :  { %v3380_v0 = vadd.f32 %v3379_v24, %v3378_v52  ;;  %3939 = vst.msk [vmem:[#allocation2 + $0x110] sm:$0xff] %vm1205_vm3, %v7815_v60  ;;  %3941 = vst.msk [vmem:[#allocation2 + $0x120] sm:$0xff] %vm1205_vm3, %v7815_v60 }
 0x56d   :  { %3940 = vst.msk [vmem:[#allocation2 + $0x118] sm:$0x3] %vm3905_vm11, %v7815_v60  ;;  %3942 = vst.msk [vmem:[#allocation2 + $0x128] sm:$0x3] %vm3905_vm11, %v7815_v60 }
 0x56e   :  { %v3382_v34 = vadd.f32 %v3381_v3, %v3380_v0  ;;  %3904 = vst.msk [vmem:[#allocation2] sm:$0xff] %vm1205_vm3, %v7815_v60  ;;  %3907 = vst.msk [vmem:[#allocation2 + $0x10] sm:$0xff] %vm1205_vm3, %v7815_v60 }
 0x56f   :  { %3906 = vst.msk [vmem:[#allocation2 + $0x8] sm:$0x3] %vm3905_vm11, %v7815_v60  ;;  %3908 = vst.msk [vmem:[#allocation2 + $0x18] sm:$0x3] %vm3905_vm11, %v7815_v60 }
 0x570   :  { %v3384_v29 = vadd.f32 %v3383_v47, %v3382_v34  ;;  %3909 = vst.msk [vmem:[#allocation2 + $0x20] sm:$0xff] %vm1205_vm3, %v7815_v60  ;;  %3911 = vst.msk [vmem:[#allocation2 + $0x30] sm:$0xff] %vm1205_vm3, %v7815_v60 }
 0x571   :  { %3910 = vst.msk [vmem:[#allocation2 + $0x28] sm:$0x3] %vm3905_vm11, %v7815_v60  ;;  %3912 = vst.msk [vmem:[#allocation2 + $0x38] sm:$0x3] %vm3905_vm11, %v7815_v60 }
 0x572   :  { %v3386_v12 = vadd.f32 %v3385_v53, %v3384_v29  ;;  %3913 = vst.msk [vmem:[#allocation2 + $0x40] sm:$0xff] %vm1205_vm3, %v7815_v60  ;;  %3915 = vst.msk [vmem:[#allocation2 + $0x50] sm:$0xff] %vm1205_vm3, %v7815_v60 }
 0x573   :  { %3914 = vst.msk [vmem:[#allocation2 + $0x48] sm:$0x3] %vm3905_vm11, %v7815_v60  ;;  %3916 = vst.msk [vmem:[#allocation2 + $0x58] sm:$0x3] %vm3905_vm11, %v7815_v60 }
 0x574   :  { %v3388_v20 = vadd.f32 %v3387_v26, %v3386_v12  ;;  %3917 = vst.msk [vmem:[#allocation2 + $0x60] sm:$0xff] %vm1205_vm3, %v7815_v60  ;;  %3919 = vst.msk [vmem:[#allocation2 + $0x70] sm:$0xff] %vm1205_vm3, %v7815_v60 }
 0x575   :  { %3918 = vst.msk [vmem:[#allocation2 + $0x68] sm:$0x3] %vm3905_vm11, %v7815_v60  ;;  %3920 = vst.msk [vmem:[#allocation2 + $0x78] sm:$0x3] %vm3905_vm11, %v7815_v60  ;;  %v3962_v11 = vld [vmem:[#allocation2] sm:$0xff] }
 0x576   :  { %v3390_v7 = vadd.f32 %v3389_v18, %v3388_v20  ;;  %3921 = vst.msk [vmem:[#allocation2 + $0x80] sm:$0xff] %vm1205_vm3, %v7815_v60  ;;  %3923 = vst.msk [vmem:[#allocation2 + $0x90] sm:$0xff] %vm1205_vm3, %v7815_v60  ;;  %v3963_v59 = vld [vmem:[#allocation2 + $0x8] sm:$0x3]  ;;  %v4034_v21 = vrot.slane %v3962_v11, 1  ;;  %v4131_v14 = vrot.slane %v3962_v11, 2 }
 0x577   :  { %3922 = vst.msk [vmem:[#allocation2 + $0x88] sm:$0x3] %vm3905_vm11, %v7815_v60  ;;  %3924 = vst.msk [vmem:[#allocation2 + $0x98] sm:$0x3] %vm3905_vm11, %v7815_v60  ;;  %v4035_v62 = vrot.slane %v3963_v59, 1  ;;  %v4132_v2 = vrot.slane %v3963_v59, 2 }
 0x578   :  { %v3392_v54 = vadd.f32 %v3391_v19, %v3390_v7  ;;  %3925 = vst.msk [vmem:[#allocation2 + $0xa0] sm:$0xff] %vm1205_vm3, %v7815_v60  ;;  %3927 = vst.msk [vmem:[#allocation2 + $0xb0] sm:$0xff] %vm1205_vm3, %v7815_v60 }
 0x579   :  { %3926 = vst.msk [vmem:[#allocation2 + $0xa8] sm:$0x3] %vm3905_vm11, %v7815_v60  ;;  %3928 = vst.msk [vmem:[#allocation2 + $0xb8] sm:$0x3] %vm3905_vm11, %v7815_v60  ;;  %v4036_v30 = vsel %vm379_vm0, %v4034_v21, %v4035_v62  ;;  %v4133_v52 = vsel %vm4130_vm12, %v4131_v14, %v4132_v2 }
 0x57a   :  { %v3394_v13 = vadd.f32 %v3393_v8, %v3392_v54  ;;  %3929 = vst.msk [vmem:[#allocation2 + $0xc0] sm:$0xff] %vm1205_vm3, %v7815_v60  ;;  %3931 = vst.msk [vmem:[#allocation2 + $0xd0] sm:$0xff] %vm1205_vm3, %v7815_v60  ;;  %4082 = vrot.lane.b32.xlu0 %v4036_v30, %s7808_s15 }
 0x57b   :  { %3930 = vst.msk [vmem:[#allocation2 + $0xc8] sm:$0x3] %vm3905_vm11, %v7815_v60  ;;  %3932 = vst.msk [vmem:[#allocation2 + $0xd8] sm:$0x3] %vm3905_vm11, %v7815_v60 }
 0x57c   :  { %v3396_v22 = vadd.f32 %v3395_v51, %v3394_v13  ;;  %3933 = vst.msk [vmem:[#allocation2 + $0xe0] sm:$0xff] %vm1205_vm3, %v7815_v60  ;;  %3943 = vst.msk [vmem:[#allocation2 + $0x130] sm:$0xff] %vm1205_vm3, %v7815_v60 }
 0x57d   :  { %3934 = vst.msk [vmem:[#allocation2 + $0xe8] sm:$0x3] %vm3905_vm11, %v7815_v60  ;;  %3944 = vst.msk [vmem:[#allocation2 + $0x138] sm:$0x3] %vm3905_vm11, %v7815_v60 }
 0x57e   :  { %v3398_v9 = vadd.f32 %v3397_v31, %v3396_v22  ;;  %4179 = vrot.lane.b32.xlu0 %v4133_v52, %s7810_s24 }
 0x580   :  { %v3400_v44 = vadd.f32 %v3399_v48, %v3398_v9 }
 0x582   :  { %v3401_v35 = vrot.slane %v3400_v44, 4 }
 0x584   :  { %v3402_v38 = vadd.f32 %v3401_v35, %v3400_v44 }
 0x586   :  { %v3403_v50 = vrot.slane %v3402_v38, 2 }
 0x588   :  { %v3404_v57 = vadd.f32 %v3403_v50, %v3402_v38 }
 0x58a   :  { %v3405_v16 = vrot.slane %v3404_v57, 1 }
 0x58c   :  { %v3406_v63 = vadd.f32 %v3405_v16, %v3404_v57 }
 0x58e   :  { %v3407_v49 = vmul.f32 0.0078125, %v3406_v63 }
 0x590   :  { %v3408_v6 = vadd.f32 1e-12, %v3407_v49 }
 0x592   :  { %7545 = vrsqrt.f32 %v3408_v6 }
 0x59c   :  { %v7546_v10 = vpop.eup %7545 }
 0x59d   :  { %v3410_v24 = vmul.f32 %v7546_v10, %v11488_v4  ;;  %v3411_v0 = vmul.f32 %v7546_v10, %v11491_v56  ;;  %v3412_v25 = vmul.f32 %v7546_v10, %v11494_v42  ;;  %v3413_v3 = vmul.f32 %v7546_v10, %v11497_v28 }
 0x59e   :  { %v3414_v34 = vmul.f32 %v7546_v10, %v11500_v32  ;;  %v3415_v40 = vmul.f32 %v7546_v10, %v11503_v27  ;;  %v3416_v47 = vmul.f32 %v7546_v10, %v11506_v46  ;;  %v3417_v29 = vmul.f32 %v7546_v10, %v11509_v17  ;;  %v7122_v46 = vld [vmem:[%s14494_s5] ss:$0 sm:$0xff]  ;;  %s7816_s5 = smov 40  }
 0x59f   :  { %v3418_v33 = vmul.f32 %v7546_v10, %v11512_v37  ;;  %v3419_v53 = vmul.f32 %v7546_v10, %v11515_v61  ;;  %v3420_v4 = vmul.f32 %v7546_v10, %v11518_v15  ;;  %v3421_v56 = vmul.f32 %v7546_v10, %v11520_v5  ;;  %v7123_v5 = vld [vmem:[%s14495_s6] ss:$0 sm:$0xff] }
 0x5a0   :  { %v3422_v42 = vmul.f32 %v7546_v10, %v11522_v45  ;;  %v3423_v28 = vmul.f32 %v7546_v10, %v11524_v41  ;;  %v3424_v32 = vmul.f32 %v7546_v10, %v11526_v23  ;;  %v3425_v27 = vmul.f32 %v7546_v10, %v11528_v43 }
 0x5a1   :  { %v3437_v17 = vmul.f32 %v7122_v46, %v3414_v34  ;;  %v3438_v37 = vmul.f32 %v7122_v46, %v3415_v40  ;;  %v3439_v12 = vmul.f32 %v7122_v46, %v3416_v47  ;;  %v3433_v61 = vmul.f32 %v7122_v46, %v3410_v24 }
 0x5a2   :  { %v3440_v39 = vmul.f32 %v7122_v46, %v3417_v29  ;;  %v3441_v15 = vmul.f32 %v7122_v46, %v3418_v33  ;;  %v3442_v26 = vmul.f32 %v7122_v46, %v3419_v53  ;;  %v3434_v45 = vmul.f32 %v7122_v46, %v3411_v0 }
 0x5a3   :  { %v3435_v41 = vmul.f32 %v7122_v46, %v3412_v25  ;;  %v3436_v23 = vmul.f32 %v7122_v46, %v3413_v3  ;;  %v3443_v20 = vmul.f32 %v7122_v46, %v3420_v4  ;;  %v3444_v43 = vmul.f32 %v7122_v46, %v3421_v56 }
 0x5a4   :  { %v3445_v55 = vmul.f32 %v7122_v46, %v3422_v42  ;;  %v3446_v18 = vmul.f32 %v7122_v46, %v3423_v28  ;;  %v3460_v7 = vadd.f32 %v7123_v5, %v3437_v17  ;;  %v3461_v1 = vadd.f32 %v7123_v5, %v3438_v37 }
 0x5a5   :  { %v3462_v19 = vadd.f32 %v7123_v5, %v3439_v12  ;;  %v11644_v54 = vadd.f32 %v7123_v5, %v3433_v61  ;;  %v3463_v36 = vadd.f32 %v7123_v5, %v3440_v39  ;;  %v3464_v8 = vadd.f32 %v7123_v5, %v3441_v15 }
 0x5a6   :  { %v3465_v13 = vadd.f32 %v7123_v5, %v3442_v26  ;;  %v3447_v58 = vmul.f32 %v7122_v46, %v3424_v32  ;;  %v11646_v51 = vadd.f32 %v7123_v5, %v3434_v45  ;;  %v11648_v22 = vadd.f32 %v7123_v5, %v3435_v41 }
 0x5a7   :  { %14795 = vst [vmem:[#allocation46_spill] sm:$0xff] %v11644_v54  ;;  %v11650_v31 = vadd.f32 %v7123_v5, %v3436_v23  ;;  %v3448_v9 = vmul.f32 %v7122_v46, %v3425_v27  ;;  %v3466_v48 = vadd.f32 %v7123_v5, %v3443_v20  ;;  %v3467_v44 = vadd.f32 %v7123_v5, %v3444_v43 }
 0x5a8   :  { %14796 = vst [vmem:[#allocation71_spill] sm:$0xff] %v11646_v51  ;;  %14797 = vst [vmem:[#allocation3_spill] sm:$0xff] %v11648_v22  ;;  %v3468_v35 = vadd.f32 %v7123_v5, %v3445_v55  ;;  %v3469_v38 = vadd.f32 %v7123_v5, %v3446_v18  ;;  %v11652_v50 = vmul.f32 0.5, %v3460_v7  ;;  %v11654_v57 = vmul.f32 0.5, %v3461_v1 }
 0x5a9   :  { %14798 = vst [vmem:[#allocation23_spill] sm:$0xff] %v11650_v31  ;;  %v11656_v16 = vmul.f32 0.5, %v3462_v19  ;;  %v11658_v60 = vmul.f32 0.5, %v3463_v36  ;;  %v11660_v63 = vmul.f32 0.5, %v3464_v8  ;;  %v11662_v49 = vmul.f32 0.5, %v3465_v13 }
 0x5aa   :  { %14799 = vst [vmem:[#allocation48_spill] sm:$0xff] %v11654_v57  ;;  %v11665_v6 = vmul.f32 0.70710677, %v11644_v54  ;;  %v3470_v11 = vadd.f32 %v7123_v5, %v3447_v58  ;;  %v11668_v59 = vmul.f32 0.70710677, %v11646_v51  ;;  %v3471_v14 = vadd.f32 %v7123_v5, %v3448_v9 }
 0x5ab   :  { %14800 = vst [vmem:[#allocation73_spill] sm:$0xff] %v11656_v16  ;;  %14801 = vst [vmem:[#allocation22_spill] sm:$0xff] %v11658_v60  ;;  %v11671_v21 = vmul.f32 0.70710677, %v11648_v22  ;;  %v11674_v62 = vmul.f32 0.70710677, %v11650_v31 }
 0x5ac   :  { %14802 = vst [vmem:[#allocation47_spill] sm:$0xff] %v11660_v63  ;;  %14803 = vst [vmem:[#allocation72_spill] sm:$0xff] %v11662_v49  ;;  %v11676_v2 = vmul.f32 0.70710677, %v3460_v7  ;;  %v11678_v30 = vmul.f32 0.70710677, %v3461_v1 }
 0x5ad   :  { %14804 = vst [vmem:[#allocation6_spill] sm:$0xff] %v11665_v6  ;;  %14805 = vst [vmem:[#allocation5_spill] sm:$0xff] %v11668_v59  ;;  %v11680_v52 = vmul.f32 0.70710677, %v3462_v19  ;;  %v11682_v10 = vmul.f32 0.70710677, %v3463_v36 }
 0x5ae   :  { %14806 = vst [vmem:[#allocation25_spill] sm:$0xff] %v11671_v21  ;;  %14807 = vst [vmem:[#allocation50_spill] sm:$0xff] %v11674_v62  ;;  %v11684_v24 = vmul.f32 0.70710677, %v3464_v8  ;;  %v11686_v0 = vmul.f32 0.70710677, %v3465_v13 }
 0x5af   :  { %v11688_v25 = vmul.f32 0.70710677, %v3466_v48  ;;  %v11690_v3 = vmul.f32 0.70710677, %v3467_v44  ;;  %v11693_v34 = vand.u32 2147483647, %v11665_v6 }
 0x5b0   :  { %v11695_v40 = vmul.f32 0.70710677, %v3468_v35  ;;  %v11697_v47 = vmul.f32 0.70710677, %v3469_v38  ;;  %v11700_v29 = vand.u32 2147483647, %v11668_v59 }
 0x5b1   :  { %14808 = vst [vmem:[#allocation75_spill] sm:$0xff] %v11690_v3  ;;  %v11702_v33 = vmul.f32 0.70710677, %v3470_v11  ;;  %v11704_v53 = vmul.f32 0.70710677, %v3471_v14  ;;  %v11746_v41 = vmul.f32 0.5, %v3466_v48 }
 0x5b2   :  { %14809 = vst [vmem:[#allocation24_spill] sm:$0xff] %v11695_v40  ;;  %14810 = vst [vmem:[#allocation49_spill] sm:$0xff] %v11697_v47  ;;  %v11707_v4 = vand.u32 2147483647, %v11671_v21  ;;  %v11710_v56 = vand.u32 2147483647, %v11674_v62 }
 0x5b3   :  { %14811 = vst [vmem:[#allocation74_spill] sm:$0xff] %v11702_v33  ;;  %14812 = vst [vmem:[#allocation8_spill] sm:$0xff] %v11704_v53  ;;  %v11713_v42 = vand.u32 2147483647, %v11676_v2  ;;  %v11716_v28 = vand.u32 2147483647, %v11678_v30 }
 0x5b4   :  { %v11719_v32 = vand.u32 2147483647, %v11680_v52  ;;  %v11722_v27 = vand.u32 2147483647, %v11682_v10  ;;  %v3520_v46 = vmul.f32 0.3275911, %v11693_v34 }
 0x5b5   :  { %v11726_v17 = vand.u32 2147483647, %v11684_v24  ;;  %v11729_v37 = vand.u32 2147483647, %v11686_v0  ;;  %v3521_v12 = vmul.f32 0.3275911, %v11700_v29 }
 0x5b6   :  { %v11733_v61 = vand.u32 2147483647, %v11688_v25  ;;  %v11736_v39 = vand.u32 2147483647, %v11690_v3  ;;  %v3522_v15 = vmul.f32 0.3275911, %v11707_v4 }
 0x5b7   :  { %v11740_v26 = vand.u32 2147483647, %v11695_v40  ;;  %v11743_v5 = vand.u32 2147483647, %v11697_v47  ;;  %v3523_v45 = vmul.f32 0.3275911, %v11710_v56 }
 0x5b8   :  { %14813 = vst [vmem:[#allocation7_spill] sm:$0xff] %v11746_v41  ;;  %v11749_v23 = vand.u32 2147483647, %v11702_v33  ;;  %v3524_v20 = vmul.f32 0.3275911, %v11713_v42  ;;  %v3536_v43 = vadd.f32 1.0, %v3520_v46 }
 0x5b9   :  { %v11752_v55 = vmul.f32 0.5, %v3467_v44  ;;  %v11755_v18 = vand.u32 2147483647, %v11704_v53  ;;  %v3525_v7 = vmul.f32 0.3275911, %v11716_v28  ;;  %v3537_v1 = vadd.f32 1.0, %v3521_v12 }
 0x5ba   :  { %v11758_v19 = vmul.f32 0.5, %v3468_v35  ;;  %v3526_v36 = vmul.f32 0.3275911, %v11719_v32  ;;  %v3527_v8 = vmul.f32 0.3275911, %v11722_v27  ;;  %v3538_v13 = vadd.f32 1.0, %v3522_v15 }
 0x5bb   :  { %14814 = vst [vmem:[#allocation27_spill] sm:$0xff] %v11752_v55  ;;  %v11762_v58 = vmul.f32 0.5, %v3469_v38  ;;  %v3528_v9 = vmul.f32 0.3275911, %v11726_v17  ;;  %v3529_v48 = vmul.f32 0.3275911, %v11729_v37  ;;  %7547 = vrcp.f32 %v3536_v43 }
 0x5bc   :  { %14815 = vst [vmem:[#allocation52_spill] sm:$0xff] %v11758_v19  ;;  %v3539_v44 = vadd.f32 1.0, %v3523_v45  ;;  %v3530_v46 = vmul.f32 0.3275911, %v11733_v61  ;;  %v3531_v31 = vmul.f32 0.3275911, %v11736_v39  ;;  %7549 = vrcp.f32 %v3537_v1 }
 0x5bd   :  { %14816 = vst [vmem:[#allocation26_spill] sm:$0xff] %v11762_v58  ;;  %v3540_v22 = vadd.f32 1.0, %v3524_v20  ;;  %v3532_v35 = vmul.f32 0.3275911, %v11740_v26  ;;  %v3533_v12 = vmul.f32 0.3275911, %v11743_v5  ;;  %7551 = vrcp.f32 %v3538_v13 }
 0x5be   :  { %v3541_v62 = vadd.f32 1.0, %v3525_v7  ;;  %v3534_v38 = vmul.f32 0.3275911, %v11749_v23  ;;  %v3535_v15 = vmul.f32 0.3275911, %v11755_v18  ;;  %v3542_v21 = vadd.f32 1.0, %v3526_v36 }
 0x5bf   :  { %v11772_v51 = vmul.f32 0.5, %v3470_v11  ;;  %v11774_v45 = vmul.f32 0.5, %v3471_v14  ;;  %v3543_v59 = vadd.f32 1.0, %v3527_v8  ;;  %7553 = vrcp.f32 %v3539_v44 }
 0x5c0   :  { %v3544_v20 = vadd.f32 1.0, %v3528_v9  ;;  %v3545_v43 = vadd.f32 1.0, %v3529_v48  ;;  %v3546_v54 = vadd.f32 1.0, %v3530_v46  ;;  %7555 = vrcp.f32 %v3540_v22 }
 0x5c1   :  { %14817 = vst [vmem:[#allocation51_spill] sm:$0xff] %v11772_v51  ;;  %14818 = vst [vmem:[#allocation10_spill] sm:$0xff] %v11774_v45  ;;  %v3547_v6 = vadd.f32 1.0, %v3531_v31  ;;  %v3548_v58 = vadd.f32 1.0, %v3532_v35  ;;  %v3549_v7 = vadd.f32 1.0, %v3533_v12  ;;  %7557 = vrcp.f32 %v3541_v62 }
 0x5c2   :  { %v3550_v1 = vadd.f32 1.0, %v3534_v38  ;;  %v3551_v19 = vadd.f32 1.0, %v3535_v15  ;;  %7559 = vrcp.f32 %v3542_v21  ;;  %v3728_v36 = vsub.f32 0.0, %v11693_v34 }
 0x5c3   :  { %7561 = vrcp.f32 %v3543_v59  ;;  %v3729_v11 = vsub.f32 0.0, %v11700_v29  ;;  %v3730_v14 = vsub.f32 0.0, %v11707_v4  ;;  %v3732_v13 = vsub.f32 0.0, %v11713_v42 }
 0x5c4   :  { %7563 = vrcp.f32 %v3544_v20  ;;  %v3733_v22 = vsub.f32 0.0, %v11716_v28  ;;  %v3734_v31 = vsub.f32 0.0, %v11719_v32  ;;  %v3735_v62 = vsub.f32 0.0, %v11722_v27 }
 0x5c5   :  { %7565 = vrcp.f32 %v3545_v43  ;;  %v3736_v21 = vsub.f32 0.0, %v11726_v17  ;;  %v3737_v59 = vsub.f32 0.0, %v11729_v37  ;;  %v11786_v9 = vpop.eup %7547  ;;  %v3738_v48 = vsub.f32 0.0, %v11733_v61 }
 0x5c6   :  { %7567 = vrcp.f32 %v3546_v54  ;;  %v3739_v44 = vsub.f32 0.0, %v11736_v39  ;;  %v3740_v46 = vsub.f32 0.0, %v11740_v26  ;;  %v11791_v35 = vpop.eup %7549  ;;  %v3741_v12 = vsub.f32 0.0, %v11743_v5 }
 0x5c7   :  { %7569 = vrcp.f32 %v3547_v6  ;;  %v3744_v15 = vmul.f32 %v3728_v36, %v11693_v34  ;;  %v11796_v20 = vpop.eup %7551  ;;  %v3745_v43 = vmul.f32 %v3729_v11, %v11700_v29  ;;  %v3748_v8 = vmul.f32 %v3732_v13, %v11713_v42 }
 0x5c8   :  { %7571 = vrcp.f32 %v3548_v58  ;;  %v11804_v6 = vmul.f32 %v3730_v14, %v11707_v4  ;;  %v3749_v51 = vmul.f32 %v3733_v22, %v11716_v28  ;;  %v3750_v38 = vmul.f32 %v3734_v31, %v11719_v32 }
 0x5c9   :  { %v11801_v45 = vpop.eup %7553  ;;  %7573 = vrcp.f32 %v3549_v7  ;;  %v3751_v58 = vmul.f32 %v3735_v62, %v11722_v27  ;;  %v3752_v36 = vmul.f32 %v3736_v21, %v11726_v17  ;;  %v3753_v29 = vmul.f32 %v3737_v59, %v11729_v37 }
 0x5ca   :  { %14819 = vst [vmem:[#allocation9_spill] sm:$0xff] %v11804_v6  ;;  %v11808_v34 = vpop.eup %7555  ;;  %7575 = vrcp.f32 %v3550_v1  ;;  %v11817_v4 = vmul.f32 %v3738_v48, %v11733_v61  ;;  %v11819_v28 = vmul.f32 1.442695, %v3744_v15  ;;  %v11825_v27 = vmul.f32 %v3739_v44, %v11736_v39 }
 0x5cb   :  { %v11813_v42 = vpop.eup %7557  ;;  %7577 = vrcp.f32 %v3551_v19  ;;  %v3588_v7 = vmul.f32 1.0614054, %v11808_v34  ;;  %v11827_v17 = vmul.f32 1.442695, %v3745_v43  ;;  %v11829_v37 = vmul.f32 1.442695, %v3748_v8 }
 0x5cc   :  { %v11821_v32 = vpop.eup %7559  ;;  %v3589_v1 = vmul.f32 1.0614054, %v11813_v42  ;;  %v11835_v61 = vmul.f32 %v3740_v46, %v11740_v26  ;;  %v11837_v13 = vmul.f32 1.442695, %v3749_v51  ;;  %v11843_v62 = vmul.f32 %v3741_v12, %v11743_v5 }
 0x5cd   :  { %14820 = vst [vmem:[#allocation29_spill] sm:$0xff] %v11827_v17  ;;  %v11831_v11 = vpop.eup %7561  ;;  %v3590_v19 = vmul.f32 1.0614054, %v11821_v32  ;;  %v3604_v14 = vadd.f32 -1.4531521, %v3588_v7  ;;  %7579 = vpow2.f32 %v11829_v37  ;;  %v14821_v37 = vsub.f32 0.0, %v11749_v23 }
 0x5ce   :  { %v11839_v22 = vpop.eup %7563  ;;  %v3591_v31 = vmul.f32 1.0614054, %v11831_v11  ;;  %v3605_v39 = vadd.f32 -1.4531521, %v3589_v1  ;;  %v11845_v8 = vmul.f32 1.442695, %v3750_v38  ;;  %7581 = vpow2.f32 %v11837_v13 }
 0x5cf   :  { %v11847_v21 = vpop.eup %7565  ;;  %v3592_v59 = vmul.f32 1.0614054, %v11839_v22  ;;  %v3606_v48 = vadd.f32 -1.4531521, %v3590_v19  ;;  %v3620_v26 = vmul.f32 %v11808_v34, %v3604_v14  ;;  %v11851_v44 = vmul.f32 1.442695, %v3751_v58 }
 0x5d0   :  { %v11853_v51 = vpop.eup %7567  ;;  %v3593_v46 = vmul.f32 1.0614054, %v11847_v21  ;;  %v3607_v15 = vadd.f32 -1.4531521, %v3591_v31  ;;  %v3621_v43 = vmul.f32 %v11813_v42, %v3605_v39  ;;  %v11857_v5 = vmul.f32 1.442695, %v3752_v36 }
 0x5d1   :  { %v11859_v12 = vpop.eup %7569  ;;  %v3594_v38 = vmul.f32 1.0614054, %v11853_v51  ;;  %v3608_v7 = vadd.f32 -1.4531521, %v3592_v59  ;;  %v3622_v1 = vmul.f32 %v11821_v32, %v3606_v48  ;;  %v11863_v19 = vmul.f32 1.442695, %v3753_v29 }
 0x5d2   :  { %v11865_v58 = vpop.eup %7571  ;;  %v3595_v14 = vmul.f32 1.0614054, %v11859_v12  ;;  %v3609_v54 = vadd.f32 -1.4531521, %v3593_v46  ;;  %v3623_v31 = vmul.f32 %v11831_v11, %v3607_v15  ;;  %v3636_v6 = vadd.f32 1.4214138, %v3620_v26 }
 0x5d3   :  { %v11869_v39 = vpop.eup %7573  ;;  %v3596_v36 = vmul.f32 1.0614054, %v11865_v58  ;;  %v3610_v17 = vadd.f32 -1.4531521, %v3594_v38  ;;  %v3624_v55 = vmul.f32 %v11839_v22, %v3608_v7  ;;  %v3637_v59 = vadd.f32 1.4214138, %v3621_v43 }
 0x5d4   :  { %v11873_v41 = vpop.eup %7575  ;;  %v3597_v29 = vmul.f32 1.0614054, %v11869_v39  ;;  %v3611_v48 = vadd.f32 -1.4531521, %v3595_v14  ;;  %v3625_v49 = vmul.f32 %v11847_v21, %v3609_v54  ;;  %v3638_v63 = vadd.f32 1.4214138, %v3622_v1 }
 0x5d5   :  { %v11877_v46 = vpop.eup %7577  ;;  %v3598_v26 = vmul.f32 1.0614054, %v11873_v41  ;;  %v3612_v15 = vadd.f32 -1.4531521, %v3596_v36  ;;  %v3626_v60 = vmul.f32 %v11853_v51, %v3610_v17  ;;  %v3639_v53 = vadd.f32 1.4214138, %v3623_v31 }
 0x5d6   :  { %v3599_v38 = vmul.f32 1.0614054, %v11877_v46  ;;  %v3613_v7 = vadd.f32 -1.4531521, %v3597_v29  ;;  %v3627_v43 = vmul.f32 %v11859_v12, %v3611_v48  ;;  %v3640_v16 = vadd.f32 1.4214138, %v3624_v55 }
 0x5d7   :  { %v3614_v33 = vadd.f32 -1.4531521, %v3598_v26  ;;  %v3628_v14 = vmul.f32 %v11865_v58, %v3612_v15  ;;  %v3641_v57 = vadd.f32 1.4214138, %v3625_v49  ;;  %v3642_v54 = vadd.f32 1.4214138, %v3626_v60 }
 0x5d8   :  { %v3615_v1 = vadd.f32 -1.4531521, %v3599_v38  ;;  %v3629_v47 = vmul.f32 %v11869_v39, %v3613_v7  ;;  %v3643_v40 = vadd.f32 1.4214138, %v3627_v43  ;;  %v3652_v36 = vmul.f32 %v11808_v34, %v3636_v6 }
 0x5d9   :  { %v3630_v17 = vmul.f32 %v11873_v41, %v3614_v33  ;;  %v3644_v31 = vadd.f32 1.4214138, %v3628_v14  ;;  %v3653_v3 = vmul.f32 %v11813_v42, %v3637_v59  ;;  %v11889_v29 = vmul.f32 1.442695, %v11817_v4 }
 0x5da   :  { %v3631_v55 = vmul.f32 %v11877_v46, %v3615_v1  ;;  %v3645_v48 = vadd.f32 1.4214138, %v3629_v47  ;;  %v3654_v49 = vmul.f32 %v11821_v32, %v3638_v63  ;;  %v3655_v60 = vmul.f32 %v11831_v11, %v3639_v53 }
 0x5db   :  { %v3646_v26 = vadd.f32 1.4214138, %v3630_v17  ;;  %v3656_v15 = vmul.f32 %v11839_v22, %v3640_v16  ;;  %v3657_v6 = vmul.f32 %v11847_v21, %v3641_v57  ;;  %v3658_v33 = vmul.f32 %v11853_v51, %v3642_v54 }
 0x5dc   :  { %v3647_v38 = vadd.f32 1.4214138, %v3631_v55  ;;  %v3659_v59 = vmul.f32 %v11859_v12, %v3643_v40  ;;  %v3660_v4 = vmul.f32 %v11865_v58, %v3644_v31  ;;  %v3668_v7 = vadd.f32 -0.28449672, %v3652_v36 }
 0x5dd   :  { %v3661_v43 = vmul.f32 %v11869_v39, %v3645_v48  ;;  %v3662_v47 = vmul.f32 %v11873_v41, %v3646_v26  ;;  %v11903_v63 = vmul.f32 1.442695, %v11825_v27  ;;  %v3669_v57 = vadd.f32 -0.28449672, %v3653_v3 }
 0x5de   :  { %v3663_v16 = vmul.f32 %v11877_v46, %v3647_v38  ;;  %v3670_v53 = vadd.f32 -0.28449672, %v3654_v49  ;;  %v3671_v14 = vadd.f32 -0.28449672, %v3655_v60  ;;  %v3672_v54 = vadd.f32 -0.28449672, %v3656_v15 }
 0x5df   :  { %v3673_v1 = vadd.f32 -0.28449672, %v3657_v6  ;;  %v3684_v40 = vmul.f32 %v11808_v34, %v3668_v7  ;;  %v3784_v36 = vmul.f32 1.442695, %v11835_v61  ;;  %v3674_v17 = vadd.f32 -0.28449672, %v3658_v33 }
 0x5e0   :  { %v3675_v31 = vadd.f32 -0.28449672, %v3659_v59  ;;  %v3676_v55 = vadd.f32 -0.28449672, %v3660_v4  ;;  %v3758_v48 = vmul.f32 %v14821_v37, %v11749_v23  ;;  %v3677_v27 = vadd.f32 -0.28449672, %v3661_v43 }
 0x5e1   :  { %v3678_v26 = vadd.f32 -0.28449672, %v3662_v47  ;;  %v14822_v3 = vsub.f32 0.0, %v11755_v18  ;;  %v3786_v60 = vmul.f32 1.442695, %v11843_v62  ;;  %v3685_v6 = vmul.f32 %v11813_v42, %v3669_v57 }
 0x5e2   :  { %v3679_v15 = vadd.f32 -0.28449672, %v3663_v16  ;;  %v3686_v61 = vmul.f32 %v11821_v32, %v3670_v53  ;;  %v3687_v33 = vmul.f32 %v11831_v11, %v3671_v14  ;;  %v3688_v38 = vmul.f32 %v11839_v22, %v3672_v54  ;;  %v7580_v54 = vpop.eup %7579 }
 0x5e3   :  { %v3759_v49 = vmul.f32 %v14822_v3, %v11755_v18  ;;  %v3689_v59 = vmul.f32 %v11847_v21, %v3673_v1  ;;  %v3700_v23 = vadd.f32 0.2548296, %v3684_v40  ;;  %v3690_v4 = vmul.f32 %v11853_v51, %v3674_v17 }
 0x5e4   :  { %v3691_v18 = vmul.f32 %v11859_v12, %v3675_v31  ;;  %v3692_v62 = vmul.f32 %v11865_v58, %v3676_v55  ;;  %7583 = vpow2.f32 %v11845_v8  ;;  %v3693_v7 = vmul.f32 %v11869_v39, %v3677_v27 }
 0x5e5   :  { %v3694_v43 = vmul.f32 %v11873_v41, %v3678_v26  ;;  %v3716_v47 = vmul.f32 %v11808_v34, %v3700_v23  ;;  %v3788_v16 = vmul.f32 1.442695, %v3758_v48  ;;  %v3695_v57 = vmul.f32 %v11877_v46, %v3679_v15 }
 0x5e6   :  { %v3701_v53 = vadd.f32 0.2548296, %v3685_v6  ;;  %v3702_v14 = vadd.f32 0.2548296, %v3686_v61  ;;  %v3790_v13 = vmul.f32 1.442695, %v3759_v49  ;;  %7585 = vpow2.f32 %v11819_v28 }
 0x5e7   :  { %v3703_v1 = vadd.f32 0.2548296, %v3687_v33  ;;  %v3704_v40 = vadd.f32 0.2548296, %v3688_v38  ;;  %v3705_v17 = vadd.f32 0.2548296, %v3689_v59  ;;  %7587 = vpow2.f32 %v11851_v44 }
 0x5e8   :  { %v14823_v31 = vsub.f32 0.0, %v11710_v56  ;;  %v3706_v55 = vadd.f32 0.2548296, %v3690_v4  ;;  %v3707_v37 = vadd.f32 0.2548296, %v3691_v18  ;;  %v3796_v26 = vmul.f32 %v7580_v54, %v3716_v47 }
 0x5e9   :  { %v3708_v27 = vadd.f32 0.2548296, %v3692_v62  ;;  %v3709_v34 = vadd.f32 0.2548296, %v3693_v7  ;;  %v3710_v48 = vadd.f32 0.2548296, %v3694_v43  ;;  %v3717_v49 = vmul.f32 %v11813_v42, %v3701_v53  ;;  %v7582_v42 = vpop.eup %7581 }
 0x5ea   :  { %v11932_v8 = vmul.f32 %v14823_v31, %v11710_v56  ;;  %v3711_v3 = vadd.f32 0.2548296, %v3695_v57  ;;  %v3718_v15 = vmul.f32 %v11821_v32, %v3702_v14  ;;  %7589 = vpow2.f32 %v11857_v5  ;;  %v14825_v53 = vld [vmem:[#allocation75_spill] sm:$0xff]  ;;  %v14826_v31 = vld [vmem:[#allocation24_spill] sm:$0xff] }
 0x5eb   :  { %v3719_v56 = vmul.f32 %v11831_v11, %v3703_v1  ;;  %v3720_v6 = vmul.f32 %v11839_v22, %v3704_v40  ;;  %7591 = vpow2.f32 %v11863_v19  ;;  %v3812_v61 = vsub.f32 1.0, %v3796_v26 }
 0x5ec   :  { %v3721_v28 = vmul.f32 %v11847_v21, %v3705_v17  ;;  %v3722_v33 = vmul.f32 %v11853_v51, %v3706_v55  ;;  %v3723_v44 = vmul.f32 %v11859_v12, %v3707_v37  ;;  %7593 = vpow2.f32 %v11889_v29 }
 0x5ed   :  { %v11947_v32 = vmul.f32 %v11865_v58, %v3708_v27  ;;  %v11950_v5 = vmul.f32 %v11869_v39, %v3709_v34  ;;  %v11953_v11 = vmul.f32 %v11873_v41, %v3710_v48  ;;  %7595 = vpow2.f32 %v11903_v63  ;;  %v14827_v34 = vld [vmem:[#allocation49_spill] sm:$0xff]  ;;  %v14828_v48 = vld [vmem:[#allocation48_spill] sm:$0xff] }
 0x5ee   :  { %v7584_v22 = vpop.eup %7583  ;;  %v11957_v21 = vmul.f32 %v11877_v46, %v3711_v3  ;;  %7597 = vpow2.f32 %v3784_v36  ;;  %v3797_v51 = vmul.f32 %v7582_v42, %v3717_v49  ;;  %vm3828_vm13 = vcmp.ge.f32.partialorder %v11676_v2, 0.0 }
 0x5ef   :  { %7599 = vpow2.f32 %v3786_v60  ;;  %v3798_v12 = vmul.f32 %v7584_v22, %v3718_v15  ;;  %vm3829_vm14 = vcmp.ge.f32.partialorder %v11678_v30, 0.0  ;;  %v3844_v19 = vsub.f32 0.0, %v3812_v61 }
 0x5f0   :  { %7601 = vpow2.f32 %v3788_v16  ;;  %v3813_v58 = vsub.f32 1.0, %v3797_v51  ;;  %vm3830_vm15 = vcmp.ge.f32.partialorder %v11680_v52, 0.0  ;;  %v3584_v41 = vmul.f32 1.0614054, %v11786_v9  ;;  %v11964_v29 = vpop.eup %7585  ;;  %v14833_v51 = vld [vmem:[#allocation8_spill] sm:$0xff] }
 0x5f1   :  { %7603 = vpow2.f32 %v3790_v13  ;;  %v3814_v39 = vsub.f32 1.0, %v3798_v12  ;;  %vm3831_vm1 = vcmp.ge.f32.partialorder %v11682_v10, 0.0  ;;  %v3860_v46 = vsel %vm3828_vm13, %v3812_v61, %v3844_v19  ;;  %v7588_v38 = vpop.eup %7587  ;;  %v14831_v61 = vld [vmem:[#allocation73_spill] sm:$0xff] }
 0x5f2   :  { %vm3832_vm2 = vcmp.ge.f32.partialorder %v11684_v24, 0.0  ;;  %v3845_v2 = vsub.f32 0.0, %v3813_v58  ;;  %v3876_v63 = vadd.f32 1.0, %v3860_v46  ;;  %v3600_v36 = vadd.f32 -1.4531521, %v3584_v41 }
 0x5f3   :  { %v3585_v60 = vmul.f32 1.0614054, %v11791_v35  ;;  %vm3833_vm4 = vcmp.ge.f32.partialorder %v11686_v0, 0.0  ;;  %v3846_v59 = vsub.f32 0.0, %v3814_v39  ;;  %v11970_v23 = vmul.f32 1.0614054, %v11796_v20 }
 0x5f4   :  { %v11973_v4 = vmul.f32 1.0614054, %v11801_v45  ;;  %v7590_v18 = vpop.eup %7589  ;;  %v3799_v62 = vmul.f32 %v7588_v38, %v3719_v56  ;;  %vm3834_vm6 = vcmp.ge.f32.partialorder %v11688_v25, 0.0  ;;  %v3861_v7 = vsel %vm3829_vm14, %v3813_v58, %v3845_v2  ;;  %v14830_v56 = vld [vmem:[#allocation74_spill] sm:$0xff] }
 0x5f5   :  { %v11979_v43 = vmul.f32 %v3876_v63, %v11652_v50  ;;  %v3616_v47 = vmul.f32 %v11786_v9, %v3600_v36  ;;  %v7592_v16 = vpop.eup %7591  ;;  %v3800_v57 = vmul.f32 %v7590_v18, %v3720_v6  ;;  %vm3835_vm8 = vcmp.ge.f32.partialorder %v14825_v53, 0.0 }
 0x5f6   :  { %v3862_v14 = vsel %vm3830_vm15, %v3814_v39, %v3846_v59  ;;  %v3877_v13 = vadd.f32 1.0, %v3861_v7  ;;  %v3601_v54 = vadd.f32 -1.4531521, %v3585_v60  ;;  %v7594_v1 = vpop.eup %7593  ;;  %v3801_v40 = vmul.f32 %v7592_v16, %v3721_v28 }
 0x5f7   :  { %14824 = vst [vmem:[#allocation54_spill] sm:$0xff] %v11979_v43  ;;  %v3815_v17 = vsub.f32 1.0, %v3799_v62  ;;  %vm3836_vm10 = vcmp.ge.f32.partialorder %v14826_v31, 0.0  ;;  %v3878_v30 = vadd.f32 1.0, %v3862_v14  ;;  %3950 = vst.msk [vmem:[#allocation2 + $0x51] sm:$0xff] %vm1205_vm3, %v11979_v43  ;;  %v7596_v55 = vpop.eup %7595  ;;  %v3802_v37 = vmul.f32 %v7594_v1, %v3722_v33 }
 0x5f8   :  { %v3632_v50 = vadd.f32 1.4214138, %v3616_v47  ;;  %v3816_v27 = vsub.f32 1.0, %v3800_v57  ;;  %vm3837_vm11 = vcmp.ge.f32.partialorder %v14827_v34, 0.0  ;;  %v11990_v52 = vmul.f32 %v3877_v13, %v14828_v48  ;;  %v7598_v3 = vpop.eup %7597  ;;  %v14838_v48 = vld [vmem:[#allocation72_spill] sm:$0xff]  ;;  %v14840_v34 = vld [vmem:[#allocation7_spill] sm:$0xff] }
 0x5f9   :  { %v3617_v26 = vmul.f32 %v11791_v35, %v3601_v54  ;;  %v3803_v49 = vmul.f32 %v7596_v55, %v3723_v44  ;;  %v3817_v15 = vsub.f32 1.0, %v3801_v40  ;;  %vm3838_vm13 = vcmp.ge.f32.partialorder %v14830_v56, 0.0  ;;  %v7600_v42 = vpop.eup %7599  ;;  %v14836_v55 = vld [vmem:[#allocation47_spill] sm:$0xff] }
 0x5fa   :  { %14829 = vst [vmem:[#allocation28_spill] sm:$0xff] %v11990_v52  ;;  %v3847_v6 = vsub.f32 0.0, %v3815_v17  ;;  %v11995_v28 = vmul.f32 %v3878_v30, %v14831_v61  ;;  %v3804_v33 = vmul.f32 %v7598_v3, %v11947_v32  ;;  %v3818_v22 = vsub.f32 1.0, %v3802_v37  ;;  %3951 = vst.msk [vmem:[#allocation2 + $0x61] sm:$0xff] %vm1205_vm3, %v11990_v52  ;;  %v7602_v44 = vpop.eup %7601  ;;  %v14842_v56 = vld [vmem:[#allocation27_spill] sm:$0xff]  ;;  %v14844_v61 = vld [vmem:[#allocation52_spill] sm:$0xff] }
 0x5fb   :  { %vm3839_vm14 = vcmp.ge.f32.partialorder %v14833_v51, 0.0  ;;  %v3848_v12 = vsub.f32 0.0, %v3816_v27  ;;  %v3648_v19 = vmul.f32 %v11786_v9, %v3632_v50  ;;  %v3805_v58 = vmul.f32 %v7600_v42, %v11950_v5  ;;  %v7604_v32 = vpop.eup %7603  ;;  %v14834_v50 = vld [vmem:[#allocation22_spill] sm:$0xff]  ;;  %v14848_v51 = vld [vmem:[#allocation51_spill] sm:$0xff] }
 0x5fc   :  { %14832 = vst [vmem:[#allocation53_spill] sm:$0xff] %v11995_v28  ;;  %v3819_v41 = vsub.f32 1.0, %v3803_v49  ;;  %v3849_v39 = vsub.f32 0.0, %v3817_v15  ;;  %v3863_v46 = vsel %vm3831_vm1, %v3815_v17, %v3847_v6  ;;  %3952 = vst.msk [vmem:[#allocation2 + $0x71] sm:$0xff] %vm1205_vm3, %v11995_v28  ;;  %v3806_v2 = vmul.f32 %v7602_v44, %v11953_v11 }
 0x5fd   :  { %v3820_v63 = vsub.f32 1.0, %v3804_v33  ;;  %v3850_v36 = vsub.f32 0.0, %v3818_v22  ;;  %v3864_v60 = vsel %vm3832_vm2, %v3816_v27, %v3848_v12  ;;  %v3807_v38 = vmul.f32 %v7604_v32, %v11957_v21  ;;  %v14846_v33 = vld [vmem:[#allocation26_spill] sm:$0xff] }
 0x5fe   :  { %v3821_v59 = vsub.f32 1.0, %v3805_v58  ;;  %v3851_v5 = vsub.f32 0.0, %v3819_v41  ;;  %v3865_v18 = vsel %vm3833_vm4, %v3817_v15, %v3849_v39  ;;  %v3822_v10 = vsub.f32 1.0, %v3806_v2  ;;  %v14850_v39 = vld [vmem:[#allocation29_spill] sm:$0xff]  ;;  %v14852_v2 = vld [vmem:[#allocation10_spill] sm:$0xff] }
 0x5ff   :  { %v3852_v62 = vsub.f32 0.0, %v3820_v63  ;;  %v3866_v7 = vsel %vm3834_vm6, %v3818_v22, %v3850_v36  ;;  %v3879_v47 = vadd.f32 1.0, %v3863_v46  ;;  %v3823_v16 = vsub.f32 1.0, %v3807_v38  ;;  %v14851_v46 = vld [vmem:[#allocation9_spill] sm:$0xff] }
 0x600   :  { %v3853_v11 = vsub.f32 0.0, %v3821_v59  ;;  %v3867_v57 = vsel %vm3835_vm8, %v3819_v41, %v3851_v5  ;;  %v3880_v24 = vadd.f32 1.0, %v3864_v60  ;;  %v3854_v14 = vsub.f32 0.0, %v3822_v10 }
 0x601   :  { %v3868_v21 = vsel %vm3836_vm10, %v3820_v63, %v3852_v62  ;;  %v3881_v13 = vadd.f32 1.0, %v3865_v18  ;;  %v3882_v54 = vadd.f32 1.0, %v3866_v7  ;;  %v3855_v0 = vsub.f32 0.0, %v3823_v16 }
 0x602   :  { %v3869_v1 = vsel %vm3837_vm11, %v3821_v59, %v3853_v11  ;;  %v3883_v40 = vadd.f32 1.0, %v3867_v57  ;;  %v3884_v25 = vadd.f32 1.0, %v3868_v21  ;;  %v3870_v17 = vsel %vm3838_vm13, %v3822_v10, %v3854_v14 }
 0x603   :  { %v3885_v30 = vadd.f32 1.0, %v3869_v1  ;;  %v12024_v53 = vmul.f32 %v3879_v47, %v14834_v50  ;;  %v12027_v37 = vmul.f32 %v3880_v24, %v14836_v55  ;;  %v3871_v31 = vsel %vm3839_vm14, %v3823_v16, %v3855_v0  ;;  %v14855_v55 = vld [vmem:[#allocation46_spill] sm:$0xff] }
 0x604   :  { %v3886_v27 = vadd.f32 1.0, %v3870_v17  ;;  %v12032_v3 = vmul.f32 %v3881_v13, %v14838_v48  ;;  %v12035_v49 = vmul.f32 %v3882_v54, %v14840_v34  ;;  %v3887_v15 = vadd.f32 1.0, %v3871_v31 }
 0x605   :  { %14835 = vst [vmem:[#allocation12_spill] sm:$0xff] %v12024_v53  ;;  %14837 = vst [vmem:[#allocation11_spill] sm:$0xff] %v12027_v37  ;;  %v12038_v6 = vmul.f32 %v3883_v40, %v14842_v56  ;;  %v12041_v42 = vmul.f32 %v3884_v25, %v14844_v61  ;;  %v12044_v22 = vmul.f32 %v3885_v30, %v14846_v33  ;;  %v3664_v44 = vadd.f32 -0.28449672, %v3648_v19  ;;  %v14854_v40 = vld [vmem:[#allocation6_spill] sm:$0xff]  ;;  %v14856_v56 = vld [vmem:[#allocation5_spill] sm:$0xff] }
 0x606   :  { %14839 = vst [vmem:[#allocation31_spill] sm:$0xff] %v12032_v3  ;;  %14841 = vst [vmem:[#allocation56_spill] sm:$0xff] %v12035_v49  ;;  %v12051_v12 = vmul.f32 %v3886_v27, %v14848_v51  ;;  %v3633_v58 = vadd.f32 1.4214138, %v3617_v26  ;;  %v3602_v41 = vadd.f32 -1.4531521, %v11970_v23  ;;  %7605 = vpow2.f32 %v14850_v39 }
 0x607   :  { %14843 = vst [vmem:[#allocation30_spill] sm:$0xff] %v12038_v6  ;;  %14845 = vst [vmem:[#allocation55_spill] sm:$0xff] %v12041_v42  ;;  %v3764_v32 = vmul.f32 1.442695, %v14851_v46  ;;  %v12061_v63 = vmul.f32 %v3887_v15, %v14852_v2  ;;  %v3603_v26 = vadd.f32 -1.4531521, %v11973_v4  ;;  %v3680_v19 = vmul.f32 %v11786_v9, %v3664_v44 }
 0x608   :  { %14847 = vst [vmem:[#allocation14_spill] sm:$0xff] %v12044_v22  ;;  %3953 = vst.msk [vmem:[#allocation2 + $0x81] sm:$0xff] %vm1205_vm3, %v12024_v53  ;;  %v3766_v23 = vmul.f32 1.442695, %v11932_v8  ;;  %v3649_v36 = vmul.f32 %v11791_v35, %v3633_v58  ;;  %v3618_v60 = vmul.f32 %v11796_v20, %v3602_v41  ;;  %vm3824_vm15 = vcmp.ge.f32.partialorder %v14854_v40, 0.0  ;;  %v14858_v58 = vld [vmem:[#allocation71_spill] sm:$0xff] }
 0x609   :  { %3954 = vst.msk [vmem:[#allocation2 + $0xb1] sm:$0xff] %vm1205_vm3, %v12027_v37  ;;  %14849 = vst [vmem:[#allocation13_spill] sm:$0xff] %v12051_v12  ;;  %v3619_v38 = vmul.f32 %v11801_v45, %v3603_v26  ;;  %v3696_v59 = vadd.f32 0.2548296, %v3680_v19  ;;  %7607 = vpow2.f32 %v3764_v32  ;;  %v3472_v31 = vmul.f32 0.5, %v14855_v55  ;;  %v14859_v32 = vld [vmem:[#allocation25_spill] sm:$0xff] }
 0x60a   :  { %3955 = vst.msk [vmem:[#allocation2 + $0xc1] sm:$0xff] %vm1205_vm3, %v12032_v3  ;;  %3956 = vst.msk [vmem:[#allocation2 + $0xd1] sm:$0xff] %vm1205_vm3, %v12035_v49  ;;  %v3665_v5 = vadd.f32 -0.28449672, %v3649_v36  ;;  %v3634_v18 = vadd.f32 1.4214138, %v3618_v60  ;;  %7609 = vpow2.f32 %v3766_v23 }
 0x60b   :  { %14853 = vst [vmem:[#allocation33_spill] sm:$0xff] %v12061_v63  ;;  %3958 = vst.msk [vmem:[#allocation2 + $0xf1] sm:$0xff] %vm1205_vm3, %v12041_v42  ;;  %v3635_v4 = vadd.f32 1.4214138, %v3619_v38  ;;  %v3712_v8 = vmul.f32 %v11786_v9, %v3696_v59  ;;  %vm3825_vm1 = vcmp.ge.f32.partialorder %v14856_v56, 0.0  ;;  %v3473_v41 = vmul.f32 0.5, %v14858_v58 }
 0x60c   :  { %3959 = vst.msk [vmem:[#allocation2 + $0x101] sm:$0xff] %vm1205_vm3, %v12044_v22  ;;  %3957 = vst.msk [vmem:[#allocation2 + $0xe1] sm:$0xff] %vm1205_vm3, %v12038_v6  ;;  %v3681_v10 = vmul.f32 %v11791_v35, %v3665_v5  ;;  %v3650_v62 = vmul.f32 %v11796_v20, %v3634_v18  ;;  %vm3826_vm2 = vcmp.ge.f32.partialorder %v14859_v32, 0.0  ;;  %v14861_v26 = vld [vmem:[#allocation50_spill] sm:$0xff]  ;;  %v14862_v19 = vld [vmem:[#allocation3_spill] sm:$0xff]  ;;  %vm14610_vm6 = vcmask 326656  }
 0x60d   :  { %3960 = vst.msk [vmem:[#allocation2 + $0x111] sm:$0xff] %vm1205_vm3, %v12051_v12  ;;  %3961 = vst.msk [vmem:[#allocation2 + $0x121] sm:$0xff] %vm1205_vm3, %v12061_v63  ;;  %v3651_v7 = vmul.f32 %v11801_v45, %v3635_v4  ;;  %v3792_v47 = vmul.f32 %v11964_v29, %v3712_v8  ;;  %vm3827_vm4 = vcmp.ge.f32.partialorder %v14861_v26, 0.0  ;;  %v3474_v36 = vmul.f32 0.5, %v14862_v19  ;;  %v14863_v59 = vld [vmem:[#allocation23_spill] sm:$0xff]  ;;  %v4682_v56 = vld [vmem:[%s14496_s3 + $0x18] sm:$0xff] }
 0x60e   :  { %v3697_v16 = vadd.f32 0.2548296, %v3681_v10  ;;  %v3666_v11 = vadd.f32 -0.28449672, %v3650_v62  ;;  %v3475_v5 = vmul.f32 0.5, %v14863_v59  ;;  %v4683_v58 = vld [vmem:[%s14496_s3 + $0x20] sm:$0xff] }
 0x60f   :  { %v3667_v57 = vadd.f32 -0.28449672, %v3651_v7  ;;  %v3808_v24 = vsub.f32 1.0, %v3792_v47  ;;  %v4685_v32 = vld [vmem:[%s14496_s3 + $0x30] sm:$0xff]  ;;  %vm14609_vm8 = vcmask 392192   ;;  %vm14607_vm10 = vcmask 523264  }
 0x610   :  { %v3713_v14 = vmul.f32 %v11791_v35, %v3697_v16  ;;  %v3682_v21 = vmul.f32 %v11796_v20, %v3666_v11  ;;  %v7606_v13 = vpop.eup %7605  ;;  %v12184_v19 = vld [vmem:[#allocation2 + $0x50] sm:$0xff]  ;;  %vm14608_vm11 = vcmask 457728   ;;  %vm14606_vm13 = vcmask 588800  }
 0x611   :  { %v3683_v54 = vmul.f32 %v11801_v45, %v3667_v57  ;;  %v3840_v9 = vsub.f32 0.0, %v3808_v24 }
 0x612   :  { %v3793_v0 = vmul.f32 %v7606_v13, %v3713_v14  ;;  %v3698_v1 = vadd.f32 0.2548296, %v3682_v21 }
 0x613   :  { %v3699_v25 = vadd.f32 0.2548296, %v3683_v54  ;;  %v3856_v17 = vsel %vm3824_vm15, %v3808_v24, %v3840_v9  ;;  %v7608_v50 = vpop.eup %7607 }
 0x614   :  { %v3809_v30 = vsub.f32 1.0, %v3793_v0  ;;  %v3714_v29 = vmul.f32 %v11796_v20, %v3698_v1  ;;  %v3872_v27 = vadd.f32 1.0, %v3856_v17  ;;  %v7610_v48 = vpop.eup %7609 }
 0x615   :  { %v3715_v35 = vmul.f32 %v11801_v45, %v3699_v25 }
 0x616   :  { %v3841_v34 = vsub.f32 0.0, %v3809_v30  ;;  %v3794_v15 = vmul.f32 %v7608_v50, %v3714_v29  ;;  %v12092_v61 = vmul.f32 %v3872_v27, %v3472_v31 }
 0x617   :  { %v3795_v33 = vmul.f32 %v7610_v48, %v3715_v35  ;;  %v4679_v35 = vld [vmem:[%s14496_s3] sm:$0xff]  ;;  %v4680_v48 = vld [vmem:[%s14496_s3 + $0x8] sm:$0xff] }
 0x618   :  { %14857 = vst [vmem:[#allocation58_spill] sm:$0xff] %v12092_v61  ;;  %v3857_v51 = vsel %vm3825_vm1, %v3809_v30, %v3841_v34  ;;  %v3810_v44 = vsub.f32 1.0, %v3794_v15  ;;  %3946 = vst.msk [vmem:[#allocation2 + $0x11] sm:$0xff] %vm1205_vm3, %v12092_v61  ;;  %v7500_v34 = vpack.c.bf16 %v4680_v48, %v4679_v35  ;;  %v4681_v15 = vld [vmem:[%s14496_s3 + $0x10] sm:$0xff]  ;;  %v12238_v35 = vld [vmem:[#allocation2 + $0xa0] sm:$0xff] }
 0x619   :  { %v3873_v20 = vadd.f32 1.0, %v3857_v51  ;;  %v3811_v39 = vsub.f32 1.0, %v3795_v33  ;;  %v7504_v33 = vpack.c.bf16 %v4682_v56, %v4681_v15  ;;  %v3983_v48 = vld [vmem:[#allocation2 + $0xa8] sm:$0x3]  ;;  %v4058_v15 = vrot.slane %v12238_v35, 1 }
 0x61a   :  { %v3842_v46 = vsub.f32 0.0, %v3810_v44  ;;  %7501 = vmatprep.subr.bf16.mxu0 %v7500_v34  ;;  %v4059_v56 = vrot.slane %v3983_v48, 1 }
 0x61b   :  { %v12098_v45 = vmul.f32 %v3873_v20, %v3473_v41  ;;  %v3843_v2 = vsub.f32 0.0, %v3811_v39  ;;  %7503 = vmatpush3.bf16.msra.mxu0 %v7500_v34  ;;  %v4684_v41 = vld [vmem:[%s14496_s3 + $0x28] sm:$0xff]  ;;  %v3978_v34 = vld [vmem:[#allocation2 + $0x80] sm:$0xff] }
 0x61c   :  { %v3858_v23 = vsel %vm3826_vm2, %v3810_v44, %v3842_v46  ;;  %7505 = vmatprep.subr.bf16.mxu0 %v7504_v33  ;;  %v7508_v20 = vpack.c.bf16 %v4684_v41, %v4683_v58  ;;  %v3985_v58 = vld [vmem:[#allocation2 + $0xb8] sm:$0x3]  ;;  %v12252_v41 = vpop.permute.xlu0 %4082 }
 0x61d   :  { %14860 = vst [vmem:[#allocation32_spill] sm:$0xff] %v12098_v45  ;;  %3947 = vst.msk [vmem:[#allocation2 + $0x21] sm:$0xff] %vm1205_vm3, %v12098_v45  ;;  %v3874_v60 = vadd.f32 1.0, %v3858_v23  ;;  %v3859_v38 = vsel %vm3827_vm4, %v3811_v39, %v3843_v2  ;;  %v4686_v2 = vld [vmem:[%s14496_s3 + $0x38] sm:$0xff] }
 0x61e   :  { %v3875_v18 = vadd.f32 1.0, %v3859_v38  ;;  %v7512_v26 = vpack.c.bf16 %v4686_v2, %v4685_v32  ;;  %v4049_v38 = vrot.slane %v12184_v19, 1  ;;  %v4279_v32 = vrot.slane %v3978_v34, 1 }
 0x61f   :  { %v12105_v4 = vmul.f32 %v3874_v60, %v3474_v36  ;;  %v12107_v8 = vld [vmem:[#allocation2 + $0x10] sm:$0xff]  ;;  %v3965_v10 = vld [vmem:[#allocation2 + $0x18] sm:$0x3]  ;;  %7507 = vmatpush3.bf16.msra.mxu0 %v7504_v33  ;;  %v4687_v60 = vld [vmem:[%s14496_s3 + $0x40] sm:$0xff]  ;;  %v4060_v33 = vsel %vm379_vm0, %v4058_v15, %v4059_v56 }
 0x620   :  { %v12109_v62 = vmul.f32 %v3875_v18, %v3475_v5  ;;  %4229 = vrot.lane.b32.xlu0 %v12107_v8, %s7812_s28  ;;  %v4037_v7 = vrot.slane %v12107_v8, 1  ;;  %v4038_v47 = vrot.slane %v3965_v10, 1  ;;  %v4134_v11 = vrot.slane %v12107_v8, 2  ;;  %7509 = vmatprep.subr.bf16.mxu0 %v7508_v20  ;;  %v3973_v36 = vld [vmem:[#allocation2 + $0x58] sm:$0x3] }
 0x621   :  { %14864 = vst [vmem:[#allocation57_spill] sm:$0xff] %v12105_v4  ;;  %3948 = vst.msk [vmem:[#allocation2 + $0x31] sm:$0xff] %vm1205_vm3, %v12105_v4  ;;  %v4135_v57 = vrot.slane %v3965_v10, 2  ;;  %v4050_v59 = vrot.slane %v3973_v36, 1 }
 0x622   :  { %14865 = vst [vmem:[#allocation16_spill] sm:$0xff] %v12109_v62  ;;  %3949 = vst.msk [vmem:[#allocation2 + $0x41] sm:$0xff] %vm1205_vm3, %v12109_v62  ;;  %v4039_v16 = vsel %vm379_vm0, %v4037_v7, %v4038_v47  ;;  %v4146_v47 = vrot.slane %v12184_v19, 2 }
 0x623   :  { %4084 = vrot.lane.b32.xlu1 %v4039_v16, %s7808_s15  ;;  %v4136_v54 = vsel %vm4130_vm12, %v4134_v11, %v4135_v57  ;;  %7511 = vmatpush3.bf16.msra.mxu0 %v7508_v20  ;;  %v4051_v5 = vsel %vm379_vm0, %v4049_v38, %v4050_v59  ;;  %v12208_v57 = vld [vmem:[#allocation2 + $0x60] sm:$0xff] }
 0x624   :  { %v12121_v24 = vld [vmem:[#allocation2 + $0x20] sm:$0xff]  ;;  %v3967_v14 = vld [vmem:[#allocation2 + $0x28] sm:$0x3]  ;;  %4285 = vrot.lane.b32.xlu0 %v4039_v16, %s7814_s26  ;;  %7513 = vmatprep.subr.bf16.mxu0 %v7512_v26  ;;  %v4147_v16 = vrot.slane %v3973_v36, 2 }
 0x625   :  { %v4040_v21 = vrot.slane %v12121_v24, 1  ;;  %v4041_v13 = vrot.slane %v3967_v14, 1  ;;  %v4137_v30 = vrot.slane %v12121_v24, 2  ;;  %v4138_v29 = vrot.slane %v3967_v14, 2  ;;  %v3975_v14 = vld [vmem:[#allocation2 + $0x68] sm:$0x3] }
 0x626   :  { %v4148_v11 = vsel %vm4130_vm12, %v4146_v47, %v4147_v16 }
 0x627   :  { %4181 = vrot.lane.b32.xlu1 %v4136_v54, %s7810_s24  ;;  %v4042_v9 = vsel %vm379_vm0, %v4040_v21, %v4041_v13  ;;  %v4139_v50 = vsel %vm4130_vm12, %v4137_v30, %v4138_v29  ;;  %7515 = vmatpush3.bf16.msra.mxu0 %v7512_v26  ;;  %v4052_v21 = vrot.slane %v12208_v57, 1  ;;  %v4053_v13 = vrot.slane %v3975_v14, 1 }
 0x628   :  { %v12128_v0 = vld [vmem:[#allocation2 + $0x30] sm:$0xff]  ;;  %v3969_v1 = vld [vmem:[#allocation2 + $0x38] sm:$0x3]  ;;  %4287 = vrot.lane.b32.xlu0 %v4042_v9, %s7814_s26  ;;  %7416 = vmatprep.subr.mxu0 %v4687_v60  ;;  %v4149_v30 = vrot.slane %v12208_v57, 2  ;;  %v4150_v29 = vrot.slane %v3975_v14, 2 }
 0x629   :  { %v4043_v40 = vrot.slane %v12128_v0, 1  ;;  %v4044_v25 = vrot.slane %v3969_v1, 1  ;;  %v4140_v55 = vrot.slane %v12128_v0, 2  ;;  %v4141_v31 = vrot.slane %v3969_v1, 2  ;;  %v12161_v51 = vld [vmem:[#allocation2 + $0x40] sm:$0xff] }
 0x62a   :  { %v3971_v44 = vld [vmem:[#allocation2 + $0x48] sm:$0x3]  ;;  %v4046_v39 = vrot.slane %v12161_v51, 1  ;;  %v4143_v18 = vrot.slane %v12161_v51, 2  ;;  %v3977_v1 = vld [vmem:[#allocation2 + $0x78] sm:$0x3] }
 0x62b   :  { %4231 = vrot.lane.b32.xlu1 %v12121_v24, %s7812_s28  ;;  %v4045_v17 = vsel %vm379_vm0, %v4043_v40, %v4044_v25  ;;  %v4142_v27 = vsel %vm4130_vm12, %v4140_v55, %v4141_v31  ;;  %v4047_v46 = vrot.slane %v3971_v44, 1  ;;  %7417 = vmatpush3.msra.mxu0 %v4687_v60  ;;  %v4144_v10 = vrot.slane %v3971_v44, 2  ;;  %v12250_v44 = vld [vmem:[#allocation2 + $0xb0] sm:$0xff]  ;;  %v12260_v60 = vpop.permute.xlu0 %4179 }
 0x62c   :  { %4088 = vrot.lane.b32.xlu0 %v4045_v17, %s7808_s15  ;;  %v4056_v25 = vrot.slane %v3977_v1, 1  ;;  %v4153_v31 = vrot.slane %v3977_v1, 2  ;;  %v4061_v20 = vrot.slane %v12250_v44, 1 }
 0x62d   :  { %v4048_v23 = vsel %vm379_vm0, %v4046_v39, %v4047_v46  ;;  %v4145_v7 = vsel %vm4130_vm12, %v4143_v18, %v4144_v10  ;;  %v4062_v39 = vrot.slane %v3985_v58, 1  ;;  %v3979_v46 = vld [vmem:[#allocation2 + $0x88] sm:$0x3]  ;;  %v4159_v18 = vrot.slane %v3985_v58, 2  ;;  %v3989_v58 = vld [vmem:[#allocation2 + $0xd8] sm:$0x3] }
 0x62e   :  { %v4280_v2 = vrot.slane %v3979_v46, 1  ;;  %v4334_v36 = vrot.slane %v3979_v46, 2  ;;  %v4155_v10 = vrot.slane %v12238_v35, 2 }
 0x62f   :  { %4086 = vrot.lane.b32.xlu1 %v4042_v9, %s7808_s15  ;;  %v4063_v26 = vsel %vm379_vm0, %v4061_v20, %v4062_v39 }
 0x630   :  { %4341 = vrot.lane.b32.xlu0 %v4139_v50, %s7816_s5  ;;  %v4281_v38 = vsel %vm379_vm0, %v4279_v32, %v4280_v2  ;;  %v4068_v32 = vrot.slane %v3989_v58, 1 }
 0x633   :  { %4339 = vrot.lane.b32.xlu1 %v4136_v54, %s7816_s5  ;;  %v4054_v54 = vsel %vm379_vm0, %v4052_v21, %v4053_v13  ;;  %v3980_v21 = vld [vmem:[#allocation2 + $0x90] sm:$0xff] }
 0x634   :  { %4185 = vrot.lane.b32.xlu0 %v4142_v27, %s7810_s24  ;;  %v4439_v1 = vrot.slane %v3980_v21, 1 }
 0x637   :  { %4183 = vrot.lane.b32.xlu1 %v4139_v50, %s7810_s24 }
 0x638   :  { %4391 = vrot.lane.b32.xlu0 %v12128_v0, %s7817_s22 }
 0x63b   :  { %4389 = vrot.lane.b32.xlu1 %v12121_v24, %s7817_s22 }
 0x63c   :  { %4235 = vrot.lane.b32.xlu0 %v12161_v51, %s7812_s28 }
 0x63f   :  { %4233 = vrot.lane.b32.xlu1 %v12128_v0, %s7812_s28 }
 0x640   :  { %4447 = vrot.lane.b32.xlu0 %v4045_v17, %s7818_s13 }
 0x643   :  { %4445 = vrot.lane.b32.xlu1 %v4042_v9, %s7818_s13  ;;  %v12219_v9 = vld [vmem:[#allocation2 + $0x70] sm:$0xff] }
 0x644   :  { %4090 = vrot.lane.b32.xlu0 %v4048_v23, %s7808_s15  ;;  %v4055_v40 = vrot.slane %v12219_v9, 1  ;;  %v4152_v55 = vrot.slane %v12219_v9, 2 }
 0x647   :  { %4289 = vrot.lane.b32.xlu1 %v4045_v17, %s7814_s26  ;;  %v4057_v17 = vsel %vm379_vm0, %v4055_v40, %v4056_v25 }
 0x648   :  { %4343 = vrot.lane.b32.xlu0 %v4142_v27, %s7816_s5 }
 0x64b   :  { %4499 = vrot.lane.b32.xlu1 %v4139_v50, %s7819_s17  ;;  %v4151_v50 = vsel %vm4130_vm12, %v4149_v30, %v4150_v29  ;;  %v12285_v30 = vld [vmem:[#allocation2 + $0xc0] sm:$0xff]  ;;  %v3987_v29 = vld [vmem:[#allocation2 + $0xc8] sm:$0x3] }
 0x64c   :  { %4092 = vrot.lane.b32.xlu0 %v4051_v5, %s7808_s15 }
 0x64f   :  { %4291 = vrot.lane.b32.xlu1 %v4048_v23, %s7814_s26 }
 0x650   :  { %4345 = vrot.lane.b32.xlu0 %v4145_v7, %s7816_s5 }
 0x653   :  { %4501 = vrot.lane.b32.xlu1 %v4142_v27, %s7819_s17  ;;  %v4154_v27 = vsel %vm4130_vm12, %v4152_v55, %v4153_v31 }
 0x654   :  { %4189 = vrot.lane.b32.xlu0 %v4148_v11, %s7810_s24 }
 0x657   :  { %4187 = vrot.lane.b32.xlu1 %v4145_v7, %s7810_s24 }
 0x658   :  { %4395 = vrot.lane.b32.xlu0 %v12184_v19, %s7817_s22 }
 0x65b   :  { %4393 = vrot.lane.b32.xlu1 %v12161_v51, %s7817_s22 }
 0x65c   :  { %4239 = vrot.lane.b32.xlu0 %v12208_v57, %s7812_s28 }
 0x65f   :  { %4237 = vrot.lane.b32.xlu1 %v12184_v19, %s7812_s28 }
 0x660   :  { %4451 = vrot.lane.b32.xlu0 %v4051_v5, %s7818_s13 }
 0x663   :  { %4449 = vrot.lane.b32.xlu1 %v4048_v23, %s7818_s13  ;;  %v4333_v23 = vrot.slane %v3978_v34, 2 }
 0x664   :  { %4094 = vrot.lane.b32.xlu0 %v4054_v54, %s7808_s15 }
 0x665   :  { %v4335_v59 = vsel %vm4130_vm12, %v4333_v23, %v4334_v36 }
 0x667   :  { %4293 = vrot.lane.b32.xlu1 %v4051_v5, %s7814_s26  ;;  %v4158_v5 = vrot.slane %v12250_v44, 2 }
 0x668   :  { %4347 = vrot.lane.b32.xlu0 %v4148_v11, %s7816_s5 }
 0x669   :  { %v4160_v16 = vsel %vm4130_vm12, %v4158_v5, %v4159_v18  ;;  %v4162_v5 = vrot.slane %v3987_v29, 2  ;;  %v4493_v18 = vrot.slane %v3980_v21, 2 }
 0x66b   :  { %4503 = vrot.lane.b32.xlu1 %v4145_v7, %s7819_s17  ;;  %v4156_v7 = vrot.slane %v3983_v48, 2  ;;  %v4065_v48 = vrot.slane %v3987_v29, 1 }
 0x66c   :  { %4096 = vrot.lane.b32.xlu0 %v4057_v17, %s7808_s15 }
 0x66f   :  { %4295 = vrot.lane.b32.xlu1 %v4054_v54, %s7814_s26 }
 0x670   :  { %4349 = vrot.lane.b32.xlu0 %v4151_v50, %s7816_s5 }
 0x673   :  { %4505 = vrot.lane.b32.xlu1 %v4148_v11, %s7819_s17  ;;  %v4157_v11 = vsel %vm4130_vm12, %v4155_v10, %v4156_v7 }
 0x674   :  { %4193 = vrot.lane.b32.xlu0 %v4154_v27, %s7810_s24 }
 0x677   :  { %4191 = vrot.lane.b32.xlu1 %v4151_v50, %s7810_s24 }
 0x678   :  { %4399 = vrot.lane.b32.xlu0 %v12219_v9, %s7817_s22 }
 0x67b   :  { %4397 = vrot.lane.b32.xlu1 %v12208_v57, %s7817_s22 }
 0x67c   :  { %4243 = vrot.lane.b32.xlu0 %v3978_v34, %s7812_s28 }
 0x67f   :  { %4241 = vrot.lane.b32.xlu1 %v12219_v9, %s7812_s28 }
 0x680   :  { %4455 = vrot.lane.b32.xlu0 %v4057_v17, %s7818_s13 }
 0x683   :  { %4453 = vrot.lane.b32.xlu1 %v4054_v54, %s7818_s13  ;;  %v3981_v54 = vld [vmem:[#allocation2 + $0x98] sm:$0x3] }
 0x684   :  { %4098 = vrot.lane.b32.xlu0 %v4060_v33, %s7808_s15  ;;  %v4440_v25 = vrot.slane %v3981_v54, 1  ;;  %v12308_v33 = vld [vmem:[#allocation2 + $0xd0] sm:$0xff] }
 0x685   :  { %v4067_v46 = vrot.slane %v12308_v33, 1 }
 0x686   :  { %v4441_v55 = vsel %vm379_vm0, %v4439_v1, %v4440_v25  ;;  %v7805_v25 = vld [vmem:[#allocation2] sm:$0xff] }
 0x687   :  { %4297 = vrot.lane.b32.xlu1 %v4057_v17, %s7814_s26  ;;  %v12319_v36 = vsel %vm379_vm0, %v4067_v46, %v4068_v32  ;;  %v4547_v29 = vsel %vm1205_vm3, %v7805_v25, %v12252_v41 }
 0x688   :  { %4351 = vrot.lane.b32.xlu0 %v4154_v27, %s7816_s5 }
 0x68b   :  { %4507 = vrot.lane.b32.xlu1 %v4151_v50, %s7819_s17 }
 0x68c   :  { %4100 = vrot.lane.b32.xlu0 %v4063_v26, %s7808_s15 }
 0x68f   :  { %4299 = vrot.lane.b32.xlu1 %v4281_v38, %s7814_s26 }
 0x690   :  { %4353 = vrot.lane.b32.xlu0 %v4335_v59, %s7816_s5 }
 0x692   :  { %v12268_v47 = vpop.permute.xlu0 %4229 }
 0x693   :  { %4509 = vrot.lane.b32.xlu1 %v4154_v27, %s7819_s17  ;;  %v4064_v27 = vrot.slane %v12285_v30, 1 }
 0x694   :  { %4197 = vrot.lane.b32.xlu0 %v4160_v16, %s7810_s24 }
 0x695   :  { %v12274_v14 = vpop.permute.xlu1 %4084  ;;  %v12304_v56 = vsel %vm379_vm0, %v4064_v27, %v4065_v48  ;;  %v4563_v48 = vsel %vm1271_vm5, %v4547_v29, %v12260_v60 }
 0x696   :  { %v12276_v13 = vpop.permute.xlu0 %4285  ;;  %v4579_v41 = vsel %vm14612_vm7, %v4563_v48, %v12268_v47  ;;  %v3991_v47 = vld [vmem:[#allocation2 + $0xe8] sm:$0x3] }
 0x697   :  { %4195 = vrot.lane.b32.xlu1 %v4157_v11, %s7810_s24  ;;  %v4165_v11 = vrot.slane %v3989_v58, 2  ;;  %v4595_v32 = vsel %vm14611_vm9, %v4579_v41, %v12276_v13  ;;  %v4548_v13 = vsel %vm1205_vm3, %v12107_v8, %v12274_v14  ;;  %v4071_v14 = vrot.slane %v3991_v47, 1  ;;  %v12402_v41 = vld [vmem:[#allocation2 + $0xf0] sm:$0xff] }
 0x698   :  { %4403 = vrot.lane.b32.xlu0 %v3980_v21, %s7817_s22 }
 0x699   :  { %v12280_v40 = vpop.permute.xlu1 %4181 }
 0x69a   :  { %v12282_v17 = vpop.permute.xlu0 %4287 }
 0x69b   :  { %4401 = vrot.lane.b32.xlu1 %v3978_v34, %s7817_s22 }
 0x69c   :  { %4247 = vrot.lane.b32.xlu0 %v12285_v30, %s7812_s28 }
 0x69d   :  { %v12289_v50 = vpop.permute.xlu1 %4231 }
 0x69e   :  { %v12292_v31 = vpop.permute.xlu0 %4088 }
 0x69f   :  { %4245 = vrot.lane.b32.xlu1 %v12250_v44, %s7812_s28 }
 0x6a0   :  { %4459 = vrot.lane.b32.xlu0 %v4441_v55, %s7818_s13 }
 0x6a1   :  { %v12298_v34 = vpop.permute.xlu1 %4086 }
 0x6a2   :  { %v12300_v15 = vpop.permute.xlu0 %4341 }
 0x6a3   :  { %4457 = vrot.lane.b32.xlu1 %v4281_v38, %s7818_s13  ;;  %v4161_v38 = vrot.slane %v12285_v30, 2 }
 0x6a4   :  { %4102 = vrot.lane.b32.xlu0 %v12304_v56, %s7808_s15 }
 0x6a5   :  { %v4340_v20 = vpop.permute.xlu1 %4339 }
 0x6a6   :  { %v12310_v39 = vpop.permute.xlu0 %4185  ;;  %v4612_v60 = vsel %vm14610_vm6, %v4595_v32, %v4340_v20  ;;  %v3993_v32 = vld [vmem:[#allocation2 + $0xf8] sm:$0x3] }
 0x6a7   :  { %4301 = vrot.lane.b32.xlu1 %v4063_v26, %s7814_s26  ;;  %v4494_v26 = vrot.slane %v3981_v54, 2 }
 0x6a8   :  { %4355 = vrot.lane.b32.xlu0 %v4160_v16, %s7816_s5  ;;  %v12329_v16 = vsel %vm4130_vm12, %v4161_v38, %v4162_v5  ;;  %v12364_v5 = vld [vmem:[#allocation2 + $0xe0] sm:$0xff] }
 0x6a9   :  { %v12315_v2 = vpop.permute.xlu1 %4183  ;;  %v4495_v21 = vsel %vm4130_vm12, %v4493_v18, %v4494_v26  ;;  %v4070_v8 = vrot.slane %v12364_v5, 1 }
 0x6aa   :  { %v4392_v23 = vpop.permute.xlu0 %4391 }
 0x6ab   :  { %4511 = vrot.lane.b32.xlu1 %v4335_v59, %s7819_s17  ;;  %v4164_v59 = vrot.slane %v12308_v33, 2 }
 0x6ac   :  { %4104 = vrot.lane.b32.xlu0 %v12319_v36, %s7808_s15 }
 0x6ad   :  { %v4390_v10 = vpop.permute.xlu1 %4389  ;;  %v12341_v55 = vsel %vm4130_vm12, %v4164_v59, %v4165_v11  ;;  %v4564_v59 = vsel %vm1271_vm5, %v4548_v13, %v12280_v40 }
 0x6ae   :  { %v12324_v7 = vpop.permute.xlu0 %4235  ;;  %v4629_v18 = vsel %vm14609_vm8, %v4612_v60, %v4390_v10  ;;  %v4580_v10 = vsel %vm14612_vm7, %v4564_v59, %v12289_v50  ;;  %v4168_v59 = vrot.slane %v3991_v47, 2 }
 0x6af   :  { %4303 = vrot.lane.b32.xlu1 %v12304_v56, %s7814_s26  ;;  %v4596_v40 = vsel %vm14611_vm9, %v4580_v10, %v12282_v17 }
 0x6b0   :  { %4357 = vrot.lane.b32.xlu0 %v12329_v16, %s7816_s5  ;;  %v4613_v50 = vsel %vm14610_vm6, %v4596_v40, %v12300_v15 }
 0x6b1   :  { %v12335_v1 = vpop.permute.xlu1 %4233  ;;  %v4630_v48 = vsel %vm14609_vm8, %v4613_v50, %v4392_v23  ;;  %v4074_v23 = vrot.slane %v3993_v32, 1  ;;  %v4549_v50 = vsel %vm1205_vm3, %v12121_v24, %v12298_v34 }
 0x6b2   :  { %v4448_v54 = vpop.permute.xlu0 %4447 }
 0x6b3   :  { %4513 = vrot.lane.b32.xlu1 %v4495_v21, %s7819_s17  ;;  %v4647_v17 = vsel %vm14608_vm11, %v4630_v48, %v4448_v54 }
 0x6b4   :  { %4201 = vrot.lane.b32.xlu0 %v12341_v55, %s7810_s24 }
 0x6b5   :  { %v4446_v27 = vpop.permute.xlu1 %4445 }
 0x6b6   :  { %v12347_v58 = vpop.permute.xlu0 %4090  ;;  %v4646_v20 = vsel %vm14608_vm11, %v4629_v18, %v4446_v27  ;;  %v12397_v27 = vsel %vm379_vm0, %v4070_v8, %v4071_v14  ;;  %v4170_v8 = vrot.slane %v12402_v41, 2  ;;  %v4171_v14 = vrot.slane %v3993_v32, 2 }
 0x6b7   :  { %4199 = vrot.lane.b32.xlu1 %v12329_v16, %s7810_s24  ;;  %v4565_v32 = vsel %vm1271_vm5, %v4549_v50, %v12315_v2  ;;  %v12459_v2 = vld [vmem:[#allocation2 + $0x100] sm:$0xff] }
 0x6b8   :  { %4407 = vrot.lane.b32.xlu0 %v12308_v33, %s7817_s22  ;;  %v12433_v47 = vsel %vm4130_vm12, %v4170_v8, %v4171_v14 }
 0x6b9   :  { %v12355_v46 = vpop.permute.xlu1 %4289 }
 0x6ba   :  { %v12359_v38 = vpop.permute.xlu0 %4343 }
 0x6bb   :  { %4405 = vrot.lane.b32.xlu1 %v12285_v30, %s7817_s22 }
 0x6bc   :  { %4251 = vrot.lane.b32.xlu0 %v12364_v5, %s7812_s28 }
 0x6bd   :  { %v4500_v26 = vpop.permute.xlu1 %4499 }
 0x6be   :  { %v4663_v11 = vsel %vm14607_vm10, %v4646_v20, %v4500_v26  ;;  %v12376_v21 = vpop.permute.xlu0 %4092  ;;  %v4167_v26 = vrot.slane %v12364_v5, 2 }
 0x6bf   :  { %4249 = vrot.lane.b32.xlu1 %v12308_v33, %s7812_s28  ;;  %7418 = vmatprep.mubr.msk.f32.mxu0 %vm14606_vm13, %v4663_v11 }
 0x6c0   :  { %4463 = vrot.lane.b32.xlu0 %v12319_v36, %s7818_s13  ;;  %v4169_v10 = vsel %vm4130_vm12, %v4167_v26, %v4168_v59 }
 0x6c1   :  { %v12386_v25 = vpop.permute.xlu1 %4291 }
 0x6c2   :  { %v12390_v29 = vpop.permute.xlu0 %4345 }
 0x6c3   :  { %4461 = vrot.lane.b32.xlu1 %v12304_v56, %s7818_s13  ;;  %v4073_v56 = vrot.slane %v12402_v41, 1 }
 0x6c4   :  { %4106 = vrot.lane.b32.xlu0 %v12397_v27, %s7808_s15 }
 0x6c5   :  { %v4502_v60 = vpop.permute.xlu1 %4501  ;;  %v4075_v54 = vsel %vm379_vm0, %v4073_v56, %v4074_v23  ;;  %v4550_v56 = vsel %vm1205_vm3, %v12128_v0, %v12292_v31  ;;  %v4076_v0 = vrot.slane %v12459_v2, 1 }
 0x6c6   :  { %v4664_v18 = vsel %vm14607_vm10, %v4647_v17, %v4502_v60  ;;  %v12406_v15 = vpop.permute.xlu0 %4189  ;;  %v4581_v60 = vsel %vm14612_vm7, %v4565_v32, %v12335_v1 }
 0x6c7   :  { %4305 = vrot.lane.b32.xlu1 %v12319_v36, %s7814_s26  ;;  %7419 = vmatmul.mubr.msk.f32.vlgmr.msra.gmra.mrb[32].mxu0 %vm14606_vm13, %v4664_v18 }
 0x6c8   :  { %4359 = vrot.lane.b32.xlu0 %v12341_v55, %s7816_s5 }
 0x6c9   :  { %v12414_v13 = vpop.permute.xlu1 %4187 }
 0x6ca   :  { %v4396_v20 = vpop.permute.xlu0 %4395 }
 0x6cb   :  { %4515 = vrot.lane.b32.xlu1 %v12329_v16, %s7819_s17 }
 0x6cc   :  { %4108 = vrot.lane.b32.xlu0 %v4075_v54, %s7808_s15 }
 0x6cd   :  { %v4394_v36 = vpop.permute.xlu1 %4393 }
 0x6ce   :  { %v12421_v11 = vpop.permute.xlu0 %4239 }
 0x6cf   :  { %4307 = vrot.lane.b32.xlu1 %v12397_v27, %s7814_s26 }
 0x6d0   :  { %4361 = vrot.lane.b32.xlu0 %v4169_v10, %s7816_s5 }
 0x6d1   :  { %v12428_v16 = vpop.permute.xlu1 %4237 }
 0x6d2   :  { %v4452_v40 = vpop.permute.xlu0 %4451 }
 0x6d3   :  { %4517 = vrot.lane.b32.xlu1 %v12341_v55, %s7819_s17  ;;  %v4597_v55 = vsel %vm14611_vm9, %v4581_v60, %v12355_v46  ;;  %v3995_v46 = vld [vmem:[#allocation2 + $0x108] sm:$0x3]  ;;  %v3997_v60 = vld [vmem:[#allocation2 + $0x118] sm:$0x3] }
 0x6d4   :  { %4205 = vrot.lane.b32.xlu0 %v12433_v47, %s7810_s24  ;;  %v4614_v34 = vsel %vm14610_vm6, %v4597_v55, %v12359_v38  ;;  %v4566_v38 = vsel %vm1271_vm5, %v4550_v56, %v12310_v39  ;;  %v4077_v31 = vrot.slane %v3995_v46, 1 }
 0x6d5   :  { %v4450_v48 = vpop.permute.xlu1 %4449  ;;  %v4631_v1 = vsel %vm14609_vm8, %v4614_v34, %v4394_v36  ;;  %v4582_v36 = vsel %vm14612_vm7, %v4566_v38, %v12324_v7  ;;  %v4174_v38 = vrot.slane %v3995_v46, 2 }
 0x6d6   :  { %v12442_v17 = vpop.permute.xlu0 %4094  ;;  %v4648_v23 = vsel %vm14608_vm11, %v4631_v1, %v4450_v48  ;;  %v4598_v14 = vsel %vm14611_vm9, %v4582_v36, %v12386_v25  ;;  %v12491_v48 = vsel %vm379_vm0, %v4076_v0, %v4077_v31  ;;  %v12496_v25 = vld [vmem:[#allocation2 + $0x110] sm:$0xff]  ;;  %v4177_v31 = vrot.slane %v3997_v60, 2 }
 0x6d7   :  { %4203 = vrot.lane.b32.xlu1 %v4169_v10, %s7810_s24  ;;  %v4615_v7 = vsel %vm14610_vm6, %v4598_v14, %v12390_v29  ;;  %v4176_v0 = vrot.slane %v12496_v25, 2 }
 0x6d8   :  { %4411 = vrot.lane.b32.xlu0 %v12402_v41, %s7817_s22  ;;  %v4632_v32 = vsel %vm14609_vm8, %v4615_v7, %v4396_v20  ;;  %v4080_v20 = vrot.slane %v3997_v60, 1  ;;  %v4551_v7 = vsel %vm1205_vm3, %v12161_v51, %v12347_v58  ;;  %v3998_v58 = vld [vmem:[#allocation2 + $0x120] sm:$0xff] }
 0x6d9   :  { %v12451_v18 = vpop.permute.xlu1 %4293  ;;  %v4649_v55 = vsel %vm14608_vm11, %v4632_v32, %v4452_v40  ;;  %v4178_v46 = vsel %vm4130_vm12, %v4176_v0, %v4177_v31  ;;  %v4567_v60 = vsel %vm1271_vm5, %v4551_v7, %v12414_v13  ;;  %v4282_v31 = vrot.slane %v3998_v58, 1 }
 0x6da   :  { %v12453_v24 = vpop.permute.xlu0 %4347 }
 0x6db   :  { %4409 = vrot.lane.b32.xlu1 %v12364_v5, %s7817_s22 }
 0x6dc   :  { %4255 = vrot.lane.b32.xlu0 %v12459_v2, %s7812_s28 }
 0x6dd   :  { %v4504_v26 = vpop.permute.xlu1 %4503 }
 0x6de   :  { %v4665_v59 = vsel %vm14607_vm10, %v4648_v23, %v4504_v26  ;;  %v12471_v8 = vpop.permute.xlu0 %4096  ;;  %v4173_v26 = vrot.slane %v12459_v2, 2 }
 0x6df   :  { %4253 = vrot.lane.b32.xlu1 %v12402_v41, %s7812_s28  ;;  %7421 = vmatprep.mubr.msk.f32.mxu0 %vm14606_vm13, %v4665_v59 }
 0x6e0   :  { %4467 = vrot.lane.b32.xlu0 %v4075_v54, %s7818_s13  ;;  %v4175_v36 = vsel %vm4130_vm12, %v4173_v26, %v4174_v38 }
 0x6e1   :  { %v12482_v39 = vpop.permute.xlu1 %4295 }
 0x6e2   :  { %v12484_v50 = vpop.permute.xlu0 %4349 }
 0x6e3   :  { %4465 = vrot.lane.b32.xlu1 %v12397_v27, %s7818_s13  ;;  %v4079_v27 = vrot.slane %v12496_v25, 1 }
 0x6e4   :  { %4110 = vrot.lane.b32.xlu0 %v12491_v48, %s7808_s15 }
 0x6e5   :  { %v4506_v34 = vpop.permute.xlu1 %4505  ;;  %v4081_v40 = vsel %vm379_vm0, %v4079_v27, %v4080_v20 }
 0x6e6   :  { %v4666_v1 = vsel %vm14607_vm10, %v4649_v55, %v4506_v34  ;;  %v12500_v29 = vpop.permute.xlu0 %4193  ;;  %v4583_v34 = vsel %vm14612_vm7, %v4567_v60, %v12428_v16  ;;  %v3999_v16 = vld [vmem:[#allocation2 + $0x128] sm:$0x3] }
 0x6e7   :  { %4309 = vrot.lane.b32.xlu1 %v4075_v54, %s7814_s26  ;;  %7422 = vmatmul.mubr.msk.f32.gmra.mrb[34].mxu0 %vm14606_vm13, %v4666_v1 }
 0x6e8   :  { %4363 = vrot.lane.b32.xlu0 %v12433_v47, %s7816_s5 }
 0x6e9   :  { %v12507_v56 = vpop.permute.xlu1 %4191 }
 0x6ea   :  { %v4400_v23 = vpop.permute.xlu0 %4399 }
 0x6eb   :  { %4519 = vrot.lane.b32.xlu1 %v4169_v10, %s7819_s17 }
 0x6ec   :  { %4112 = vrot.lane.b32.xlu0 %v4081_v40, %s7808_s15 }
 0x6ed   :  { %v4398_v54 = vpop.permute.xlu1 %4397 }
 0x6ee   :  { %v12513_v59 = vpop.permute.xlu0 %4243 }
 0x6ef   :  { %4311 = vrot.lane.b32.xlu1 %v12491_v48, %s7814_s26 }
 0x6f0   :  { %4365 = vrot.lane.b32.xlu0 %v4175_v36, %s7816_s5 }
 0x6f1   :  { %v12520_v10 = vpop.permute.xlu1 %4241 }
 0x6f2   :  { %v4456_v14 = vpop.permute.xlu0 %4455 }
 0x6f3   :  { %4521 = vrot.lane.b32.xlu1 %v12433_v47, %s7819_s17  ;;  %v4599_v47 = vsel %vm14611_vm9, %v4583_v34, %v12451_v18  ;;  %v4552_v18 = vsel %vm1205_vm3, %v12184_v19, %v12376_v21  ;;  %v4283_v19 = vrot.slane %v3999_v16, 1 }
 0x6f4   :  { %4209 = vrot.lane.b32.xlu0 %v4178_v46, %s7810_s24  ;;  %v4616_v51 = vsel %vm14610_vm6, %v4599_v47, %v12453_v24  ;;  %v4568_v38 = vsel %vm1271_vm5, %v4552_v18, %v12406_v15  ;;  %v4337_v18 = vrot.slane %v3999_v16, 2 }
 0x6f5   :  { %v4454_v32 = vpop.permute.xlu1 %4453  ;;  %v4633_v13 = vsel %vm14609_vm8, %v4616_v51, %v4398_v54  ;;  %v4584_v54 = vsel %vm14612_vm7, %v4568_v38, %v12421_v11  ;;  %v4284_v11 = vsel %vm379_vm0, %v4282_v31, %v4283_v19 }
 0x6f6   :  { %v12531_v55 = vpop.permute.xlu0 %4098  ;;  %v4650_v20 = vsel %vm14608_vm11, %v4633_v13, %v4454_v32  ;;  %v4600_v21 = vsel %vm14611_vm9, %v4584_v54, %v12482_v39  ;;  %v4336_v13 = vrot.slane %v3998_v58, 2 }
 0x6f7   :  { %4207 = vrot.lane.b32.xlu1 %v4175_v36, %s7810_s24  ;;  %v4617_v32 = vsel %vm14610_vm6, %v4600_v21, %v12484_v50 }
 0x6f8   :  { %4415 = vrot.lane.b32.xlu0 %v12496_v25, %s7817_s22  ;;  %v4634_v60 = vsel %vm14609_vm8, %v4617_v32, %v4400_v23 }
 0x6f9   :  { %v4298_v1 = vpop.permute.xlu1 %4297  ;;  %v4651_v34 = vsel %vm14608_vm11, %v4634_v60, %v4456_v14 }
 0x6fa   :  { %v12540_v27 = vpop.permute.xlu0 %4351 }
 0x6fb   :  { %4413 = vrot.lane.b32.xlu1 %v12459_v2, %s7817_s22 }
 0x6fc   :  { %4259 = vrot.lane.b32.xlu0 %v3998_v58, %s7812_s28 }
 0x6fd   :  { %v4508_v26 = vpop.permute.xlu1 %4507 }
 0x6fe   :  { %v4667_v24 = vsel %vm14607_vm10, %v4650_v20, %v4508_v26  ;;  %v12555_v0 = vpop.permute.xlu0 %4100  ;;  %v4000_v20 = vld [vmem:[#allocation2 + $0x130] sm:$0xff]  ;;  %v4001_v26 = vld [vmem:[#allocation2 + $0x138] sm:$0x3] }
 0x6ff   :  { %4257 = vrot.lane.b32.xlu1 %v12496_v25, %s7812_s28  ;;  %7424 = vmatprep.mubr.msk.f32.mxu0 %vm14606_vm13, %v4667_v24  ;;  %v4338_v24 = vsel %vm4130_vm12, %v4336_v13, %v4337_v18  ;;  %v4443_v54 = vrot.slane %v4001_v26, 1  ;;  %v4496_v32 = vrot.slane %v4000_v20, 2  ;;  %v4497_v60 = vrot.slane %v4001_v26, 2 }
 0x700   :  { %4471 = vrot.lane.b32.xlu0 %v4081_v40, %s7818_s13 }
 0x701   :  { %v4300_v15 = vpop.permute.xlu1 %4299 }
 0x702   :  { %v4354_v7 = vpop.permute.xlu0 %4353 }
 0x703   :  { %4469 = vrot.lane.b32.xlu1 %v12491_v48, %s7818_s13 }
 0x704   :  { %4315 = vrot.lane.b32.xlu0 %v4284_v11, %s7814_s26 }
 0x705   :  { %v4510_v47 = vpop.permute.xlu1 %4509 }
 0x706   :  { %v4668_v39 = vsel %vm14607_vm10, %v4651_v34, %v4510_v47  ;;  %v12574_v51 = vpop.permute.xlu0 %4197 }
 0x707   :  { %4313 = vrot.lane.b32.xlu1 %v4081_v40, %s7814_s26  ;;  %7425 = vmatmul.mubr.msk.f32.gmra.mrb[36].mxu0 %vm14606_vm13, %v4668_v39 }
 0x708   :  { %4525 = vrot.lane.b32.xlu0 %v4178_v46, %s7819_s17 }
 0x709   :  { %v12579_v50 = vpop.permute.xlu1 %4195 }
 0x70a   :  { %v4404_v48 = vpop.permute.xlu0 %4403 }
 0x70b   :  { %4523 = vrot.lane.b32.xlu1 %v4175_v36, %s7819_s17  ;;  %v4442_v36 = vrot.slane %v4000_v20, 1 }
 0x70c   :  { %4417 = vrot.lane.b32.xlu0 %v3998_v58, %s7817_s22  ;;  %v4553_v58 = vsel %vm1205_vm3, %v12208_v57, %v12442_v17 }
 0x70d   :  { %v4402_v23 = vpop.permute.xlu1 %4401 }
 0x70e   :  { %v12583_v14 = vpop.permute.xlu0 %4247 }
 0x70f   :  { %4367 = vrot.lane.b32.xlu1 %v4178_v46, %s7816_s5  ;;  %v4569_v46 = vsel %vm1271_vm5, %v4553_v58, %v12507_v56  ;;  %v4498_v56 = vsel %vm4130_vm12, %v4496_v32, %v4497_v60 }
 0x710   :  { %4473 = vrot.lane.b32.xlu0 %v4284_v11, %s7818_s13  ;;  %v4585_v19 = vsel %vm14612_vm7, %v4569_v46, %v12520_v10  ;;  %v4444_v11 = vsel %vm379_vm0, %v4442_v36, %v4443_v54  ;;  %v4554_v10 = vsel %vm1205_vm3, %v12219_v9, %v12471_v8 }
 0x711   :  { %v4246_v40 = vpop.permute.xlu1 %4245  ;;  %v4601_v21 = vsel %vm14611_vm9, %v4585_v19, %v4298_v1  ;;  %v4570_v13 = vsel %vm1271_vm5, %v4554_v10, %v12500_v29 }
 0x712   :  { %v4460_v38 = vpop.permute.xlu0 %4459  ;;  %v4618_v57 = vsel %vm14610_vm6, %v4601_v21, %v12540_v27  ;;  %v4586_v27 = vsel %vm14612_vm7, %v4570_v13, %v12513_v59 }
 0x713   :  { %4369 = vrot.lane.b32.xlu1 %v4338_v24, %s7816_s5  ;;  %v4635_v17 = vsel %vm14609_vm8, %v4618_v57, %v4402_v23  ;;  %v4602_v23 = vsel %vm14611_vm9, %v4586_v27, %v4300_v15 }
 0x714   :  { %4527 = vrot.lane.b32.xlu0 %v4338_v24, %s7819_s17  ;;  %v4619_v26 = vsel %vm14610_vm6, %v4602_v23, %v4354_v7  ;;  %v4555_v7 = vsel %vm1205_vm3, %v12238_v35, %v12531_v55  ;;  %v4556_v35 = vsel %vm1205_vm3, %v12250_v44, %v12555_v0 }
 0x715   :  { %v4458_v16 = vpop.permute.xlu1 %4457  ;;  %v4636_v24 = vsel %vm14609_vm8, %v4619_v26, %v4404_v48  ;;  %v4571_v48 = vsel %vm1271_vm5, %v4555_v7, %v12579_v50  ;;  %v4572_v50 = vsel %vm1271_vm5, %v4556_v35, %v12574_v51 }
 0x716   :  { %v12595_v31 = vpop.permute.xlu0 %4102  ;;  %v4652_v1 = vsel %vm14608_vm11, %v4635_v17, %v4458_v16  ;;  %v4653_v29 = vsel %vm14608_vm11, %v4636_v24, %v4460_v38 }
 0x717   :  { %4419 = vrot.lane.b32.xlu1 %v4000_v20, %s7817_s22 }
 0x719   :  { %v4302_v34 = vpop.permute.xlu1 %4301 }
 0x71a   :  { %v4356_v47 = vpop.permute.xlu0 %4355 }
 0x71b   :  { %4475 = vrot.lane.b32.xlu1 %v4444_v11, %s7818_s13  ;;  %v4587_v11 = vsel %vm14612_vm7, %v4571_v48, %v4246_v40 }
 0x71c   :  { %v4603_v60 = vsel %vm14611_vm9, %v4587_v11, %v4302_v34  ;;  %v4588_v34 = vsel %vm14612_vm7, %v4572_v50, %v12583_v14 }
 0x71d   :  { %v4512_v39 = vpop.permute.xlu1 %4511 }
 0x71e   :  { %v4669_v18 = vsel %vm14607_vm10, %v4652_v1, %v4512_v39  ;;  %v12614_v20 = vpop.permute.xlu0 %4104 }
 0x71f   :  { %4529 = vrot.lane.b32.xlu1 %v4498_v56, %s7819_s17  ;;  %7427 = vmatprep.mubr.msk.f32.mxu0 %vm14606_vm13, %v4669_v18  ;;  %v4620_v56 = vsel %vm14610_vm6, %v4603_v60, %v4356_v47 }
 0x721   :  { %v4304_v9 = vpop.permute.xlu1 %4303 }
 0x722   :  { %v4358_v8 = vpop.permute.xlu0 %4357  ;;  %v4604_v47 = vsel %vm14611_vm9, %v4588_v34, %v4304_v9 }
 0x723   :  { %v4621_v44 = vsel %vm14610_vm6, %v4604_v47, %v4358_v8  ;;  %v4557_v8 = vsel %vm1205_vm3, %v12285_v30, %v12595_v31 }
 0x725   :  { %v4514_v36 = vpop.permute.xlu1 %4513 }
 0x726   :  { %v4670_v54 = vsel %vm14607_vm10, %v4653_v29, %v4514_v36  ;;  %v4202_v58 = vpop.permute.xlu0 %4201 }
 0x727   :  { %7428 = vmatmul.mubr.msk.f32.gmra.mrb[38].mxu0 %vm14606_vm13, %v4670_v54 }
 0x729   :  { %v4200_v59 = vpop.permute.xlu1 %4199 }
 0x72a   :  { %v4408_v16 = vpop.permute.xlu0 %4407 }
 0x72b   :  { %v4638_v0 = vsel %vm14609_vm8, %v4621_v44, %v4408_v16  ;;  %v4573_v16 = vsel %vm1271_vm5, %v4557_v8, %v4200_v59 }
 0x72d   :  { %v4406_v46 = vpop.permute.xlu1 %4405 }
 0x72e   :  { %v4252_v19 = vpop.permute.xlu0 %4251  ;;  %v4637_v10 = vsel %vm14609_vm8, %v4620_v56, %v4406_v46 }
 0x731   :  { %v4250_v21 = vpop.permute.xlu1 %4249 }
 0x732   :  { %v4464_v15 = vpop.permute.xlu0 %4463  ;;  %v4589_v7 = vsel %vm14612_vm7, %v4573_v16, %v4250_v21 }
 0x733   :  { %v4655_v27 = vsel %vm14608_vm11, %v4638_v0, %v4464_v15 }
 0x735   :  { %v4462_v32 = vpop.permute.xlu1 %4461 }
 0x736   :  { %v12631_v38 = vpop.permute.xlu0 %4106  ;;  %v4654_v55 = vsel %vm14608_vm11, %v4637_v10, %v4462_v32  ;;  %v4558_v10 = vsel %vm1205_vm3, %v12308_v33, %v12614_v20 }
 0x737   :  { %v4574_v59 = vsel %vm1271_vm5, %v4558_v10, %v4202_v58 }
 0x739   :  { %v4306_v57 = vpop.permute.xlu1 %4305 }
 0x73a   :  { %v4360_v17 = vpop.permute.xlu0 %4359  ;;  %v4605_v32 = vsel %vm14611_vm9, %v4589_v7, %v4306_v57  ;;  %v4590_v57 = vsel %vm14612_vm7, %v4574_v59, %v4252_v19 }
 0x73b   :  { %v4622_v60 = vsel %vm14610_vm6, %v4605_v32, %v4360_v17 }
 0x73d   :  { %v4516_v1 = vpop.permute.xlu1 %4515 }
 0x73e   :  { %v4671_v40 = vsel %vm14607_vm10, %v4654_v55, %v4516_v1  ;;  %v4109_v39 = vpop.permute.xlu0 %4108 }
 0x73f   :  { %7430 = vmatprep.mubr.msk.f32.mxu0 %vm14606_vm13, %v4671_v40 }
 0x741   :  { %v4308_v13 = vpop.permute.xlu1 %4307 }
 0x742   :  { %v4362_v18 = vpop.permute.xlu0 %4361  ;;  %v4606_v17 = vsel %vm14611_vm9, %v4590_v57, %v4308_v13 }
 0x743   :  { %v4623_v50 = vsel %vm14610_vm6, %v4606_v17, %v4362_v18  ;;  %v4559_v18 = vsel %vm1205_vm3, %v12364_v5, %v12631_v38 }
 0x745   :  { %v4518_v23 = vpop.permute.xlu1 %4517 }
 0x746   :  { %v4672_v51 = vsel %vm14607_vm10, %v4655_v27, %v4518_v23  ;;  %v4206_v26 = vpop.permute.xlu0 %4205 }
 0x747   :  { %7431 = vmatmul.mubr.msk.f32.gmra.mrb[40].mxu0 %vm14606_vm13, %v4672_v51  ;;  %v4560_v51 = vsel %vm1205_vm3, %v12402_v41, %v4109_v39 }
 0x749   :  { %v4204_v24 = vpop.permute.xlu1 %4203 }
 0x74a   :  { %v4412_v14 = vpop.permute.xlu0 %4411 }
 0x74b   :  { %v4640_v33 = vsel %vm14609_vm8, %v4623_v50, %v4412_v14  ;;  %v4575_v14 = vsel %vm1271_vm5, %v4559_v18, %v4204_v24 }
 0x74d   :  { %v4410_v29 = vpop.permute.xlu1 %4409 }
 0x74e   :  { %v4256_v36 = vpop.permute.xlu0 %4255  ;;  %v4639_v56 = vsel %vm14609_vm8, %v4622_v60, %v4410_v29 }
 0x751   :  { %v4254_v54 = vpop.permute.xlu1 %4253 }
 0x752   :  { %v4468_v9 = vpop.permute.xlu0 %4467  ;;  %v4591_v8 = vsel %vm14612_vm7, %v4575_v14, %v4254_v54 }
 0x753   :  { %v4657_v20 = vsel %vm14608_vm11, %v4640_v33, %v4468_v9  ;;  %v4576_v9 = vsel %vm1271_vm5, %v4560_v51, %v4206_v26 }
 0x755   :  { %v4466_v46 = vpop.permute.xlu1 %4465 }
 0x756   :  { %v4111_v15 = vpop.permute.xlu0 %4110  ;;  %v4656_v30 = vsel %vm14608_vm11, %v4639_v56, %v4466_v46  ;;  %v4592_v46 = vsel %vm14612_vm7, %v4576_v9, %v4256_v36 }
 0x757   :  { %v4561_v36 = vsel %vm1205_vm3, %v12459_v2, %v4111_v15 }
 0x759   :  { %v4310_v48 = vpop.permute.xlu1 %4309 }
 0x75a   :  { %v4364_v11 = vpop.permute.xlu0 %4363  ;;  %v4607_v16 = vsel %vm14611_vm9, %v4591_v8, %v4310_v48 }
 0x75b   :  { %v4624_v5 = vsel %vm14610_vm6, %v4607_v16, %v4364_v11 }
 0x75d   :  { %v4520_v31 = vpop.permute.xlu1 %4519 }
 0x75e   :  { %v4673_v35 = vsel %vm14607_vm10, %v4656_v30, %v4520_v31  ;;  %v4113_v21 = vpop.permute.xlu0 %4112 }
 0x75f   :  { %7433 = vmatprep.mubr.msk.f32.mxu0 %vm14606_vm13, %v4673_v35  ;;  %v4562_v33 = vsel %vm1205_vm3, %v12496_v25, %v4113_v21 }
 0x761   :  { %v4312_v55 = vpop.permute.xlu1 %4311 }
 0x762   :  { %v4366_v1 = vpop.permute.xlu0 %4365  ;;  %v4608_v7 = vsel %vm14611_vm9, %v4592_v46, %v4312_v55 }
 0x763   :  { %v4625_v38 = vsel %vm14610_vm6, %v4608_v7, %v4366_v1 }
 0x765   :  { %v4522_v40 = vpop.permute.xlu1 %4521 }
 0x766   :  { %v4674_v58 = vsel %vm14607_vm10, %v4657_v20, %v4522_v40  ;;  %v4210_v34 = vpop.permute.xlu0 %4209 }
 0x767   :  { %7434 = vmatmul.mubr.msk.f32.gmra.mrb[42].mxu0 %vm14606_vm13, %v4674_v58  ;;  %v4578_v20 = vsel %vm1271_vm5, %v4562_v33, %v4210_v34 }
 0x769   :  { %v4208_v47 = vpop.permute.xlu1 %4207 }
 0x76a   :  { %v4416_v19 = vpop.permute.xlu0 %4415  ;;  %v4577_v10 = vsel %vm1271_vm5, %v4561_v36, %v4208_v47 }
 0x76b   :  { %v4642_v39 = vsel %vm14609_vm8, %v4625_v38, %v4416_v19 }
 0x76d   :  { %v4414_v44 = vpop.permute.xlu1 %4413 }
 0x76e   :  { %v4260_v0 = vpop.permute.xlu0 %4259  ;;  %v4641_v41 = vsel %vm14609_vm8, %v4624_v5, %v4414_v44 }
 0x76f   :  { %v4594_v40 = vsel %vm14612_vm7, %v4578_v20, %v4260_v0 }
 0x771   :  { %v4258_v27 = vpop.permute.xlu1 %4257 }
 0x772   :  { %v4472_v13 = vpop.permute.xlu0 %4471  ;;  %v4593_v30 = vsel %vm14612_vm7, %v4577_v10, %v4258_v27 }
 0x773   :  { %v4659_v54 = vsel %vm14608_vm11, %v4642_v39, %v4472_v13 }
 0x775   :  { %v4470_v23 = vpop.permute.xlu1 %4469 }
 0x776   :  { %v4316_v29 = vpop.permute.xlu0 %4315  ;;  %v4658_v26 = vsel %vm14608_vm11, %v4641_v41, %v4470_v23 }
 0x777   :  { %v4610_v47 = vsel %vm14611_vm9, %v4594_v40, %v4316_v29 }
 0x779   :  { %v4314_v32 = vpop.permute.xlu1 %4313 }
 0x77a   :  { %v4526_v60 = vpop.permute.xlu0 %4525  ;;  %v4609_v31 = vsel %vm14611_vm9, %v4593_v30, %v4314_v32 }
 0x77b   :  { %v4676_v11 = vsel %vm14607_vm10, %v4659_v54, %v4526_v60 }
 0x77d   :  { %v4524_v24 = vpop.permute.xlu1 %4523 }
 0x77e   :  { %v4675_v48 = vsel %vm14607_vm10, %v4658_v26, %v4524_v24  ;;  %v4418_v56 = vpop.permute.xlu0 %4417 }
 0x77f   :  { %7436 = vmatprep.mubr.msk.f32.mxu0 %vm14606_vm13, %v4675_v48 }
 0x780   :  { %7437 = vmatmul.mubr.msk.f32.gmra.mrb[44].mxu0 %vm14606_vm13, %v4676_v11 }
 0x781   :  { %v4368_v59 = vpop.permute.xlu1 %4367 }
 0x782   :  { %v4626_v2 = vsel %vm14610_vm6, %v4609_v31, %v4368_v59  ;;  %v4474_v15 = vpop.permute.xlu0 %4473 }
 0x783   :  { %v4643_v35 = vsel %vm14609_vm8, %v4626_v2, %v4418_v56 }
 0x784   :  { %v4660_v17 = vsel %vm14608_vm11, %v4643_v35, %v4474_v15 }
 0x785   :  { %v4370_v57 = vpop.permute.xlu1 %4369 }
 0x786   :  { %v4528_v55 = vpop.permute.xlu0 %4527  ;;  %v4627_v19 = vsel %vm14610_vm6, %v4610_v47, %v4370_v57 }
 0x787   :  { %v4677_v1 = vsel %vm14607_vm10, %v4660_v17, %v4528_v55 }
 0x788   :  { %7439 = vmatprep.mubr.msk.f32.mxu0 %vm14606_vm13, %v4677_v1 }
 0x789   :  { %v4420_v50 = vpop.permute.xlu1 %4419 }
 0x78a   :  { %v4644_v44 = vsel %vm14609_vm8, %v4627_v19, %v4420_v50 }
 0x78d   :  { %v4476_v58 = vpop.permute.xlu1 %4475 }
 0x78e   :  { %v4661_v27 = vsel %vm14608_vm11, %v4644_v44, %v4476_v58 }
 0x791   :  { %v4530_v13 = vpop.permute.xlu1 %4529 }
 0x792   :  { %v4678_v18 = vsel %vm14607_vm10, %v4661_v27, %v4530_v13 }
 0x793   :  { %7440 = vmatmul.mubr.msk.f32.gmra.mrb[46].mxu0 %vm14606_vm13, %v4678_v18 }
 0x79a   :  { %v7420_v23 = vpop.f32.mrb[32].mxu0 }
 0x79b   :  { %v4883_v25 = vsel %vm1205_vm3, %v7420_v23, 0.0  ;;  %v4803_v21 = vpop.f32.mrb[33].mxu0 }
 0x79c   :  { %v4882_v34 = vsel %vm1205_vm3, %v4803_v21, 0.0 }
 0x79d   :  { %v4884_v0 = vadd.f32 %v4883_v25, %v4882_v34 }
 0x7ba   :  { %v7423_v51 = vpop.f32.mrb[34].mxu0 }
 0x7bb   :  { %v4813_v14 = vpop.f32.mrb[35].mxu0  ;;  %v4887_v8 = vsel %vm1205_vm3, %v7423_v51, 0.0 }
 0x7bc   :  { %v4885_v29 = vsel %vm1205_vm3, %v4813_v14, 0.0 }
 0x7bd   :  { %v4886_v9 = vadd.f32 %v4885_v29, %v4884_v0 }
 0x7bf   :  { %v4888_v46 = vadd.f32 %v4887_v8, %v4886_v9 }
 0x7da   :  { %v7426_v16 = vpop.f32.mrb[36].mxu0 }
 0x7db   :  { %v4823_v7 = vpop.f32.mrb[37].mxu0  ;;  %v4891_v5 = vsel %vm1205_vm3, %v7426_v16, 0.0 }
 0x7dc   :  { %v4889_v32 = vsel %vm1205_vm3, %v4823_v7, 0.0 }
 0x7dd   :  { %v4890_v60 = vadd.f32 %v4889_v32, %v4888_v46 }
 0x7df   :  { %v4892_v38 = vadd.f32 %v4891_v5, %v4890_v60 }
 0x7fa   :  { %v7429_v41 = vpop.f32.mrb[38].mxu0 }
 0x7fb   :  { %v4833_v39 = vpop.f32.mrb[39].mxu0  ;;  %v4895_v36 = vsel %vm1205_vm3, %v7429_v41, 0.0 }
 0x7fc   :  { %v4893_v26 = vsel %vm1205_vm3, %v4833_v39, 0.0 }
 0x7fd   :  { %v4894_v24 = vadd.f32 %v4893_v26, %v4892_v38 }
 0x7ff   :  { %v4896_v54 = vadd.f32 %v4895_v36, %v4894_v24 }
 0x81a   :  { %v7432_v48 = vpop.f32.mrb[40].mxu0 }
 0x81b   :  { %v4843_v56 = vpop.f32.mrb[41].mxu0  ;;  %v4899_v30 = vsel %vm1205_vm3, %v7432_v48, 0.0 }
 0x81c   :  { %v4897_v10 = vsel %vm1205_vm3, %v4843_v56, 0.0 }
 0x81d   :  { %v4898_v11 = vadd.f32 %v4897_v10, %v4896_v54 }
 0x81f   :  { %v4900_v31 = vadd.f32 %v4899_v30, %v4898_v11 }
 0x83a   :  { %v7435_v59 = vpop.f32.mrb[42].mxu0 }
 0x83b   :  { %v4853_v2 = vpop.f32.mrb[43].mxu0  ;;  %v4903_v57 = vsel %vm1205_vm3, %v7435_v59, 0.0 }
 0x83c   :  { %v4901_v15 = vsel %vm1205_vm3, %v4853_v2, 0.0 }
 0x83d   :  { %v4902_v35 = vadd.f32 %v4901_v15, %v4900_v31 }
 0x83f   :  { %v4904_v17 = vadd.f32 %v4903_v57, %v4902_v35 }
 0x853   :  { %v7438_v55 = vpop.f32.mrb[44].mxu0 }
 0x854   :  { %v4863_v1 = vpop.f32.mrb[45].mxu0  ;;  %v4907_v20 = vsel %vm1205_vm3, %v7438_v55, 0.0 }
 0x855   :  { %v4905_v50 = vsel %vm1205_vm3, %v4863_v1, 0.0 }
 0x856   :  { %v4906_v33 = vadd.f32 %v4905_v50, %v4904_v17 }
 0x858   :  { %v4908_v40 = vadd.f32 %v4907_v20, %v4906_v33 }
 0x866   :  { %v7441_v58 = vpop.f32.mrb[46].mxu0 }
 0x867   :  { %v4873_v47 = vpop.f32.mrb[47].mxu0  ;;  %v4911_v27 = vsel %vm1205_vm3, %v7441_v58, 0.0 }
 0x868   :  { %v4909_v19 = vsel %vm1205_vm3, %v4873_v47, 0.0 }
 0x869   :  { %v4910_v44 = vadd.f32 %v4909_v19, %v4908_v40 }
 0x86b   :  { %v4912_v13 = vadd.f32 %v4911_v27, %v4910_v44 }
 0x86d   :  { %v4913_v18 = vrot.slane %v4912_v13, 4 }
 0x86f   :  { %v4914_v25 = vadd.f32 %v4913_v18, %v4912_v13 }
 0x871   :  { %v4915_v34 = vrot.slane %v4914_v25, 2 }
 0x873   :  { %v4916_v0 = vadd.f32 %v4915_v34, %v4914_v25 }
 0x875   :  { %v4917_v29 = vrot.slane %v4916_v0, 1 }
 0x877   :  { %v4918_v9 = vadd.f32 %v4917_v29, %v4916_v0 }
 0x879   :  { %v4919_v8 = vmul.f32 0.0078125, %v4918_v9 }
 0x87b   :  { %v12732_v46 = vsub.f32 %v4803_v21, %v4919_v8  ;;  %v12734_v32 = vsub.f32 %v7420_v23, %v4919_v8  ;;  %v12736_v60 = vsub.f32 %v4813_v14, %v4919_v8  ;;  %v12738_v5 = vsub.f32 %v7423_v51, %v4919_v8 }
 0x87c   :  { %v12740_v38 = vsub.f32 %v4823_v7, %v4919_v8  ;;  %v12742_v26 = vsub.f32 %v7426_v16, %v4919_v8  ;;  %v12744_v24 = vsub.f32 %v4833_v39, %v4919_v8  ;;  %v12746_v36 = vsub.f32 %v7429_v41, %v4919_v8 }
 0x87d   :  { %v12748_v54 = vsub.f32 %v4843_v56, %v4919_v8  ;;  %v12750_v10 = vsub.f32 %v7432_v48, %v4919_v8  ;;  %v12752_v21 = vsub.f32 %v4853_v2, %v4919_v8  ;;  %v12754_v23 = vsub.f32 %v7435_v59, %v4919_v8 }
 0x87e   :  { %v12756_v14 = vsub.f32 %v4863_v1, %v4919_v8  ;;  %v12758_v51 = vsub.f32 %v7438_v55, %v4919_v8  ;;  %v12760_v7 = vsub.f32 %v4873_v47, %v4919_v8  ;;  %v12762_v16 = vsub.f32 %v7441_v58, %v4919_v8 }
 0x87f   :  { %v4936_v41 = vmul.f32 %v12732_v46, %v12732_v46  ;;  %v4937_v39 = vmul.f32 %v12734_v32, %v12734_v32  ;;  %v4938_v48 = vmul.f32 %v12736_v60, %v12736_v60  ;;  %v4939_v56 = vmul.f32 %v12738_v5, %v12738_v5 }
 0x880   :  { %v4940_v59 = vmul.f32 %v12740_v38, %v12740_v38  ;;  %v4941_v35 = vmul.f32 %v12742_v26, %v12742_v26  ;;  %v4942_v55 = vmul.f32 %v12744_v24, %v12744_v24  ;;  %v4943_v33 = vmul.f32 %v12746_v36, %v12746_v36 }
 0x881   :  { %v4952_v11 = vsel %vm1205_vm3, %v4936_v41, 0.0  ;;  %v4953_v30 = vsel %vm1205_vm3, %v4937_v39, 0.0  ;;  %v4955_v2 = vsel %vm1205_vm3, %v4938_v48, 0.0  ;;  %v4957_v57 = vsel %vm1205_vm3, %v4939_v56, 0.0 }
 0x882   :  { %v4954_v31 = vadd.f32 %v4953_v30, %v4952_v11  ;;  %v4959_v1 = vsel %vm1205_vm3, %v4940_v59, 0.0  ;;  %v4961_v20 = vsel %vm1205_vm3, %v4941_v35, 0.0  ;;  %v4944_v58 = vmul.f32 %v12748_v54, %v12748_v54 }
 0x883   :  { %v4963_v47 = vsel %vm1205_vm3, %v4942_v55, 0.0  ;;  %v4945_v44 = vmul.f32 %v12750_v10, %v12750_v10  ;;  %v4965_v27 = vsel %vm1205_vm3, %v4943_v33, 0.0  ;;  %v4946_v18 = vmul.f32 %v12752_v21, %v12752_v21 }
 0x884   :  { %v4956_v15 = vadd.f32 %v4955_v2, %v4954_v31  ;;  %v4967_v25 = vsel %vm1205_vm3, %v4944_v58, 0.0  ;;  %v4947_v0 = vmul.f32 %v12754_v23, %v12754_v23  ;;  %v4948_v8 = vmul.f32 %v12756_v14, %v12756_v14 }
 0x885   :  { %v4969_v29 = vsel %vm1205_vm3, %v4945_v44, 0.0  ;;  %v4971_v41 = vsel %vm1205_vm3, %v4946_v18, 0.0  ;;  %v4949_v48 = vmul.f32 %v12758_v51, %v12758_v51  ;;  %v4950_v30 = vmul.f32 %v12760_v7, %v12760_v7 }
 0x886   :  { %v4958_v17 = vadd.f32 %v4957_v57, %v4956_v15  ;;  %v4973_v56 = vsel %vm1205_vm3, %v4947_v0, 0.0  ;;  %v4975_v31 = vsel %vm1205_vm3, %v4948_v8, 0.0  ;;  %v4951_v2 = vmul.f32 %v12762_v16, %v12762_v16 }
 0x887   :  { %v4977_v15 = vsel %vm1205_vm3, %v4949_v48, 0.0  ;;  %v4979_v57 = vsel %vm1205_vm3, %v4950_v30, 0.0 }
 0x888   :  { %v4960_v50 = vadd.f32 %v4959_v1, %v4958_v17  ;;  %v4981_v55 = vsel %vm1205_vm3, %v4951_v2, 0.0 }
 0x88a   :  { %v4962_v40 = vadd.f32 %v4961_v20, %v4960_v50 }
 0x88c   :  { %v4964_v19 = vadd.f32 %v4963_v47, %v4962_v40 }
 0x88e   :  { %v4966_v13 = vadd.f32 %v4965_v27, %v4964_v19  ;;  %v5502_v27 = vld [vmem:[#allocation2] sm:$0xff] }
 0x88f   :  { %v5574_v18 = vrot.slane %v5502_v27, 1 }
 0x890   :  { %v4968_v34 = vadd.f32 %v4967_v25, %v4966_v13  ;;  %v5503_v13 = vld [vmem:[#allocation2 + $0x8] sm:$0x3] }
 0x891   :  { %v5575_v25 = vrot.slane %v5503_v13, 1  ;;  %v5671_v0 = vrot.slane %v5503_v13, 2 }
 0x892   :  { %v4970_v9 = vadd.f32 %v4969_v29, %v4968_v34  ;;  %v5670_v34 = vrot.slane %v5502_v27, 2 }
 0x893   :  { %v5576_v29 = vsel %vm379_vm0, %v5574_v18, %v5575_v25 }
 0x894   :  { %v4972_v39 = vadd.f32 %v4971_v41, %v4970_v9  ;;  %5622 = vrot.lane.b32.xlu0 %v5576_v29, %s7808_s15  ;;  %v5672_v8 = vsel %vm4130_vm12, %v5670_v34, %v5671_v0 }
 0x896   :  { %v4974_v11 = vadd.f32 %v4973_v56, %v4972_v39 }
 0x898   :  { %v4976_v59 = vadd.f32 %v4975_v31, %v4974_v11  ;;  %5718 = vrot.lane.b32.xlu0 %v5672_v8, %s7810_s24 }
 0x89a   :  { %v4978_v35 = vadd.f32 %v4977_v15, %v4976_v59 }
 0x89c   :  { %v4980_v17 = vadd.f32 %v4979_v57, %v4978_v35 }
 0x89e   :  { %v4982_v1 = vadd.f32 %v4981_v55, %v4980_v17 }
 0x8a0   :  { %v4983_v50 = vrot.slane %v4982_v1, 4 }
 0x8a2   :  { %v4984_v33 = vadd.f32 %v4983_v50, %v4982_v1 }
 0x8a4   :  { %v4985_v20 = vrot.slane %v4984_v33, 2 }
 0x8a6   :  { %v4986_v40 = vadd.f32 %v4985_v20, %v4984_v33 }
 0x8a8   :  { %v4987_v58 = vrot.slane %v4986_v40, 1 }
 0x8aa   :  { %v4988_v47 = vadd.f32 %v4987_v58, %v4986_v40 }
 0x8ac   :  { %v4989_v19 = vmul.f32 0.0078125, %v4988_v47 }
 0x8ae   :  { %v4990_v44 = vadd.f32 1e-12, %v4989_v19 }
 0x8b0   :  { %7611 = vrsqrt.f32 %v4990_v44 }
 0x8ba   :  { %v7612_v9 = vpop.eup %7611 }
 0x8bb   :  { %v4992_v41 = vmul.f32 %v7612_v9, %v12732_v46  ;;  %v4993_v39 = vmul.f32 %v7612_v9, %v12734_v32  ;;  %v4994_v48 = vmul.f32 %v7612_v9, %v12736_v60  ;;  %v4995_v56 = vmul.f32 %v7612_v9, %v12738_v5 }
 0x8bc   :  { %v4996_v11 = vmul.f32 %v7612_v9, %v12740_v38  ;;  %v4997_v30 = vmul.f32 %v7612_v9, %v12742_v26  ;;  %v4998_v31 = vmul.f32 %v7612_v9, %v12744_v24  ;;  %v4999_v59 = vmul.f32 %v7612_v9, %v12746_v36  ;;  %v7140_v24 = vld [vmem:[%s14497_s7] ss:$0 sm:$0xff] }
 0x8bd   :  { %v5000_v2 = vmul.f32 %v7612_v9, %v12748_v54  ;;  %v5001_v15 = vmul.f32 %v7612_v9, %v12750_v10  ;;  %v5002_v46 = vmul.f32 %v7612_v9, %v12752_v21  ;;  %v5003_v32 = vmul.f32 %v7612_v9, %v12754_v23 }
 0x8be   :  { %v5004_v60 = vmul.f32 %v7612_v9, %v12756_v14  ;;  %v5005_v5 = vmul.f32 %v7612_v9, %v12758_v51  ;;  %v5006_v38 = vmul.f32 %v7612_v9, %v12760_v7  ;;  %v5007_v26 = vmul.f32 %v7612_v9, %v12762_v16  ;;  %v7141_v14 = vld [vmem:[%s14498_s8] ss:$0 sm:$0xff] }
 0x8bf   :  { %v5015_v36 = vmul.f32 %v7140_v24, %v4992_v41  ;;  %v5016_v54 = vmul.f32 %v7140_v24, %v4993_v39  ;;  %v5017_v10 = vmul.f32 %v7140_v24, %v4994_v48  ;;  %v5018_v21 = vmul.f32 %v7140_v24, %v4995_v56 }
 0x8c0   :  { %v5019_v35 = vmul.f32 %v7140_v24, %v4996_v11  ;;  %v5020_v23 = vmul.f32 %v7140_v24, %v4997_v30  ;;  %v5021_v57 = vmul.f32 %v7140_v24, %v4998_v31  ;;  %v5022_v51 = vmul.f32 %v7140_v24, %v4999_v59 }
 0x8c1   :  { %v5023_v17 = vmul.f32 %v7140_v24, %v5000_v2  ;;  %v5024_v7 = vmul.f32 %v7140_v24, %v5001_v15  ;;  %v5025_v55 = vmul.f32 %v7140_v24, %v5002_v46  ;;  %v5026_v16 = vmul.f32 %v7140_v24, %v5003_v32 }
 0x8c2   :  { %v5027_v1 = vmul.f32 %v7140_v24, %v5004_v60  ;;  %v5028_v50 = vmul.f32 %v7140_v24, %v5005_v5  ;;  %v5029_v33 = vmul.f32 %v7140_v24, %v5006_v38  ;;  %v5038_v20 = vadd.f32 %v7141_v14, %v5015_v36 }
 0x8c3   :  { %v5039_v40 = vadd.f32 %v7141_v14, %v5016_v54  ;;  %v5040_v58 = vadd.f32 %v7141_v14, %v5017_v10  ;;  %v5041_v47 = vadd.f32 %v7141_v14, %v5018_v21  ;;  %v5042_v19 = vadd.f32 %v7141_v14, %v5019_v35 }
 0x8c4   :  { %v5043_v44 = vadd.f32 %v7141_v14, %v5020_v23  ;;  %v5044_v27 = vadd.f32 %v7141_v14, %v5021_v57  ;;  %v5045_v13 = vadd.f32 %v7141_v14, %v5022_v51  ;;  %v5046_v18 = vadd.f32 %v7141_v14, %v5023_v17 }
 0x8c5   :  { %v5047_v25 = vadd.f32 %v7141_v14, %v5024_v7  ;;  %v5048_v34 = vadd.f32 %v7141_v14, %v5025_v55  ;;  %v5030_v0 = vmul.f32 %v7140_v24, %v5007_v26  ;;  %v5049_v29 = vadd.f32 %v7141_v14, %v5026_v16 }
 0x8c6   :  { %v5050_v9 = vadd.f32 %v7141_v14, %v5027_v1  ;;  %v5051_v8 = vadd.f32 %v7141_v14, %v5028_v50  ;;  %v5052_v41 = vadd.f32 %v7141_v14, %v5029_v33  ;;  %v12838_v39 = vmul.f32 0.5, %v5038_v20 }
 0x8c7   :  { %v12840_v48 = vmul.f32 0.5, %v5039_v40  ;;  %v12842_v56 = vmul.f32 0.5, %v5040_v58  ;;  %v12844_v11 = vmul.f32 0.5, %v5041_v47  ;;  %v12846_v30 = vmul.f32 0.5, %v5042_v19 }
 0x8c8   :  { %14866 = vst [vmem:[#allocation15_spill] sm:$0xff] %v12838_v39  ;;  %v12848_v31 = vmul.f32 0.5, %v5043_v44  ;;  %v12850_v59 = vmul.f32 0.5, %v5044_v27  ;;  %v12852_v2 = vmul.f32 0.5, %v5045_v13  ;;  %v12854_v15 = vmul.f32 0.5, %v5046_v18 }
 0x8c9   :  { %14867 = vst [vmem:[#allocation35_spill] sm:$0xff] %v12840_v48  ;;  %14868 = vst [vmem:[#allocation60_spill] sm:$0xff] %v12842_v56  ;;  %v12856_v46 = vmul.f32 0.5, %v5047_v25  ;;  %v12858_v32 = vmul.f32 0.5, %v5048_v34  ;;  %v12860_v60 = vmul.f32 0.5, %v5049_v29  ;;  %v12862_v5 = vmul.f32 0.5, %v5050_v9 }
 0x8ca   :  { %14869 = vst [vmem:[#allocation34_spill] sm:$0xff] %v12844_v11  ;;  %14870 = vst [vmem:[#allocation59_spill] sm:$0xff] %v12846_v30  ;;  %v12864_v38 = vmul.f32 0.70710677, %v5038_v20  ;;  %v12866_v26 = vmul.f32 0.70710677, %v5039_v40  ;;  %v5053_v24 = vadd.f32 %v7141_v14, %v5030_v0 }
 0x8cb   :  { %14871 = vst [vmem:[#allocation18_spill] sm:$0xff] %v12848_v31  ;;  %14872 = vst [vmem:[#allocation17_spill] sm:$0xff] %v12850_v59  ;;  %v12868_v36 = vmul.f32 0.70710677, %v5040_v58  ;;  %v12870_v54 = vmul.f32 0.70710677, %v5041_v47 }
 0x8cc   :  { %14873 = vst [vmem:[#allocation37_spill] sm:$0xff] %v12852_v2  ;;  %14874 = vst [vmem:[#allocation62_spill] sm:$0xff] %v12854_v15  ;;  %v12872_v10 = vmul.f32 0.70710677, %v5042_v19  ;;  %v12874_v21 = vmul.f32 0.70710677, %v5043_v44 }
 0x8cd   :  { %14875 = vst [vmem:[#allocation36_spill] sm:$0xff] %v12856_v46  ;;  %14876 = vst [vmem:[#allocation61_spill] sm:$0xff] %v12858_v32  ;;  %v12876_v35 = vmul.f32 0.70710677, %v5044_v27  ;;  %v12878_v23 = vmul.f32 0.70710677, %v5045_v13 }
 0x8ce   :  { %14877 = vst [vmem:[#allocation20_spill] sm:$0xff] %v12860_v60  ;;  %14878 = vst [vmem:[#allocation19_spill] sm:$0xff] %v12862_v5  ;;  %v12880_v57 = vmul.f32 0.70710677, %v5046_v18  ;;  %v12882_v51 = vmul.f32 0.70710677, %v5047_v25 }
 0x8cf   :  { %14879 = vst [vmem:[#allocation39_spill] sm:$0xff] %v12864_v38  ;;  %14880 = vst [vmem:[#allocation64_spill] sm:$0xff] %v12866_v26  ;;  %v12884_v17 = vmul.f32 0.70710677, %v5048_v34  ;;  %v12886_v7 = vmul.f32 0.70710677, %v5049_v29 }
 0x8d0   :  { %14881 = vst [vmem:[#allocation38_spill] sm:$0xff] %v12868_v36  ;;  %14882 = vst [vmem:[#allocation63_spill] sm:$0xff] %v12870_v54  ;;  %v12888_v14 = vmul.f32 0.70710677, %v5050_v9  ;;  %v12890_v55 = vmul.f32 0.70710677, %v5051_v8 }
 0x8d1   :  { %14883 = vst [vmem:[#allocation41_spill] sm:$0xff] %v12872_v10  ;;  %14884 = vst [vmem:[#allocation66_spill] sm:$0xff] %v12874_v21  ;;  %v12892_v16 = vmul.f32 0.70710677, %v5052_v41  ;;  %v12894_v1 = vmul.f32 0.70710677, %v5053_v24 }
 0x8d2   :  { %14885 = vst [vmem:[#allocation40_spill] sm:$0xff] %v12876_v35  ;;  %14886 = vst [vmem:[#allocation65_spill] sm:$0xff] %v12878_v23  ;;  %v12897_v50 = vand.u32 2147483647, %v12864_v38  ;;  %v12900_v33 = vand.u32 2147483647, %v12866_v26 }
 0x8d3   :  { %14887 = vst [vmem:[#allocation43_spill] sm:$0xff] %v12880_v57  ;;  %14888 = vst [vmem:[#allocation68_spill] sm:$0xff] %v12882_v51  ;;  %v12903_v20 = vand.u32 2147483647, %v12868_v36  ;;  %v12906_v40 = vand.u32 2147483647, %v12870_v54 }
 0x8d4   :  { %14889 = vst [vmem:[#allocation42_spill] sm:$0xff] %v12884_v17  ;;  %14890 = vst [vmem:[#allocation67_spill] sm:$0xff] %v12886_v7  ;;  %v12909_v58 = vand.u32 2147483647, %v12872_v10  ;;  %v12912_v47 = vand.u32 2147483647, %v12874_v21 }
 0x8d5   :  { %14891 = vst [vmem:[#allocation45_spill] sm:$0xff] %v12888_v14  ;;  %14892 = vst [vmem:[#allocation70_spill] sm:$0xff] %v12890_v55  ;;  %v12915_v19 = vand.u32 2147483647, %v12876_v35  ;;  %v12918_v44 = vand.u32 2147483647, %v12878_v23 }
 0x8d6   :  { %14893 = vst [vmem:[#allocation44_spill] sm:$0xff] %v12892_v16  ;;  %14894 = vst [vmem:[#allocation69_spill] sm:$0xff] %v12894_v1  ;;  %v12921_v27 = vand.u32 2147483647, %v12880_v57  ;;  %v12924_v13 = vand.u32 2147483647, %v12882_v51 }
 0x8d7   :  { %v12927_v18 = vand.u32 2147483647, %v12884_v17  ;;  %v12930_v25 = vand.u32 2147483647, %v12886_v7  ;;  %v12933_v34 = vand.u32 2147483647, %v12888_v14 }
 0x8d8   :  { %v12936_v0 = vand.u32 2147483647, %v12890_v55  ;;  %v12939_v29 = vand.u32 2147483647, %v12892_v16  ;;  %v5102_v9 = vmul.f32 0.3275911, %v12897_v50 }
 0x8d9   :  { %v12943_v63 = vand.u32 2147483647, %v12894_v1  ;;  %v5103_v12 = vmul.f32 0.3275911, %v12900_v33  ;;  %v5104_v22 = vmul.f32 0.3275911, %v12903_v20 }
 0x8da   :  { %v5105_v42 = vmul.f32 0.3275911, %v12906_v40  ;;  %v5106_v6 = vmul.f32 0.3275911, %v12909_v58  ;;  %v5107_v49 = vmul.f32 0.3275911, %v12912_v47 }
 0x8db   :  { %v5108_v3 = vmul.f32 0.3275911, %v12915_v19  ;;  %v5109_v37 = vmul.f32 0.3275911, %v12918_v44  ;;  %v5110_v53 = vmul.f32 0.3275911, %v12921_v27 }
 0x8dc   :  { %v12953_v28 = vmul.f32 0.5, %v5051_v8  ;;  %v5111_v52 = vmul.f32 0.3275911, %v12924_v13  ;;  %v5112_v43 = vmul.f32 0.3275911, %v12927_v18  ;;  %v5118_v62 = vadd.f32 1.0, %v5102_v9 }
 0x8dd   :  { %v12957_v4 = vmul.f32 0.5, %v5052_v41  ;;  %v5113_v45 = vmul.f32 0.3275911, %v12930_v25  ;;  %v5114_v61 = vmul.f32 0.3275911, %v12933_v34  ;;  %v5119_v5 = vadd.f32 1.0, %v5103_v12 }
 0x8de   :  { %14895 = vst [vmem:[#allocation21_spill] sm:$0xff] %v12953_v28  ;;  %v12961_v60 = vmul.f32 0.5, %v5053_v24  ;;  %v5115_v32 = vmul.f32 0.3275911, %v12936_v0  ;;  %v5116_v46 = vmul.f32 0.3275911, %v12939_v29  ;;  %7613 = vrcp.f32 %v5118_v62 }
 0x8df   :  { %14896 = vst [vmem:[#allocation4_spill] sm:$0xff] %v12957_v4  ;;  %v5120_v8 = vadd.f32 1.0, %v5104_v22  ;;  %v5117_v28 = vmul.f32 0.3275911, %v12943_v63  ;;  %v5121_v15 = vadd.f32 1.0, %v5105_v42  ;;  %v5122_v2 = vadd.f32 1.0, %v5106_v6 }
 0x8e0   :  { %14897 = vst [vmem:[#allocation75_spill] sm:$0xff] %v12961_v60  ;;  %v5123_v59 = vadd.f32 1.0, %v5107_v49  ;;  %v5124_v9 = vadd.f32 1.0, %v5108_v3  ;;  %v5125_v41 = vadd.f32 1.0, %v5109_v37  ;;  %v5126_v4 = vadd.f32 1.0, %v5110_v53 }
 0x8e1   :  { %v5127_v31 = vadd.f32 1.0, %v5111_v52  ;;  %v5128_v30 = vadd.f32 1.0, %v5112_v43  ;;  %v5129_v11 = vadd.f32 1.0, %v5113_v45  ;;  %7615 = vrcp.f32 %v5119_v5 }
 0x8e2   :  { %v5130_v12 = vadd.f32 1.0, %v5114_v61  ;;  %v5131_v24 = vadd.f32 1.0, %v5115_v32  ;;  %v5132_v60 = vadd.f32 1.0, %v5116_v46  ;;  %7617 = vrcp.f32 %v5120_v8 }
 0x8e3   :  { %v5133_v56 = vadd.f32 1.0, %v5117_v28  ;;  %7619 = vrcp.f32 %v5121_v15  ;;  %v5310_v22 = vsub.f32 0.0, %v12897_v50  ;;  %v5311_v42 = vsub.f32 0.0, %v12900_v33 }
 0x8e4   :  { %7621 = vrcp.f32 %v5122_v2  ;;  %v5312_v3 = vsub.f32 0.0, %v12903_v20  ;;  %v5313_v53 = vsub.f32 0.0, %v12906_v40  ;;  %v5314_v52 = vsub.f32 0.0, %v12909_v58 }
 0x8e5   :  { %7623 = vrcp.f32 %v5123_v59  ;;  %v5315_v43 = vsub.f32 0.0, %v12912_v47  ;;  %v5316_v37 = vsub.f32 0.0, %v12915_v19  ;;  %v5317_v49 = vsub.f32 0.0, %v12918_v44 }
 0x8e6   :  { %7625 = vrcp.f32 %v5124_v9  ;;  %v5318_v28 = vsub.f32 0.0, %v12921_v27  ;;  %v5319_v6 = vsub.f32 0.0, %v12924_v13  ;;  %v5320_v61 = vsub.f32 0.0, %v12927_v18 }
 0x8e7   :  { %7627 = vrcp.f32 %v5125_v41  ;;  %v5321_v45 = vsub.f32 0.0, %v12930_v25  ;;  %v5322_v62 = vsub.f32 0.0, %v12933_v34  ;;  %v5326_v46 = vmul.f32 %v5310_v22, %v12897_v50 }
 0x8e8   :  { %7629 = vrcp.f32 %v5126_v4  ;;  %v5327_v32 = vmul.f32 %v5311_v42, %v12900_v33  ;;  %v5328_v5 = vmul.f32 %v5312_v3, %v12903_v20  ;;  %v5329_v8 = vmul.f32 %v5313_v53, %v12906_v40  ;;  %v12986_v9 = vpop.eup %7613 }
 0x8e9   :  { %7631 = vrcp.f32 %v5127_v31  ;;  %v5330_v41 = vmul.f32 %v5314_v52, %v12909_v58  ;;  %v5331_v4 = vmul.f32 %v5315_v43, %v12912_v47  ;;  %v5332_v2 = vmul.f32 %v5316_v37, %v12915_v19 }
 0x8ea   :  { %7633 = vrcp.f32 %v5128_v30  ;;  %v5166_v31 = vmul.f32 1.0614054, %v12986_v9  ;;  %v12995_v50 = vmul.f32 %v5317_v49, %v12918_v44  ;;  %v12998_v33 = vmul.f32 %v5318_v28, %v12921_v27 }
 0x8eb   :  { %v12991_v59 = vpop.eup %7615  ;;  %7635 = vrcp.f32 %v5129_v11  ;;  %v13004_v40 = vmul.f32 %v5319_v6, %v12924_v13  ;;  %v13007_v58 = vmul.f32 %v5320_v61, %v12927_v18  ;;  %v13012_v44 = vmul.f32 1.442695, %v5326_v46 }
 0x8ec   :  { %v13000_v20 = vpop.eup %7617  ;;  %7637 = vrcp.f32 %v5130_v12  ;;  %v5167_v30 = vmul.f32 1.0614054, %v12991_v59  ;;  %v5182_v19 = vadd.f32 -1.4531521, %v5166_v31  ;;  %v13017_v42 = vmul.f32 1.442695, %v5327_v32 }
 0x8ed   :  { %v13009_v11 = vpop.eup %7619  ;;  %7639 = vrcp.f32 %v5131_v24  ;;  %v5168_v47 = vmul.f32 1.0614054, %v13000_v20  ;;  %v13027_v43 = vmul.f32 %v5321_v45, %v12930_v25  ;;  %v13031_v37 = vmul.f32 1.442695, %v5329_v8 }
 0x8ee   :  { %v13014_v27 = vpop.eup %7621  ;;  %7641 = vrcp.f32 %v5132_v60  ;;  %v5169_v12 = vmul.f32 1.0614054, %v13009_v11  ;;  %v5183_v22 = vadd.f32 -1.4531521, %v5167_v30  ;;  %v5198_v24 = vmul.f32 %v12986_v9, %v5182_v19 }
 0x8ef   :  { %v13019_v13 = vpop.eup %7623  ;;  %7643 = vrcp.f32 %v5133_v56  ;;  %v5170_v18 = vmul.f32 1.0614054, %v13014_v27  ;;  %v5184_v3 = vadd.f32 -1.4531521, %v5168_v47  ;;  %v13029_v60 = vmul.f32 1.442695, %v5328_v5 }
 0x8f0   :  { %v13023_v53 = vpop.eup %7625  ;;  %v5171_v52 = vmul.f32 1.0614054, %v13019_v13  ;;  %v13037_v28 = vmul.f32 %v5322_v62, %v12933_v34  ;;  %v13039_v6 = vmul.f32 1.442695, %v5330_v41  ;;  %v13041_v61 = vmul.f32 1.442695, %v5331_v4 }
 0x8f1   :  { %v13033_v49 = vpop.eup %7627  ;;  %v5172_v56 = vmul.f32 1.0614054, %v13023_v53  ;;  %v5185_v45 = vadd.f32 -1.4531521, %v5169_v12  ;;  %v5199_v32 = vmul.f32 %v12991_v59, %v5183_v22  ;;  %v13047_v5 = vmul.f32 1.442695, %v5332_v2 }
 0x8f2   :  { %v13043_v46 = vpop.eup %7629  ;;  %v5173_v25 = vmul.f32 1.0614054, %v13033_v49  ;;  %v5186_v30 = vadd.f32 -1.4531521, %v5170_v18  ;;  %v5200_v34 = vmul.f32 %v13000_v20, %v5184_v3  ;;  %v5214_v62 = vadd.f32 1.4214138, %v5198_v24 }
 0x8f3   :  { %v13049_v8 = vpop.eup %7631  ;;  %v5174_v31 = vmul.f32 1.0614054, %v13043_v46  ;;  %v5187_v47 = vadd.f32 -1.4531521, %v5171_v52  ;;  %v5188_v19 = vadd.f32 -1.4531521, %v5172_v56  ;;  %v5201_v1 = vmul.f32 %v13009_v11, %v5185_v45 }
 0x8f4   :  { %v13053_v41 = vpop.eup %7633  ;;  %v5175_v4 = vmul.f32 1.0614054, %v13049_v8  ;;  %v14898_v12 = vsub.f32 0.0, %v12936_v0  ;;  %v5189_v48 = vadd.f32 -1.4531521, %v5173_v25  ;;  %v14899_v3 = vsub.f32 0.0, %v12939_v29 }
 0x8f5   :  { %v13061_v2 = vpop.eup %7635  ;;  %v5176_v15 = vmul.f32 1.0614054, %v13053_v41  ;;  %v5190_v18 = vadd.f32 -1.4531521, %v5174_v31  ;;  %v5202_v25 = vmul.f32 %v13014_v27, %v5186_v30  ;;  %v5216_v31 = vadd.f32 1.4214138, %v5200_v34 }
 0x8f6   :  { %v13059_v22 = vmul.f32 %v14898_v12, %v12936_v0  ;;  %v13067_v24 = vmul.f32 %v14899_v3, %v12939_v29  ;;  %v13069_v39 = vpop.eup %7637  ;;  %v5177_v52 = vmul.f32 1.0614054, %v13061_v2  ;;  %v5191_v56 = vadd.f32 -1.4531521, %v5175_v4 }
 0x8f7   :  { %v5215_v0 = vadd.f32 1.4214138, %v5199_v32  ;;  %v13073_v12 = vpop.eup %7639  ;;  %v5178_v16 = vmul.f32 1.0614054, %v13069_v39  ;;  %v5192_v55 = vadd.f32 -1.4531521, %v5176_v15  ;;  %v5203_v7 = vmul.f32 %v13019_v13, %v5187_v47 }
 0x8f8   :  { %v13077_v14 = vpop.eup %7641  ;;  %v5179_v29 = vmul.f32 1.0614054, %v13073_v12  ;;  %v5193_v3 = vadd.f32 -1.4531521, %v5177_v52  ;;  %v5204_v4 = vmul.f32 %v13023_v53, %v5188_v19  ;;  %v5205_v51 = vmul.f32 %v13033_v49, %v5189_v48 }
 0x8f9   :  { %v13082_v17 = vpop.eup %7643  ;;  %v5180_v45 = vmul.f32 1.0614054, %v13077_v14  ;;  %v5194_v32 = vadd.f32 -1.4531521, %v5178_v16  ;;  %v5206_v15 = vmul.f32 %v13043_v46, %v5190_v18  ;;  %v5207_v57 = vmul.f32 %v13049_v8, %v5191_v56 }
 0x8fa   :  { %v5181_v30 = vmul.f32 1.0614054, %v13082_v17  ;;  %v5195_v34 = vadd.f32 -1.4531521, %v5179_v29  ;;  %v5208_v52 = vmul.f32 %v13053_v41, %v5192_v55  ;;  %v5209_v47 = vmul.f32 %v13061_v2, %v5193_v3 }
 0x8fb   :  { %v5196_v23 = vadd.f32 -1.4531521, %v5180_v45  ;;  %v5210_v19 = vmul.f32 %v13069_v39, %v5194_v32  ;;  %v5217_v35 = vadd.f32 1.4214138, %v5201_v1  ;;  %v5218_v10 = vadd.f32 1.4214138, %v5202_v25 }
 0x8fc   :  { %v5197_v21 = vadd.f32 -1.4531521, %v5181_v30  ;;  %v5211_v16 = vmul.f32 %v13073_v12, %v5195_v34  ;;  %v5219_v48 = vadd.f32 1.4214138, %v5203_v7  ;;  %v5220_v54 = vadd.f32 1.4214138, %v5204_v4 }
 0x8fd   :  { %v5212_v18 = vmul.f32 %v13077_v14, %v5196_v23  ;;  %v5221_v36 = vadd.f32 1.4214138, %v5205_v51  ;;  %v5222_v29 = vadd.f32 1.4214138, %v5206_v15  ;;  %v5223_v26 = vadd.f32 1.4214138, %v5207_v57 }
 0x8fe   :  { %v5213_v56 = vmul.f32 %v13082_v17, %v5197_v21  ;;  %v5224_v55 = vadd.f32 1.4214138, %v5208_v52  ;;  %v5230_v45 = vmul.f32 %v12986_v9, %v5214_v62  ;;  %v5225_v3 = vadd.f32 1.4214138, %v5209_v47 }
 0x8ff   :  { %v5226_v38 = vadd.f32 1.4214138, %v5210_v19  ;;  %v5227_v32 = vadd.f32 1.4214138, %v5211_v16  ;;  %v5231_v1 = vmul.f32 %v12991_v59, %v5215_v0  ;;  %v5228_v30 = vadd.f32 1.4214138, %v5212_v18 }
 0x900   :  { %v5229_v34 = vadd.f32 1.4214138, %v5213_v56  ;;  %v5232_v7 = vmul.f32 %v13000_v20, %v5216_v31  ;;  %v5233_v23 = vmul.f32 %v13009_v11, %v5217_v35  ;;  %v5234_v51 = vmul.f32 %v13014_v27, %v5218_v10 }
 0x901   :  { %v5235_v25 = vmul.f32 %v13019_v13, %v5219_v48  ;;  %v5236_v21 = vmul.f32 %v13023_v53, %v5220_v54  ;;  %v5237_v57 = vmul.f32 %v13033_v49, %v5221_v36  ;;  %v5238_v62 = vmul.f32 %v13043_v46, %v5222_v29 }
 0x902   :  { %v5239_v4 = vmul.f32 %v13049_v8, %v5223_v26  ;;  %v5240_v0 = vmul.f32 %v13053_v41, %v5224_v55  ;;  %v5246_v15 = vadd.f32 -0.28449672, %v5230_v45  ;;  %v5241_v52 = vmul.f32 %v13061_v2, %v5225_v3 }
 0x903   :  { %v5242_v31 = vmul.f32 %v13069_v39, %v5226_v38  ;;  %v5243_v35 = vmul.f32 %v13073_v12, %v5227_v32  ;;  %v5247_v10 = vadd.f32 -0.28449672, %v5231_v1  ;;  %v5244_v47 = vmul.f32 %v13077_v14, %v5228_v30 }
 0x904   :  { %v5245_v54 = vmul.f32 %v13082_v17, %v5229_v34  ;;  %v5248_v19 = vadd.f32 -0.28449672, %v5232_v7  ;;  %v5249_v36 = vadd.f32 -0.28449672, %v5233_v23  ;;  %v5250_v16 = vadd.f32 -0.28449672, %v5234_v51 }
 0x905   :  { %v5251_v48 = vadd.f32 -0.28449672, %v5235_v25  ;;  %v5252_v18 = vadd.f32 -0.28449672, %v5236_v21  ;;  %7645 = vpow2.f32 %v13012_v44  ;;  %v5253_v26 = vadd.f32 -0.28449672, %v5237_v57 }
 0x906   :  { %v5254_v29 = vadd.f32 -0.28449672, %v5238_v62  ;;  %v5255_v56 = vadd.f32 -0.28449672, %v5239_v4  ;;  %v5262_v55 = vmul.f32 %v12986_v9, %v5246_v15  ;;  %v5256_v38 = vadd.f32 -0.28449672, %v5240_v0 }
 0x907   :  { %v5257_v45 = vadd.f32 -0.28449672, %v5241_v52  ;;  %v5258_v3 = vadd.f32 -0.28449672, %v5242_v31  ;;  %v5263_v32 = vmul.f32 %v12991_v59, %v5247_v10  ;;  %v5259_v1 = vadd.f32 -0.28449672, %v5243_v35 }
 0x908   :  { %v5260_v30 = vadd.f32 -0.28449672, %v5244_v47  ;;  %v5261_v34 = vadd.f32 -0.28449672, %v5245_v54  ;;  %v5264_v7 = vmul.f32 %v13000_v20, %v5248_v19  ;;  %v5265_v23 = vmul.f32 %v13009_v11, %v5249_v36 }
 0x909   :  { %v5266_v51 = vmul.f32 %v13014_v27, %v5250_v16  ;;  %v5267_v44 = vmul.f32 %v13019_v13, %v5251_v48  ;;  %v5268_v25 = vmul.f32 %v13023_v53, %v5252_v18  ;;  %v5269_v21 = vmul.f32 %v13033_v49, %v5253_v26 }
 0x90a   :  { %v5270_v57 = vmul.f32 %v13043_v46, %v5254_v29  ;;  %v5271_v62 = vmul.f32 %v13049_v8, %v5255_v56  ;;  %7647 = vpow2.f32 %v13017_v42  ;;  %v5272_v4 = vmul.f32 %v13053_v41, %v5256_v38 }
 0x90b   :  { %v5273_v0 = vmul.f32 %v13061_v2, %v5257_v45  ;;  %v5278_v15 = vadd.f32 0.2548296, %v5262_v55  ;;  %7649 = vpow2.f32 %v13029_v60  ;;  %v5274_v52 = vmul.f32 %v13069_v39, %v5258_v3 }
 0x90c   :  { %v5275_v31 = vmul.f32 %v13073_v12, %v5259_v1  ;;  %v5276_v35 = vmul.f32 %v13077_v14, %v5260_v30  ;;  %v5279_v10 = vadd.f32 0.2548296, %v5263_v32  ;;  %v5277_v47 = vmul.f32 %v13082_v17, %v5261_v34 }
 0x90d   :  { %v5280_v54 = vadd.f32 0.2548296, %v5264_v7  ;;  %v5281_v19 = vadd.f32 0.2548296, %v5265_v23  ;;  %v5282_v36 = vadd.f32 0.2548296, %v5266_v51  ;;  %v5294_v38 = vmul.f32 %v12986_v9, %v5278_v15 }
 0x90e   :  { %v5283_v42 = vadd.f32 0.2548296, %v5267_v44  ;;  %v5284_v16 = vadd.f32 0.2548296, %v5268_v25  ;;  %v5285_v48 = vadd.f32 0.2548296, %v5269_v21  ;;  %v5295_v1 = vmul.f32 %v12991_v59, %v5279_v10 }
 0x90f   :  { %v14900_v18 = vsub.f32 0.0, %v12943_v63  ;;  %v7646_v60 = vpop.eup %7645  ;;  %v5286_v29 = vadd.f32 0.2548296, %v5270_v57  ;;  %v5287_v56 = vadd.f32 0.2548296, %v5271_v62  ;;  %v5296_v7 = vmul.f32 %v13000_v20, %v5280_v54  ;;  %v14902_v62 = vld [vmem:[#allocation64_spill] sm:$0xff] }
 0x910   :  { %v5288_v55 = vadd.f32 0.2548296, %v5272_v4  ;;  %v5289_v45 = vadd.f32 0.2548296, %v5273_v0  ;;  %v5290_v3 = vadd.f32 0.2548296, %v5274_v52  ;;  %v5297_v23 = vmul.f32 %v13009_v11, %v5281_v19 }
 0x911   :  { %v5341_v26 = vmul.f32 %v14900_v18, %v12943_v63  ;;  %v5291_v32 = vadd.f32 0.2548296, %v5275_v31  ;;  %v5292_v30 = vadd.f32 0.2548296, %v5276_v35  ;;  %v5293_v34 = vadd.f32 0.2548296, %v5277_v47 }
 0x912   :  { %v5298_v51 = vmul.f32 %v13014_v27, %v5282_v36  ;;  %v5299_v63 = vmul.f32 %v13019_v13, %v5283_v42  ;;  %7651 = vpow2.f32 %v13031_v37  ;;  %v5356_v44 = vmul.f32 1.442695, %v12995_v50  ;;  %v14906_v0 = vld [vmem:[#allocation66_spill] sm:$0xff]  ;;  %v14907_v52 = vld [vmem:[#allocation40_spill] sm:$0xff]  ;;  %v14908_v54 = vld [vmem:[#allocation65_spill] sm:$0xff] }
 0x913   :  { %v5300_v9 = vmul.f32 %v13023_v53, %v5284_v16  ;;  %v13143_v25 = vmul.f32 %v13033_v49, %v5285_v48  ;;  %7653 = vpow2.f32 %v13039_v6  ;;  %v5358_v59 = vmul.f32 1.442695, %v12998_v33  ;;  %v14909_v48 = vld [vmem:[#allocation43_spill] sm:$0xff] }
 0x914   :  { %v7648_v20 = vpop.eup %7647  ;;  %v13148_v11 = vmul.f32 %v13043_v46, %v5286_v29  ;;  %v13151_v27 = vmul.f32 %v13049_v8, %v5287_v56  ;;  %7655 = vpow2.f32 %v13041_v61  ;;  %v5360_v50 = vmul.f32 1.442695, %v13004_v40 }
 0x915   :  { %v7650_v13 = vpop.eup %7649  ;;  %v13156_v53 = vmul.f32 %v13053_v41, %v5288_v55  ;;  %7657 = vpow2.f32 %v13047_v5  ;;  %v5362_v37 = vmul.f32 1.442695, %v13007_v58  ;;  %v5374_v33 = vmul.f32 %v7646_v60, %v5294_v38  ;;  %v14910_v55 = vld [vmem:[#allocation68_spill] sm:$0xff] }
 0x916   :  { %7659 = vpow2.f32 %v5356_v44  ;;  %v5364_v49 = vmul.f32 1.442695, %v13027_v43  ;;  %v5375_v6 = vmul.f32 %v7648_v20, %v5295_v1  ;;  %v5376_v46 = vmul.f32 %v7650_v13, %v5296_v7  ;;  %v14912_v44 = vld [vmem:[#allocation67_spill] sm:$0xff] }
 0x917   :  { %v13162_v8 = vmul.f32 %v13061_v2, %v5289_v45  ;;  %v13165_v61 = vmul.f32 %v13069_v39, %v5290_v3  ;;  %7661 = vpow2.f32 %v5358_v59  ;;  %v5366_v40 = vmul.f32 1.442695, %v13037_v28 }
 0x918   :  { %v13169_v41 = vmul.f32 %v13073_v12, %v5291_v32  ;;  %v13172_v58 = vmul.f32 %v13077_v14, %v5292_v30  ;;  %7663 = vpow2.f32 %v5360_v50  ;;  %v5368_v43 = vmul.f32 1.442695, %v13059_v22  ;;  %v14901_v12 = vld [vmem:[#allocation39_spill] sm:$0xff]  ;;  %v14903_v14 = vld [vmem:[#allocation38_spill] sm:$0xff] }
 0x919   :  { %7665 = vpow2.f32 %v5362_v37  ;;  %v5370_v5 = vmul.f32 1.442695, %v13067_v24  ;;  %v5390_v2 = vsub.f32 1.0, %v5374_v33  ;;  %v5391_v21 = vsub.f32 1.0, %v5375_v6  ;;  %v14904_v22 = vld [vmem:[#allocation63_spill] sm:$0xff]  ;;  %v14905_v24 = vld [vmem:[#allocation41_spill] sm:$0xff] }
 0x91a   :  { %v13177_v39 = vmul.f32 %v13082_v17, %v5293_v34  ;;  %7667 = vpow2.f32 %v5364_v49  ;;  %v5372_v57 = vmul.f32 1.442695, %v5341_v26  ;;  %v5392_v28 = vsub.f32 1.0, %v5376_v46  ;;  %v14911_v30 = vld [vmem:[#allocation42_spill] sm:$0xff] }
 0x91b   :  { %7669 = vpow2.f32 %v5366_v40  ;;  %vm5406_vm14 = vcmp.ge.f32.partialorder %v14901_v12, 0.0  ;;  %vm5407_vm15 = vcmp.ge.f32.partialorder %v14902_v62, 0.0  ;;  %vm5408_vm1 = vcmp.ge.f32.partialorder %v14903_v14, 0.0  ;;  %v14914_v46 = vld [vmem:[#allocation70_spill] sm:$0xff]  ;;  %v14916_v14 = vld [vmem:[#allocation69_spill] sm:$0xff] }
 0x91c   :  { %v7652_v4 = vpop.eup %7651  ;;  %7671 = vpow2.f32 %v5368_v43  ;;  %vm5409_vm2 = vcmp.ge.f32.partialorder %v14904_v22, 0.0  ;;  %vm5410_vm4 = vcmp.ge.f32.partialorder %v14905_v24, 0.0  ;;  %vm5411_vm13 = vcmp.ge.f32.partialorder %v14906_v0, 0.0 }
 0x91d   :  { %v7654_v17 = vpop.eup %7653  ;;  %7673 = vpow2.f32 %v5370_v5  ;;  %v5377_v15 = vmul.f32 %v7652_v4, %v5297_v23  ;;  %vm5412_vm10 = vcmp.ge.f32.partialorder %v14907_v52, 0.0  ;;  %v5422_v31 = vsub.f32 0.0, %v5390_v2 }
 0x91e   :  { %v5423_v35 = vsub.f32 0.0, %v5391_v21  ;;  %v7656_v10 = vpop.eup %7655  ;;  %7675 = vpow2.f32 %v5372_v57  ;;  %v5378_v47 = vmul.f32 %v7654_v17, %v5298_v51  ;;  %vm5413_vm11 = vcmp.ge.f32.partialorder %v14908_v54, 0.0 }
 0x91f   :  { %v5424_v19 = vsub.f32 0.0, %v5392_v28  ;;  %v7658_v36 = vpop.eup %7657  ;;  %v5379_v42 = vmul.f32 %v7656_v10, %v5299_v63  ;;  %v5393_v16 = vsub.f32 1.0, %v5377_v15  ;;  %vm5414_vm8 = vcmp.ge.f32.partialorder %v14909_v48, 0.0 }
 0x920   :  { %v5438_v18 = vsel %vm5406_vm14, %v5390_v2, %v5422_v31  ;;  %v5439_v26 = vsel %vm5407_vm15, %v5391_v21, %v5423_v35  ;;  %v7660_v60 = vpop.eup %7659  ;;  %v5380_v29 = vmul.f32 %v7658_v36, %v5300_v9  ;;  %v5394_v56 = vsub.f32 1.0, %v5378_v47  ;;  %v14915_v21 = vld [vmem:[#allocation44_spill] sm:$0xff] }
 0x921   :  { %vm5415_vm6 = vcmp.ge.f32.partialorder %v14910_v55, 0.0  ;;  %v5440_v38 = vsel %vm5408_vm1, %v5392_v28, %v5424_v19  ;;  %v13195_v45 = vadd.f32 1.0, %v5438_v18  ;;  %v7662_v3 = vpop.eup %7661  ;;  %v5381_v32 = vmul.f32 %v7660_v60, %v13143_v25  ;;  %v14913_v25 = vld [vmem:[#allocation45_spill] sm:$0xff] }
 0x922   :  { %v5395_v1 = vsub.f32 1.0, %v5379_v42  ;;  %vm5416_vm9 = vcmp.ge.f32.partialorder %v14911_v30, 0.0  ;;  %v5425_v34 = vsub.f32 0.0, %v5393_v16  ;;  %v13199_v7 = vadd.f32 1.0, %v5439_v26  ;;  %v7664_v23 = vpop.eup %7663 }
 0x923   :  { %v5382_v51 = vmul.f32 %v7662_v3, %v13148_v11  ;;  %v5396_v63 = vsub.f32 1.0, %v5380_v29  ;;  %vm5417_vm14 = vcmp.ge.f32.partialorder %v14912_v44, 0.0  ;;  %v5426_v9 = vsub.f32 0.0, %v5394_v56  ;;  %v7666_v20 = vpop.eup %7665 }
 0x924   :  { %v13203_v59 = vadd.f32 1.0, %v5440_v38  ;;  %v5383_v50 = vmul.f32 %v7664_v23, %v13151_v27  ;;  %v5397_v13 = vsub.f32 1.0, %v5381_v32  ;;  %vm5418_vm15 = vcmp.ge.f32.partialorder %v14913_v25, 0.0  ;;  %v7668_v49 = vpop.eup %7667 }
 0x925   :  { %v5427_v37 = vsub.f32 0.0, %v5395_v1  ;;  %v5441_v33 = vsel %vm5409_vm2, %v5393_v16, %v5425_v34  ;;  %v5384_v6 = vmul.f32 %v7666_v20, %v13156_v53  ;;  %v5398_v11 = vsub.f32 1.0, %v5382_v51  ;;  %v7670_v5 = vpop.eup %7669 }
 0x926   :  { %vm5419_vm1 = vcmp.ge.f32.partialorder %v14914_v46, 0.0  ;;  %v5428_v40 = vsub.f32 0.0, %v5396_v63  ;;  %v5442_v43 = vsel %vm5410_vm4, %v5394_v56, %v5426_v9  ;;  %v5385_v27 = vmul.f32 %v7668_v49, %v13162_v8  ;;  %v7672_v12 = vpop.eup %7671  ;;  %v14919_v49 = vld [vmem:[#allocation60_spill] sm:$0xff] }
 0x927   :  { %v5399_v2 = vsub.f32 1.0, %v5383_v50  ;;  %vm5420_vm7 = vcmp.ge.f32.partialorder %v14915_v21, 0.0  ;;  %v5429_v57 = vsub.f32 0.0, %v5397_v13  ;;  %v5443_v28 = vsel %vm5411_vm13, %v5395_v1, %v5427_v37  ;;  %v7674_v24 = vpop.eup %7673  ;;  %v14918_v37 = vld [vmem:[#allocation35_spill] sm:$0xff] }
 0x928   :  { %v5386_v53 = vmul.f32 %v7670_v5, %v13165_v61  ;;  %v5400_v62 = vsub.f32 1.0, %v5384_v6  ;;  %vm5421_vm2 = vcmp.ge.f32.partialorder %v14916_v14, 0.0  ;;  %v5430_v4 = vsub.f32 0.0, %v5398_v11  ;;  %v7676_v0 = vpop.eup %7675  ;;  %v14922_v5 = vld [vmem:[#allocation18_spill] sm:$0xff]  ;;  %v14927_v14 = vld [vmem:[#allocation61_spill] sm:$0xff] }
 0x929   :  { %v5444_v22 = vsel %vm5412_vm10, %v5396_v63, %v5428_v40  ;;  %v5387_v8 = vmul.f32 %v7672_v12, %v13169_v41  ;;  %v5401_v17 = vsub.f32 1.0, %v5385_v27  ;;  %v5431_v15 = vsub.f32 0.0, %v5399_v2  ;;  %v14921_v40 = vld [vmem:[#allocation59_spill] sm:$0xff]  ;;  %v14925_v12 = vld [vmem:[#allocation62_spill] sm:$0xff] }
 0x92a   :  { %v5445_v31 = vsel %vm5413_vm11, %v5397_v13, %v5429_v57  ;;  %v5388_v35 = vmul.f32 %v7674_v24, %v13172_v58  ;;  %v5402_v10 = vsub.f32 1.0, %v5386_v53  ;;  %v5432_v61 = vsub.f32 0.0, %v5400_v62  ;;  %v14917_v13 = vld [vmem:[#allocation15_spill] sm:$0xff]  ;;  %v14924_v57 = vld [vmem:[#allocation37_spill] sm:$0xff] }
 0x92b   :  { %v5446_v47 = vsel %vm5414_vm8, %v5398_v11, %v5430_v4  ;;  %v5389_v19 = vmul.f32 %v7676_v0, %v13177_v39  ;;  %v5403_v52 = vsub.f32 1.0, %v5387_v8  ;;  %v5433_v36 = vsub.f32 0.0, %v5401_v17  ;;  %v14920_v11 = vld [vmem:[#allocation34_spill] sm:$0xff]  ;;  %v14930_v8 = vld [vmem:[#allocation21_spill] sm:$0xff]  ;;  %v14932_v0 = vld [vmem:[#allocation75_spill] sm:$0xff] }
 0x92c   :  { %v5447_v41 = vsel %vm5415_vm6, %v5399_v2, %v5431_v15  ;;  %v5404_v42 = vsub.f32 1.0, %v5388_v35  ;;  %v5434_v16 = vsub.f32 0.0, %v5402_v10  ;;  %v5448_v54 = vsel %vm5416_vm9, %v5400_v62, %v5432_v61  ;;  %v14923_v2 = vld [vmem:[#allocation17_spill] sm:$0xff]  ;;  %v14926_v62 = vld [vmem:[#allocation36_spill] sm:$0xff] }
 0x92d   :  { %v5457_v18 = vadd.f32 1.0, %v5441_v33  ;;  %v5405_v26 = vsub.f32 1.0, %v5389_v19  ;;  %v5435_v58 = vsub.f32 0.0, %v5403_v52  ;;  %v5449_v60 = vsel %vm5417_vm14, %v5401_v17, %v5433_v36  ;;  %v14931_v15 = vld [vmem:[#allocation4_spill] sm:$0xff] }
 0x92e   :  { %v5458_v48 = vadd.f32 1.0, %v5442_v43  ;;  %v5436_v29 = vsub.f32 0.0, %v5404_v42  ;;  %v5450_v39 = vsel %vm5418_vm15, %v5402_v10, %v5434_v16  ;;  %v5459_v56 = vadd.f32 1.0, %v5443_v28 }
 0x92f   :  { %v5460_v38 = vadd.f32 1.0, %v5444_v22  ;;  %v5437_v55 = vsub.f32 0.0, %v5405_v26  ;;  %v5451_v3 = vsel %vm5419_vm1, %v5403_v52, %v5435_v58  ;;  %v5461_v32 = vadd.f32 1.0, %v5445_v31  ;;  %v14929_v22 = vld [vmem:[#allocation19_spill] sm:$0xff] }
 0x930   :  { %v5462_v1 = vadd.f32 1.0, %v5446_v47  ;;  %v5452_v30 = vsel %vm5420_vm7, %v5404_v42, %v5436_v29  ;;  %v5463_v34 = vadd.f32 1.0, %v5447_v41  ;;  %v5464_v23 = vadd.f32 1.0, %v5448_v54 }
 0x931   :  { %v5465_v51 = vadd.f32 1.0, %v5449_v60  ;;  %v5453_v63 = vsel %vm5421_vm2, %v5405_v26, %v5437_v55  ;;  %v5466_v44 = vadd.f32 1.0, %v5450_v39  ;;  %v5467_v9 = vadd.f32 1.0, %v5451_v3 }
 0x932   :  { %v5468_v20 = vadd.f32 1.0, %v5452_v30  ;;  %v5469_v50 = vadd.f32 1.0, %v5453_v63  ;;  %v5470_v25 = vmul.f32 %v13195_v45, %v14917_v13  ;;  %v5471_v33 = vmul.f32 %v13199_v7, %v14918_v37  ;;  %v14928_v7 = vld [vmem:[#allocation20_spill] sm:$0xff]  ;;  %v6216_v63 = vld [vmem:[%s14499_s4 + $0x10] sm:$0xff]  ;;  %v6218_v13 = vld [vmem:[%s14499_s4 + $0x20] sm:$0xff] }
 0x933   :  { %v5472_v6 = vmul.f32 %v13203_v59, %v14919_v49  ;;  %v5473_v46 = vmul.f32 %v5457_v18, %v14920_v11  ;;  %v5474_v43 = vmul.f32 %v5458_v48, %v14921_v40  ;;  %v5475_v27 = vmul.f32 %v5459_v56, %v14922_v5  ;;  %v6221_v11 = vld [vmem:[%s14499_s4 + $0x38] sm:$0xff] }
 0x934   :  { %v5476_v21 = vmul.f32 %v5460_v38, %v14923_v2  ;;  %v5477_v28 = vmul.f32 %v5461_v32, %v14924_v57  ;;  %v5478_v53 = vmul.f32 %v5462_v1, %v14925_v12  ;;  %v5479_v45 = vmul.f32 %v5463_v34, %v14926_v62  ;;  %5486 = vst.msk [vmem:[#allocation2 + $0x11] sm:$0xff] %vm1205_vm3, %v5470_v25  ;;  %v6214_v34 = vld [vmem:[%s14499_s4] sm:$0xff]  ;;  %v6219_v25 = vld [vmem:[%s14499_s4 + $0x28] sm:$0xff] }
 0x935   :  { %v5480_v4 = vmul.f32 %v5464_v23, %v14927_v14  ;;  %5487 = vst.msk [vmem:[#allocation2 + $0x21] sm:$0xff] %vm1205_vm3, %v5471_v33  ;;  %5488 = vst.msk [vmem:[#allocation2 + $0x31] sm:$0xff] %vm1205_vm3, %v5472_v6  ;;  %v5481_v59 = vmul.f32 %v5465_v51, %v14928_v7  ;;  %v5482_v24 = vmul.f32 %v5466_v44, %v14929_v22  ;;  %v6215_v23 = vld [vmem:[%s14499_s4 + $0x8] sm:$0xff]  ;;  %v6217_v44 = vld [vmem:[%s14499_s4 + $0x18] sm:$0xff]  ;;  %vm14933_vm7 = vcmask 195584  }
 0x936   :  { %v5483_v17 = vmul.f32 %v5467_v9, %v14930_v8  ;;  %v5484_v31 = vmul.f32 %v5468_v20, %v14931_v15  ;;  %5489 = vst.msk [vmem:[#allocation2 + $0x41] sm:$0xff] %vm1205_vm3, %v5473_v46  ;;  %5490 = vst.msk [vmem:[#allocation2 + $0x51] sm:$0xff] %vm1205_vm3, %v5474_v43  ;;  %v5485_v35 = vmul.f32 %v5469_v50, %v14932_v0  ;;  %v6220_v6 = vld [vmem:[%s14499_s4 + $0x30] sm:$0xff]  ;;  %vm14934_vm9 = vcmask 261120  }
 0x937   :  { %5491 = vst.msk [vmem:[#allocation2 + $0x61] sm:$0xff] %vm1205_vm3, %v5475_v27  ;;  %5492 = vst.msk [vmem:[#allocation2 + $0x71] sm:$0xff] %vm1205_vm3, %v5476_v21  ;;  %v7516_v51 = vpack.c.bf16 %v6215_v23, %v6214_v34  ;;  %v7520_v9 = vpack.c.bf16 %v6217_v44, %v6216_v63  ;;  %v7524_v37 = vpack.c.bf16 %v6219_v25, %v6218_v13  ;;  %v6222_v27 = vld [vmem:[%s14499_s4 + $0x40] sm:$0xff]  ;;  %vm14935_vm6 = vcmask 326656  }
 0x938   :  { %5493 = vst.msk [vmem:[#allocation2 + $0x81] sm:$0xff] %vm1205_vm3, %v5477_v28  ;;  %5494 = vst.msk [vmem:[#allocation2 + $0xb1] sm:$0xff] %vm1205_vm3, %v5478_v53  ;;  %v7528_v46 = vpack.c.bf16 %v6221_v11, %v6220_v6  ;;  %v5520_v6 = vld [vmem:[#allocation2 + $0x90] sm:$0xff]  ;;  %vm14936_vm8 = vcmask 392192   ;;  %vm14937_vm10 = vcmask 457728   ;;  %vm14938_vm11 = vcmask 523264  }
 0x939   :  { %5495 = vst.msk [vmem:[#allocation2 + $0xc1] sm:$0xff] %vm1205_vm3, %v5479_v45  ;;  %5496 = vst.msk [vmem:[#allocation2 + $0xd1] sm:$0xff] %vm1205_vm3, %v5480_v4  ;;  %7517 = vmatprep.subr.bf16.mxu1 %v7516_v51  ;;  %vm14940_vm4 = vcmask 588800  }
 0x93a   :  { %5498 = vst.msk [vmem:[#allocation2 + $0xf1] sm:$0xff] %vm1205_vm3, %v5482_v24  ;;  %5499 = vst.msk [vmem:[#allocation2 + $0x101] sm:$0xff] %vm1205_vm3, %v5483_v17  ;;  %7519 = vmatpush3.bf16.msra.mxu1 %v7516_v51 }
 0x93b   :  { %5500 = vst.msk [vmem:[#allocation2 + $0x111] sm:$0xff] %vm1205_vm3, %v5484_v31  ;;  %5497 = vst.msk [vmem:[#allocation2 + $0xe1] sm:$0xff] %vm1205_vm3, %v5481_v59  ;;  %v13277_v10 = vld [vmem:[#allocation2 + $0x10] sm:$0xff]  ;;  %v5505_v61 = vld [vmem:[#allocation2 + $0x18] sm:$0x3]  ;;  %7521 = vmatprep.subr.bf16.mxu1 %v7520_v9 }
 0x93c   :  { %5501 = vst.msk [vmem:[#allocation2 + $0x121] sm:$0xff] %vm1205_vm3, %v5485_v35  ;;  %5768 = vrot.lane.b32.xlu0 %v13277_v10, %s7812_s28  ;;  %v5577_v47 = vrot.slane %v13277_v10, 1  ;;  %v5578_v19 = vrot.slane %v5505_v61, 1  ;;  %v13282_v52 = vld [vmem:[#allocation2 + $0x20] sm:$0xff]  ;;  %v5507_v36 = vld [vmem:[#allocation2 + $0x28] sm:$0x3]  ;;  %vm14939_vm13 = vmmov %vm14933_vm7 }
 0x93d   :  { %v5673_v41 = vrot.slane %v13277_v10, 2  ;;  %v5674_v16 = vrot.slane %v5505_v61, 2  ;;  %v5580_v54 = vrot.slane %v13282_v52, 1  ;;  %v5581_v18 = vrot.slane %v5507_v36, 1  ;;  %v13289_v26 = vld [vmem:[#allocation2 + $0x30] sm:$0xff]  ;;  %v13325_v20 = vld [vmem:[#allocation2 + $0x40] sm:$0xff]  ;;  %vm14941_vm14 = vmmov %vm14934_vm9 }
 0x93e   :  { %v5579_v42 = vsel %vm379_vm0, %v5577_v47, %v5578_v19  ;;  %v5509_v58 = vld [vmem:[#allocation2 + $0x38] sm:$0x3]  ;;  %v5583_v29 = vrot.slane %v13289_v26, 1  ;;  %v5676_v38 = vrot.slane %v13282_v52, 2  ;;  %v5677_v55 = vrot.slane %v5507_v36, 2  ;;  %7523 = vmatpush3.bf16.msra.mxu1 %v7520_v9  ;;  %v13348_v43 = vld [vmem:[#allocation2 + $0x50] sm:$0xff]  ;;  %vm14942_vm15 = vmmov %vm14935_vm6 }
 0x93f   :  { %5624 = vrot.lane.b32.xlu1 %v5579_v42, %s7808_s15  ;;  %v5675_v60 = vsel %vm4130_vm12, %v5673_v41, %v5674_v16  ;;  %v5582_v48 = vsel %vm379_vm0, %v5580_v54, %v5581_v18  ;;  %v5584_v39 = vrot.slane %v5509_v58, 1  ;;  %v5679_v32 = vrot.slane %v13289_v26, 2  ;;  %v5511_v50 = vld [vmem:[#allocation2 + $0x48] sm:$0x3]  ;;  %7525 = vmatprep.subr.bf16.mxu1 %v7524_v37  ;;  %v5513_v5 = vld [vmem:[#allocation2 + $0x58] sm:$0x3]  ;;  %vm14943_vm1 = vmmov %vm14936_vm8 }
 0x940   :  { %5824 = vrot.lane.b32.xlu0 %v5579_v42, %s7814_s26  ;;  %v5678_v3 = vsel %vm4130_vm12, %v5676_v38, %v5677_v55  ;;  %v5680_v1 = vrot.slane %v5509_v58, 2  ;;  %v5586_v33 = vrot.slane %v13325_v20, 1  ;;  %v5587_v49 = vrot.slane %v5511_v50, 1  ;;  %v13372_v4 = vld [vmem:[#allocation2 + $0x60] sm:$0xff]  ;;  %v5515_v7 = vld [vmem:[#allocation2 + $0x68] sm:$0x3]  ;;  %vm14944_vm2 = vmmov %vm14937_vm10 }
 0x941   :  { %v5585_v56 = vsel %vm379_vm0, %v5583_v29, %v5584_v39  ;;  %v5589_v2 = vrot.slane %v13348_v43, 1  ;;  %v5590_v21 = vrot.slane %v5513_v5, 1  ;;  %v5682_v28 = vrot.slane %v13325_v20, 2  ;;  %v13383_v8 = vld [vmem:[#allocation2 + $0x70] sm:$0xff]  ;;  %v5517_v17 = vld [vmem:[#allocation2 + $0x78] sm:$0x3]  ;;  %v13416_v39 = vpop.permute.xlu0 %5622 }
 0x942   :  { %v5681_v30 = vsel %vm4130_vm12, %v5679_v32, %v5680_v1  ;;  %7527 = vmatpush3.bf16.msra.mxu1 %v7524_v37  ;;  %v5588_v40 = vsel %vm379_vm0, %v5586_v33, %v5587_v49  ;;  %v5683_v12 = vrot.slane %v5511_v50, 2  ;;  %v5685_v62 = vrot.slane %v13348_v43, 2  ;;  %v13402_v42 = vld [vmem:[#allocation2 + $0xa0] sm:$0xff]  ;;  %v5523_v16 = vld [vmem:[#allocation2 + $0xa8] sm:$0x3] }
 0x943   :  { %5720 = vrot.lane.b32.xlu1 %v5675_v60, %s7810_s24  ;;  %7529 = vmatprep.subr.bf16.mxu1 %v7528_v46  ;;  %v5591_v57 = vsel %vm379_vm0, %v5589_v2, %v5590_v21  ;;  %v5686_v45 = vrot.slane %v5513_v5, 2  ;;  %v5592_v59 = vrot.slane %v13372_v4, 1  ;;  %v5593_v22 = vrot.slane %v5515_v7, 1  ;;  %v5518_v54 = vld [vmem:[#allocation2 + $0x80] sm:$0xff]  ;;  %v5525_v29 = vld [vmem:[#allocation2 + $0xb8] sm:$0x3] }
 0x944   :  { %5826 = vrot.lane.b32.xlu0 %v5582_v48, %s7814_s26  ;;  %v5684_v53 = vsel %vm4130_vm12, %v5682_v28, %v5683_v12  ;;  %v5595_v15 = vrot.slane %v13383_v8, 1  ;;  %v5596_v31 = vrot.slane %v5517_v17, 1  ;;  %v5688_v35 = vrot.slane %v13372_v4, 2  ;;  %v5519_v55 = vld [vmem:[#allocation2 + $0x88] sm:$0x3]  ;;  %v13449_v21 = vld [vmem:[#allocation2 + $0xc0] sm:$0xff] }
 0x945   :  { %v5687_v14 = vsel %vm4130_vm12, %v5685_v62, %v5686_v45  ;;  %v5594_v24 = vsel %vm379_vm0, %v5592_v59, %v5593_v22  ;;  %v5689_v61 = vrot.slane %v5515_v7, 2  ;;  %v5691_v19 = vrot.slane %v13383_v8, 2  ;;  %v13424_v23 = vpop.permute.xlu0 %5718  ;;  %v13472_v22 = vld [vmem:[#allocation2 + $0xd0] sm:$0xff] }
 0x946   :  { %7531 = vmatpush3.bf16.msra.mxu1 %v7528_v46  ;;  %v5597_v0 = vsel %vm379_vm0, %v5595_v15, %v5596_v31  ;;  %v5692_v36 = vrot.slane %v5517_v17, 2  ;;  %v5598_v18 = vrot.slane %v13402_v42, 1  ;;  %v5599_v58 = vrot.slane %v5523_v16, 1  ;;  %v5521_v46 = vld [vmem:[#allocation2 + $0x98] sm:$0x3] }
 0x947   :  { %5770 = vrot.lane.b32.xlu1 %v13282_v52, %s7812_s28  ;;  %7458 = vmatprep.subr.mxu1 %v6222_v27  ;;  %v5690_v47 = vsel %vm4130_vm12, %v5688_v35, %v5689_v61  ;;  %v5602_v38 = vrot.slane %v5525_v29, 1  ;;  %v5819_v32 = vrot.slane %v5519_v55, 1  ;;  %v5872_v1 = vrot.slane %v5518_v54, 2 }
 0x948   :  { %5628 = vrot.lane.b32.xlu0 %v5585_v56, %s7808_s15  ;;  %v5693_v41 = vsel %vm4130_vm12, %v5691_v19, %v5692_v36  ;;  %v5873_v34 = vrot.slane %v5519_v55, 2  ;;  %v5698_v9 = vrot.slane %v5525_v29, 2  ;;  %v5694_v50 = vrot.slane %v13402_v42, 2 }
 0x949   :  { %v5695_v13 = vrot.slane %v5523_v16, 2  ;;  %v5604_v62 = vrot.slane %v13449_v21, 1  ;;  %v5607_v31 = vrot.slane %v13472_v22, 1  ;;  %v5700_v19 = vrot.slane %v13449_v21, 2 }
 0x94a   :  { %7459 = vmatpush3.msra.mxu1 %v6222_v27  ;;  %v5874_v63 = vsel %vm4130_vm12, %v5872_v1, %v5873_v34  ;;  %v5979_v27 = vrot.slane %v5521_v46, 1  ;;  %v6033_v16 = vrot.slane %v5521_v46, 2 }
 0x94b   :  { %5626 = vrot.lane.b32.xlu1 %v5582_v48, %s7808_s15  ;;  %v5696_v33 = vsel %vm4130_vm12, %v5694_v50, %v5695_v13 }
 0x94c   :  { %5880 = vrot.lane.b32.xlu0 %v5678_v3, %s7816_s5 }
 0x94f   :  { %5878 = vrot.lane.b32.xlu1 %v5675_v60, %s7816_s5  ;;  %v5600_v60 = vsel %vm379_vm0, %v5598_v18, %v5599_v58 }
 0x950   :  { %5724 = vrot.lane.b32.xlu0 %v5681_v30, %s7810_s24 }
 0x953   :  { %5722 = vrot.lane.b32.xlu1 %v5678_v3, %s7810_s24 }
 0x954   :  { %5930 = vrot.lane.b32.xlu0 %v13289_v26, %s7817_s22 }
 0x957   :  { %5928 = vrot.lane.b32.xlu1 %v13282_v52, %s7817_s22 }
 0x958   :  { %5774 = vrot.lane.b32.xlu0 %v13325_v20, %s7812_s28 }
 0x95b   :  { %5772 = vrot.lane.b32.xlu1 %v13289_v26, %s7812_s28 }
 0x95c   :  { %5986 = vrot.lane.b32.xlu0 %v5585_v56, %s7818_s13 }
 0x95f   :  { %5984 = vrot.lane.b32.xlu1 %v5582_v48, %s7818_s13  ;;  %v13414_v48 = vld [vmem:[#allocation2 + $0xb0] sm:$0xff] }
 0x960   :  { %5630 = vrot.lane.b32.xlu0 %v5588_v40, %s7808_s15  ;;  %v5697_v44 = vrot.slane %v13414_v48, 2 }
 0x962   :  { %v5699_v37 = vsel %vm4130_vm12, %v5697_v44, %v5698_v9 }
 0x963   :  { %5828 = vrot.lane.b32.xlu1 %v5585_v56, %s7814_s26  ;;  %v5601_v56 = vrot.slane %v13414_v48, 1 }
 0x964   :  { %5882 = vrot.lane.b32.xlu0 %v5681_v30, %s7816_s5 }
 0x967   :  { %6038 = vrot.lane.b32.xlu1 %v5678_v3, %s7819_s17  ;;  %v5818_v3 = vrot.slane %v5518_v54, 1 }
 0x968   :  { %5632 = vrot.lane.b32.xlu0 %v5591_v57, %s7808_s15 }
 0x969   :  { %v5820_v51 = vsel %vm379_vm0, %v5818_v3, %v5819_v32  ;;  %v7806_v3 = vld [vmem:[#allocation2] sm:$0xff] }
 0x96a   :  { %v6086_v32 = vsel %vm1205_vm3, %v7806_v3, %v13416_v39 }
 0x96b   :  { %5830 = vrot.lane.b32.xlu1 %v5588_v40, %s7814_s26  ;;  %v6102_v34 = vsel %vm1271_vm5, %v6086_v32, %v13424_v23  ;;  %v13521_v23 = vld [vmem:[#allocation2 + $0xe0] sm:$0xff] }
 0x96c   :  { %5884 = vrot.lane.b32.xlu0 %v5684_v53, %s7816_s5 }
 0x96f   :  { %6040 = vrot.lane.b32.xlu1 %v5681_v30, %s7819_s17  ;;  %v5603_v30 = vsel %vm379_vm0, %v5601_v56, %v5602_v38 }
 0x970   :  { %5728 = vrot.lane.b32.xlu0 %v5687_v14, %s7810_s24 }
 0x973   :  { %5726 = vrot.lane.b32.xlu1 %v5684_v53, %s7810_s24 }
 0x974   :  { %5934 = vrot.lane.b32.xlu0 %v13348_v43, %s7817_s22 }
 0x977   :  { %5932 = vrot.lane.b32.xlu1 %v13325_v20, %s7817_s22 }
 0x978   :  { %5778 = vrot.lane.b32.xlu0 %v13372_v4, %s7812_s28 }
 0x97b   :  { %5776 = vrot.lane.b32.xlu1 %v13348_v43, %s7812_s28 }
 0x97c   :  { %5990 = vrot.lane.b32.xlu0 %v5591_v57, %s7818_s13 }
 0x97f   :  { %5988 = vrot.lane.b32.xlu1 %v5588_v40, %s7818_s13  ;;  %v5978_v40 = vrot.slane %v5520_v6, 1 }
 0x980   :  { %5634 = vrot.lane.b32.xlu0 %v5594_v24, %s7808_s15 }
 0x981   :  { %v5980_v12 = vsel %vm379_vm0, %v5978_v40, %v5979_v27 }
 0x983   :  { %5832 = vrot.lane.b32.xlu1 %v5591_v57, %s7814_s26  ;;  %v5527_v57 = vld [vmem:[#allocation2 + $0xc8] sm:$0x3] }
 0x984   :  { %5886 = vrot.lane.b32.xlu0 %v5687_v14, %s7816_s5  ;;  %v5605_v45 = vrot.slane %v5527_v57, 1  ;;  %v5701_v36 = vrot.slane %v5527_v57, 2 }
 0x986   :  { %v13468_v59 = vsel %vm379_vm0, %v5604_v62, %v5605_v45  ;;  %v5702_v58 = vsel %vm4130_vm12, %v5700_v19, %v5701_v36 }
 0x987   :  { %6042 = vrot.lane.b32.xlu1 %v5684_v53, %s7819_s17 }
 0x988   :  { %5636 = vrot.lane.b32.xlu0 %v5597_v0, %s7808_s15 }
 0x98b   :  { %5834 = vrot.lane.b32.xlu1 %v5594_v24, %s7814_s26 }
 0x98c   :  { %5888 = vrot.lane.b32.xlu0 %v5690_v47, %s7816_s5 }
 0x98f   :  { %6044 = vrot.lane.b32.xlu1 %v5687_v14, %s7819_s17 }
 0x990   :  { %5732 = vrot.lane.b32.xlu0 %v5693_v41, %s7810_s24 }
 0x993   :  { %5730 = vrot.lane.b32.xlu1 %v5690_v47, %s7810_s24 }
 0x994   :  { %5938 = vrot.lane.b32.xlu0 %v13383_v8, %s7817_s22 }
 0x997   :  { %5936 = vrot.lane.b32.xlu1 %v13372_v4, %s7817_s22 }
 0x998   :  { %5782 = vrot.lane.b32.xlu0 %v5518_v54, %s7812_s28 }
 0x99b   :  { %5780 = vrot.lane.b32.xlu1 %v13383_v8, %s7812_s28 }
 0x99c   :  { %5994 = vrot.lane.b32.xlu0 %v5597_v0, %s7818_s13 }
 0x99f   :  { %5992 = vrot.lane.b32.xlu1 %v5594_v24, %s7818_s13  ;;  %v5529_v24 = vld [vmem:[#allocation2 + $0xd8] sm:$0x3] }
 0x9a0   :  { %5638 = vrot.lane.b32.xlu0 %v5600_v60, %s7808_s15  ;;  %v5703_v60 = vrot.slane %v13472_v22, 2  ;;  %v5704_v29 = vrot.slane %v5529_v24, 2 }
 0x9a2   :  { %v13499_v1 = vsel %vm4130_vm12, %v5703_v60, %v5704_v29 }
 0x9a3   :  { %5836 = vrot.lane.b32.xlu1 %v5597_v0, %s7814_s26  ;;  %v5608_v0 = vrot.slane %v5529_v24, 1  ;;  %v13558_v24 = vld [vmem:[#allocation2 + $0xf0] sm:$0xff] }
 0x9a4   :  { %5890 = vrot.lane.b32.xlu0 %v5693_v41, %s7816_s5 }
 0x9a7   :  { %6046 = vrot.lane.b32.xlu1 %v5690_v47, %s7819_s17  ;;  %v5609_v47 = vsel %vm379_vm0, %v5607_v31, %v5608_v0 }
 0x9a8   :  { %5640 = vrot.lane.b32.xlu0 %v5603_v30, %s7808_s15 }
 0x9ab   :  { %5838 = vrot.lane.b32.xlu1 %v5820_v51, %s7814_s26 }
 0x9ac   :  { %5892 = vrot.lane.b32.xlu0 %v5874_v63, %s7816_s5 }
 0x9ae   :  { %v13432_v25 = vpop.permute.xlu0 %5768 }
 0x9af   :  { %6048 = vrot.lane.b32.xlu1 %v5693_v41, %s7819_s17  ;;  %v6032_v41 = vrot.slane %v5520_v6, 2  ;;  %v6118_v39 = vsel %vm14933_vm7, %v6102_v34, %v13432_v25  ;;  %v5531_v25 = vld [vmem:[#allocation2 + $0xe8] sm:$0x3]  ;;  %vm14945_vm7 = vmmov %vm14938_vm11 }
 0x9b0   :  { %5736 = vrot.lane.b32.xlu0 %v5699_v37, %s7810_s24 }
 0x9b1   :  { %v13438_v49 = vpop.permute.xlu1 %5624  ;;  %v6034_v56 = vsel %vm4130_vm12, %v6032_v41, %v6033_v16  ;;  %v5706_v16 = vrot.slane %v13521_v23, 2 }
 0x9b2   :  { %v13440_v11 = vpop.permute.xlu0 %5824 }
 0x9b3   :  { %5734 = vrot.lane.b32.xlu1 %v5696_v33, %s7810_s24  ;;  %v6134_v44 = vsel %vm14934_vm9, %v6118_v39, %v13440_v11  ;;  %vm14946_vm9 = vmmov %vm14940_vm4 }
 0x9b4   :  { %5942 = vrot.lane.b32.xlu0 %v5520_v6, %s7817_s22 }
 0x9b5   :  { %v13444_v5 = vpop.permute.xlu1 %5720 }
 0x9b6   :  { %v13446_v2 = vpop.permute.xlu0 %5826 }
 0x9b7   :  { %5940 = vrot.lane.b32.xlu1 %v5518_v54, %s7817_s22 }
 0x9b8   :  { %5786 = vrot.lane.b32.xlu0 %v13449_v21, %s7812_s28 }
 0x9b9   :  { %v13453_v28 = vpop.permute.xlu1 %5770 }
 0x9ba   :  { %v13456_v53 = vpop.permute.xlu0 %5628 }
 0x9bb   :  { %5784 = vrot.lane.b32.xlu1 %v13414_v48, %s7812_s28 }
 0x9bc   :  { %5998 = vrot.lane.b32.xlu0 %v5980_v12, %s7818_s13 }
 0x9bd   :  { %v13462_v14 = vpop.permute.xlu1 %5626 }
 0x9be   :  { %v13464_v7 = vpop.permute.xlu0 %5880 }
 0x9bf   :  { %5996 = vrot.lane.b32.xlu1 %v5820_v51, %s7818_s13 }
 0x9c0   :  { %5642 = vrot.lane.b32.xlu0 %v13468_v59, %s7808_s15 }
 0x9c1   :  { %v5879_v17 = vpop.permute.xlu1 %5878 }
 0x9c2   :  { %v13474_v15 = vpop.permute.xlu0 %5724  ;;  %v6150_v50 = vsel %vm14935_vm6, %v6134_v44, %v5879_v17  ;;  %v5533_v17 = vld [vmem:[#allocation2 + $0xf8] sm:$0x3]  ;;  %vm14947_vm6 = vmmov %vm14939_vm13 }
 0x9c3   :  { %5840 = vrot.lane.b32.xlu1 %v5603_v30, %s7814_s26 }
 0x9c4   :  { %5894 = vrot.lane.b32.xlu0 %v5699_v37, %s7816_s5  ;;  %v6087_v37 = vsel %vm1205_vm3, %v13277_v10, %v13438_v49  ;;  %v5610_v10 = vrot.slane %v13521_v23, 1  ;;  %v5611_v49 = vrot.slane %v5531_v25, 1 }
 0x9c5   :  { %v13479_v35 = vpop.permute.xlu1 %5722  ;;  %v6103_v11 = vsel %vm1271_vm5, %v6087_v37, %v13444_v5 }
 0x9c6   :  { %v5931_v61 = vpop.permute.xlu0 %5930  ;;  %v6119_v27 = vsel %vm14939_vm13, %v6103_v11, %v13453_v28  ;;  %v13553_v62 = vsel %vm379_vm0, %v5610_v10, %v5611_v49  ;;  %vm14951_vm13 = vmmov %vm14944_vm2 }
 0x9c7   :  { %6050 = vrot.lane.b32.xlu1 %v5874_v63, %s7819_s17  ;;  %v6135_v5 = vsel %vm14941_vm14, %v6119_v27, %v13446_v2 }
 0x9c8   :  { %5644 = vrot.lane.b32.xlu0 %v5609_v47, %s7808_s15  ;;  %v6151_v28 = vsel %vm14942_vm15, %v6135_v5, %v13464_v7 }
 0x9c9   :  { %v5929_v54 = vpop.permute.xlu1 %5928  ;;  %v6167_v45 = vsel %vm14943_vm1, %v6151_v28, %v5931_v61  ;;  %v5614_v61 = vrot.slane %v5533_v17, 1  ;;  %v5537_v28 = vld [vmem:[#allocation2 + $0x118] sm:$0x3] }
 0x9ca   :  { %v13485_v18 = vpop.permute.xlu0 %5774  ;;  %v6166_v13 = vsel %vm14936_vm8, %v6150_v50, %v5929_v54  ;;  %v5707_v54 = vrot.slane %v5531_v25, 2  ;;  %vm14948_vm8 = vmmov %vm14941_vm14  ;;  %v6089_v25 = vsel %vm1205_vm3, %v13289_v26, %v13456_v53 }
 0x9cb   :  { %5842 = vrot.lane.b32.xlu1 %v13468_v59, %s7814_s26  ;;  %vm14953_vm14 = vmmov %vm14947_vm6 }
 0x9cc   :  { %5896 = vrot.lane.b32.xlu0 %v5702_v58, %s7816_s5  ;;  %v5708_v29 = vsel %vm4130_vm12, %v5706_v16, %v5707_v54 }
 0x9cd   :  { %v13493_v38 = vpop.permute.xlu1 %5772 }
 0x9ce   :  { %v5987_v55 = vpop.permute.xlu0 %5986 }
 0x9cf   :  { %6052 = vrot.lane.b32.xlu1 %v6034_v56, %s7819_s17  ;;  %v6183_v2 = vsel %vm14944_vm2, %v6167_v45, %v5987_v55  ;;  %v5709_v56 = vrot.slane %v13558_v24, 2  ;;  %v5710_v55 = vrot.slane %v5533_v17, 2 }
 0x9d0   :  { %5740 = vrot.lane.b32.xlu0 %v13499_v1, %s7810_s24 }
 0x9d1   :  { %v5985_v30 = vpop.permute.xlu1 %5984  ;;  %v13587_v32 = vsel %vm4130_vm12, %v5709_v56, %v5710_v55  ;;  %v5716_v55 = vrot.slane %v5537_v28, 2 }
 0x9d2   :  { %v13505_v51 = vpop.permute.xlu0 %5630  ;;  %v6182_v33 = vsel %vm14937_vm10, %v6166_v13, %v5985_v30  ;;  %v6088_v30 = vsel %vm1205_vm3, %v13282_v52, %v13462_v14  ;;  %vm14949_vm10 = vmmov %vm14942_vm15 }
 0x9d3   :  { %5738 = vrot.lane.b32.xlu1 %v5702_v58, %s7810_s24  ;;  %v6104_v39 = vsel %vm1271_vm5, %v6088_v30, %v13479_v35  ;;  %v13613_v35 = vld [vmem:[#allocation2 + $0x100] sm:$0xff]  ;;  %vm14954_vm15 = vmmov %vm14946_vm9 }
 0x9d4   :  { %5946 = vrot.lane.b32.xlu0 %v13472_v22, %s7817_s22  ;;  %v6120_v50 = vsel %vm14947_vm6, %v6104_v39, %v13493_v38  ;;  %v5616_v26 = vrot.slane %v13613_v35, 1  ;;  %vm14956_vm2 = vmmov %vm14949_vm10 }
 0x9d5   :  { %v13512_v63 = vpop.permute.xlu1 %5828 }
 0x9d6   :  { %v13516_v9 = vpop.permute.xlu0 %5882 }
 0x9d7   :  { %5944 = vrot.lane.b32.xlu1 %v13449_v21, %s7817_s22 }
 0x9d8   :  { %5790 = vrot.lane.b32.xlu0 %v13521_v23, %s7812_s28 }
 0x9d9   :  { %v6039_v6 = vpop.permute.xlu1 %6038 }
 0x9da   :  { %v6198_v46 = vsel %vm14938_vm11, %v6182_v33, %v6039_v6  ;;  %v13533_v40 = vpop.permute.xlu0 %5632  ;;  %vm14950_vm11 = vmmov %vm14943_vm1 }
 0x9db   :  { %5788 = vrot.lane.b32.xlu1 %v13472_v22, %s7812_s28  ;;  %7460 = vmatprep.mubr.msk.f32.mxu1 %vm14940_vm4, %v6198_v46  ;;  %vm14952_vm4 = vmmov %vm14945_vm7 }
 0x9dc   :  { %6002 = vrot.lane.b32.xlu0 %v5609_v47, %s7818_s13  ;;  %vm14955_vm1 = vmmov %vm14948_vm8 }
 0x9dd   :  { %v13542_v57 = vpop.permute.xlu1 %5830  ;;  %vm14959_vm6 = vmmov %vm14952_vm4 }
 0x9de   :  { %v13546_v12 = vpop.permute.xlu0 %5884 }
 0x9df   :  { %6000 = vrot.lane.b32.xlu1 %v13468_v59, %s7818_s13  ;;  %v5613_v59 = vrot.slane %v13558_v24, 1 }
 0x9e0   :  { %5646 = vrot.lane.b32.xlu0 %v13553_v62, %s7808_s15 }
 0x9e1   :  { %v6041_v31 = vpop.permute.xlu1 %6040  ;;  %v5615_v41 = vsel %vm379_vm0, %v5613_v59, %v5614_v61 }
 0x9e2   :  { %v6199_v0 = vsel %vm14945_vm7, %v6183_v2, %v6041_v31  ;;  %v13562_v7 = vpop.permute.xlu0 %5728  ;;  %vm14957_vm7 = vmmov %vm14950_vm11  ;;  %v5620_v31 = vrot.slane %v5537_v28, 1 }
 0x9e3   :  { %5844 = vrot.lane.b32.xlu1 %v5609_v47, %s7814_s26  ;;  %7461 = vmatmul.mubr.msk.f32.vlgmr.msra.gmra.mrb[32].mxu1 %vm14946_vm9, %v6199_v0  ;;  %vm14958_vm9 = vmmov %vm14951_vm13 }
 0x9e4   :  { %5898 = vrot.lane.b32.xlu0 %v13499_v1, %s7816_s5 }
 0x9e5   :  { %v13569_v19 = vpop.permute.xlu1 %5726 }
 0x9e6   :  { %v5935_v36 = vpop.permute.xlu0 %5934 }
 0x9e7   :  { %6054 = vrot.lane.b32.xlu1 %v5702_v58, %s7819_s17 }
 0x9e8   :  { %5648 = vrot.lane.b32.xlu0 %v5615_v41, %s7808_s15 }
 0x9e9   :  { %v5933_v47 = vpop.permute.xlu1 %5932 }
 0x9ea   :  { %v13575_v60 = vpop.permute.xlu0 %5778 }
 0x9eb   :  { %5846 = vrot.lane.b32.xlu1 %v13553_v62, %s7814_s26 }
 0x9ec   :  { %5900 = vrot.lane.b32.xlu0 %v5708_v29, %s7816_s5 }
 0x9ed   :  { %v13582_v58 = vpop.permute.xlu1 %5776 }
 0x9ee   :  { %v5991_v3 = vpop.permute.xlu0 %5990 }
 0x9ef   :  { %6056 = vrot.lane.b32.xlu1 %v13499_v1, %s7819_s17  ;;  %v6136_v1 = vsel %vm14948_vm8, %v6120_v50, %v13512_v63  ;;  %v5535_v63 = vld [vmem:[#allocation2 + $0x108] sm:$0x3]  ;;  %vm14960_vm8 = vmmov %vm14954_vm15 }
 0x9f0   :  { %5744 = vrot.lane.b32.xlu0 %v13587_v32, %s7810_s24  ;;  %v6152_v14 = vsel %vm14949_vm10, %v6136_v1, %v13516_v9  ;;  %v6105_v9 = vsel %vm1271_vm5, %v6089_v25, %v13474_v15  ;;  %v5617_v53 = vrot.slane %v5535_v63, 1  ;;  %v5713_v16 = vrot.slane %v5535_v63, 2  ;;  %vm14961_vm10 = vmmov %vm14953_vm14 }
 0x9f1   :  { %v5989_v34 = vpop.permute.xlu1 %5988  ;;  %v6168_v38 = vsel %vm14950_vm11, %v6152_v14, %v5933_v47  ;;  %v6121_v46 = vsel %vm14953_vm14, %v6105_v9, %v13485_v18  ;;  %vm14962_vm11 = vmmov %vm14955_vm1 }
 0x9f2   :  { %v13596_v44 = vpop.permute.xlu0 %5634  ;;  %v6184_v37 = vsel %vm14951_vm13, %v6168_v38, %v5989_v34  ;;  %v6137_v27 = vsel %vm14955_vm1, %v6121_v46, %v13542_v57  ;;  %v13645_v49 = vsel %vm379_vm0, %v5616_v26, %v5617_v53  ;;  %v13650_v57 = vld [vmem:[#allocation2 + $0x110] sm:$0xff]  ;;  %v6090_v34 = vsel %vm1205_vm3, %v13325_v20, %v13505_v51  ;;  %vm14963_vm13 = vmmov %vm14956_vm2  ;;  %v5538_v51 = vld [vmem:[#allocation2 + $0x120] sm:$0xff] }
 0x9f3   :  { %5742 = vrot.lane.b32.xlu1 %v5708_v29, %s7810_s24  ;;  %v6153_v18 = vsel %vm14956_vm2, %v6137_v27, %v13546_v12  ;;  %v5715_v56 = vrot.slane %v13650_v57, 2  ;;  %v6106_v50 = vsel %vm1271_vm5, %v6090_v34, %v13569_v19  ;;  %vm14965_vm14 = vmmov %vm14958_vm9  ;;  %v5821_v46 = vrot.slane %v5538_v51, 1 }
 0x9f4   :  { %5950 = vrot.lane.b32.xlu0 %v13558_v24, %s7817_s22  ;;  %v6169_v5 = vsel %vm14957_vm7, %v6153_v18, %v5935_v36  ;;  %v5712_v36 = vrot.slane %v13613_v35, 2  ;;  %v6122_v14 = vsel %vm14961_vm10, %v6106_v50, %v13582_v58  ;;  %v5539_v58 = vld [vmem:[#allocation2 + $0x128] sm:$0x3]  ;;  %vm14967_vm1 = vmmov %vm14961_vm10 }
 0x9f5   :  { %v13605_v13 = vpop.permute.xlu1 %5832  ;;  %v6185_v45 = vsel %vm14958_vm9, %v6169_v5, %v5991_v3  ;;  %v5717_v30 = vsel %vm4130_vm12, %v5715_v56, %v5716_v55  ;;  %vm14968_vm2 = vmmov %vm14960_vm8  ;;  %v6092_v56 = vsel %vm1205_vm3, %v13372_v4, %v13596_v44 }
 0x9f6   :  { %v13607_v52 = vpop.permute.xlu0 %5886  ;;  %v5714_v47 = vsel %vm4130_vm12, %v5712_v36, %v5713_v16  ;;  %vm14970_vm9 = vmmov %vm14963_vm13 }
 0x9f7   :  { %5948 = vrot.lane.b32.xlu1 %v13521_v23, %s7817_s22 }
 0x9f8   :  { %5794 = vrot.lane.b32.xlu0 %v13613_v35, %s7812_s28 }
 0x9f9   :  { %v6043_v33 = vpop.permute.xlu1 %6042 }
 0x9fa   :  { %v6200_v6 = vsel %vm14952_vm4, %v6184_v37, %v6043_v33  ;;  %v13625_v11 = vpop.permute.xlu0 %5636  ;;  %vm14964_vm4 = vmmov %vm14957_vm7 }
 0x9fb   :  { %5792 = vrot.lane.b32.xlu1 %v13558_v24, %s7812_s28  ;;  %7463 = vmatprep.mubr.msk.f32.mxu1 %vm14954_vm15, %v6200_v6  ;;  %vm14966_vm15 = vmmov %vm14959_vm6 }
 0x9fc   :  { %6006 = vrot.lane.b32.xlu0 %v5615_v41, %s7818_s13  ;;  %vm14969_vm7 = vmmov %vm14962_vm11 }
 0x9fd   :  { %v13636_v15 = vpop.permute.xlu1 %5834  ;;  %vm14973_vm10 = vmmov %vm14966_vm15 }
 0x9fe   :  { %v13638_v10 = vpop.permute.xlu0 %5888 }
 0x9ff   :  { %6004 = vrot.lane.b32.xlu1 %v13553_v62, %s7818_s13  ;;  %v5619_v62 = vrot.slane %v13650_v57, 1 }
 0xa00   :  { %5650 = vrot.lane.b32.xlu0 %v13645_v49, %s7808_s15 }
 0xa01   :  { %v6045_v17 = vpop.permute.xlu1 %6044  ;;  %v5621_v61 = vsel %vm379_vm0, %v5619_v62, %v5620_v31  ;;  %v5876_v62 = vrot.slane %v5539_v58, 2 }
 0xa02   :  { %v6201_v2 = vsel %vm14959_vm6, %v6185_v45, %v6045_v17  ;;  %v13654_v12 = vpop.permute.xlu0 %5732  ;;  %vm14971_vm6 = vmmov %vm14964_vm4  ;;  %v5875_v17 = vrot.slane %v5538_v51, 2 }
 0xa03   :  { %5848 = vrot.lane.b32.xlu1 %v5615_v41, %s7814_s26  ;;  %7464 = vmatmul.mubr.msk.f32.gmra.mrb[34].mxu1 %vm14960_vm8, %v6201_v2  ;;  %vm14972_vm8 = vmmov %vm14965_vm14 }
 0xa04   :  { %5902 = vrot.lane.b32.xlu0 %v13587_v32, %s7816_s5  ;;  %v5877_v16 = vsel %vm4130_vm12, %v5875_v17, %v5876_v62 }
 0xa05   :  { %v13661_v0 = vpop.permute.xlu1 %5730 }
 0xa06   :  { %v5939_v59 = vpop.permute.xlu0 %5938 }
 0xa07   :  { %6058 = vrot.lane.b32.xlu1 %v5708_v29, %s7819_s17 }
 0xa08   :  { %5652 = vrot.lane.b32.xlu0 %v5621_v61, %s7808_s15 }
 0xa09   :  { %v5937_v41 = vpop.permute.xlu1 %5936 }
 0xa0a   :  { %v13667_v54 = vpop.permute.xlu0 %5782 }
 0xa0b   :  { %5850 = vrot.lane.b32.xlu1 %v13645_v49, %s7814_s26 }
 0xa0c   :  { %5904 = vrot.lane.b32.xlu0 %v5714_v47, %s7816_s5 }
 0xa0d   :  { %v13674_v29 = vpop.permute.xlu1 %5780 }
 0xa0e   :  { %v5995_v3 = vpop.permute.xlu0 %5994 }
 0xa0f   :  { %6060 = vrot.lane.b32.xlu1 %v13587_v32, %s7819_s17  ;;  %v6138_v32 = vsel %vm14962_vm11, %v6122_v14, %v13605_v13  ;;  %v6091_v13 = vsel %vm1205_vm3, %v13348_v43, %v13533_v40  ;;  %v5822_v43 = vrot.slane %v5539_v58, 1  ;;  %vm14974_vm11 = vmmov %vm14968_vm2 }
 0xa10   :  { %5748 = vrot.lane.b32.xlu0 %v5717_v30, %s7810_s24  ;;  %v6154_v20 = vsel %vm14963_vm13, %v6138_v32, %v13607_v52  ;;  %v6107_v33 = vsel %vm1271_vm5, %v6091_v13, %v13562_v7  ;;  %vm14975_vm13 = vmmov %vm14967_vm1 }
 0xa11   :  { %v5993_v39 = vpop.permute.xlu1 %5992  ;;  %v6170_v19 = vsel %vm14964_vm4, %v6154_v20, %v5937_v41  ;;  %v6123_v6 = vsel %vm14967_vm1, %v6107_v33, %v13575_v60  ;;  %v5823_v60 = vsel %vm379_vm0, %v5821_v46, %v5822_v43  ;;  %vm14976_vm4 = vmmov %vm14969_vm7 }
 0xa12   :  { %v13685_v1 = vpop.permute.xlu0 %5638  ;;  %v6186_v25 = vsel %vm14965_vm14, %v6170_v19, %v5993_v39  ;;  %v6139_v40 = vsel %vm14969_vm7, %v6123_v6, %v13636_v15  ;;  %vm14977_vm14 = vmmov %vm14970_vm9 }
 0xa13   :  { %5746 = vrot.lane.b32.xlu1 %v5714_v47, %s7810_s24  ;;  %v6155_v53 = vsel %vm14970_vm9, %v6139_v40, %v13638_v10  ;;  %vm14979_vm1 = vmmov %vm14972_vm8 }
 0xa14   :  { %5954 = vrot.lane.b32.xlu0 %v13650_v57, %s7817_s22  ;;  %v6171_v27 = vsel %vm14971_vm6, %v6155_v53, %v5939_v59  ;;  %v5540_v59 = vld [vmem:[#allocation2 + $0x130] sm:$0xff]  ;;  %vm14983_vm7 = vmmov %vm14976_vm4 }
 0xa15   :  { %v5837_v38 = vpop.permute.xlu1 %5836  ;;  %v6187_v18 = vsel %vm14972_vm8, %v6171_v27, %v5995_v3  ;;  %v5981_v41 = vrot.slane %v5540_v59, 1  ;;  %v6108_v3 = vsel %vm1271_vm5, %v6092_v56, %v13661_v0  ;;  %v6035_v50 = vrot.slane %v5540_v59, 2  ;;  %vm14984_vm8 = vmmov %vm14979_vm1 }
 0xa16   :  { %v13694_v63 = vpop.permute.xlu0 %5890  ;;  %v6124_v34 = vsel %vm14975_vm13, %v6108_v3, %v13674_v29  ;;  %v6093_v29 = vsel %vm1205_vm3, %v13383_v8, %v13625_v11 }
 0xa17   :  { %5952 = vrot.lane.b32.xlu1 %v13613_v35, %s7817_s22  ;;  %v6140_v39 = vsel %vm14976_vm4, %v6124_v34, %v5837_v38  ;;  %v6109_v58 = vsel %vm1271_vm5, %v6093_v29, %v13654_v12 }
 0xa18   :  { %5798 = vrot.lane.b32.xlu0 %v5538_v51, %s7812_s28  ;;  %v6156_v4 = vsel %vm14977_vm14, %v6140_v39, %v13694_v63  ;;  %vm14987_vm14 = vmmov %vm14970_vm9 }
 0xa19   :  { %v6047_v37 = vpop.permute.xlu1 %6046 }
 0xa1a   :  { %v6202_v52 = vsel %vm14966_vm15, %v6186_v25, %v6047_v37  ;;  %v13709_v9 = vpop.permute.xlu0 %5640  ;;  %vm14978_vm15 = vmmov %vm14971_vm6 }
 0xa1b   :  { %5796 = vrot.lane.b32.xlu1 %v13650_v57, %s7812_s28  ;;  %7466 = vmatprep.mubr.msk.f32.mxu1 %vm14968_vm2, %v6202_v52  ;;  %vm14981_vm2 = vmmov %vm14975_vm13 }
 0xa1c   :  { %6010 = vrot.lane.b32.xlu0 %v5621_v61, %s7818_s13  ;;  %v6125_v63 = vsel %vm14981_vm2, %v6109_v58, %v13667_v54  ;;  %vm14986_vm13 = vmmov %vm14981_vm2 }
 0xa1d   :  { %v5839_v7 = vpop.permute.xlu1 %5838 }
 0xa1e   :  { %v5893_v26 = vpop.permute.xlu0 %5892  ;;  %v6141_v37 = vsel %vm14983_vm7, %v6125_v63, %v5839_v7  ;;  %vm14990_vm7 = vmmov %vm14976_vm4 }
 0xa1f   :  { %6008 = vrot.lane.b32.xlu1 %v13645_v49, %s7818_s13  ;;  %v6157_v33 = vsel %vm14970_vm9, %v6141_v37, %v5893_v26  ;;  %v6094_v26 = vsel %vm1205_vm3, %v13402_v42, %v13685_v1  ;;  %v6095_v42 = vsel %vm1205_vm3, %v13414_v48, %v13709_v9 }
 0xa20   :  { %5854 = vrot.lane.b32.xlu0 %v5823_v60, %s7814_s26 }
 0xa21   :  { %v6049_v5 = vpop.permute.xlu1 %6048 }
 0xa22   :  { %v6203_v15 = vsel %vm14973_vm10, %v6187_v18, %v6049_v5  ;;  %v13728_v28 = vpop.permute.xlu0 %5736 }
 0xa23   :  { %5852 = vrot.lane.b32.xlu1 %v5621_v61, %s7814_s26  ;;  %7467 = vmatmul.mubr.msk.f32.gmra.mrb[36].mxu1 %vm14974_vm11, %v6203_v15  ;;  %v5541_v61 = vld [vmem:[#allocation2 + $0x138] sm:$0x3] }
 0xa24   :  { %6064 = vrot.lane.b32.xlu0 %v5717_v30, %s7819_s17  ;;  %v6036_v32 = vrot.slane %v5541_v61, 2 }
 0xa25   :  { %v13733_v10 = vpop.permute.xlu1 %5734 }
 0xa26   :  { %v5943_v49 = vpop.permute.xlu0 %5942  ;;  %v6037_v0 = vsel %vm4130_vm12, %v6035_v50, %v6036_v32  ;;  %vm14982_vm12 = vmmov %vm14974_vm11  ;;  %v6110_v5 = vsel %vm1271_vm5, %v6094_v26, %v13733_v10  ;;  %v6111_v10 = vsel %vm1271_vm5, %v6095_v42, %v13728_v28 }
 0xa27   :  { %6062 = vrot.lane.b32.xlu1 %v5714_v47, %s7819_s17  ;;  %v5982_v47 = vrot.slane %v5541_v61, 1  ;;  %v6173_v52 = vsel %vm14971_vm6, %v6157_v33, %v5943_v49 }
 0xa28   :  { %5956 = vrot.lane.b32.xlu0 %v5538_v51, %s7817_s22 }
 0xa29   :  { %v5941_v45 = vpop.permute.xlu1 %5940  ;;  %v5983_v14 = vsel %vm379_vm0, %v5981_v41, %v5982_v47  ;;  %vm14980_vm0 = vmmov %vm14973_vm10 }
 0xa2a   :  { %v13737_v2 = vpop.permute.xlu0 %5786  ;;  %v6172_v44 = vsel %vm14978_vm15, %v6156_v4, %v5941_v45  ;;  %vm14985_vm10 = vmmov %vm14980_vm0 }
 0xa2b   :  { %5906 = vrot.lane.b32.xlu1 %v5717_v30, %s7816_s5  ;;  %vm14988_vm15 = vmmov %vm14971_vm6  ;;  %v6127_v41 = vsel %vm14981_vm2, %v6111_v10, %v13737_v2 }
 0xa2c   :  { %6012 = vrot.lane.b32.xlu0 %v5823_v60, %s7818_s13 }
 0xa2d   :  { %v5785_v31 = vpop.permute.xlu1 %5784 }
 0xa2e   :  { %v5999_v36 = vpop.permute.xlu0 %5998  ;;  %v6126_v49 = vsel %vm14986_vm13, %v6110_v5, %v5785_v31  ;;  %vm14993_vm13 = vmmov %vm14981_vm2 }
 0xa2f   :  { %5908 = vrot.lane.b32.xlu1 %v5877_v16, %s7816_s5  ;;  %v6189_v12 = vsel %vm14984_vm8, %v6173_v52, %v5999_v36  ;;  %vm14991_vm8 = vmmov %vm14979_vm1 }
 0xa30   :  { %6066 = vrot.lane.b32.xlu0 %v5877_v16, %s7819_s17 }
 0xa31   :  { %v5997_v55 = vpop.permute.xlu1 %5996 }
 0xa32   :  { %v13749_v30 = vpop.permute.xlu0 %5642  ;;  %v6188_v38 = vsel %vm14979_vm1, %v6172_v44, %v5997_v55 }
 0xa33   :  { %5958 = vrot.lane.b32.xlu1 %v5540_v59, %s7817_s22  ;;  %v6096_v4 = vsel %vm1205_vm3, %v13449_v21, %v13749_v30 }
 0xa35   :  { %v5841_v20 = vpop.permute.xlu1 %5840 }
 0xa36   :  { %v5895_v51 = vpop.permute.xlu0 %5894  ;;  %v6142_v45 = vsel %vm14976_vm4, %v6126_v49, %v5841_v20 }
 0xa37   :  { %6014 = vrot.lane.b32.xlu1 %v5983_v14, %s7818_s13  ;;  %v6158_v59 = vsel %vm14987_vm14, %v6142_v45, %v5895_v51  ;;  %vm14994_vm14 = vmmov %vm14970_vm9 }
 0xa39   :  { %v6051_v19 = vpop.permute.xlu1 %6050 }
 0xa3a   :  { %v6204_v13 = vsel %vm14980_vm0, %v6188_v38, %v6051_v19  ;;  %v13768_v25 = vpop.permute.xlu0 %5644 }
 0xa3b   :  { %6068 = vrot.lane.b32.xlu1 %v6037_v0, %s7819_s17  ;;  %7469 = vmatprep.mubr.msk.f32.mxu1 %vm14982_vm12, %v6204_v13  ;;  %vm14989_vm12 = vmmov %vm14974_vm11 }
 0xa3d   :  { %v5843_v8 = vpop.permute.xlu1 %5842 }
 0xa3e   :  { %v5897_v11 = vpop.permute.xlu0 %5896  ;;  %v6143_v47 = vsel %vm14990_vm7, %v6127_v41, %v5843_v8  ;;  %v6097_v8 = vsel %vm1205_vm3, %v13472_v22, %v13768_v25  ;;  %vm14997_vm7 = vmmov %vm14976_vm4 }
 0xa3f   :  { %v6159_v48 = vsel %vm14970_vm9, %v6143_v47, %v5897_v11 }
 0xa41   :  { %v6053_v6 = vpop.permute.xlu1 %6052 }
 0xa42   :  { %v6205_v46 = vsel %vm14985_vm10, %v6189_v12, %v6053_v6  ;;  %v5741_v43 = vpop.permute.xlu0 %5740  ;;  %vm14992_vm10 = vmmov %vm14980_vm0 }
 0xa43   :  { %7470 = vmatmul.mubr.msk.f32.gmra.mrb[38].mxu1 %vm14974_vm11, %v6205_v46  ;;  %v6113_v11 = vsel %vm1271_vm5, %v6097_v8, %v5741_v43 }
 0xa45   :  { %v5739_v54 = vpop.permute.xlu1 %5738 }
 0xa46   :  { %v5947_v40 = vpop.permute.xlu0 %5946  ;;  %v6112_v0 = vsel %vm1271_vm5, %v6096_v4, %v5739_v54 }
 0xa47   :  { %v6175_v9 = vsel %vm14971_vm6, %v6159_v48, %v5947_v40 }
 0xa49   :  { %v5945_v53 = vpop.permute.xlu1 %5944 }
 0xa4a   :  { %v5791_v60 = vpop.permute.xlu0 %5790  ;;  %v6174_v61 = vsel %vm14988_vm15, %v6158_v59, %v5945_v53  ;;  %vm14995_vm15 = vmmov %vm14971_vm6 }
 0xa4b   :  { %v6129_v12 = vsel %vm14981_vm2, %v6113_v11, %v5791_v60 }
 0xa4d   :  { %v5789_v27 = vpop.permute.xlu1 %5788 }
 0xa4e   :  { %v6003_v7 = vpop.permute.xlu0 %6002  ;;  %v6128_v38 = vsel %vm14993_vm13, %v6112_v0, %v5789_v27  ;;  %vm15000_vm13 = vmmov %vm14981_vm2 }
 0xa4f   :  { %v6191_v3 = vsel %vm14991_vm8, %v6175_v9, %v6003_v7  ;;  %vm14998_vm8 = vmmov %vm14979_vm1 }
 0xa51   :  { %v6001_v18 = vpop.permute.xlu1 %6000 }
 0xa52   :  { %v13785_v15 = vpop.permute.xlu0 %5646  ;;  %v6190_v1 = vsel %vm14979_vm1, %v6174_v61, %v6001_v18 }
 0xa53   :  { %v6098_v45 = vsel %vm1205_vm3, %v13521_v23, %v13785_v15 }
 0xa55   :  { %v5845_v17 = vpop.permute.xlu1 %5844 }
 0xa56   :  { %v5899_v62 = vpop.permute.xlu0 %5898  ;;  %v6144_v19 = vsel %vm14976_vm4, %v6128_v38, %v5845_v17  ;;  %vm15001_vm4 = vmmov %vm14981_vm2 }
 0xa57   :  { %v6160_v63 = vsel %vm14994_vm14, %v6144_v19, %v5899_v62  ;;  %vm15002_vm14 = vmmov %vm14997_vm7 }
 0xa58   :  { %vm15006_vm2 = vmmov %vm14971_vm6 }
 0xa59   :  { %v6055_v36 = vpop.permute.xlu1 %6054 }
 0xa5a   :  { %v6206_v31 = vsel %vm14980_vm0, %v6190_v1, %v6055_v36  ;;  %v5649_v16 = vpop.permute.xlu0 %5648 }
 0xa5b   :  { %7472 = vmatprep.mubr.msk.f32.mxu1 %vm14989_vm12, %v6206_v31  ;;  %vm14996_vm12 = vmmov %vm14974_vm11  ;;  %v6099_v62 = vsel %vm1205_vm3, %v13558_v24, %v5649_v16 }
 0xa5d   :  { %v5847_v56 = vpop.permute.xlu1 %5846 }
 0xa5e   :  { %v5901_v55 = vpop.permute.xlu0 %5900  ;;  %v6145_v6 = vsel %vm14997_vm7, %v6129_v12, %v5847_v56 }
 0xa5f   :  { %v6161_v40 = vsel %vm14970_vm9, %v6145_v6, %v5901_v55 }
 0xa61   :  { %v6057_v34 = vpop.permute.xlu1 %6056 }
 0xa62   :  { %v6207_v28 = vsel %vm14992_vm10, %v6191_v3, %v6057_v34  ;;  %v5745_v39 = vpop.permute.xlu0 %5744  ;;  %vm14999_vm10 = vmmov %vm14980_vm0 }
 0xa63   :  { %7473 = vmatmul.mubr.msk.f32.gmra.mrb[40].mxu1 %vm14974_vm11, %v6207_v28  ;;  %v6115_v42 = vsel %vm1271_vm5, %v6099_v62, %v5745_v39 }
 0xa65   :  { %v5743_v50 = vpop.permute.xlu1 %5742 }
 0xa66   :  { %v5951_v2 = vpop.permute.xlu0 %5950  ;;  %v6114_v59 = vsel %vm1271_vm5, %v6098_v45, %v5743_v50 }
 0xa67   :  { %v6177_v22 = vsel %vm14971_vm6, %v6161_v40, %v5951_v2  ;;  %vm15010_vm6 = vmmov %vm14999_vm10 }
 0xa69   :  { %v5949_v14 = vpop.permute.xlu1 %5948 }
 0xa6a   :  { %v5795_v32 = vpop.permute.xlu0 %5794  ;;  %v6176_v37 = vsel %vm14995_vm15, %v6160_v63, %v5949_v14  ;;  %vm15003_vm15 = vmmov %vm14997_vm7 }
 0xa6b   :  { %v6131_v36 = vsel %vm15001_vm4, %v6115_v42, %v5795_v32  ;;  %vm15008_vm7 = vmmov %vm14998_vm8 }
 0xa6d   :  { %v5793_v20 = vpop.permute.xlu1 %5792 }
 0xa6e   :  { %v6007_v51 = vpop.permute.xlu0 %6006  ;;  %v6130_v1 = vsel %vm15000_vm13, %v6114_v59, %v5793_v20 }
 0xa6f   :  { %v6193_v25 = vsel %vm14998_vm8, %v6177_v22, %v6007_v51  ;;  %vm15011_vm8 = vmmov %vm15010_vm6 }
 0xa71   :  { %v6005_v44 = vpop.permute.xlu1 %6004 }
 0xa72   :  { %v5651_v29 = vpop.permute.xlu0 %5650  ;;  %v6192_v21 = vsel %vm14979_vm1, %v6176_v37, %v6005_v44  ;;  %vm15004_vm1 = vmmov %vm14970_vm9 }
 0xa73   :  { %v6100_v48 = vsel %vm1205_vm3, %v13613_v35, %v5651_v29  ;;  %vm15009_vm9 = vmmov %vm15008_vm7 }
 0xa75   :  { %v5849_v58 = vpop.permute.xlu1 %5848 }
 0xa76   :  { %v5903_v13 = vpop.permute.xlu0 %5902  ;;  %v6146_v10 = vsel %vm15002_vm14, %v6130_v1, %v5849_v58 }
 0xa77   :  { %v6162_v23 = vsel %vm15004_vm1, %v6146_v10, %v5903_v13 }
 0xa79   :  { %v6059_v30 = vpop.permute.xlu1 %6058 }
 0xa7a   :  { %v6208_v33 = vsel %vm14980_vm0, %v6192_v21, %v6059_v30  ;;  %v5653_v52 = vpop.permute.xlu0 %5652  ;;  %vm15005_vm0 = vmmov %vm15004_vm1 }
 0xa7b   :  { %7475 = vmatprep.mubr.msk.f32.mxu1 %vm14996_vm12, %v6208_v33  ;;  %vm15007_vm12 = vmmov %vm15006_vm2  ;;  %v6101_v38 = vsel %vm1205_vm3, %v13650_v57, %v5653_v52 }
 0xa7c   :  { %vm15018_vm1 = vmmov %vm15008_vm7 }
 0xa7d   :  { %v5851_v46 = vpop.permute.xlu1 %5850 }
 0xa7e   :  { %v5905_v54 = vpop.permute.xlu0 %5904  ;;  %v6147_v31 = vsel %vm15003_vm15, %v6131_v36, %v5851_v46  ;;  %vm15017_vm15 = vmmov %vm15006_vm2 }
 0xa7f   :  { %v6163_v15 = vsel %vm15005_vm0, %v6147_v31, %v5905_v54 }
 0xa81   :  { %v6061_v53 = vpop.permute.xlu1 %6060 }
 0xa82   :  { %v6209_v43 = vsel %vm14999_vm10, %v6193_v25, %v6061_v53  ;;  %v5749_v27 = vpop.permute.xlu0 %5748  ;;  %vm15012_vm10 = vmmov %vm14974_vm11 }
 0xa83   :  { %7476 = vmatmul.mubr.msk.f32.gmra.mrb[42].mxu1 %vm14974_vm11, %v6209_v43  ;;  %vm15013_vm11 = vmmov %vm15001_vm4  ;;  %v6117_v19 = vsel %vm1271_vm5, %v6101_v38, %v5749_v27 }
 0xa84   :  { %vm15014_vm13 = vmmov %vm15012_vm10 }
 0xa85   :  { %v5747_v7 = vpop.permute.xlu1 %5746  ;;  %vm15015_vm4 = vmmov %vm15002_vm14 }
 0xa86   :  { %v5955_v60 = vpop.permute.xlu0 %5954  ;;  %v6116_v28 = vsel %vm1271_vm5, %v6100_v48, %v5747_v7  ;;  %vm15016_vm14 = vmmov %vm15005_vm0 }
 0xa87   :  { %v6179_v16 = vsel %vm15007_vm12, %v6163_v15, %v5955_v60  ;;  %vm15019_vm0 = vmmov %vm15010_vm6 }
 0xa88   :  { %vm15021_vm12 = vmmov %vm15013_vm11 }
 0xa89   :  { %v5953_v26 = vpop.permute.xlu1 %5952 }
 0xa8a   :  { %v5799_v18 = vpop.permute.xlu0 %5798  ;;  %v6178_v24 = vsel %vm15006_vm2, %v6162_v23, %v5953_v26  ;;  %vm15020_vm2 = vmmov %vm15012_vm10 }
 0xa8b   :  { %v6133_v58 = vsel %vm15021_vm12, %v6117_v19, %v5799_v18 }
 0xa8d   :  { %v5797_v5 = vpop.permute.xlu1 %5796 }
 0xa8e   :  { %v6011_v49 = vpop.permute.xlu0 %6010  ;;  %v6132_v50 = vsel %vm15013_vm11, %v6116_v28, %v5797_v5  ;;  %vm15027_vm11 = vmmov %vm15020_vm2 }
 0xa8f   :  { %v6195_v9 = vsel %vm15009_vm9, %v6179_v16, %v6011_v49  ;;  %vm15023_vm9 = vmmov %vm15016_vm14 }
 0xa91   :  { %v6009_v17 = vpop.permute.xlu1 %6008 }
 0xa92   :  { %v5855_v61 = vpop.permute.xlu0 %5854  ;;  %v6194_v56 = vsel %vm15008_vm7, %v6178_v24, %v6009_v17  ;;  %vm15022_vm7 = vmmov %vm15015_vm4 }
 0xa93   :  { %v6149_v63 = vsel %vm15022_vm7, %v6133_v58, %v5855_v61 }
 0xa95   :  { %v5853_v41 = vpop.permute.xlu1 %5852 }
 0xa96   :  { %v6065_v47 = vpop.permute.xlu0 %6064  ;;  %v6148_v2 = vsel %vm15015_vm4, %v6132_v50, %v5853_v41 }
 0xa97   :  { %v6211_v39 = vsel %vm15011_vm8, %v6195_v9, %v6065_v47  ;;  %vm15025_vm8 = vmmov %vm15018_vm1 }
 0xa99   :  { %v6063_v55 = vpop.permute.xlu1 %6062 }
 0xa9a   :  { %v6210_v3 = vsel %vm15010_vm6, %v6194_v56, %v6063_v55  ;;  %v5957_v34 = vpop.permute.xlu0 %5956  ;;  %vm15024_vm6 = vmmov %vm15017_vm15 }
 0xa9b   :  { %7478 = vmatprep.mubr.msk.f32.mxu1 %vm15012_vm10, %v6210_v3  ;;  %vm15026_vm10 = vmmov %vm15019_vm0 }
 0xa9c   :  { %7479 = vmatmul.mubr.msk.f32.gmra.mrb[44].mxu1 %vm15014_vm13, %v6211_v39 }
 0xa9d   :  { %v5907_v14 = vpop.permute.xlu1 %5906 }
 0xa9e   :  { %v6164_v35 = vsel %vm15016_vm14, %v6148_v2, %v5907_v14  ;;  %v6013_v32 = vpop.permute.xlu0 %6012 }
 0xa9f   :  { %v6180_v20 = vsel %vm15017_vm15, %v6164_v35, %v5957_v34 }
 0xaa0   :  { %v6196_v4 = vsel %vm15018_vm1, %v6180_v20, %v6013_v32 }
 0xaa1   :  { %v5909_v51 = vpop.permute.xlu1 %5908 }
 0xaa2   :  { %v6067_v44 = vpop.permute.xlu0 %6066  ;;  %v6165_v37 = vsel %vm15023_vm9, %v6149_v63, %v5909_v51 }
 0xaa3   :  { %v6212_v0 = vsel %vm15019_vm0, %v6196_v4, %v6067_v44 }
 0xaa4   :  { %7481 = vmatprep.mubr.msk.f32.mxu1 %vm15020_vm2, %v6212_v0 }
 0xaa5   :  { %v5959_v29 = vpop.permute.xlu1 %5958 }
 0xaa6   :  { %v6181_v8 = vsel %vm15024_vm6, %v6165_v37, %v5959_v29 }
 0xaa9   :  { %v6015_v13 = vpop.permute.xlu1 %6014 }
 0xaaa   :  { %v6197_v21 = vsel %vm15025_vm8, %v6181_v8, %v6015_v13 }
 0xaad   :  { %v6069_v30 = vpop.permute.xlu1 %6068 }
 0xaae   :  { %v6213_v11 = vsel %vm15026_vm10, %v6197_v21, %v6069_v30 }
 0xaaf   :  { %7482 = vmatmul.mubr.msk.f32.gmra.mrb[46].mxu1 %vm15027_vm11, %v6213_v11 }
 0xab6   :  { %v7462_v33 = vpop.f32.mrb[32].mxu1 }
 0xab7   :  { %v6417_v57 = vsel %vm1205_vm3, %v7462_v33, 0.0  ;;  %v6337_v52 = vpop.f32.mrb[33].mxu1 }
 0xab8   :  { %v6416_v12 = vsel %vm1205_vm3, %v6337_v52, 0.0 }
 0xab9   :  { %v6418_v6 = vadd.f32 %v6417_v57, %v6416_v12 }
 0xad6   :  { %v7465_v46 = vpop.f32.mrb[34].mxu1 }
 0xad7   :  { %v6347_v54 = vpop.f32.mrb[35].mxu1  ;;  %v6421_v25 = vsel %vm1205_vm3, %v7465_v46, 0.0 }
 0xad8   :  { %v6419_v40 = vsel %vm1205_vm3, %v6347_v54, 0.0 }
 0xad9   :  { %v6420_v22 = vadd.f32 %v6419_v40, %v6418_v6 }
 0xadb   :  { %v6422_v53 = vadd.f32 %v6421_v25, %v6420_v22 }
 0xaf6   :  { %v7468_v43 = vpop.f32.mrb[36].mxu1 }
 0xaf7   :  { %v6357_v27 = vpop.f32.mrb[37].mxu1  ;;  %v6425_v26 = vsel %vm1205_vm3, %v7468_v43, 0.0 }
 0xaf8   :  { %v6423_v7 = vsel %vm1205_vm3, %v6357_v27, 0.0 }
 0xaf9   :  { %v6424_v60 = vadd.f32 %v6423_v7, %v6422_v53 }
 0xafb   :  { %v6426_v18 = vadd.f32 %v6425_v26, %v6424_v60 }
 0xb16   :  { %v7471_v5 = vpop.f32.mrb[38].mxu1 }
 0xb17   :  { %v6367_v49 = vpop.f32.mrb[39].mxu1  ;;  %v6429_v62 = vsel %vm1205_vm3, %v7471_v5, 0.0 }
 0xb18   :  { %v6427_v45 = vsel %vm1205_vm3, %v6367_v49, 0.0 }
 0xb19   :  { %v6428_v17 = vadd.f32 %v6427_v45, %v6426_v18 }
 0xb1b   :  { %v6430_v59 = vadd.f32 %v6429_v62, %v6428_v17 }
 0xb36   :  { %v7474_v61 = vpop.f32.mrb[40].mxu1 }
 0xb37   :  { %v6377_v42 = vpop.f32.mrb[41].mxu1  ;;  %v6433_v10 = vsel %vm1205_vm3, %v7474_v61, 0.0 }
 0xb38   :  { %v6431_v1 = vsel %vm1205_vm3, %v6377_v42, 0.0 }
 0xb39   :  { %v6432_v36 = vadd.f32 %v6431_v1, %v6430_v59 }
 0xb3b   :  { %v6434_v31 = vadd.f32 %v6433_v10, %v6432_v36 }
 0xb56   :  { %v7477_v41 = vpop.f32.mrb[42].mxu1 }
 0xb57   :  { %v6387_v47 = vpop.f32.mrb[43].mxu1  ;;  %v6437_v24 = vsel %vm1205_vm3, %v7477_v41, 0.0 }
 0xb58   :  { %v6435_v23 = vsel %vm1205_vm3, %v6387_v47, 0.0 }
 0xb59   :  { %v6436_v15 = vadd.f32 %v6435_v23, %v6434_v31 }
 0xb5b   :  { %v6438_v16 = vadd.f32 %v6437_v24, %v6436_v15 }
 0xb6f   :  { %v7480_v56 = vpop.f32.mrb[44].mxu1 }
 0xb70   :  { %v6397_v55 = vpop.f32.mrb[45].mxu1  ;;  %v6441_v3 = vsel %vm1205_vm3, %v7480_v56, 0.0 }
 0xb71   :  { %v6439_v48 = vsel %vm1205_vm3, %v6397_v55, 0.0 }
 0xb72   :  { %v6440_v9 = vadd.f32 %v6439_v48, %v6438_v16 }
 0xb74   :  { %v6442_v34 = vadd.f32 %v6441_v3, %v6440_v9 }
 0xb82   :  { %v7483_v28 = vpop.f32.mrb[46].mxu1 }
 0xb83   :  { %v6407_v39 = vpop.f32.mrb[47].mxu1  ;;  %v6445_v14 = vsel %vm1205_vm3, %v7483_v28, 0.0 }
 0xb84   :  { %v6443_v50 = vsel %vm1205_vm3, %v6407_v39, 0.0 }
 0xb85   :  { %v6444_v2 = vadd.f32 %v6443_v50, %v6442_v34 }
 0xb87   :  { %v6446_v35 = vadd.f32 %v6445_v14, %v6444_v2 }
 0xb89   :  { %v6447_v32 = vrot.slane %v6446_v35, 4 }
 0xb8b   :  { %v6448_v20 = vadd.f32 %v6447_v32, %v6446_v35 }
 0xb8d   :  { %v6449_v51 = vrot.slane %v6448_v20, 2 }
 0xb8f   :  { %v6450_v4 = vadd.f32 %v6449_v51, %v6448_v20 }
 0xb91   :  { %v6451_v44 = vrot.slane %v6450_v4, 1 }
 0xb93   :  { %v6452_v0 = vadd.f32 %v6451_v44, %v6450_v4 }
 0xb95   :  { %v6453_v29 = vmul.f32 0.0078125, %v6452_v0 }
 0xb97   :  { %v13886_v38 = vsub.f32 %v6337_v52, %v6453_v29  ;;  %v13888_v19 = vsub.f32 %v7462_v33, %v6453_v29  ;;  %v13890_v58 = vsub.f32 %v6347_v54, %v6453_v29  ;;  %v13892_v13 = vsub.f32 %v7465_v46, %v6453_v29 }
 0xb98   :  { %v13894_v63 = vsub.f32 %v6357_v27, %v6453_v29  ;;  %v13896_v37 = vsub.f32 %v7468_v43, %v6453_v29  ;;  %v13898_v8 = vsub.f32 %v6367_v49, %v6453_v29  ;;  %v13900_v21 = vsub.f32 %v7471_v5, %v6453_v29 }
 0xb99   :  { %v13902_v30 = vsub.f32 %v6377_v42, %v6453_v29  ;;  %v13904_v11 = vsub.f32 %v7474_v61, %v6453_v29  ;;  %v13906_v57 = vsub.f32 %v6387_v47, %v6453_v29  ;;  %v13908_v33 = vsub.f32 %v7477_v41, %v6453_v29 }
 0xb9a   :  { %v13910_v52 = vsub.f32 %v6397_v55, %v6453_v29  ;;  %v13912_v12 = vsub.f32 %v7480_v56, %v6453_v29  ;;  %v13914_v6 = vsub.f32 %v6407_v39, %v6453_v29  ;;  %v13916_v46 = vsub.f32 %v7483_v28, %v6453_v29 }
 0xb9b   :  { %v6470_v54 = vmul.f32 %v13886_v38, %v13886_v38  ;;  %v6471_v40 = vmul.f32 %v13888_v19, %v13888_v19  ;;  %v6472_v22 = vmul.f32 %v13890_v58, %v13890_v58  ;;  %v6473_v25 = vmul.f32 %v13892_v13, %v13892_v13 }
 0xb9c   :  { %v6474_v7 = vmul.f32 %v13894_v63, %v13894_v63  ;;  %v6475_v18 = vmul.f32 %v13896_v37, %v13896_v37  ;;  %v6476_v45 = vmul.f32 %v13898_v8, %v13898_v8  ;;  %v6477_v59 = vmul.f32 %v13900_v21, %v13900_v21 }
 0xb9d   :  { %v6486_v53 = vsel %vm1205_vm3, %v6470_v54, 0.0  ;;  %v6487_v43 = vsel %vm1205_vm3, %v6471_v40, 0.0  ;;  %v6489_v60 = vsel %vm1205_vm3, %v6472_v22, 0.0  ;;  %v6491_v5 = vsel %vm1205_vm3, %v6473_v25, 0.0 }
 0xb9e   :  { %v6488_v27 = vadd.f32 %v6487_v43, %v6486_v53  ;;  %v6493_v17 = vsel %vm1205_vm3, %v6474_v7, 0.0  ;;  %v6495_v61 = vsel %vm1205_vm3, %v6475_v18, 0.0  ;;  %v6478_v1 = vmul.f32 %v13902_v30, %v13902_v30 }
 0xb9f   :  { %v6497_v36 = vsel %vm1205_vm3, %v6476_v45, 0.0  ;;  %v6479_v31 = vmul.f32 %v13904_v11, %v13904_v11  ;;  %v6499_v41 = vsel %vm1205_vm3, %v6477_v59, 0.0  ;;  %v6480_v23 = vmul.f32 %v13906_v57, %v13906_v57 }
 0xba0   :  { %v6490_v26 = vadd.f32 %v6489_v60, %v6488_v27  ;;  %v6501_v15 = vsel %vm1205_vm3, %v6478_v1, 0.0  ;;  %v6481_v16 = vmul.f32 %v13908_v33, %v13908_v33  ;;  %v6482_v48 = vmul.f32 %v13910_v52, %v13910_v52 }
 0xba1   :  { %v6503_v56 = vsel %vm1205_vm3, %v6479_v31, 0.0  ;;  %v6505_v9 = vsel %vm1205_vm3, %v6480_v23, 0.0  ;;  %v6483_v34 = vmul.f32 %v13912_v12, %v13912_v12  ;;  %v6484_v50 = vmul.f32 %v13914_v6, %v13914_v6 }
 0xba2   :  { %v6492_v49 = vadd.f32 %v6491_v5, %v6490_v26  ;;  %v6507_v28 = vsel %vm1205_vm3, %v6481_v16, 0.0  ;;  %v6509_v2 = vsel %vm1205_vm3, %v6482_v48, 0.0  ;;  %v6485_v35 = vmul.f32 %v13916_v46, %v13916_v46 }
 0xba3   :  { %v6511_v32 = vsel %vm1205_vm3, %v6483_v34, 0.0  ;;  %v6513_v51 = vsel %vm1205_vm3, %v6484_v50, 0.0 }
 0xba4   :  { %v6494_v62 = vadd.f32 %v6493_v17, %v6492_v49  ;;  %v6515_v44 = vsel %vm1205_vm3, %v6485_v35, 0.0 }
 0xba6   :  { %v6496_v42 = vadd.f32 %v6495_v61, %v6494_v62 }
 0xba8   :  { %v6498_v10 = vadd.f32 %v6497_v36, %v6496_v42 }
 0xbaa   :  { %v6500_v47 = vadd.f32 %v6499_v41, %v6498_v10 }
 0xbac   :  { %v6502_v24 = vadd.f32 %v6501_v15, %v6500_v47 }
 0xbae   :  { %v6504_v55 = vadd.f32 %v6503_v56, %v6502_v24 }
 0xbb0   :  { %v6506_v3 = vadd.f32 %v6505_v9, %v6504_v55 }
 0xbb2   :  { %v6508_v39 = vadd.f32 %v6507_v28, %v6506_v3 }
 0xbb4   :  { %v6510_v14 = vadd.f32 %v6509_v2, %v6508_v39 }
 0xbb6   :  { %v6512_v20 = vadd.f32 %v6511_v32, %v6510_v14  ;;  %v15028_v32 = vld [vmem:[#allocation58_spill] sm:$0xff] }
 0xbb8   :  { %v6514_v4 = vadd.f32 %v6513_v51, %v6512_v20  ;;  %v15029_v51 = vld [vmem:[#allocation32_spill] sm:$0xff] }
 0xbba   :  { %v6516_v0 = vadd.f32 %v6515_v44, %v6514_v4  ;;  %v15030_v44 = vld [vmem:[#allocation57_spill] sm:$0xff] }
 0xbbc   :  { %v6517_v29 = vrot.slane %v6516_v0, 4 }
 0xbbe   :  { %v6518_v54 = vadd.f32 %v6517_v29, %v6516_v0  ;;  %v15031_v29 = vld [vmem:[#allocation16_spill] sm:$0xff] }
 0xbc0   :  { %v6519_v40 = vrot.slane %v6518_v54, 2 }
 0xbc2   :  { %v6520_v22 = vadd.f32 %v6519_v40, %v6518_v54  ;;  %v15032_v40 = vld [vmem:[#allocation54_spill] sm:$0xff] }
 0xbc4   :  { %v6521_v25 = vrot.slane %v6520_v22, 1 }
 0xbc6   :  { %v6522_v53 = vadd.f32 %v6521_v25, %v6520_v22  ;;  %v15033_v25 = vld [vmem:[#allocation28_spill] sm:$0xff] }
 0xbc8   :  { %v6523_v43 = vmul.f32 0.0078125, %v6522_v53 }
 0xbca   :  { %v6524_v27 = vadd.f32 1e-12, %v6523_v43  ;;  %v15034_v43 = vld [vmem:[#allocation53_spill] sm:$0xff] }
 0xbcc   :  { %7677 = vrsqrt.f32 %v6524_v27 }
 0xbd6   :  { %v7678_v7 = vpop.eup %7677 }
 0xbd7   :  { %v6526_v60 = vmul.f32 %v7678_v7, %v13886_v38  ;;  %v6527_v26 = vmul.f32 %v7678_v7, %v13888_v19  ;;  %v6528_v18 = vmul.f32 %v7678_v7, %v13890_v58  ;;  %v6529_v5 = vmul.f32 %v7678_v7, %v13892_v13 }
 0xbd8   :  { %v6530_v49 = vmul.f32 %v7678_v7, %v13894_v63  ;;  %v6531_v45 = vmul.f32 %v7678_v7, %v13896_v37  ;;  %v6532_v17 = vmul.f32 %v7678_v7, %v13898_v8  ;;  %v6533_v62 = vmul.f32 %v7678_v7, %v13900_v21  ;;  %v7158_v8 = vld [vmem:[%s14500_s9] ss:$0 sm:$0xff] }
 0xbd9   :  { %v6534_v59 = vmul.f32 %v7678_v7, %v13902_v30  ;;  %v6535_v61 = vmul.f32 %v7678_v7, %v13904_v11  ;;  %v6536_v38 = vmul.f32 %v7678_v7, %v13906_v57  ;;  %v6537_v19 = vmul.f32 %v7678_v7, %v13908_v33  ;;  %v7159_v33 = vld [vmem:[%s14501_s10] ss:$0 sm:$0xff] }
 0xbda   :  { %v6538_v58 = vmul.f32 %v7678_v7, %v13910_v52  ;;  %v6539_v13 = vmul.f32 %v7678_v7, %v13912_v12  ;;  %v6540_v63 = vmul.f32 %v7678_v7, %v13914_v6  ;;  %v6541_v37 = vmul.f32 %v7678_v7, %v13916_v46  ;;  %v15035_v7 = vld [vmem:[#allocation12_spill] sm:$0xff] }
 0xbdb   :  { %v6549_v21 = vmul.f32 %v7158_v8, %v6526_v60  ;;  %v6550_v30 = vmul.f32 %v7158_v8, %v6527_v26  ;;  %v6551_v42 = vmul.f32 %v7158_v8, %v6528_v18  ;;  %v6552_v11 = vmul.f32 %v7158_v8, %v6529_v5  ;;  %v15036_v26 = vld [vmem:[#allocation11_spill] sm:$0xff] }
 0xbdc   :  { %v6553_v1 = vmul.f32 %v7158_v8, %v6530_v49  ;;  %v6554_v57 = vmul.f32 %v7158_v8, %v6531_v45  ;;  %v6555_v36 = vmul.f32 %v7158_v8, %v6532_v17  ;;  %v6556_v52 = vmul.f32 %v7158_v8, %v6533_v62  ;;  %v15037_v5 = vld [vmem:[#allocation31_spill] sm:$0xff]  ;;  %v15038_v45 = vld [vmem:[#allocation56_spill] sm:$0xff] }
 0xbdd   :  { %v6557_v12 = vmul.f32 %v7158_v8, %v6534_v59  ;;  %v6558_v6 = vmul.f32 %v7158_v8, %v6535_v61  ;;  %v6559_v10 = vmul.f32 %v7158_v8, %v6536_v38  ;;  %v6560_v46 = vmul.f32 %v7158_v8, %v6537_v19  ;;  %v15039_v59 = vld [vmem:[#allocation30_spill] sm:$0xff]  ;;  %v15040_v38 = vld [vmem:[#allocation55_spill] sm:$0xff] }
 0xbde   :  { %v6561_v31 = vmul.f32 %v7158_v8, %v6538_v58  ;;  %v6562_v41 = vmul.f32 %v7158_v8, %v6539_v13  ;;  %v6563_v47 = vmul.f32 %v7158_v8, %v6540_v63  ;;  %v6572_v23 = vadd.f32 %v7159_v33, %v6549_v21  ;;  %v15041_v58 = vld [vmem:[#allocation14_spill] sm:$0xff]  ;;  %v15042_v63 = vld [vmem:[#allocation13_spill] sm:$0xff] }
 0xbdf   :  { %v6573_v15 = vadd.f32 %v7159_v33, %v6550_v30  ;;  %v6574_v24 = vadd.f32 %v7159_v33, %v6551_v42  ;;  %v6575_v16 = vadd.f32 %v7159_v33, %v6552_v11  ;;  %v6576_v56 = vadd.f32 %v7159_v33, %v6553_v1 }
 0xbe0   :  { %v6577_v55 = vadd.f32 %v7159_v33, %v6554_v57  ;;  %v6578_v48 = vadd.f32 %v7159_v33, %v6555_v36  ;;  %v6579_v9 = vadd.f32 %v7159_v33, %v6556_v52  ;;  %v6580_v3 = vadd.f32 %v7159_v33, %v6557_v12 }
 0xbe1   :  { %v6581_v34 = vadd.f32 %v7159_v33, %v6558_v6  ;;  %v6582_v28 = vadd.f32 %v7159_v33, %v6559_v10  ;;  %v6564_v39 = vmul.f32 %v7158_v8, %v6541_v37  ;;  %v6583_v50 = vadd.f32 %v7159_v33, %v6560_v46 }
 0xbe2   :  { %v6584_v2 = vadd.f32 %v7159_v33, %v6561_v31  ;;  %v6585_v14 = vadd.f32 %v7159_v33, %v6562_v41  ;;  %v6586_v35 = vadd.f32 %v7159_v33, %v6563_v47  ;;  %v6588_v20 = vadd.f32 %v6572_v23, %v15028_v32  ;;  %v15058_v41 = vld [vmem:[#allocation33_spill] sm:$0xff] }
 0xbe3   :  { %v6589_v4 = vadd.f32 %v6573_v15, %v15029_v51  ;;  %v6590_v0 = vadd.f32 %v6574_v24, %v15030_v44  ;;  %v6591_v54 = vadd.f32 %v6575_v16, %v15031_v29  ;;  %v6592_v22 = vadd.f32 %v6576_v56, %v15032_v40 }
 0xbe4   :  { %v6593_v53 = vadd.f32 %v6577_v55, %v15033_v25  ;;  %v6594_v27 = vadd.f32 %v6578_v48, %v15034_v43  ;;  %v6595_v60 = vadd.f32 %v6579_v9, %v15035_v7  ;;  %v6596_v18 = vadd.f32 %v6580_v3, %v15036_v26 }
 0xbe5   :  { %v6597_v49 = vadd.f32 %v6581_v34, %v15037_v5  ;;  %v6598_v17 = vadd.f32 %v6582_v28, %v15038_v45  ;;  %v6587_v62 = vadd.f32 %v7159_v33, %v6564_v39  ;;  %v6599_v61 = vadd.f32 %v6583_v50, %v15039_v59 }
 0xbe6   :  { %v6600_v19 = vadd.f32 %v6584_v2, %v15040_v38  ;;  %v6601_v13 = vadd.f32 %v6585_v14, %v15041_v58  ;;  %v6602_v37 = vadd.f32 %v6586_v35, %v15042_v63  ;;  %v14003_v8 = vmul.f32 0.5, %v6588_v20 }
 0xbe7   :  { %v14005_v21 = vmul.f32 0.5, %v6589_v4  ;;  %v14007_v30 = vmul.f32 0.5, %v6590_v0  ;;  %v14009_v42 = vmul.f32 0.5, %v6591_v54  ;;  %v14011_v11 = vmul.f32 0.5, %v6592_v22 }
 0xbe8   :  { %15043 = vst [vmem:[#allocation24_spill] sm:$0xff] %v14003_v8  ;;  %v14013_v1 = vmul.f32 0.5, %v6593_v53  ;;  %v14015_v57 = vmul.f32 0.5, %v6594_v27  ;;  %v14017_v36 = vmul.f32 0.5, %v6595_v60  ;;  %v14019_v33 = vmul.f32 0.5, %v6596_v18 }
 0xbe9   :  { %15044 = vst [vmem:[#allocation49_spill] sm:$0xff] %v14005_v21  ;;  %15045 = vst [vmem:[#allocation48_spill] sm:$0xff] %v14007_v30  ;;  %v14021_v52 = vmul.f32 0.5, %v6597_v49  ;;  %v14023_v12 = vmul.f32 0.5, %v6598_v17  ;;  %v14025_v6 = vmul.f32 0.5, %v6599_v61  ;;  %v14027_v10 = vmul.f32 0.5, %v6600_v19 }
 0xbea   :  { %15046 = vst [vmem:[#allocation74_spill] sm:$0xff] %v14009_v42  ;;  %15047 = vst [vmem:[#allocation73_spill] sm:$0xff] %v14011_v11  ;;  %v14029_v46 = vmul.f32 0.70710677, %v6588_v20  ;;  %v14031_v31 = vmul.f32 0.70710677, %v6589_v4  ;;  %v6603_v47 = vadd.f32 %v6587_v62, %v15058_v41 }
 0xbeb   :  { %15048 = vst [vmem:[#allocation8_spill] sm:$0xff] %v14013_v1  ;;  %15049 = vst [vmem:[#allocation22_spill] sm:$0xff] %v14015_v57  ;;  %v14034_v23 = vmul.f32 0.70710677, %v6590_v0  ;;  %v14036_v15 = vmul.f32 0.70710677, %v6591_v54 }
 0xbec   :  { %15050 = vst [vmem:[#allocation47_spill] sm:$0xff] %v14017_v36  ;;  %15051 = vst [vmem:[#allocation72_spill] sm:$0xff] %v14019_v33  ;;  %v14038_v24 = vmul.f32 0.70710677, %v6592_v22  ;;  %v14040_v16 = vmul.f32 0.70710677, %v6593_v53 }
 0xbed   :  { %15052 = vst [vmem:[#allocation7_spill] sm:$0xff] %v14021_v52  ;;  %15053 = vst [vmem:[#allocation27_spill] sm:$0xff] %v14023_v12  ;;  %v14042_v56 = vmul.f32 0.70710677, %v6594_v27  ;;  %v14044_v55 = vmul.f32 0.70710677, %v6595_v60 }
 0xbee   :  { %15054 = vst [vmem:[#allocation52_spill] sm:$0xff] %v14025_v6  ;;  %15055 = vst [vmem:[#allocation26_spill] sm:$0xff] %v14027_v10  ;;  %v14046_v48 = vmul.f32 0.70710677, %v6596_v18  ;;  %v14048_v9 = vmul.f32 0.70710677, %v6597_v49 }
 0xbef   :  { %15056 = vst [vmem:[#allocation51_spill] sm:$0xff] %v14029_v46  ;;  %15057 = vst [vmem:[#allocation29_spill] sm:$0xff] %v14031_v31  ;;  %v14050_v3 = vmul.f32 0.70710677, %v6598_v17  ;;  %v14052_v34 = vmul.f32 0.70710677, %v6599_v61 }
 0xbf0   :  { %15059 = vst [vmem:[#allocation9_spill] sm:$0xff] %v14034_v23  ;;  %15060 = vst [vmem:[#allocation10_spill] sm:$0xff] %v14036_v15  ;;  %v14054_v28 = vmul.f32 0.70710677, %v6600_v19  ;;  %v14056_v39 = vmul.f32 0.70710677, %v6601_v13 }
 0xbf1   :  { %15061 = vst [vmem:[#allocation6_spill] sm:$0xff] %v14038_v24  ;;  %15062 = vst [vmem:[#allocation46_spill] sm:$0xff] %v14040_v16  ;;  %v14058_v50 = vmul.f32 0.70710677, %v6602_v37  ;;  %v14060_v2 = vmul.f32 0.70710677, %v6603_v47 }
 0xbf2   :  { %15063 = vst [vmem:[#allocation5_spill] sm:$0xff] %v14042_v56  ;;  %15064 = vst [vmem:[#allocation71_spill] sm:$0xff] %v14044_v55  ;;  %v14063_v14 = vand.u32 2147483647, %v14029_v46  ;;  %v14066_v35 = vand.u32 2147483647, %v14031_v31 }
 0xbf3   :  { %15065 = vst [vmem:[#allocation25_spill] sm:$0xff] %v14046_v48  ;;  %15066 = vst [vmem:[#allocation50_spill] sm:$0xff] %v14048_v9  ;;  %v14069_v32 = vand.u32 2147483647, %v14034_v23  ;;  %v14072_v20 = vand.u32 2147483647, %v14036_v15 }
 0xbf4   :  { %15067 = vst [vmem:[#allocation3_spill] sm:$0xff] %v14050_v3  ;;  %15068 = vst [vmem:[#allocation23_spill] sm:$0xff] %v14052_v34  ;;  %v14075_v51 = vand.u32 2147483647, %v14038_v24  ;;  %v14078_v4 = vand.u32 2147483647, %v14040_v16 }
 0xbf5   :  { %15069 = vst [vmem:[#allocation39_spill] sm:$0xff] %v14054_v28  ;;  %15070 = vst [vmem:[#allocation64_spill] sm:$0xff] %v14056_v39  ;;  %v14081_v44 = vand.u32 2147483647, %v14042_v56  ;;  %v14084_v0 = vand.u32 2147483647, %v14044_v55 }
 0xbf6   :  { %15071 = vst [vmem:[#allocation38_spill] sm:$0xff] %v14058_v50  ;;  %15072 = vst [vmem:[#allocation63_spill] sm:$0xff] %v14060_v2  ;;  %v14087_v29 = vand.u32 2147483647, %v14046_v48  ;;  %v14090_v54 = vand.u32 2147483647, %v14048_v9 }
 0xbf7   :  { %v14093_v40 = vand.u32 2147483647, %v14050_v3  ;;  %v14096_v22 = vand.u32 2147483647, %v14052_v34  ;;  %v14099_v25 = vand.u32 2147483647, %v14054_v28 }
 0xbf8   :  { %v14102_v53 = vand.u32 2147483647, %v14056_v39  ;;  %v14105_v43 = vand.u32 2147483647, %v14058_v50  ;;  %v6652_v27 = vmul.f32 0.3275911, %v14063_v14 }
 0xbf9   :  { %v14109_v7 = vand.u32 2147483647, %v14060_v2  ;;  %v6653_v60 = vmul.f32 0.3275911, %v14066_v35  ;;  %v6654_v26 = vmul.f32 0.3275911, %v14069_v32 }
 0xbfa   :  { %v6655_v18 = vmul.f32 0.3275911, %v14072_v20  ;;  %v6656_v5 = vmul.f32 0.3275911, %v14075_v51  ;;  %v6657_v49 = vmul.f32 0.3275911, %v14078_v4 }
 0xbfb   :  { %v6658_v45 = vmul.f32 0.3275911, %v14081_v44  ;;  %v6659_v17 = vmul.f32 0.3275911, %v14084_v0  ;;  %v6660_v62 = vmul.f32 0.3275911, %v14087_v29 }
 0xbfc   :  { %v14119_v59 = vmul.f32 0.5, %v6601_v13  ;;  %v6661_v61 = vmul.f32 0.3275911, %v14090_v54  ;;  %v6662_v38 = vmul.f32 0.3275911, %v14093_v40  ;;  %v6668_v19 = vadd.f32 1.0, %v6652_v27 }
 0xbfd   :  { %v14123_v58 = vmul.f32 0.5, %v6602_v37  ;;  %v6663_v63 = vmul.f32 0.3275911, %v14096_v22  ;;  %v6664_v41 = vmul.f32 0.3275911, %v14099_v25  ;;  %v6669_v10 = vadd.f32 1.0, %v6653_v60 }
 0xbfe   :  { %15073 = vst [vmem:[#allocation41_spill] sm:$0xff] %v14119_v59  ;;  %v14127_v6 = vmul.f32 0.5, %v6603_v47  ;;  %v6665_v12 = vmul.f32 0.3275911, %v14102_v53  ;;  %v6666_v52 = vmul.f32 0.3275911, %v14105_v43  ;;  %7679 = vrcp.f32 %v6668_v19 }
 0xbff   :  { %15074 = vst [vmem:[#allocation66_spill] sm:$0xff] %v14123_v58  ;;  %v6670_v13 = vadd.f32 1.0, %v6654_v26  ;;  %v6667_v59 = vmul.f32 0.3275911, %v14109_v7  ;;  %v6671_v33 = vadd.f32 1.0, %v6655_v18  ;;  %v6672_v36 = vadd.f32 1.0, %v6656_v5 }
 0xc00   :  { %15075 = vst [vmem:[#allocation40_spill] sm:$0xff] %v14127_v6  ;;  %v6673_v57 = vadd.f32 1.0, %v6657_v49  ;;  %v6674_v27 = vadd.f32 1.0, %v6658_v45  ;;  %v6675_v37 = vadd.f32 1.0, %v6659_v17  ;;  %v6676_v58 = vadd.f32 1.0, %v6660_v62 }
 0xc01   :  { %v6677_v1 = vadd.f32 1.0, %v6661_v61  ;;  %v6678_v11 = vadd.f32 1.0, %v6662_v38  ;;  %v6679_v42 = vadd.f32 1.0, %v6663_v63  ;;  %7681 = vrcp.f32 %v6669_v10 }
 0xc02   :  { %v6680_v47 = vadd.f32 1.0, %v6664_v41  ;;  %v6681_v60 = vadd.f32 1.0, %v6665_v12  ;;  %v6682_v6 = vadd.f32 1.0, %v6666_v52  ;;  %7683 = vrcp.f32 %v6670_v13 }
 0xc03   :  { %v6683_v30 = vadd.f32 1.0, %v6667_v59  ;;  %7685 = vrcp.f32 %v6671_v33  ;;  %v6860_v26 = vsub.f32 0.0, %v14063_v14  ;;  %v6861_v18 = vsub.f32 0.0, %v14066_v35 }
 0xc04   :  { %7687 = vrcp.f32 %v6672_v36  ;;  %v6862_v5 = vsub.f32 0.0, %v14069_v32  ;;  %v6863_v49 = vsub.f32 0.0, %v14072_v20  ;;  %v6864_v45 = vsub.f32 0.0, %v14075_v51 }
 0xc05   :  { %7689 = vrcp.f32 %v6673_v57  ;;  %v6865_v10 = vsub.f32 0.0, %v14078_v4  ;;  %v6866_v12 = vsub.f32 0.0, %v14081_v44  ;;  %v6867_v52 = vsub.f32 0.0, %v14084_v0 }
 0xc06   :  { %7691 = vrcp.f32 %v6674_v27  ;;  %v6868_v33 = vsub.f32 0.0, %v14087_v29  ;;  %v6869_v17 = vsub.f32 0.0, %v14090_v54  ;;  %v6870_v36 = vsub.f32 0.0, %v14093_v40 }
 0xc07   :  { %7693 = vrcp.f32 %v6675_v37  ;;  %v6871_v62 = vsub.f32 0.0, %v14096_v22  ;;  %v6872_v59 = vsub.f32 0.0, %v14099_v25  ;;  %v6876_v19 = vmul.f32 %v6860_v26, %v14063_v14 }
 0xc08   :  { %7695 = vrcp.f32 %v6676_v58  ;;  %v6877_v63 = vmul.f32 %v6861_v18, %v14066_v35  ;;  %v6878_v41 = vmul.f32 %v6862_v5, %v14069_v32  ;;  %v6879_v13 = vmul.f32 %v6863_v49, %v14072_v20  ;;  %v14152_v27 = vpop.eup %7679 }
 0xc09   :  { %7697 = vrcp.f32 %v6677_v1  ;;  %v6880_v37 = vmul.f32 %v6864_v45, %v14075_v51  ;;  %v6881_v58 = vmul.f32 %v6865_v10, %v14078_v4  ;;  %v6882_v61 = vmul.f32 %v6866_v12, %v14081_v44 }
 0xc0a   :  { %7699 = vrcp.f32 %v6678_v11  ;;  %v6716_v1 = vmul.f32 1.0614054, %v14152_v27  ;;  %v14161_v14 = vmul.f32 %v6867_v52, %v14084_v0  ;;  %v14164_v35 = vmul.f32 %v6868_v33, %v14087_v29 }
 0xc0b   :  { %v14157_v57 = vpop.eup %7681  ;;  %7701 = vrcp.f32 %v6679_v42  ;;  %v14170_v20 = vmul.f32 %v6869_v17, %v14090_v54  ;;  %v14173_v51 = vmul.f32 %v6870_v36, %v14093_v40  ;;  %v14178_v0 = vmul.f32 1.442695, %v6876_v19 }
 0xc0c   :  { %v14166_v32 = vpop.eup %7683  ;;  %7703 = vrcp.f32 %v6680_v47  ;;  %v6717_v11 = vmul.f32 1.0614054, %v14157_v57  ;;  %v6732_v44 = vadd.f32 -1.4531521, %v6716_v1  ;;  %v14183_v18 = vmul.f32 1.442695, %v6877_v63 }
 0xc0d   :  { %v14175_v42 = vpop.eup %7685  ;;  %7705 = vrcp.f32 %v6681_v60  ;;  %v6718_v4 = vmul.f32 1.0614054, %v14166_v32  ;;  %v14193_v10 = vmul.f32 %v6871_v62, %v14096_v22  ;;  %v14197_v12 = vmul.f32 1.442695, %v6879_v13 }
 0xc0e   :  { %v14180_v29 = vpop.eup %7687  ;;  %7707 = vrcp.f32 %v6682_v6  ;;  %v6719_v47 = vmul.f32 1.0614054, %v14175_v42  ;;  %v6733_v26 = vadd.f32 -1.4531521, %v6717_v11  ;;  %v6748_v60 = vmul.f32 %v14152_v27, %v6732_v44 }
 0xc0f   :  { %v14185_v54 = vpop.eup %7689  ;;  %7709 = vrcp.f32 %v6683_v30  ;;  %v6720_v40 = vmul.f32 1.0614054, %v14180_v29  ;;  %v6734_v5 = vadd.f32 -1.4531521, %v6718_v4  ;;  %v14195_v6 = vmul.f32 1.442695, %v6878_v41 }
 0xc10   :  { %v14189_v49 = vpop.eup %7691  ;;  %v6721_v45 = vmul.f32 1.0614054, %v14185_v54  ;;  %v14203_v33 = vmul.f32 %v6872_v59, %v14099_v25  ;;  %v14205_v17 = vmul.f32 1.442695, %v6880_v37  ;;  %v14207_v36 = vmul.f32 1.442695, %v6881_v58 }
 0xc11   :  { %v14199_v52 = vpop.eup %7693  ;;  %v6722_v30 = vmul.f32 1.0614054, %v14189_v49  ;;  %v6735_v62 = vadd.f32 -1.4531521, %v6719_v47  ;;  %v6749_v63 = vmul.f32 %v14157_v57, %v6733_v26  ;;  %v14213_v41 = vmul.f32 1.442695, %v6882_v61 }
 0xc12   :  { %v14209_v19 = vpop.eup %7695  ;;  %v6723_v22 = vmul.f32 1.0614054, %v14199_v52  ;;  %v6736_v11 = vadd.f32 -1.4531521, %v6720_v40  ;;  %v6750_v25 = vmul.f32 %v14166_v32, %v6734_v5  ;;  %v6764_v59 = vadd.f32 1.4214138, %v6748_v60 }
 0xc13   :  { %v14215_v13 = vpop.eup %7697  ;;  %v6724_v1 = vmul.f32 1.0614054, %v14209_v19  ;;  %v6737_v4 = vadd.f32 -1.4531521, %v6721_v45  ;;  %v6738_v44 = vadd.f32 -1.4531521, %v6722_v30  ;;  %v6751_v2 = vmul.f32 %v14175_v42, %v6735_v62 }
 0xc14   :  { %v14219_v37 = vpop.eup %7699  ;;  %v6725_v58 = vmul.f32 1.0614054, %v14215_v13  ;;  %v15076_v47 = vsub.f32 0.0, %v14102_v53  ;;  %v6739_v21 = vadd.f32 -1.4531521, %v6723_v22  ;;  %v15077_v5 = vsub.f32 0.0, %v14105_v43 }
 0xc15   :  { %v14227_v61 = vpop.eup %7701  ;;  %v6726_v38 = vmul.f32 1.0614054, %v14219_v37  ;;  %v6740_v40 = vadd.f32 -1.4531521, %v6724_v1  ;;  %v6752_v22 = vmul.f32 %v14180_v29, %v6736_v11  ;;  %v6766_v1 = vadd.f32 1.4214138, %v6750_v25 }
 0xc16   :  { %v14225_v26 = vmul.f32 %v15076_v47, %v14102_v53  ;;  %v14233_v60 = vmul.f32 %v15077_v5, %v14105_v43  ;;  %v14235_v8 = vpop.eup %7703  ;;  %v6727_v45 = vmul.f32 1.0614054, %v14227_v61  ;;  %v6741_v30 = vadd.f32 -1.4531521, %v6725_v58 }
 0xc17   :  { %v6765_v53 = vadd.f32 1.4214138, %v6749_v63  ;;  %v14239_v47 = vpop.eup %7705  ;;  %v6728_v50 = vmul.f32 1.0614054, %v14235_v8  ;;  %v6742_v39 = vadd.f32 -1.4531521, %v6726_v38  ;;  %v6753_v34 = vmul.f32 %v14185_v54, %v6737_v4 }
 0xc18   :  { %v14243_v28 = vpop.eup %7707  ;;  %v6729_v43 = vmul.f32 1.0614054, %v14239_v47  ;;  %v6743_v5 = vadd.f32 -1.4531521, %v6727_v45  ;;  %v6754_v58 = vmul.f32 %v14189_v49, %v6738_v44  ;;  %v6755_v9 = vmul.f32 %v14199_v52, %v6739_v21 }
 0xc19   :  { %v14248_v3 = vpop.eup %7709  ;;  %v6730_v62 = vmul.f32 1.0614054, %v14243_v28  ;;  %v6744_v63 = vadd.f32 -1.4531521, %v6728_v50  ;;  %v6756_v38 = vmul.f32 %v14209_v19, %v6740_v40  ;;  %v6757_v48 = vmul.f32 %v14215_v13, %v6741_v30 }
 0xc1a   :  { %v6731_v11 = vmul.f32 1.0614054, %v14248_v3  ;;  %v6745_v25 = vadd.f32 -1.4531521, %v6729_v43  ;;  %v6758_v45 = vmul.f32 %v14219_v37, %v6742_v39  ;;  %v6759_v4 = vmul.f32 %v14227_v61, %v6743_v5 }
 0xc1b   :  { %v6746_v55 = vadd.f32 -1.4531521, %v6730_v62  ;;  %v6760_v44 = vmul.f32 %v14235_v8, %v6744_v63  ;;  %v6767_v56 = vadd.f32 1.4214138, %v6751_v2  ;;  %v6768_v24 = vadd.f32 1.4214138, %v6752_v22 }
 0xc1c   :  { %v6747_v16 = vadd.f32 -1.4531521, %v6731_v11  ;;  %v6761_v50 = vmul.f32 %v14239_v47, %v6745_v25  ;;  %v6769_v21 = vadd.f32 1.4214138, %v6753_v34  ;;  %v6770_v15 = vadd.f32 1.4214138, %v6754_v58 }
 0xc1d   :  { %v6762_v40 = vmul.f32 %v14243_v28, %v6746_v55  ;;  %v6771_v23 = vadd.f32 1.4214138, %v6755_v9  ;;  %v6772_v43 = vadd.f32 1.4214138, %v6756_v38  ;;  %v6773_v31 = vadd.f32 1.4214138, %v6757_v48 }
 0xc1e   :  { %v6763_v30 = vmul.f32 %v14248_v3, %v6747_v16  ;;  %v6774_v39 = vadd.f32 1.4214138, %v6758_v45  ;;  %v6780_v62 = vmul.f32 %v14152_v27, %v6764_v59  ;;  %v6775_v5 = vadd.f32 1.4214138, %v6759_v4 }
 0xc1f   :  { %v6776_v46 = vadd.f32 1.4214138, %v6760_v44  ;;  %v6777_v63 = vadd.f32 1.4214138, %v6761_v50  ;;  %v6781_v2 = vmul.f32 %v14157_v57, %v6765_v53  ;;  %v6778_v11 = vadd.f32 1.4214138, %v6762_v40 }
 0xc20   :  { %v6779_v25 = vadd.f32 1.4214138, %v6763_v30  ;;  %v6782_v34 = vmul.f32 %v14166_v32, %v6766_v1  ;;  %v6783_v55 = vmul.f32 %v14175_v42, %v6767_v56  ;;  %v6784_v9 = vmul.f32 %v14180_v29, %v6768_v24 }
 0xc21   :  { %v6785_v22 = vmul.f32 %v14185_v54, %v6769_v21  ;;  %v6786_v16 = vmul.f32 %v14189_v49, %v6770_v15  ;;  %v6787_v48 = vmul.f32 %v14199_v52, %v6771_v23  ;;  %v6788_v59 = vmul.f32 %v14209_v19, %v6772_v43 }
 0xc22   :  { %v6789_v58 = vmul.f32 %v14215_v13, %v6773_v31  ;;  %v6790_v53 = vmul.f32 %v14219_v37, %v6774_v39  ;;  %v6796_v38 = vadd.f32 -0.28449672, %v6780_v62  ;;  %v6791_v45 = vmul.f32 %v14227_v61, %v6775_v5 }
 0xc23   :  { %v6792_v1 = vmul.f32 %v14235_v8, %v6776_v46  ;;  %v6793_v56 = vmul.f32 %v14239_v47, %v6777_v63  ;;  %v6797_v24 = vadd.f32 -0.28449672, %v6781_v2  ;;  %v6794_v4 = vmul.f32 %v14243_v28, %v6778_v11 }
 0xc24   :  { %v6795_v15 = vmul.f32 %v14248_v3, %v6779_v25  ;;  %v6798_v44 = vadd.f32 -0.28449672, %v6782_v34  ;;  %v6799_v23 = vadd.f32 -0.28449672, %v6783_v55  ;;  %v6800_v50 = vadd.f32 -0.28449672, %v6784_v9 }
 0xc25   :  { %v6801_v21 = vadd.f32 -0.28449672, %v6785_v22  ;;  %v6802_v40 = vadd.f32 -0.28449672, %v6786_v16  ;;  %7711 = vpow2.f32 %v14178_v0  ;;  %v6803_v31 = vadd.f32 -0.28449672, %v6787_v48 }
 0xc26   :  { %v6804_v43 = vadd.f32 -0.28449672, %v6788_v59  ;;  %v6805_v30 = vadd.f32 -0.28449672, %v6789_v58  ;;  %v6812_v39 = vmul.f32 %v14152_v27, %v6796_v38  ;;  %v6806_v46 = vadd.f32 -0.28449672, %v6790_v53 }
 0xc27   :  { %v6807_v62 = vadd.f32 -0.28449672, %v6791_v45  ;;  %v6808_v5 = vadd.f32 -0.28449672, %v6792_v1  ;;  %v6813_v63 = vmul.f32 %v14157_v57, %v6797_v24  ;;  %v6809_v2 = vadd.f32 -0.28449672, %v6793_v56 }
 0xc28   :  { %v6810_v11 = vadd.f32 -0.28449672, %v6794_v4  ;;  %v6811_v25 = vadd.f32 -0.28449672, %v6795_v15  ;;  %v6814_v34 = vmul.f32 %v14166_v32, %v6798_v44  ;;  %v6815_v55 = vmul.f32 %v14175_v42, %v6799_v23 }
 0xc29   :  { %v6816_v9 = vmul.f32 %v14180_v29, %v6800_v50  ;;  %v6817_v0 = vmul.f32 %v14185_v54, %v6801_v21  ;;  %v6818_v22 = vmul.f32 %v14189_v49, %v6802_v40  ;;  %v6819_v16 = vmul.f32 %v14199_v52, %v6803_v31 }
 0xc2a   :  { %v6820_v48 = vmul.f32 %v14209_v19, %v6804_v43  ;;  %v6821_v59 = vmul.f32 %v14215_v13, %v6805_v30  ;;  %7713 = vpow2.f32 %v14183_v18  ;;  %v6822_v58 = vmul.f32 %v14219_v37, %v6806_v46 }
 0xc2b   :  { %v6823_v53 = vmul.f32 %v14227_v61, %v6807_v62  ;;  %v6828_v38 = vadd.f32 0.2548296, %v6812_v39  ;;  %7715 = vpow2.f32 %v14195_v6  ;;  %v6824_v45 = vmul.f32 %v14235_v8, %v6808_v5 }
 0xc2c   :  { %v6825_v1 = vmul.f32 %v14239_v47, %v6809_v2  ;;  %v6826_v56 = vmul.f32 %v14243_v28, %v6810_v11  ;;  %v6829_v24 = vadd.f32 0.2548296, %v6813_v63  ;;  %v6827_v4 = vmul.f32 %v14248_v3, %v6811_v25 }
 0xc2d   :  { %v6830_v15 = vadd.f32 0.2548296, %v6814_v34  ;;  %v6831_v44 = vadd.f32 0.2548296, %v6815_v55  ;;  %v6832_v23 = vadd.f32 0.2548296, %v6816_v9  ;;  %v6844_v46 = vmul.f32 %v14152_v27, %v6828_v38 }
 0xc2e   :  { %v6833_v18 = vadd.f32 0.2548296, %v6817_v0  ;;  %v6834_v50 = vadd.f32 0.2548296, %v6818_v22  ;;  %v6835_v21 = vadd.f32 0.2548296, %v6819_v16  ;;  %v6845_v2 = vmul.f32 %v14157_v57, %v6829_v24 }
 0xc2f   :  { %v15078_v40 = vsub.f32 0.0, %v14109_v7  ;;  %v7712_v6 = vpop.eup %7711  ;;  %v6836_v43 = vadd.f32 0.2548296, %v6820_v48  ;;  %v6837_v30 = vadd.f32 0.2548296, %v6821_v59  ;;  %v6846_v34 = vmul.f32 %v14166_v32, %v6830_v15  ;;  %v15080_v59 = vld [vmem:[#allocation29_spill] sm:$0xff] }
 0xc30   :  { %v6838_v39 = vadd.f32 0.2548296, %v6822_v58  ;;  %v6839_v62 = vadd.f32 0.2548296, %v6823_v53  ;;  %v6840_v5 = vadd.f32 0.2548296, %v6824_v45  ;;  %v6847_v55 = vmul.f32 %v14175_v42, %v6831_v44 }
 0xc31   :  { %v6891_v31 = vmul.f32 %v15078_v40, %v14109_v7  ;;  %v6841_v63 = vadd.f32 0.2548296, %v6825_v1  ;;  %v6842_v11 = vadd.f32 0.2548296, %v6826_v56  ;;  %v6843_v25 = vadd.f32 0.2548296, %v6827_v4 }
 0xc32   :  { %v6848_v9 = vmul.f32 %v14180_v29, %v6832_v23  ;;  %v6849_v7 = vmul.f32 %v14185_v54, %v6833_v18  ;;  %7717 = vpow2.f32 %v14197_v12  ;;  %v6906_v0 = vmul.f32 1.442695, %v14161_v14  ;;  %v15084_v53 = vld [vmem:[#allocation46_spill] sm:$0xff]  ;;  %v15085_v45 = vld [vmem:[#allocation5_spill] sm:$0xff]  ;;  %v15086_v15 = vld [vmem:[#allocation71_spill] sm:$0xff] }
 0xc33   :  { %v6850_v27 = vmul.f32 %v14189_v49, %v6834_v50  ;;  %v14309_v22 = vmul.f32 %v14199_v52, %v6835_v21  ;;  %7719 = vpow2.f32 %v14205_v17  ;;  %v6908_v57 = vmul.f32 1.442695, %v14164_v35  ;;  %v15087_v21 = vld [vmem:[#allocation25_spill] sm:$0xff] }
 0xc34   :  { %v7714_v32 = vpop.eup %7713  ;;  %v14314_v42 = vmul.f32 %v14209_v19, %v6836_v43  ;;  %v14317_v29 = vmul.f32 %v14215_v13, %v6837_v30  ;;  %7721 = vpow2.f32 %v14207_v36  ;;  %v6910_v14 = vmul.f32 1.442695, %v14170_v20 }
 0xc35   :  { %v7716_v54 = vpop.eup %7715  ;;  %v14322_v49 = vmul.f32 %v14219_v37, %v6838_v39  ;;  %7723 = vpow2.f32 %v14213_v41  ;;  %v6912_v12 = vmul.f32 1.442695, %v14173_v51  ;;  %v6924_v35 = vmul.f32 %v7712_v6, %v6844_v46  ;;  %v15088_v39 = vld [vmem:[#allocation50_spill] sm:$0xff] }
 0xc36   :  { %7725 = vpow2.f32 %v6906_v0  ;;  %v6914_v52 = vmul.f32 1.442695, %v14193_v10  ;;  %v6925_v17 = vmul.f32 %v7714_v32, %v6845_v2  ;;  %v6926_v19 = vmul.f32 %v7716_v54, %v6846_v34  ;;  %v15090_v0 = vld [vmem:[#allocation23_spill] sm:$0xff] }
 0xc37   :  { %v14328_v13 = vmul.f32 %v14227_v61, %v6839_v62  ;;  %v14331_v36 = vmul.f32 %v14235_v8, %v6840_v5  ;;  %7727 = vpow2.f32 %v6908_v57  ;;  %v6916_v20 = vmul.f32 1.442695, %v14203_v33 }
 0xc38   :  { %v14335_v37 = vmul.f32 %v14239_v47, %v6841_v63  ;;  %v14338_v51 = vmul.f32 %v14243_v28, %v6842_v11  ;;  %7729 = vpow2.f32 %v6910_v14  ;;  %v6918_v10 = vmul.f32 1.442695, %v14225_v26  ;;  %v15079_v47 = vld [vmem:[#allocation51_spill] sm:$0xff]  ;;  %v15081_v28 = vld [vmem:[#allocation9_spill] sm:$0xff]  ;;  %v15082_v26 = vld [vmem:[#allocation10_spill] sm:$0xff] }
 0xc39   :  { %7731 = vpow2.f32 %v6912_v12  ;;  %v6920_v41 = vmul.f32 1.442695, %v14233_v60  ;;  %v6940_v61 = vsub.f32 1.0, %v6924_v35  ;;  %v6941_v16 = vsub.f32 1.0, %v6925_v17  ;;  %v15083_v60 = vld [vmem:[#allocation6_spill] sm:$0xff]  ;;  %v15089_v11 = vld [vmem:[#allocation3_spill] sm:$0xff] }
 0xc3a   :  { %v14343_v8 = vmul.f32 %v14248_v3, %v6843_v25  ;;  %7733 = vpow2.f32 %v6914_v52  ;;  %v6922_v48 = vmul.f32 1.442695, %v6891_v31  ;;  %v6942_v33 = vsub.f32 1.0, %v6926_v19  ;;  %v15092_v19 = vld [vmem:[#allocation64_spill] sm:$0xff] }
 0xc3b   :  { %7735 = vpow2.f32 %v6916_v20  ;;  %vm6956_vm5 = vcmp.ge.f32.partialorder %v15079_v47, 0.0  ;;  %vm6957_vm13 = vcmp.ge.f32.partialorder %v15080_v59, 0.0  ;;  %vm6958_vm4 = vcmp.ge.f32.partialorder %v15081_v28, 0.0  ;;  %v15094_v28 = vld [vmem:[#allocation63_spill] sm:$0xff] }
 0xc3c   :  { %v7718_v58 = vpop.eup %7717  ;;  %7737 = vpow2.f32 %v6918_v10  ;;  %vm6959_vm14 = vcmp.ge.f32.partialorder %v15082_v26, 0.0  ;;  %vm6960_vm15 = vcmp.ge.f32.partialorder %v15083_v60, 0.0  ;;  %vm6961_vm1 = vcmp.ge.f32.partialorder %v15084_v53, 0.0 }
 0xc3d   :  { %v7720_v3 = vpop.eup %7719  ;;  %7739 = vpow2.f32 %v6920_v41  ;;  %v6927_v38 = vmul.f32 %v7718_v58, %v6847_v55  ;;  %vm6962_vm0 = vcmp.ge.f32.partialorder %v15085_v45, 0.0  ;;  %v6972_v1 = vsub.f32 0.0, %v6940_v61 }
 0xc3e   :  { %v6973_v56 = vsub.f32 0.0, %v6941_v16  ;;  %v7722_v24 = vpop.eup %7721  ;;  %7741 = vpow2.f32 %v6922_v48  ;;  %v6928_v4 = vmul.f32 %v7720_v3, %v6848_v9  ;;  %vm6963_vm2 = vcmp.ge.f32.partialorder %v15086_v15, 0.0 }
 0xc3f   :  { %v6974_v44 = vsub.f32 0.0, %v6942_v33  ;;  %v7724_v23 = vpop.eup %7723  ;;  %v6929_v18 = vmul.f32 %v7722_v24, %v6849_v7  ;;  %v6943_v50 = vsub.f32 1.0, %v6927_v38  ;;  %vm6964_vm12 = vcmp.ge.f32.partialorder %v15087_v21, 0.0 }
 0xc40   :  { %v6988_v40 = vsel %vm6956_vm5, %v6940_v61, %v6972_v1  ;;  %v6989_v31 = vsel %vm6957_vm13, %v6941_v16, %v6973_v56  ;;  %v7726_v6 = vpop.eup %7725  ;;  %v6930_v43 = vmul.f32 %v7724_v23, %v6850_v27  ;;  %v6944_v30 = vsub.f32 1.0, %v6928_v4  ;;  %v15093_v16 = vld [vmem:[#allocation38_spill] sm:$0xff] }
 0xc41   :  { %vm6965_vm7 = vcmp.ge.f32.partialorder %v15088_v39, 0.0  ;;  %v6990_v46 = vsel %vm6958_vm4, %v6942_v33, %v6974_v44  ;;  %v14361_v62 = vadd.f32 1.0, %v6988_v40  ;;  %v7728_v5 = vpop.eup %7727  ;;  %v6931_v63 = vmul.f32 %v7726_v6, %v14309_v22  ;;  %v15091_v22 = vld [vmem:[#allocation39_spill] sm:$0xff] }
 0xc42   :  { %v6945_v2 = vsub.f32 1.0, %v6929_v18  ;;  %vm6966_vm9 = vcmp.ge.f32.partialorder %v15089_v11, 0.0  ;;  %v6975_v25 = vsub.f32 0.0, %v6943_v50  ;;  %v14365_v34 = vadd.f32 1.0, %v6989_v31  ;;  %v7730_v55 = vpop.eup %7729 }
 0xc43   :  { %v6932_v9 = vmul.f32 %v7728_v5, %v14314_v42  ;;  %v6946_v7 = vsub.f32 1.0, %v6930_v43  ;;  %vm6967_vm6 = vcmp.ge.f32.partialorder %v15090_v0, 0.0  ;;  %v6976_v27 = vsub.f32 0.0, %v6944_v30  ;;  %v7732_v32 = vpop.eup %7731 }
 0xc44   :  { %v14369_v57 = vadd.f32 1.0, %v6990_v46  ;;  %v6933_v14 = vmul.f32 %v7730_v55, %v14317_v29  ;;  %v6947_v54 = vsub.f32 1.0, %v6931_v63  ;;  %vm6968_vm8 = vcmp.ge.f32.partialorder %v15091_v22, 0.0  ;;  %v7734_v52 = vpop.eup %7733 }
 0xc45   :  { %v6977_v12 = vsub.f32 0.0, %v6945_v2  ;;  %v6991_v35 = vsel %vm6959_vm14, %v6943_v50, %v6975_v25  ;;  %v6934_v17 = vmul.f32 %v7732_v32, %v14322_v49  ;;  %v6948_v42 = vsub.f32 1.0, %v6932_v9  ;;  %v7736_v41 = vpop.eup %7735 }
 0xc46   :  { %vm6969_vm10 = vcmp.ge.f32.partialorder %v15092_v19, 0.0  ;;  %v6978_v20 = vsub.f32 0.0, %v6946_v7  ;;  %v6992_v10 = vsel %vm6960_vm15, %v6944_v30, %v6976_v27  ;;  %v6935_v29 = vmul.f32 %v7734_v52, %v14328_v13  ;;  %v7738_v47 = vpop.eup %7737  ;;  %v15097_v52 = vld [vmem:[#allocation48_spill] sm:$0xff] }
 0xc47   :  { %v6949_v61 = vsub.f32 1.0, %v6933_v14  ;;  %vm6970_vm11 = vcmp.ge.f32.partialorder %v15093_v16, 0.0  ;;  %v6979_v48 = vsub.f32 0.0, %v6947_v54  ;;  %v6993_v33 = vsel %vm6961_vm1, %v6945_v2, %v6977_v12  ;;  %v7740_v60 = vpop.eup %7739  ;;  %v15096_v12 = vld [vmem:[#allocation49_spill] sm:$0xff] }
 0xc48   :  { %v6936_v49 = vmul.f32 %v7736_v41, %v14331_v36  ;;  %v6950_v59 = vsub.f32 1.0, %v6934_v17  ;;  %vm6971_vm5 = vcmp.ge.f32.partialorder %v15094_v28, 0.0  ;;  %v6980_v58 = vsub.f32 0.0, %v6948_v42  ;;  %v7742_v53 = vpop.eup %7741  ;;  %v15100_v41 = vld [vmem:[#allocation8_spill] sm:$0xff]  ;;  %v15105_v28 = vld [vmem:[#allocation27_spill] sm:$0xff] }
 0xc49   :  { %v6994_v26 = vsel %vm6962_vm0, %v6946_v7, %v6978_v20  ;;  %v6937_v13 = vmul.f32 %v7738_v47, %v14335_v37  ;;  %v6951_v3 = vsub.f32 1.0, %v6935_v29  ;;  %v6981_v38 = vsub.f32 0.0, %v6949_v61  ;;  %v15099_v20 = vld [vmem:[#allocation73_spill] sm:$0xff]  ;;  %v15103_v47 = vld [vmem:[#allocation72_spill] sm:$0xff] }
 0xc4a   :  { %v6995_v1 = vsel %vm6963_vm2, %v6947_v54, %v6979_v48  ;;  %v6938_v56 = vmul.f32 %v7740_v60, %v14338_v51  ;;  %v6952_v24 = vsub.f32 1.0, %v6936_v49  ;;  %v6982_v36 = vsub.f32 0.0, %v6950_v59  ;;  %v15095_v54 = vld [vmem:[#allocation24_spill] sm:$0xff]  ;;  %v15102_v48 = vld [vmem:[#allocation47_spill] sm:$0xff] }
 0xc4b   :  { %v6996_v4 = vsel %vm6964_vm12, %v6948_v42, %v6980_v58  ;;  %v6939_v44 = vmul.f32 %v7742_v53, %v14343_v8  ;;  %v6953_v45 = vsub.f32 1.0, %v6937_v13  ;;  %v6983_v23 = vsub.f32 0.0, %v6951_v3  ;;  %v15098_v42 = vld [vmem:[#allocation74_spill] sm:$0xff]  ;;  %v15108_v13 = vld [vmem:[#allocation41_spill] sm:$0xff]  ;;  %v15110_v53 = vld [vmem:[#allocation40_spill] sm:$0xff] }
 0xc4c   :  { %v6997_v37 = vsel %vm6965_vm7, %v6949_v61, %v6981_v38  ;;  %v6954_v18 = vsub.f32 1.0, %v6938_v56  ;;  %v6984_v50 = vsub.f32 0.0, %v6952_v24  ;;  %v6998_v15 = vsel %vm6966_vm9, %v6950_v59, %v6982_v36  ;;  %v15101_v61 = vld [vmem:[#allocation22_spill] sm:$0xff]  ;;  %v15104_v59 = vld [vmem:[#allocation7_spill] sm:$0xff] }
 0xc4d   :  { %v7007_v40 = vadd.f32 1.0, %v6991_v35  ;;  %v6955_v31 = vsub.f32 1.0, %v6939_v44  ;;  %v6985_v51 = vsub.f32 0.0, %v6953_v45  ;;  %v6999_v6 = vsel %vm6967_vm6, %v6951_v3, %v6983_v23  ;;  %v15109_v38 = vld [vmem:[#allocation66_spill] sm:$0xff] }
 0xc4e   :  { %v7008_v21 = vadd.f32 1.0, %v6992_v10  ;;  %v6986_v43 = vsub.f32 0.0, %v6954_v18  ;;  %v7000_v8 = vsel %vm6968_vm8, %v6952_v24, %v6984_v50  ;;  %v7009_v30 = vadd.f32 1.0, %v6993_v33 }
 0xc4f   :  { %v7010_v46 = vadd.f32 1.0, %v6994_v26  ;;  %v6987_v39 = vsub.f32 0.0, %v6955_v31  ;;  %v7001_v5 = vsel %vm6969_vm10, %v6953_v45, %v6985_v51  ;;  %v7011_v63 = vadd.f32 1.0, %v6995_v1  ;;  %v15107_v26 = vld [vmem:[#allocation26_spill] sm:$0xff] }
 0xc50   :  { %v7012_v2 = vadd.f32 1.0, %v6996_v4  ;;  %v7002_v11 = vsel %vm6970_vm11, %v6954_v18, %v6986_v43  ;;  %v7013_v25 = vadd.f32 1.0, %v6997_v37  ;;  %v7014_v55 = vadd.f32 1.0, %v6998_v15 }
 0xc51   :  { %v7015_v9 = vadd.f32 1.0, %v6999_v6  ;;  %v7003_v7 = vsel %vm6971_vm5, %v6955_v31, %v6987_v39  ;;  %v7016_v0 = vadd.f32 1.0, %v7000_v8  ;;  %v7017_v27 = vadd.f32 1.0, %v7001_v5 }
 0xc52   :  { %v7018_v32 = vadd.f32 1.0, %v7002_v11  ;;  %v7019_v14 = vadd.f32 1.0, %v7003_v7  ;;  %v7020_v22 = vmul.f32 %v14361_v62, %v15095_v54  ;;  %v7021_v35 = vmul.f32 %v14365_v34, %v15096_v12  ;;  %v15106_v34 = vld [vmem:[#allocation52_spill] sm:$0xff] }
 0xc53   :  { %v7022_v17 = vmul.f32 %v14369_v57, %v15097_v52  ;;  %v7023_v19 = vmul.f32 %v7007_v40, %v15098_v42  ;;  %v7024_v10 = vmul.f32 %v7008_v21, %v15099_v20  ;;  %v7025_v29 = vmul.f32 %v7009_v30, %v15100_v41 }
 0xc54   :  { %v7026_v16 = vmul.f32 %v7010_v46, %v15101_v61  ;;  %v7027_v33 = vmul.f32 %v7011_v63, %v15102_v48  ;;  %v7028_v49 = vmul.f32 %v7012_v2, %v15103_v47  ;;  %v7029_v62 = vmul.f32 %v7013_v25, %v15104_v59  ;;  %7036 = vst.msk [vmem:[%s14502_s11] sm:$0xff] %vm1205_vm3, %v7020_v22 }
 0xc55   :  { %v7030_v58 = vmul.f32 %v7014_v55, %v15105_v28  ;;  %7037 = vst.msk [vmem:[%s14502_s11 + $0x8] sm:$0xff] %vm1205_vm3, %v7021_v35  ;;  %7038 = vst.msk [vmem:[%s14502_s11 + $0x10] sm:$0xff] %vm1205_vm3, %v7022_v17  ;;  %v7031_v57 = vmul.f32 %v7015_v9, %v15106_v34  ;;  %v7032_v60 = vmul.f32 %v7016_v0, %v15107_v26 }
 0xc56   :  { %v7033_v3 = vmul.f32 %v7017_v27, %v15108_v13  ;;  %v7034_v1 = vmul.f32 %v7018_v32, %v15109_v38  ;;  %7039 = vst.msk [vmem:[%s14502_s11 + $0x18] sm:$0xff] %vm1205_vm3, %v7023_v19  ;;  %7040 = vst.msk [vmem:[%s14502_s11 + $0x20] sm:$0xff] %vm1205_vm3, %v7024_v10  ;;  %v7035_v56 = vmul.f32 %v7019_v14, %v15110_v53 }
 0xc57   :  { %7041 = vst.msk [vmem:[%s14502_s11 + $0x28] sm:$0xff] %vm1205_vm3, %v7025_v29  ;;  %7042 = vst.msk [vmem:[%s14502_s11 + $0x30] sm:$0xff] %vm1205_vm3, %v7026_v16 }
 0xc58   :  { %7043 = vst.msk [vmem:[%s14502_s11 + $0x38] sm:$0xff] %vm1205_vm3, %v7027_v33  ;;  %7044 = vst.msk [vmem:[%s14502_s11 + $0x40] sm:$0xff] %vm1205_vm3, %v7028_v49 }
 0xc59   :  { %7045 = vst.msk [vmem:[%s14502_s11 + $0x48] sm:$0xff] %vm1205_vm3, %v7029_v62  ;;  %7046 = vst.msk [vmem:[%s14502_s11 + $0x50] sm:$0xff] %vm1205_vm3, %v7030_v58 }
 0xc5a   :  { %7047 = vst.msk [vmem:[%s14502_s11 + $0x58] sm:$0xff] %vm1205_vm3, %v7031_v57  ;;  %7048 = vst.msk [vmem:[%s14502_s11 + $0x60] sm:$0xff] %vm1205_vm3, %v7032_v60 }
 0xc5b   :  { %7049 = vst.msk [vmem:[%s14502_s11 + $0x68] sm:$0xff] %vm1205_vm3, %v7033_v3  ;;  %7050 = vst.msk [vmem:[%s14502_s11 + $0x70] sm:$0xff] %vm1205_vm3, %v7034_v1 }
 0xc5c   :  { %7051 = vst.msk [vmem:[%s14502_s11 + $0x78] sm:$0xff] %vm1205_vm3, %v7035_v56 }

</bundles_post_ra>
